<compile_context>
chip_gen: v7x
topology: tpu7x:2x2x1
jax: 0.10.0
libtpu: 0.0.40
codegen_flags: <defaults>
</compile_context>

<pallas_src>
import math
from functools import partial

import numpy as np
import jax
import jax.numpy as jnp
from jax.experimental import pallas as pl
from jax.experimental.pallas import tpu as pltpu

_BN_EPS = 1e-5
_VMEM_LIMIT = 48 * 1024 * 1024          # modest; safe on v5e/v6e and v7x (64 MiB)
BF16 = jnp.bfloat16


# ---------------------------------------------------------------------------
# Host-side helpers (constant operators, im2col for the tiny stem preamble)
# ---------------------------------------------------------------------------
def _sel_np(B, lin, lout, stride, offset):
    """(B*lout, B*lin) 0/1 matrix selecting input row stride*l + offset per batch."""
    S = np.zeros((B * lout, B * lin), np.float32)
    for b in range(B):
        for l in range(lout):
            j = stride * l + offset
            if 0 <= j < lin:
                S[b * lout + l, b * lin + j] = 1.0
    return S


def _im2col(x, k, stride, pad):
    """x: (B, L, C) -> (B, Lout, k*C); patch layout is (tap, channel)."""
    B, L, C = x.shape
    xp = jnp.pad(x, ((0, 0), (pad, pad), (0, 0)))
    lout = (L + 2 * pad - k) // stride + 1
    idx = jnp.arange(lout)[:, None] * stride + jnp.arange(k)[None, :]
    return xp[:, idx, :].reshape(B, lout, k * C)


def _full_spec(a):
    zeros = (0,) * a.ndim
    return pl.BlockSpec(a.shape, lambda i, _z=zeros: _z)


# ---------------------------------------------------------------------------
# The single fused kernel
# ---------------------------------------------------------------------------
def _fused_kernel(cfg, *args):
    logits_ref, c_ref = args[-2], args[-1]
    it = iter(args[:-2])
    take = lambda: next(it)                                   # noqa: E731
    f32 = jnp.float32

    def bdot(a, b):                                           # bf16 MXU, f32 accum
        return jnp.dot(a.astype(BF16), b.astype(BF16),
                       preferred_element_type=f32)

    # ---- stem: merged 4-branch conv (K=45) + BN + ReLU -------------------
    P = take()[...]                       # (B*L2, 640) bf16 im2col patches
    Wstem = take()[...]                   # (640, 256)  bf16, BN scale folded
    sh_stem = take()[...]                 # (1, 256)    f32 BN shift
    stem = jnp.maximum(bdot(P, Wstem) + sh_stem, 0.0)         # (B*L2, 256)

    # ---- shared conv11 as one block-diagonal 256->64 matmul --------------
    W11 = take()[...]                     # (256, 64) bf16
    c11 = bdot(stem, W11)                                     # (B*L2, 64)

    # ---- SE gate (global avg -> fc1/relu -> fc2/sigmoid) -----------------
    Wse1 = take()[...]                    # (64, 4)
    Wse2 = take()[...]                    # (4, 64)
    Pavg = take()[...]                    # (B, B*L2) per-batch averaging operator
    avg = bdot(Pavg, c11)                                     # (B, 64)
    z = jnp.maximum(bdot(avg, Wse1), 0.0)                     # (B, 4)
    g = jax.nn.sigmoid(bdot(z, Wse2))                         # (B, 64)

    # ---- MaxPool1d(3,2,1) via selection operators; gate commutes (g > 0) --
    Mpool = take()                        # ref (3, B*L3, B*L2)
    maskprev = take()[...]                # (B*L3, 1) f32, -1e30 at per-batch l=0
    Rrep = take()[...]                    # (B*L3, B)  gate row-replication
    prv = bdot(Mpool[0], c11) + maskprev
    mid = bdot(Mpool[1], c11)
    nxt = bdot(Mpool[2], c11)
    x = jnp.maximum(jnp.maximum(mid, nxt), prv) * bdot(Rrep, g)   # (B*L3, 64)

    # ---- residual BasicBlocks --------------------------------------------
    for stride, has_down in zip(cfg["strides"], cfg["downs"]):
        W1 = take()                       # ref (3, Cin, Cout)  conv1 taps
        W2 = take()                       # ref (3, Cout, Cout) conv2 taps
        sh = take()                       # ref (3, Cout) f32: bn1 / bn2 / bn_down
        T = take()                        # ref (2, R, R) stride-1 shift operators
        if stride != 1:
            S = take()                    # ref (3, Rout, Rin) stride-2 selections
            xm, x0, xp = bdot(S[0], x), bdot(S[1], x), bdot(S[2], x)
        else:
            xm, x0, xp = bdot(T[0], x), x, bdot(T[1], x)
        if has_down:
            Wd = take()                   # ref (Cin, Cout) 1x1 downsample
            ident = bdot(x0, Wd[...]) + sh[2:3, :]
        else:
            ident = x
        y1 = jnp.maximum(
            bdot(xm, W1[0]) + bdot(x0, W1[1]) + bdot(xp, W1[2]) + sh[0:1, :], 0.0)
        y2 = (bdot(bdot(T[0], y1), W2[0]) + bdot(y1, W2[1])
              + bdot(bdot(T[1], y1), W2[2]) + sh[1:2, :] + ident)
        x = jnp.maximum(y2, 0.0)

    # ---- global avg+max pool, head (Linear/hswish/Linear), dense2 --------
    Pavg4 = take()[...]                   # (B, B*fl) averaging operator
    Qmax = take()                         # ref (fl, B, B*fl) row selections
    W1a = take()[...]; W1b = take()[...]; b1 = take()[...]
    W2h = take()[...]; b2 = take()[...]
    Wd2 = take()[...]; bd2 = take()[...]

    avg4 = bdot(Pavg4, x)                                      # (B, 512)
    mx = bdot(Qmax[0], x)
    for i in range(1, Qmax.shape[0]):
        mx = jnp.maximum(mx, bdot(Qmax[i], x))
    h = bdot(avg4, W1a) + bdot(mx, W1b) + b1
    h = h * jnp.clip(h + 3.0, 0.0, 6.0) * (1.0 / 6.0)          # hswish
    logits = bdot(h, W2h) + b2
    c = jax.nn.sigmoid(bdot(logits, Wd2) + bd2)

    logits_ref[...] = logits
    c_ref[...] = c


# ---------------------------------------------------------------------------
# Parameter / operator construction (eval-mode BN: gamma=1, beta=0, mu=0, var=1)
# ---------------------------------------------------------------------------
def make_model(key, *, B, L, num_classes=18, layers=(1, 1, 1, 1)):
    assert L % 64 == 0 and L >= 64
    keys = iter(jax.random.split(key, 256))

    def conv_w(cout, cin, k):
        std = math.sqrt(2.0 / (k * k * cout))                 # matches module init
        return std * jax.random.normal(next(keys), (cout, cin, k), jnp.float32)

    def lin_w(fout, fin):
        b = 1.0 / math.sqrt(fin)
        return jax.random.uniform(next(keys), (fout, fin), jnp.float32, -b, b)

    def lin_b(fout, fin):
        b = 1.0 / math.sqrt(fin)
        return jax.random.uniform(next(keys), (fout,), jnp.float32, -b, b)

    def bn(c):                                                # eval-mode BN affine
        scale = jnp.full((c,), 1.0 / math.sqrt(1.0 + _BN_EPS), jnp.float32)
        shift = jnp.zeros((c,), jnp.float32)
        return scale, shift

    ops = []

    # -- stem: expand conv stays host-side; 4 branch convs merged into K=45 --
    expand_wf = conv_w(12, 1, 15).transpose(2, 1, 0).reshape(15, 12)

    branch_specs = ((15, 7), (31, 15), (45, 22), (9, 4))
    bw = jnp.zeros((256, 12, 45), jnp.float32)
    for i, (k, p) in enumerate(branch_specs):
        wi = conv_w(64, 12, k)
        off = 22 - p                                          # keeps tap alignment
        bw = bw.at[i * 64:(i + 1) * 64, :, off:off + k].set(wi)
    sc, sh = bn(256)
    bw = bw * sc[:, None, None]
    wstem = bw.transpose(2, 1, 0).reshape(45 * 12, 256)
    k_pad = 5 * 128                                           # lane-aligned K
    wstem = jnp.pad(wstem, ((0, k_pad - 45 * 12), (0, 0)))
    ops.append(wstem.astype(BF16))
    ops.append(sh.reshape(1, 256))

    w11 = conv_w(16, 64, 1)[:, :, 0]                          # shared conv11
    w11bd = jnp.zeros((256, 64), jnp.float32)
    for i in range(4):
        w11bd = w11bd.at[i * 64:(i + 1) * 64, i * 16:(i + 1) * 16].set(w11.T)
    ops.append(w11bd.astype(BF16))

    ops.append(lin_w(64 // 16, 64).T.astype(BF16))            # SE fc1 (64, 4)
    ops.append(lin_w(64, 64 // 16).T.astype(BF16))            # SE fc2 (4, 64)

    L2, L3 = L // 4, L // 8
    pavg = np.zeros((B, B * L2), np.float32)
    for b in range(B):
        pavg[b, b * L2:(b + 1) * L2] = 1.0 / L2
    ops.append(jnp.asarray(pavg, BF16))

    mpool = np.stack([_sel_np(B, L2, L3, 2, o) for o in (-1, 0, 1)])
    ops.append(jnp.asarray(mpool, BF16))
    maskprev = np.zeros((B * L3, 1), np.float32)
    for b in range(B):
        maskprev[b * L3, 0] = -1e30                           # -inf stand-in
    ops.append(jnp.asarray(maskprev))
    rrep = np.zeros((B * L3, B), np.float32)
    for b in range(B):
        rrep[b * L3:(b + 1) * L3, b] = 1.0
    ops.append(jnp.asarray(rrep, BF16))

    # -- residual blocks -----------------------------------------------------
    strides, downs = [], []
    inplanes, cur = 64, L3
    for planes, nblocks, stride0 in zip((64, 128, 256, 512), layers, (1, 2, 2, 2)):
        for bi in range(nblocks):
            s = stride0 if bi == 0 else 1
            lin_sp, lout_sp = cur, cur // s
            need_down = (s != 1) or (inplanes != planes)
            sc1, sh1 = bn(planes)
            sc2, sh2 = bn(planes)
            w1 = conv_w(planes, inplanes, 3) * sc1[:, None, None]
            w2 = conv_w(planes, planes, 3) * sc2[:, None, None]
            ops.append(w1.transpose(2, 1, 0).astype(BF16))    # (3, Cin, Cout)
            ops.append(w2.transpose(2, 1, 0).astype(BF16))    # (3, Cout, Cout)
            shd = jnp.zeros((planes,), jnp.float32)
            scd = None
            if need_down:
                scd, shd = bn(planes)
            ops.append(jnp.stack([sh1, sh2, shd]))            # (3, Cout) f32
            T = np.stack([_sel_np(B, lout_sp, lout_sp, 1, o) for o in (-1, 1)])
            ops.append(jnp.asarray(T, BF16))
            if s != 1:
                S = np.stack([_sel_np(B, lin_sp, lout_sp, 2, o) for o in (-1, 0, 1)])
                ops.append(jnp.asarray(S, BF16))
            if need_down:
                wd = conv_w(planes, inplanes, 1)[:, :, 0] * scd[:, None]
                ops.append(wd.T.astype(BF16))                 # (Cin, Cout)
            strides.append(s)
            downs.append(need_down)
            inplanes, cur = planes, lout_sp

    # -- head ----------------------------------------------------------------
    fl = cur                                                  # final spatial length
    pavg4 = np.zeros((B, B * fl), np.float32)
    for b in range(B):
        pavg4[b, b * fl:(b + 1) * fl] = 1.0 / fl
    ops.append(jnp.asarray(pavg4, BF16))
    qmax = np.zeros((fl, B, B * fl), np.float32)
    for i in range(fl):
        for b in range(B):
            qmax[i, b, b * fl + i] = 1.0
    ops.append(jnp.asarray(qmax, BF16))

    hw1 = lin_w(128, 512 * 2)                                 # expansion = 1
    ops.append(hw1[:, :512].T.astype(BF16))                   # avg half
    ops.append(hw1[:, 512:].T.astype(BF16))                   # max half
    ops.append(lin_b(128, 512 * 2).reshape(1, 128))
    ops.append(lin_w(num_classes, 128).T.astype(BF16))
    ops.append(lin_b(num_classes, 128).reshape(1, num_classes))
    ops.append(lin_w(1, num_classes).T.astype(BF16))
    ops.append(lin_b(1, num_classes).reshape(1, 1))

    arrays = {"expand_wf": expand_wf, "operands": ops}
    cfg = {"strides": tuple(strides), "downs": tuple(downs),
           "num_classes": num_classes, "k_pad": k_pad}
    return arrays, cfg


# ---------------------------------------------------------------------------
# Forward pass: tiny XLA preamble + ONE fused pallas_call
# ---------------------------------------------------------------------------
def forward(arrays, x, *, cfg):
    B, _, L = x.shape
    xc = jnp.transpose(x, (0, 2, 1))                          # (B, L, 1)
    p1 = _im2col(xc, 15, 2, 7)                                # (B, L/2, 15)
    h = jnp.dot(p1, arrays["expand_wf"])                      # (B, L/2, 12)
    p2 = _im2col(h, 45, 2, 22).reshape(B * (L // 4), 45 * 12) # (B*L/4, 540)
    P = jnp.pad(p2, ((0, 0), (0, cfg["k_pad"] - 45 * 12))).astype(BF16)

    operands = [P] + list(arrays["operands"])
    nc = cfg["num_classes"]
    logits, c = pl.pallas_call(
        partial(_fused_kernel, cfg),
        out_shape=(jax.ShapeDtypeStruct((B, nc), jnp.float32),
                   jax.ShapeDtypeStruct((B, 1), jnp.float32)),
        grid=(1,),
        in_specs=[_full_spec(a) for a in operands],
        out_specs=(pl.BlockSpec((B, nc), lambda i: (0, 0)),
                   pl.BlockSpec((B, 1), lambda i: (0, 0))),
        compiler_params=pltpu.CompilerParams(
            dimension_semantics=("arbitrary",),
            vmem_limit_bytes=_VMEM_LIMIT),
    )(*operands)
    return logits, c


# ---------------------------------------------------------------------------
if __name__ == "__main__":
    key = jax.random.PRNGKey(0)
    pkey, xkey = jax.random.split(key)

    B, L = 2, 256
    arrays, cfg = make_model(pkey, B=B, L=L, num_classes=18, layers=(1, 1, 1, 1))

    # (batch=2, channels=1, length=256) consistent with Conv1d(1, 12, ...)
    x = jax.random.normal(xkey, (B, 1, L), dtype=jnp.float32)

    fwd = jax.jit(partial(forward, cfg=cfg))
    logits, c = fwd(arrays, x)
    jax.block_until_ready((logits, c))

    assert logits.shape == (B, 18) and c.shape == (B, 1)
    assert bool(jnp.all(jnp.isfinite(logits))) and bool(jnp.all(jnp.isfinite(c)))
    print("KERNEL_OK")
</pallas_src>

<mosaic_0001>
module attributes {stable_mosaic.version = 11 : i64} {
  func.func @_fused_kernel(%arg0: i32, %arg1: memref<128x640xbf16, #tpu.memory_space<vmem>>, %arg2: memref<640x256xbf16, #tpu.memory_space<vmem>>, %arg3: memref<1x256xf32, #tpu.memory_space<vmem>>, %arg4: memref<256x64xbf16, #tpu.memory_space<vmem>>, %arg5: memref<64x4xbf16, #tpu.memory_space<vmem>>, %arg6: memref<4x64xbf16, #tpu.memory_space<vmem>>, %arg7: memref<2x128xbf16, #tpu.memory_space<vmem>>, %arg8: memref<3x64x128xbf16, #tpu.memory_space<vmem>>, %arg9: memref<64x1xf32, #tpu.memory_space<vmem>>, %arg10: memref<64x2xbf16, #tpu.memory_space<vmem>>, %arg11: memref<3x64x64xbf16, #tpu.memory_space<vmem>>, %arg12: memref<3x64x64xbf16, #tpu.memory_space<vmem>>, %arg13: memref<3x64xf32, #tpu.memory_space<vmem>>, %arg14: memref<2x64x64xbf16, #tpu.memory_space<vmem>>, %arg15: memref<3x64x128xbf16, #tpu.memory_space<vmem>>, %arg16: memref<3x128x128xbf16, #tpu.memory_space<vmem>>, %arg17: memref<3x128xf32, #tpu.memory_space<vmem>>, %arg18: memref<2x32x32xbf16, #tpu.memory_space<vmem>>, %arg19: memref<3x32x64xbf16, #tpu.memory_space<vmem>>, %arg20: memref<64x128xbf16, #tpu.memory_space<vmem>>, %arg21: memref<3x128x256xbf16, #tpu.memory_space<vmem>>, %arg22: memref<3x256x256xbf16, #tpu.memory_space<vmem>>, %arg23: memref<3x256xf32, #tpu.memory_space<vmem>>, %arg24: memref<2x16x16xbf16, #tpu.memory_space<vmem>>, %arg25: memref<3x16x32xbf16, #tpu.memory_space<vmem>>, %arg26: memref<128x256xbf16, #tpu.memory_space<vmem>>, %arg27: memref<3x256x512xbf16, #tpu.memory_space<vmem>>, %arg28: memref<3x512x512xbf16, #tpu.memory_space<vmem>>, %arg29: memref<3x512xf32, #tpu.memory_space<vmem>>, %arg30: memref<2x8x8xbf16, #tpu.memory_space<vmem>>, %arg31: memref<3x8x16xbf16, #tpu.memory_space<vmem>>, %arg32: memref<256x512xbf16, #tpu.memory_space<vmem>>, %arg33: memref<2x8xbf16, #tpu.memory_space<vmem>>, %arg34: memref<4x2x8xbf16, #tpu.memory_space<vmem>>, %arg35: memref<512x128xbf16, #tpu.memory_space<vmem>>, %arg36: memref<512x128xbf16, #tpu.memory_space<vmem>>, %arg37: memref<1x128xf32, #tpu.memory_space<vmem>>, %arg38: memref<128x18xbf16, #tpu.memory_space<vmem>>, %arg39: memref<1x18xf32, #tpu.memory_space<vmem>>, %arg40: memref<18x1xbf16, #tpu.memory_space<vmem>>, %arg41: memref<1x1xf32, #tpu.memory_space<vmem>>, %arg42: memref<2x18xf32, #tpu.memory_space<vmem>>, %arg43: memref<2x1xf32, #tpu.memory_space<vmem>>) attributes {dimension_semantics = [#tpu.dimension_semantics<arbitrary>], iteration_bounds = array<i64: 1>, scalar_prefetch = 0 : i64, scratch_operands = 0 : i64, tpu.core_type = #tpu.core_type<tc>, window_params = [{pipeline_mode = #tpu.pipeline_mode<synchronous>, transform_indices = @transform_0, window_bounds = array<i64: 128, 640>}, {pipeline_mode = #tpu.pipeline_mode<synchronous>, transform_indices = @transform_1, window_bounds = array<i64: 640, 256>}, {pipeline_mode = #tpu.pipeline_mode<synchronous>, transform_indices = @transform_2, window_bounds = array<i64: 1, 256>}, {pipeline_mode = #tpu.pipeline_mode<synchronous>, transform_indices = @transform_3, window_bounds = array<i64: 256, 64>}, {pipeline_mode = #tpu.pipeline_mode<synchronous>, transform_indices = @transform_4, window_bounds = array<i64: 64, 4>}, {pipeline_mode = #tpu.pipeline_mode<synchronous>, transform_indices = @transform_5, window_bounds = array<i64: 4, 64>}, {pipeline_mode = #tpu.pipeline_mode<synchronous>, transform_indices = @transform_6, window_bounds = array<i64: 2, 128>}, {pipeline_mode = #tpu.pipeline_mode<synchronous>, transform_indices = @transform_7, window_bounds = array<i64: 3, 64, 128>}, {pipeline_mode = #tpu.pipeline_mode<synchronous>, transform_indices = @transform_8, window_bounds = array<i64: 64, 1>}, {pipeline_mode = #tpu.pipeline_mode<synchronous>, transform_indices = @transform_9, window_bounds = array<i64: 64, 2>}, {pipeline_mode = #tpu.pipeline_mode<synchronous>, transform_indices = @transform_10, window_bounds = array<i64: 3, 64, 64>}, {pipeline_mode = #tpu.pipeline_mode<synchronous>, transform_indices = @transform_11, window_bounds = array<i64: 3, 64, 64>}, {pipeline_mode = #tpu.pipeline_mode<synchronous>, transform_indices = @transform_12, window_bounds = array<i64: 3, 64>}, {pipeline_mode = #tpu.pipeline_mode<synchronous>, transform_indices = @transform_13, window_bounds = array<i64: 2, 64, 64>}, {pipeline_mode = #tpu.pipeline_mode<synchronous>, transform_indices = @transform_14, window_bounds = array<i64: 3, 64, 128>}, {pipeline_mode = #tpu.pipeline_mode<synchronous>, transform_indices = @transform_15, window_bounds = array<i64: 3, 128, 128>}, {pipeline_mode = #tpu.pipeline_mode<synchronous>, transform_indices = @transform_16, window_bounds = array<i64: 3, 128>}, {pipeline_mode = #tpu.pipeline_mode<synchronous>, transform_indices = @transform_17, window_bounds = array<i64: 2, 32, 32>}, {pipeline_mode = #tpu.pipeline_mode<synchronous>, transform_indices = @transform_18, window_bounds = array<i64: 3, 32, 64>}, {pipeline_mode = #tpu.pipeline_mode<synchronous>, transform_indices = @transform_19, window_bounds = array<i64: 64, 128>}, {pipeline_mode = #tpu.pipeline_mode<synchronous>, transform_indices = @transform_20, window_bounds = array<i64: 3, 128, 256>}, {pipeline_mode = #tpu.pipeline_mode<synchronous>, transform_indices = @transform_21, window_bounds = array<i64: 3, 256, 256>}, {pipeline_mode = #tpu.pipeline_mode<synchronous>, transform_indices = @transform_22, window_bounds = array<i64: 3, 256>}, {pipeline_mode = #tpu.pipeline_mode<synchronous>, transform_indices = @transform_23, window_bounds = array<i64: 2, 16, 16>}, {pipeline_mode = #tpu.pipeline_mode<synchronous>, transform_indices = @transform_24, window_bounds = array<i64: 3, 16, 32>}, {pipeline_mode = #tpu.pipeline_mode<synchronous>, transform_indices = @transform_25, window_bounds = array<i64: 128, 256>}, {pipeline_mode = #tpu.pipeline_mode<synchronous>, transform_indices = @transform_26, window_bounds = array<i64: 3, 256, 512>}, {pipeline_mode = #tpu.pipeline_mode<synchronous>, transform_indices = @transform_27, window_bounds = array<i64: 3, 512, 512>}, {pipeline_mode = #tpu.pipeline_mode<synchronous>, transform_indices = @transform_28, window_bounds = array<i64: 3, 512>}, {pipeline_mode = #tpu.pipeline_mode<synchronous>, transform_indices = @transform_29, window_bounds = array<i64: 2, 8, 8>}, {pipeline_mode = #tpu.pipeline_mode<synchronous>, transform_indices = @transform_30, window_bounds = array<i64: 3, 8, 16>}, {pipeline_mode = #tpu.pipeline_mode<synchronous>, transform_indices = @transform_31, window_bounds = array<i64: 256, 512>}, {pipeline_mode = #tpu.pipeline_mode<synchronous>, transform_indices = @transform_32, window_bounds = array<i64: 2, 8>}, {pipeline_mode = #tpu.pipeline_mode<synchronous>, transform_indices = @transform_33, window_bounds = array<i64: 4, 2, 8>}, {pipeline_mode = #tpu.pipeline_mode<synchronous>, transform_indices = @transform_34, window_bounds = array<i64: 512, 128>}, {pipeline_mode = #tpu.pipeline_mode<synchronous>, transform_indices = @transform_35, window_bounds = array<i64: 512, 128>}, {pipeline_mode = #tpu.pipeline_mode<synchronous>, transform_indices = @transform_36, window_bounds = array<i64: 1, 128>}, {pipeline_mode = #tpu.pipeline_mode<synchronous>, transform_indices = @transform_37, window_bounds = array<i64: 128, 18>}, {pipeline_mode = #tpu.pipeline_mode<synchronous>, transform_indices = @transform_38, window_bounds = array<i64: 1, 18>}, {pipeline_mode = #tpu.pipeline_mode<synchronous>, transform_indices = @transform_39, window_bounds = array<i64: 18, 1>}, {pipeline_mode = #tpu.pipeline_mode<synchronous>, transform_indices = @transform_40, window_bounds = array<i64: 1, 1>}, {pipeline_mode = #tpu.pipeline_mode<synchronous>, transform_indices = @transform_41, window_bounds = array<i64: 2, 18>}, {pipeline_mode = #tpu.pipeline_mode<synchronous>, transform_indices = @transform_42, window_bounds = array<i64: 2, 1>}]} {
    %c0 = arith.constant 0 : index
    %c0_0 = arith.constant 0 : index
    %0 = vector.load %arg1[%c0, %c0_0] : memref<128x640xbf16, #tpu.memory_space<vmem>>, vector<128x640xbf16>
    %c0_1 = arith.constant 0 : index
    %c0_2 = arith.constant 0 : index
    %1 = vector.load %arg2[%c0_1, %c0_2] : memref<640x256xbf16, #tpu.memory_space<vmem>>, vector<640x256xbf16>
    %c0_3 = arith.constant 0 : index
    %c0_4 = arith.constant 0 : index
    %2 = vector.load %arg3[%c0_3, %c0_4] : memref<1x256xf32, #tpu.memory_space<vmem>>, vector<1x256xf32>
    %cst = arith.constant dense<0.000000e+00> : vector<128x256xf32>
    %3 = tpu.matmul %0, %1, %cst {dimension_numbers = #tpu.dot_dimension_numbers<[1], [0], [0], [1], [0, 0, 1, 1], [], []>} : vector<128x640xbf16>, vector<640x256xbf16>, vector<128x256xf32> -> vector<128x256xf32>
    %4 = vector.broadcast %2 : vector<1x256xf32> to vector<128x256xf32>
    %5 = arith.addf %3, %4 : vector<128x256xf32>
    %cst_5 = arith.constant 0.000000e+00 : f32
    %6 = vector.broadcast %cst_5 : f32 to vector<128x256xf32>
    %7 = arith.maximumf %5, %6 : vector<128x256xf32>
    %c0_6 = arith.constant 0 : index
    %c0_7 = arith.constant 0 : index
    %8 = vector.load %arg4[%c0_6, %c0_7] : memref<256x64xbf16, #tpu.memory_space<vmem>>, vector<256x64xbf16>
    %9 = arith.truncf %7 : vector<128x256xf32> to vector<128x256xbf16>
    %cst_8 = arith.constant dense<0.000000e+00> : vector<128x64xf32>
    %10 = tpu.matmul %9, %8, %cst_8 {dimension_numbers = #tpu.dot_dimension_numbers<[1], [0], [0], [1], [0, 0, 1, 1], [], []>} : vector<128x256xbf16>, vector<256x64xbf16>, vector<128x64xf32> -> vector<128x64xf32>
    %c0_9 = arith.constant 0 : index
    %c0_10 = arith.constant 0 : index
    %11 = vector.load %arg5[%c0_9, %c0_10] : memref<64x4xbf16, #tpu.memory_space<vmem>>, vector<64x4xbf16>
    %c0_11 = arith.constant 0 : index
    %c0_12 = arith.constant 0 : index
    %12 = vector.load %arg6[%c0_11, %c0_12] : memref<4x64xbf16, #tpu.memory_space<vmem>>, vector<4x64xbf16>
    %c0_13 = arith.constant 0 : index
    %c0_14 = arith.constant 0 : index
    %13 = vector.load %arg7[%c0_13, %c0_14] : memref<2x128xbf16, #tpu.memory_space<vmem>>, vector<2x128xbf16>
    %14 = arith.truncf %10 : vector<128x64xf32> to vector<128x64xbf16>
    %cst_15 = arith.constant dense<0.000000e+00> : vector<2x64xf32>
    %15 = tpu.matmul %13, %14, %cst_15 {dimension_numbers = #tpu.dot_dimension_numbers<[1], [0], [0], [1], [0, 0, 1, 1], [], []>} : vector<2x128xbf16>, vector<128x64xbf16>, vector<2x64xf32> -> vector<2x64xf32>
    %16 = arith.truncf %15 : vector<2x64xf32> to vector<2x64xbf16>
    %cst_16 = arith.constant dense<0.000000e+00> : vector<2x4xf32>
    %17 = tpu.matmul %16, %11, %cst_16 {dimension_numbers = #tpu.dot_dimension_numbers<[1], [0], [0], [1], [0, 0, 1, 1], [], []>} : vector<2x64xbf16>, vector<64x4xbf16>, vector<2x4xf32> -> vector<2x4xf32>
    %cst_17 = arith.constant 0.000000e+00 : f32
    %18 = vector.broadcast %cst_17 : f32 to vector<2x4xf32>
    %19 = arith.maximumf %17, %18 : vector<2x4xf32>
    %20 = arith.truncf %19 : vector<2x4xf32> to vector<2x4xbf16>
    %cst_18 = arith.constant dense<0.000000e+00> : vector<2x64xf32>
    %21 = tpu.matmul %20, %12, %cst_18 {dimension_numbers = #tpu.dot_dimension_numbers<[1], [0], [0], [1], [0, 0, 1, 1], [], []>} : vector<2x4xbf16>, vector<4x64xbf16>, vector<2x64xf32> -> vector<2x64xf32>
    %22 = arith.negf %21 : vector<2x64xf32>
    %23 = math.exp %22 : vector<2x64xf32>
    %cst_19 = arith.constant 1.000000e+00 : f32
    %24 = vector.broadcast %cst_19 : f32 to vector<2x64xf32>
    %25 = arith.addf %24, %23 : vector<2x64xf32>
    %26 = arith.divf %24, %25 : vector<2x64xf32>
    %c0_20 = arith.constant 0 : index
    %c0_21 = arith.constant 0 : index
    %27 = vector.load %arg9[%c0_20, %c0_21] : memref<64x1xf32, #tpu.memory_space<vmem>>, vector<64x1xf32>
    %c0_22 = arith.constant 0 : index
    %c0_23 = arith.constant 0 : index
    %28 = vector.load %arg10[%c0_22, %c0_23] : memref<64x2xbf16, #tpu.memory_space<vmem>>, vector<64x2xbf16>
    %c0_24 = arith.constant 0 : index
    %c0_25 = arith.constant 0 : index
    %c0_26 = arith.constant 0 : index
    %29 = vector.load %arg8[%c0_24, %c0_25, %c0_26] : memref<3x64x128xbf16, #tpu.memory_space<vmem>>, vector<1x64x128xbf16>
    %30 = vector.shape_cast %29 : vector<1x64x128xbf16> to vector<64x128xbf16>
    %31 = arith.truncf %10 : vector<128x64xf32> to vector<128x64xbf16>
    %cst_27 = arith.constant dense<0.000000e+00> : vector<64x64xf32>
    %32 = tpu.matmul %30, %31, %cst_27 {dimension_numbers = #tpu.dot_dimension_numbers<[1], [0], [0], [1], [0, 0, 1, 1], [], []>} : vector<64x128xbf16>, vector<128x64xbf16>, vector<64x64xf32> -> vector<64x64xf32>
    %33 = vector.broadcast %27 : vector<64x1xf32> to vector<64x64xf32>
    %34 = arith.addf %32, %33 : vector<64x64xf32>
    %c1 = arith.constant 1 : index
    %c0_28 = arith.constant 0 : index
    %c0_29 = arith.constant 0 : index
    %35 = vector.load %arg8[%c1, %c0_28, %c0_29] : memref<3x64x128xbf16, #tpu.memory_space<vmem>>, vector<1x64x128xbf16>
    %36 = vector.shape_cast %35 : vector<1x64x128xbf16> to vector<64x128xbf16>
    %37 = arith.truncf %10 : vector<128x64xf32> to vector<128x64xbf16>
    %cst_30 = arith.constant dense<0.000000e+00> : vector<64x64xf32>
    %38 = tpu.matmul %36, %37, %cst_30 {dimension_numbers = #tpu.dot_dimension_numbers<[1], [0], [0], [1], [0, 0, 1, 1], [], []>} : vector<64x128xbf16>, vector<128x64xbf16>, vector<64x64xf32> -> vector<64x64xf32>
    %c2 = arith.constant 2 : index
    %c0_31 = arith.constant 0 : index
    %c0_32 = arith.constant 0 : index
    %39 = vector.load %arg8[%c2, %c0_31, %c0_32] : memref<3x64x128xbf16, #tpu.memory_space<vmem>>, vector<1x64x128xbf16>
    %40 = vector.shape_cast %39 : vector<1x64x128xbf16> to vector<64x128xbf16>
    %41 = arith.truncf %10 : vector<128x64xf32> to vector<128x64xbf16>
    %cst_33 = arith.constant dense<0.000000e+00> : vector<64x64xf32>
    %42 = tpu.matmul %40, %41, %cst_33 {dimension_numbers = #tpu.dot_dimension_numbers<[1], [0], [0], [1], [0, 0, 1, 1], [], []>} : vector<64x128xbf16>, vector<128x64xbf16>, vector<64x64xf32> -> vector<64x64xf32>
    %43 = arith.maximumf %38, %42 : vector<64x64xf32>
    %44 = arith.maximumf %43, %34 : vector<64x64xf32>
    %45 = arith.truncf %26 : vector<2x64xf32> to vector<2x64xbf16>
    %cst_34 = arith.constant dense<0.000000e+00> : vector<64x64xf32>
    %46 = tpu.matmul %28, %45, %cst_34 {dimension_numbers = #tpu.dot_dimension_numbers<[1], [0], [0], [1], [0, 0, 1, 1], [], []>} : vector<64x2xbf16>, vector<2x64xbf16>, vector<64x64xf32> -> vector<64x64xf32>
    %47 = arith.mulf %44, %46 : vector<64x64xf32>
    %c0_35 = arith.constant 0 : index
    %c0_36 = arith.constant 0 : index
    %c0_37 = arith.constant 0 : index
    %48 = vector.load %arg14[%c0_35, %c0_36, %c0_37] : memref<2x64x64xbf16, #tpu.memory_space<vmem>>, vector<1x64x64xbf16>
    %49 = vector.shape_cast %48 : vector<1x64x64xbf16> to vector<64x64xbf16>
    %50 = arith.truncf %47 : vector<64x64xf32> to vector<64x64xbf16>
    %cst_38 = arith.constant dense<0.000000e+00> : vector<64x64xf32>
    %51 = tpu.matmul %49, %50, %cst_38 {dimension_numbers = #tpu.dot_dimension_numbers<[1], [0], [0], [1], [0, 0, 1, 1], [], []>} : vector<64x64xbf16>, vector<64x64xbf16>, vector<64x64xf32> -> vector<64x64xf32>
    %c1_39 = arith.constant 1 : index
    %c0_40 = arith.constant 0 : index
    %c0_41 = arith.constant 0 : index
    %52 = vector.load %arg14[%c1_39, %c0_40, %c0_41] : memref<2x64x64xbf16, #tpu.memory_space<vmem>>, vector<1x64x64xbf16>
    %53 = vector.shape_cast %52 : vector<1x64x64xbf16> to vector<64x64xbf16>
    %54 = arith.truncf %47 : vector<64x64xf32> to vector<64x64xbf16>
    %cst_42 = arith.constant dense<0.000000e+00> : vector<64x64xf32>
    %55 = tpu.matmul %53, %54, %cst_42 {dimension_numbers = #tpu.dot_dimension_numbers<[1], [0], [0], [1], [0, 0, 1, 1], [], []>} : vector<64x64xbf16>, vector<64x64xbf16>, vector<64x64xf32> -> vector<64x64xf32>
    %c0_43 = arith.constant 0 : index
    %c0_44 = arith.constant 0 : index
    %c0_45 = arith.constant 0 : index
    %56 = vector.load %arg11[%c0_43, %c0_44, %c0_45] : memref<3x64x64xbf16, #tpu.memory_space<vmem>>, vector<1x64x64xbf16>
    %57 = vector.shape_cast %56 : vector<1x64x64xbf16> to vector<64x64xbf16>
    %58 = arith.truncf %51 : vector<64x64xf32> to vector<64x64xbf16>
    %cst_46 = arith.constant dense<0.000000e+00> : vector<64x64xf32>
    %59 = tpu.matmul %58, %57, %cst_46 {dimension_numbers = #tpu.dot_dimension_numbers<[1], [0], [0], [1], [0, 0, 1, 1], [], []>} : vector<64x64xbf16>, vector<64x64xbf16>, vector<64x64xf32> -> vector<64x64xf32>
    %c1_47 = arith.constant 1 : index
    %c0_48 = arith.constant 0 : index
    %c0_49 = arith.constant 0 : index
    %60 = vector.load %arg11[%c1_47, %c0_48, %c0_49] : memref<3x64x64xbf16, #tpu.memory_space<vmem>>, vector<1x64x64xbf16>
    %61 = vector.shape_cast %60 : vector<1x64x64xbf16> to vector<64x64xbf16>
    %62 = arith.truncf %47 : vector<64x64xf32> to vector<64x64xbf16>
    %cst_50 = arith.constant dense<0.000000e+00> : vector<64x64xf32>
    %63 = tpu.matmul %62, %61, %cst_50 {dimension_numbers = #tpu.dot_dimension_numbers<[1], [0], [0], [1], [0, 0, 1, 1], [], []>} : vector<64x64xbf16>, vector<64x64xbf16>, vector<64x64xf32> -> vector<64x64xf32>
    %64 = arith.addf %59, %63 : vector<64x64xf32>
    %c2_51 = arith.constant 2 : index
    %c0_52 = arith.constant 0 : index
    %c0_53 = arith.constant 0 : index
    %65 = vector.load %arg11[%c2_51, %c0_52, %c0_53] : memref<3x64x64xbf16, #tpu.memory_space<vmem>>, vector<1x64x64xbf16>
    %66 = vector.shape_cast %65 : vector<1x64x64xbf16> to vector<64x64xbf16>
    %67 = arith.truncf %55 : vector<64x64xf32> to vector<64x64xbf16>
    %cst_54 = arith.constant dense<0.000000e+00> : vector<64x64xf32>
    %68 = tpu.matmul %67, %66, %cst_54 {dimension_numbers = #tpu.dot_dimension_numbers<[1], [0], [0], [1], [0, 0, 1, 1], [], []>} : vector<64x64xbf16>, vector<64x64xbf16>, vector<64x64xf32> -> vector<64x64xf32>
    %69 = arith.addf %64, %68 : vector<64x64xf32>
    %c0_55 = arith.constant 0 : index
    %c0_56 = arith.constant 0 : index
    %70 = vector.load %arg13[%c0_55, %c0_56] : memref<3x64xf32, #tpu.memory_space<vmem>>, vector<1x64xf32>
    %71 = vector.broadcast %70 : vector<1x64xf32> to vector<64x64xf32>
    %72 = arith.addf %69, %71 : vector<64x64xf32>
    %cst_57 = arith.constant 0.000000e+00 : f32
    %73 = vector.broadcast %cst_57 : f32 to vector<64x64xf32>
    %74 = arith.maximumf %72, %73 : vector<64x64xf32>
    %c0_58 = arith.constant 0 : index
    %c0_59 = arith.constant 0 : index
    %c0_60 = arith.constant 0 : index
    %75 = vector.load %arg14[%c0_58, %c0_59, %c0_60] : memref<2x64x64xbf16, #tpu.memory_space<vmem>>, vector<1x64x64xbf16>
    %76 = vector.shape_cast %75 : vector<1x64x64xbf16> to vector<64x64xbf16>
    %77 = arith.truncf %74 : vector<64x64xf32> to vector<64x64xbf16>
    %cst_61 = arith.constant dense<0.000000e+00> : vector<64x64xf32>
    %78 = tpu.matmul %76, %77, %cst_61 {dimension_numbers = #tpu.dot_dimension_numbers<[1], [0], [0], [1], [0, 0, 1, 1], [], []>} : vector<64x64xbf16>, vector<64x64xbf16>, vector<64x64xf32> -> vector<64x64xf32>
    %c0_62 = arith.constant 0 : index
    %c0_63 = arith.constant 0 : index
    %c0_64 = arith.constant 0 : index
    %79 = vector.load %arg12[%c0_62, %c0_63, %c0_64] : memref<3x64x64xbf16, #tpu.memory_space<vmem>>, vector<1x64x64xbf16>
    %80 = vector.shape_cast %79 : vector<1x64x64xbf16> to vector<64x64xbf16>
    %81 = arith.truncf %78 : vector<64x64xf32> to vector<64x64xbf16>
    %cst_65 = arith.constant dense<0.000000e+00> : vector<64x64xf32>
    %82 = tpu.matmul %81, %80, %cst_65 {dimension_numbers = #tpu.dot_dimension_numbers<[1], [0], [0], [1], [0, 0, 1, 1], [], []>} : vector<64x64xbf16>, vector<64x64xbf16>, vector<64x64xf32> -> vector<64x64xf32>
    %c1_66 = arith.constant 1 : index
    %c0_67 = arith.constant 0 : index
    %c0_68 = arith.constant 0 : index
    %83 = vector.load %arg12[%c1_66, %c0_67, %c0_68] : memref<3x64x64xbf16, #tpu.memory_space<vmem>>, vector<1x64x64xbf16>
    %84 = vector.shape_cast %83 : vector<1x64x64xbf16> to vector<64x64xbf16>
    %85 = arith.truncf %74 : vector<64x64xf32> to vector<64x64xbf16>
    %cst_69 = arith.constant dense<0.000000e+00> : vector<64x64xf32>
    %86 = tpu.matmul %85, %84, %cst_69 {dimension_numbers = #tpu.dot_dimension_numbers<[1], [0], [0], [1], [0, 0, 1, 1], [], []>} : vector<64x64xbf16>, vector<64x64xbf16>, vector<64x64xf32> -> vector<64x64xf32>
    %87 = arith.addf %82, %86 : vector<64x64xf32>
    %c1_70 = arith.constant 1 : index
    %c0_71 = arith.constant 0 : index
    %c0_72 = arith.constant 0 : index
    %88 = vector.load %arg14[%c1_70, %c0_71, %c0_72] : memref<2x64x64xbf16, #tpu.memory_space<vmem>>, vector<1x64x64xbf16>
    %89 = vector.shape_cast %88 : vector<1x64x64xbf16> to vector<64x64xbf16>
    %90 = arith.truncf %74 : vector<64x64xf32> to vector<64x64xbf16>
    %cst_73 = arith.constant dense<0.000000e+00> : vector<64x64xf32>
    %91 = tpu.matmul %89, %90, %cst_73 {dimension_numbers = #tpu.dot_dimension_numbers<[1], [0], [0], [1], [0, 0, 1, 1], [], []>} : vector<64x64xbf16>, vector<64x64xbf16>, vector<64x64xf32> -> vector<64x64xf32>
    %c2_74 = arith.constant 2 : index
    %c0_75 = arith.constant 0 : index
    %c0_76 = arith.constant 0 : index
    %92 = vector.load %arg12[%c2_74, %c0_75, %c0_76] : memref<3x64x64xbf16, #tpu.memory_space<vmem>>, vector<1x64x64xbf16>
    %93 = vector.shape_cast %92 : vector<1x64x64xbf16> to vector<64x64xbf16>
    %94 = arith.truncf %91 : vector<64x64xf32> to vector<64x64xbf16>
    %cst_77 = arith.constant dense<0.000000e+00> : vector<64x64xf32>
    %95 = tpu.matmul %94, %93, %cst_77 {dimension_numbers = #tpu.dot_dimension_numbers<[1], [0], [0], [1], [0, 0, 1, 1], [], []>} : vector<64x64xbf16>, vector<64x64xbf16>, vector<64x64xf32> -> vector<64x64xf32>
    %96 = arith.addf %87, %95 : vector<64x64xf32>
    %c1_78 = arith.constant 1 : index
    %c0_79 = arith.constant 0 : index
    %97 = vector.load %arg13[%c1_78, %c0_79] : memref<3x64xf32, #tpu.memory_space<vmem>>, vector<1x64xf32>
    %98 = vector.broadcast %97 : vector<1x64xf32> to vector<64x64xf32>
    %99 = arith.addf %96, %98 : vector<64x64xf32>
    %100 = arith.addf %99, %47 : vector<64x64xf32>
    %cst_80 = arith.constant 0.000000e+00 : f32
    %101 = vector.broadcast %cst_80 : f32 to vector<64x64xf32>
    %102 = arith.maximumf %100, %101 : vector<64x64xf32>
    %c0_81 = arith.constant 0 : index
    %c0_82 = arith.constant 0 : index
    %c0_83 = arith.constant 0 : index
    %103 = vector.load %arg19[%c0_81, %c0_82, %c0_83] : memref<3x32x64xbf16, #tpu.memory_space<vmem>>, vector<1x32x64xbf16>
    %104 = vector.shape_cast %103 : vector<1x32x64xbf16> to vector<32x64xbf16>
    %105 = arith.truncf %102 : vector<64x64xf32> to vector<64x64xbf16>
    %cst_84 = arith.constant dense<0.000000e+00> : vector<32x64xf32>
    %106 = tpu.matmul %104, %105, %cst_84 {dimension_numbers = #tpu.dot_dimension_numbers<[1], [0], [0], [1], [0, 0, 1, 1], [], []>} : vector<32x64xbf16>, vector<64x64xbf16>, vector<32x64xf32> -> vector<32x64xf32>
    %c1_85 = arith.constant 1 : index
    %c0_86 = arith.constant 0 : index
    %c0_87 = arith.constant 0 : index
    %107 = vector.load %arg19[%c1_85, %c0_86, %c0_87] : memref<3x32x64xbf16, #tpu.memory_space<vmem>>, vector<1x32x64xbf16>
    %108 = vector.shape_cast %107 : vector<1x32x64xbf16> to vector<32x64xbf16>
    %109 = arith.truncf %102 : vector<64x64xf32> to vector<64x64xbf16>
    %cst_88 = arith.constant dense<0.000000e+00> : vector<32x64xf32>
    %110 = tpu.matmul %108, %109, %cst_88 {dimension_numbers = #tpu.dot_dimension_numbers<[1], [0], [0], [1], [0, 0, 1, 1], [], []>} : vector<32x64xbf16>, vector<64x64xbf16>, vector<32x64xf32> -> vector<32x64xf32>
    %c2_89 = arith.constant 2 : index
    %c0_90 = arith.constant 0 : index
    %c0_91 = arith.constant 0 : index
    %111 = vector.load %arg19[%c2_89, %c0_90, %c0_91] : memref<3x32x64xbf16, #tpu.memory_space<vmem>>, vector<1x32x64xbf16>
    %112 = vector.shape_cast %111 : vector<1x32x64xbf16> to vector<32x64xbf16>
    %113 = arith.truncf %102 : vector<64x64xf32> to vector<64x64xbf16>
    %cst_92 = arith.constant dense<0.000000e+00> : vector<32x64xf32>
    %114 = tpu.matmul %112, %113, %cst_92 {dimension_numbers = #tpu.dot_dimension_numbers<[1], [0], [0], [1], [0, 0, 1, 1], [], []>} : vector<32x64xbf16>, vector<64x64xbf16>, vector<32x64xf32> -> vector<32x64xf32>
    %c0_93 = arith.constant 0 : index
    %c0_94 = arith.constant 0 : index
    %115 = vector.load %arg20[%c0_93, %c0_94] : memref<64x128xbf16, #tpu.memory_space<vmem>>, vector<64x128xbf16>
    %116 = arith.truncf %110 : vector<32x64xf32> to vector<32x64xbf16>
    %cst_95 = arith.constant dense<0.000000e+00> : vector<32x128xf32>
    %117 = tpu.matmul %116, %115, %cst_95 {dimension_numbers = #tpu.dot_dimension_numbers<[1], [0], [0], [1], [0, 0, 1, 1], [], []>} : vector<32x64xbf16>, vector<64x128xbf16>, vector<32x128xf32> -> vector<32x128xf32>
    %c2_96 = arith.constant 2 : index
    %c0_97 = arith.constant 0 : index
    %118 = vector.load %arg17[%c2_96, %c0_97] : memref<3x128xf32, #tpu.memory_space<vmem>>, vector<1x128xf32>
    %119 = vector.broadcast %118 : vector<1x128xf32> to vector<32x128xf32>
    %120 = arith.addf %117, %119 : vector<32x128xf32>
    %c0_98 = arith.constant 0 : index
    %c0_99 = arith.constant 0 : index
    %c0_100 = arith.constant 0 : index
    %121 = vector.load %arg15[%c0_98, %c0_99, %c0_100] : memref<3x64x128xbf16, #tpu.memory_space<vmem>>, vector<1x64x128xbf16>
    %122 = vector.shape_cast %121 : vector<1x64x128xbf16> to vector<64x128xbf16>
    %123 = arith.truncf %106 : vector<32x64xf32> to vector<32x64xbf16>
    %cst_101 = arith.constant dense<0.000000e+00> : vector<32x128xf32>
    %124 = tpu.matmul %123, %122, %cst_101 {dimension_numbers = #tpu.dot_dimension_numbers<[1], [0], [0], [1], [0, 0, 1, 1], [], []>} : vector<32x64xbf16>, vector<64x128xbf16>, vector<32x128xf32> -> vector<32x128xf32>
    %c1_102 = arith.constant 1 : index
    %c0_103 = arith.constant 0 : index
    %c0_104 = arith.constant 0 : index
    %125 = vector.load %arg15[%c1_102, %c0_103, %c0_104] : memref<3x64x128xbf16, #tpu.memory_space<vmem>>, vector<1x64x128xbf16>
    %126 = vector.shape_cast %125 : vector<1x64x128xbf16> to vector<64x128xbf16>
    %127 = arith.truncf %110 : vector<32x64xf32> to vector<32x64xbf16>
    %cst_105 = arith.constant dense<0.000000e+00> : vector<32x128xf32>
    %128 = tpu.matmul %127, %126, %cst_105 {dimension_numbers = #tpu.dot_dimension_numbers<[1], [0], [0], [1], [0, 0, 1, 1], [], []>} : vector<32x64xbf16>, vector<64x128xbf16>, vector<32x128xf32> -> vector<32x128xf32>
    %129 = arith.addf %124, %128 : vector<32x128xf32>
    %c2_106 = arith.constant 2 : index
    %c0_107 = arith.constant 0 : index
    %c0_108 = arith.constant 0 : index
    %130 = vector.load %arg15[%c2_106, %c0_107, %c0_108] : memref<3x64x128xbf16, #tpu.memory_space<vmem>>, vector<1x64x128xbf16>
    %131 = vector.shape_cast %130 : vector<1x64x128xbf16> to vector<64x128xbf16>
    %132 = arith.truncf %114 : vector<32x64xf32> to vector<32x64xbf16>
    %cst_109 = arith.constant dense<0.000000e+00> : vector<32x128xf32>
    %133 = tpu.matmul %132, %131, %cst_109 {dimension_numbers = #tpu.dot_dimension_numbers<[1], [0], [0], [1], [0, 0, 1, 1], [], []>} : vector<32x64xbf16>, vector<64x128xbf16>, vector<32x128xf32> -> vector<32x128xf32>
    %134 = arith.addf %129, %133 : vector<32x128xf32>
    %c0_110 = arith.constant 0 : index
    %c0_111 = arith.constant 0 : index
    %135 = vector.load %arg17[%c0_110, %c0_111] : memref<3x128xf32, #tpu.memory_space<vmem>>, vector<1x128xf32>
    %136 = vector.broadcast %135 : vector<1x128xf32> to vector<32x128xf32>
    %137 = arith.addf %134, %136 : vector<32x128xf32>
    %cst_112 = arith.constant 0.000000e+00 : f32
    %138 = vector.broadcast %cst_112 : f32 to vector<32x128xf32>
    %139 = arith.maximumf %137, %138 : vector<32x128xf32>
    %c0_113 = arith.constant 0 : index
    %c0_114 = arith.constant 0 : index
    %c0_115 = arith.constant 0 : index
    %140 = vector.load %arg18[%c0_113, %c0_114, %c0_115] : memref<2x32x32xbf16, #tpu.memory_space<vmem>>, vector<1x32x32xbf16>
    %141 = vector.shape_cast %140 : vector<1x32x32xbf16> to vector<32x32xbf16>
    %142 = arith.truncf %139 : vector<32x128xf32> to vector<32x128xbf16>
    %cst_116 = arith.constant dense<0.000000e+00> : vector<32x128xf32>
    %143 = tpu.matmul %141, %142, %cst_116 {dimension_numbers = #tpu.dot_dimension_numbers<[1], [0], [0], [1], [0, 0, 1, 1], [], []>} : vector<32x32xbf16>, vector<32x128xbf16>, vector<32x128xf32> -> vector<32x128xf32>
    %c0_117 = arith.constant 0 : index
    %c0_118 = arith.constant 0 : index
    %c0_119 = arith.constant 0 : index
    %144 = vector.load %arg16[%c0_117, %c0_118, %c0_119] : memref<3x128x128xbf16, #tpu.memory_space<vmem>>, vector<1x128x128xbf16>
    %145 = vector.shape_cast %144 : vector<1x128x128xbf16> to vector<128x128xbf16>
    %146 = arith.truncf %143 : vector<32x128xf32> to vector<32x128xbf16>
    %cst_120 = arith.constant dense<0.000000e+00> : vector<32x128xf32>
    %147 = tpu.matmul %146, %145, %cst_120 {dimension_numbers = #tpu.dot_dimension_numbers<[1], [0], [0], [1], [0, 0, 1, 1], [], []>} : vector<32x128xbf16>, vector<128x128xbf16>, vector<32x128xf32> -> vector<32x128xf32>
    %c1_121 = arith.constant 1 : index
    %c0_122 = arith.constant 0 : index
    %c0_123 = arith.constant 0 : index
    %148 = vector.load %arg16[%c1_121, %c0_122, %c0_123] : memref<3x128x128xbf16, #tpu.memory_space<vmem>>, vector<1x128x128xbf16>
    %149 = vector.shape_cast %148 : vector<1x128x128xbf16> to vector<128x128xbf16>
    %150 = arith.truncf %139 : vector<32x128xf32> to vector<32x128xbf16>
    %cst_124 = arith.constant dense<0.000000e+00> : vector<32x128xf32>
    %151 = tpu.matmul %150, %149, %cst_124 {dimension_numbers = #tpu.dot_dimension_numbers<[1], [0], [0], [1], [0, 0, 1, 1], [], []>} : vector<32x128xbf16>, vector<128x128xbf16>, vector<32x128xf32> -> vector<32x128xf32>
    %152 = arith.addf %147, %151 : vector<32x128xf32>
    %c1_125 = arith.constant 1 : index
    %c0_126 = arith.constant 0 : index
    %c0_127 = arith.constant 0 : index
    %153 = vector.load %arg18[%c1_125, %c0_126, %c0_127] : memref<2x32x32xbf16, #tpu.memory_space<vmem>>, vector<1x32x32xbf16>
    %154 = vector.shape_cast %153 : vector<1x32x32xbf16> to vector<32x32xbf16>
    %155 = arith.truncf %139 : vector<32x128xf32> to vector<32x128xbf16>
    %cst_128 = arith.constant dense<0.000000e+00> : vector<32x128xf32>
    %156 = tpu.matmul %154, %155, %cst_128 {dimension_numbers = #tpu.dot_dimension_numbers<[1], [0], [0], [1], [0, 0, 1, 1], [], []>} : vector<32x32xbf16>, vector<32x128xbf16>, vector<32x128xf32> -> vector<32x128xf32>
    %c2_129 = arith.constant 2 : index
    %c0_130 = arith.constant 0 : index
    %c0_131 = arith.constant 0 : index
    %157 = vector.load %arg16[%c2_129, %c0_130, %c0_131] : memref<3x128x128xbf16, #tpu.memory_space<vmem>>, vector<1x128x128xbf16>
    %158 = vector.shape_cast %157 : vector<1x128x128xbf16> to vector<128x128xbf16>
    %159 = arith.truncf %156 : vector<32x128xf32> to vector<32x128xbf16>
    %cst_132 = arith.constant dense<0.000000e+00> : vector<32x128xf32>
    %160 = tpu.matmul %159, %158, %cst_132 {dimension_numbers = #tpu.dot_dimension_numbers<[1], [0], [0], [1], [0, 0, 1, 1], [], []>} : vector<32x128xbf16>, vector<128x128xbf16>, vector<32x128xf32> -> vector<32x128xf32>
    %161 = arith.addf %152, %160 : vector<32x128xf32>
    %c1_133 = arith.constant 1 : index
    %c0_134 = arith.constant 0 : index
    %162 = vector.load %arg17[%c1_133, %c0_134] : memref<3x128xf32, #tpu.memory_space<vmem>>, vector<1x128xf32>
    %163 = vector.broadcast %162 : vector<1x128xf32> to vector<32x128xf32>
    %164 = arith.addf %161, %163 : vector<32x128xf32>
    %165 = arith.addf %164, %120 : vector<32x128xf32>
    %cst_135 = arith.constant 0.000000e+00 : f32
    %166 = vector.broadcast %cst_135 : f32 to vector<32x128xf32>
    %167 = arith.maximumf %165, %166 : vector<32x128xf32>
    %c0_136 = arith.constant 0 : index
    %c0_137 = arith.constant 0 : index
    %c0_138 = arith.constant 0 : index
    %168 = vector.load %arg25[%c0_136, %c0_137, %c0_138] : memref<3x16x32xbf16, #tpu.memory_space<vmem>>, vector<1x16x32xbf16>
    %169 = vector.shape_cast %168 : vector<1x16x32xbf16> to vector<16x32xbf16>
    %170 = arith.truncf %167 : vector<32x128xf32> to vector<32x128xbf16>
    %cst_139 = arith.constant dense<0.000000e+00> : vector<16x128xf32>
    %171 = tpu.matmul %169, %170, %cst_139 {dimension_numbers = #tpu.dot_dimension_numbers<[1], [0], [0], [1], [0, 0, 1, 1], [], []>} : vector<16x32xbf16>, vector<32x128xbf16>, vector<16x128xf32> -> vector<16x128xf32>
    %c1_140 = arith.constant 1 : index
    %c0_141 = arith.constant 0 : index
    %c0_142 = arith.constant 0 : index
    %172 = vector.load %arg25[%c1_140, %c0_141, %c0_142] : memref<3x16x32xbf16, #tpu.memory_space<vmem>>, vector<1x16x32xbf16>
    %173 = vector.shape_cast %172 : vector<1x16x32xbf16> to vector<16x32xbf16>
    %174 = arith.truncf %167 : vector<32x128xf32> to vector<32x128xbf16>
    %cst_143 = arith.constant dense<0.000000e+00> : vector<16x128xf32>
    %175 = tpu.matmul %173, %174, %cst_143 {dimension_numbers = #tpu.dot_dimension_numbers<[1], [0], [0], [1], [0, 0, 1, 1], [], []>} : vector<16x32xbf16>, vector<32x128xbf16>, vector<16x128xf32> -> vector<16x128xf32>
    %c2_144 = arith.constant 2 : index
    %c0_145 = arith.constant 0 : index
    %c0_146 = arith.constant 0 : index
    %176 = vector.load %arg25[%c2_144, %c0_145, %c0_146] : memref<3x16x32xbf16, #tpu.memory_space<vmem>>, vector<1x16x32xbf16>
    %177 = vector.shape_cast %176 : vector<1x16x32xbf16> to vector<16x32xbf16>
    %178 = arith.truncf %167 : vector<32x128xf32> to vector<32x128xbf16>
    %cst_147 = arith.constant dense<0.000000e+00> : vector<16x128xf32>
    %179 = tpu.matmul %177, %178, %cst_147 {dimension_numbers = #tpu.dot_dimension_numbers<[1], [0], [0], [1], [0, 0, 1, 1], [], []>} : vector<16x32xbf16>, vector<32x128xbf16>, vector<16x128xf32> -> vector<16x128xf32>
    %c0_148 = arith.constant 0 : index
    %c0_149 = arith.constant 0 : index
    %180 = vector.load %arg26[%c0_148, %c0_149] : memref<128x256xbf16, #tpu.memory_space<vmem>>, vector<128x256xbf16>
    %181 = arith.truncf %175 : vector<16x128xf32> to vector<16x128xbf16>
    %cst_150 = arith.constant dense<0.000000e+00> : vector<16x256xf32>
    %182 = tpu.matmul %181, %180, %cst_150 {dimension_numbers = #tpu.dot_dimension_numbers<[1], [0], [0], [1], [0, 0, 1, 1], [], []>} : vector<16x128xbf16>, vector<128x256xbf16>, vector<16x256xf32> -> vector<16x256xf32>
    %c2_151 = arith.constant 2 : index
    %c0_152 = arith.constant 0 : index
    %183 = vector.load %arg23[%c2_151, %c0_152] : memref<3x256xf32, #tpu.memory_space<vmem>>, vector<1x256xf32>
    %184 = vector.broadcast %183 : vector<1x256xf32> to vector<16x256xf32>
    %185 = arith.addf %182, %184 : vector<16x256xf32>
    %c0_153 = arith.constant 0 : index
    %c0_154 = arith.constant 0 : index
    %c0_155 = arith.constant 0 : index
    %186 = vector.load %arg21[%c0_153, %c0_154, %c0_155] : memref<3x128x256xbf16, #tpu.memory_space<vmem>>, vector<1x128x256xbf16>
    %187 = vector.shape_cast %186 : vector<1x128x256xbf16> to vector<128x256xbf16>
    %188 = arith.truncf %171 : vector<16x128xf32> to vector<16x128xbf16>
    %cst_156 = arith.constant dense<0.000000e+00> : vector<16x256xf32>
    %189 = tpu.matmul %188, %187, %cst_156 {dimension_numbers = #tpu.dot_dimension_numbers<[1], [0], [0], [1], [0, 0, 1, 1], [], []>} : vector<16x128xbf16>, vector<128x256xbf16>, vector<16x256xf32> -> vector<16x256xf32>
    %c1_157 = arith.constant 1 : index
    %c0_158 = arith.constant 0 : index
    %c0_159 = arith.constant 0 : index
    %190 = vector.load %arg21[%c1_157, %c0_158, %c0_159] : memref<3x128x256xbf16, #tpu.memory_space<vmem>>, vector<1x128x256xbf16>
    %191 = vector.shape_cast %190 : vector<1x128x256xbf16> to vector<128x256xbf16>
    %192 = arith.truncf %175 : vector<16x128xf32> to vector<16x128xbf16>
    %cst_160 = arith.constant dense<0.000000e+00> : vector<16x256xf32>
    %193 = tpu.matmul %192, %191, %cst_160 {dimension_numbers = #tpu.dot_dimension_numbers<[1], [0], [0], [1], [0, 0, 1, 1], [], []>} : vector<16x128xbf16>, vector<128x256xbf16>, vector<16x256xf32> -> vector<16x256xf32>
    %194 = arith.addf %189, %193 : vector<16x256xf32>
    %c2_161 = arith.constant 2 : index
    %c0_162 = arith.constant 0 : index
    %c0_163 = arith.constant 0 : index
    %195 = vector.load %arg21[%c2_161, %c0_162, %c0_163] : memref<3x128x256xbf16, #tpu.memory_space<vmem>>, vector<1x128x256xbf16>
    %196 = vector.shape_cast %195 : vector<1x128x256xbf16> to vector<128x256xbf16>
    %197 = arith.truncf %179 : vector<16x128xf32> to vector<16x128xbf16>
    %cst_164 = arith.constant dense<0.000000e+00> : vector<16x256xf32>
    %198 = tpu.matmul %197, %196, %cst_164 {dimension_numbers = #tpu.dot_dimension_numbers<[1], [0], [0], [1], [0, 0, 1, 1], [], []>} : vector<16x128xbf16>, vector<128x256xbf16>, vector<16x256xf32> -> vector<16x256xf32>
    %199 = arith.addf %194, %198 : vector<16x256xf32>
    %c0_165 = arith.constant 0 : index
    %c0_166 = arith.constant 0 : index
    %200 = vector.load %arg23[%c0_165, %c0_166] : memref<3x256xf32, #tpu.memory_space<vmem>>, vector<1x256xf32>
    %201 = vector.broadcast %200 : vector<1x256xf32> to vector<16x256xf32>
    %202 = arith.addf %199, %201 : vector<16x256xf32>
    %cst_167 = arith.constant 0.000000e+00 : f32
    %203 = vector.broadcast %cst_167 : f32 to vector<16x256xf32>
    %204 = arith.maximumf %202, %203 : vector<16x256xf32>
    %c0_168 = arith.constant 0 : index
    %c0_169 = arith.constant 0 : index
    %c0_170 = arith.constant 0 : index
    %205 = vector.load %arg24[%c0_168, %c0_169, %c0_170] : memref<2x16x16xbf16, #tpu.memory_space<vmem>>, vector<1x16x16xbf16>
    %206 = vector.shape_cast %205 : vector<1x16x16xbf16> to vector<16x16xbf16>
    %207 = arith.truncf %204 : vector<16x256xf32> to vector<16x256xbf16>
    %cst_171 = arith.constant dense<0.000000e+00> : vector<16x256xf32>
    %208 = tpu.matmul %206, %207, %cst_171 {dimension_numbers = #tpu.dot_dimension_numbers<[1], [0], [0], [1], [0, 0, 1, 1], [], []>} : vector<16x16xbf16>, vector<16x256xbf16>, vector<16x256xf32> -> vector<16x256xf32>
    %c0_172 = arith.constant 0 : index
    %c0_173 = arith.constant 0 : index
    %c0_174 = arith.constant 0 : index
    %209 = vector.load %arg22[%c0_172, %c0_173, %c0_174] : memref<3x256x256xbf16, #tpu.memory_space<vmem>>, vector<1x256x256xbf16>
    %210 = vector.shape_cast %209 : vector<1x256x256xbf16> to vector<256x256xbf16>
    %211 = arith.truncf %208 : vector<16x256xf32> to vector<16x256xbf16>
    %cst_175 = arith.constant dense<0.000000e+00> : vector<16x256xf32>
    %212 = tpu.matmul %211, %210, %cst_175 {dimension_numbers = #tpu.dot_dimension_numbers<[1], [0], [0], [1], [0, 0, 1, 1], [], []>} : vector<16x256xbf16>, vector<256x256xbf16>, vector<16x256xf32> -> vector<16x256xf32>
    %c1_176 = arith.constant 1 : index
    %c0_177 = arith.constant 0 : index
    %c0_178 = arith.constant 0 : index
    %213 = vector.load %arg22[%c1_176, %c0_177, %c0_178] : memref<3x256x256xbf16, #tpu.memory_space<vmem>>, vector<1x256x256xbf16>
    %214 = vector.shape_cast %213 : vector<1x256x256xbf16> to vector<256x256xbf16>
    %215 = arith.truncf %204 : vector<16x256xf32> to vector<16x256xbf16>
    %cst_179 = arith.constant dense<0.000000e+00> : vector<16x256xf32>
    %216 = tpu.matmul %215, %214, %cst_179 {dimension_numbers = #tpu.dot_dimension_numbers<[1], [0], [0], [1], [0, 0, 1, 1], [], []>} : vector<16x256xbf16>, vector<256x256xbf16>, vector<16x256xf32> -> vector<16x256xf32>
    %217 = arith.addf %212, %216 : vector<16x256xf32>
    %c1_180 = arith.constant 1 : index
    %c0_181 = arith.constant 0 : index
    %c0_182 = arith.constant 0 : index
    %218 = vector.load %arg24[%c1_180, %c0_181, %c0_182] : memref<2x16x16xbf16, #tpu.memory_space<vmem>>, vector<1x16x16xbf16>
    %219 = vector.shape_cast %218 : vector<1x16x16xbf16> to vector<16x16xbf16>
    %220 = arith.truncf %204 : vector<16x256xf32> to vector<16x256xbf16>
    %cst_183 = arith.constant dense<0.000000e+00> : vector<16x256xf32>
    %221 = tpu.matmul %219, %220, %cst_183 {dimension_numbers = #tpu.dot_dimension_numbers<[1], [0], [0], [1], [0, 0, 1, 1], [], []>} : vector<16x16xbf16>, vector<16x256xbf16>, vector<16x256xf32> -> vector<16x256xf32>
    %c2_184 = arith.constant 2 : index
    %c0_185 = arith.constant 0 : index
    %c0_186 = arith.constant 0 : index
    %222 = vector.load %arg22[%c2_184, %c0_185, %c0_186] : memref<3x256x256xbf16, #tpu.memory_space<vmem>>, vector<1x256x256xbf16>
    %223 = vector.shape_cast %222 : vector<1x256x256xbf16> to vector<256x256xbf16>
    %224 = arith.truncf %221 : vector<16x256xf32> to vector<16x256xbf16>
    %cst_187 = arith.constant dense<0.000000e+00> : vector<16x256xf32>
    %225 = tpu.matmul %224, %223, %cst_187 {dimension_numbers = #tpu.dot_dimension_numbers<[1], [0], [0], [1], [0, 0, 1, 1], [], []>} : vector<16x256xbf16>, vector<256x256xbf16>, vector<16x256xf32> -> vector<16x256xf32>
    %226 = arith.addf %217, %225 : vector<16x256xf32>
    %c1_188 = arith.constant 1 : index
    %c0_189 = arith.constant 0 : index
    %227 = vector.load %arg23[%c1_188, %c0_189] : memref<3x256xf32, #tpu.memory_space<vmem>>, vector<1x256xf32>
    %228 = vector.broadcast %227 : vector<1x256xf32> to vector<16x256xf32>
    %229 = arith.addf %226, %228 : vector<16x256xf32>
    %230 = arith.addf %229, %185 : vector<16x256xf32>
    %cst_190 = arith.constant 0.000000e+00 : f32
    %231 = vector.broadcast %cst_190 : f32 to vector<16x256xf32>
    %232 = arith.maximumf %230, %231 : vector<16x256xf32>
    %c0_191 = arith.constant 0 : index
    %c0_192 = arith.constant 0 : index
    %c0_193 = arith.constant 0 : index
    %233 = vector.load %arg31[%c0_191, %c0_192, %c0_193] : memref<3x8x16xbf16, #tpu.memory_space<vmem>>, vector<1x8x16xbf16>
    %234 = vector.shape_cast %233 : vector<1x8x16xbf16> to vector<8x16xbf16>
    %235 = arith.truncf %232 : vector<16x256xf32> to vector<16x256xbf16>
    %cst_194 = arith.constant dense<0.000000e+00> : vector<8x256xf32>
    %236 = tpu.matmul %234, %235, %cst_194 {dimension_numbers = #tpu.dot_dimension_numbers<[1], [0], [0], [1], [0, 0, 1, 1], [], []>} : vector<8x16xbf16>, vector<16x256xbf16>, vector<8x256xf32> -> vector<8x256xf32>
    %c1_195 = arith.constant 1 : index
    %c0_196 = arith.constant 0 : index
    %c0_197 = arith.constant 0 : index
    %237 = vector.load %arg31[%c1_195, %c0_196, %c0_197] : memref<3x8x16xbf16, #tpu.memory_space<vmem>>, vector<1x8x16xbf16>
    %238 = vector.shape_cast %237 : vector<1x8x16xbf16> to vector<8x16xbf16>
    %239 = arith.truncf %232 : vector<16x256xf32> to vector<16x256xbf16>
    %cst_198 = arith.constant dense<0.000000e+00> : vector<8x256xf32>
    %240 = tpu.matmul %238, %239, %cst_198 {dimension_numbers = #tpu.dot_dimension_numbers<[1], [0], [0], [1], [0, 0, 1, 1], [], []>} : vector<8x16xbf16>, vector<16x256xbf16>, vector<8x256xf32> -> vector<8x256xf32>
    %c2_199 = arith.constant 2 : index
    %c0_200 = arith.constant 0 : index
    %c0_201 = arith.constant 0 : index
    %241 = vector.load %arg31[%c2_199, %c0_200, %c0_201] : memref<3x8x16xbf16, #tpu.memory_space<vmem>>, vector<1x8x16xbf16>
    %242 = vector.shape_cast %241 : vector<1x8x16xbf16> to vector<8x16xbf16>
    %243 = arith.truncf %232 : vector<16x256xf32> to vector<16x256xbf16>
    %cst_202 = arith.constant dense<0.000000e+00> : vector<8x256xf32>
    %244 = tpu.matmul %242, %243, %cst_202 {dimension_numbers = #tpu.dot_dimension_numbers<[1], [0], [0], [1], [0, 0, 1, 1], [], []>} : vector<8x16xbf16>, vector<16x256xbf16>, vector<8x256xf32> -> vector<8x256xf32>
    %c0_203 = arith.constant 0 : index
    %c0_204 = arith.constant 0 : index
    %245 = vector.load %arg32[%c0_203, %c0_204] : memref<256x512xbf16, #tpu.memory_space<vmem>>, vector<256x512xbf16>
    %246 = arith.truncf %240 : vector<8x256xf32> to vector<8x256xbf16>
    %cst_205 = arith.constant dense<0.000000e+00> : vector<8x512xf32>
    %247 = tpu.matmul %246, %245, %cst_205 {dimension_numbers = #tpu.dot_dimension_numbers<[1], [0], [0], [1], [0, 0, 1, 1], [], []>} : vector<8x256xbf16>, vector<256x512xbf16>, vector<8x512xf32> -> vector<8x512xf32>
    %c2_206 = arith.constant 2 : index
    %c0_207 = arith.constant 0 : index
    %248 = vector.load %arg29[%c2_206, %c0_207] : memref<3x512xf32, #tpu.memory_space<vmem>>, vector<1x512xf32>
    %249 = vector.broadcast %248 : vector<1x512xf32> to vector<8x512xf32>
    %250 = arith.addf %247, %249 : vector<8x512xf32>
    %c0_208 = arith.constant 0 : index
    %c0_209 = arith.constant 0 : index
    %c0_210 = arith.constant 0 : index
    %251 = vector.load %arg27[%c0_208, %c0_209, %c0_210] : memref<3x256x512xbf16, #tpu.memory_space<vmem>>, vector<1x256x512xbf16>
    %252 = vector.shape_cast %251 : vector<1x256x512xbf16> to vector<256x512xbf16>
    %253 = arith.truncf %236 : vector<8x256xf32> to vector<8x256xbf16>
    %cst_211 = arith.constant dense<0.000000e+00> : vector<8x512xf32>
    %254 = tpu.matmul %253, %252, %cst_211 {dimension_numbers = #tpu.dot_dimension_numbers<[1], [0], [0], [1], [0, 0, 1, 1], [], []>} : vector<8x256xbf16>, vector<256x512xbf16>, vector<8x512xf32> -> vector<8x512xf32>
    %c1_212 = arith.constant 1 : index
    %c0_213 = arith.constant 0 : index
    %c0_214 = arith.constant 0 : index
    %255 = vector.load %arg27[%c1_212, %c0_213, %c0_214] : memref<3x256x512xbf16, #tpu.memory_space<vmem>>, vector<1x256x512xbf16>
    %256 = vector.shape_cast %255 : vector<1x256x512xbf16> to vector<256x512xbf16>
    %257 = arith.truncf %240 : vector<8x256xf32> to vector<8x256xbf16>
    %cst_215 = arith.constant dense<0.000000e+00> : vector<8x512xf32>
    %258 = tpu.matmul %257, %256, %cst_215 {dimension_numbers = #tpu.dot_dimension_numbers<[1], [0], [0], [1], [0, 0, 1, 1], [], []>} : vector<8x256xbf16>, vector<256x512xbf16>, vector<8x512xf32> -> vector<8x512xf32>
    %259 = arith.addf %254, %258 : vector<8x512xf32>
    %c2_216 = arith.constant 2 : index
    %c0_217 = arith.constant 0 : index
    %c0_218 = arith.constant 0 : index
    %260 = vector.load %arg27[%c2_216, %c0_217, %c0_218] : memref<3x256x512xbf16, #tpu.memory_space<vmem>>, vector<1x256x512xbf16>
    %261 = vector.shape_cast %260 : vector<1x256x512xbf16> to vector<256x512xbf16>
    %262 = arith.truncf %244 : vector<8x256xf32> to vector<8x256xbf16>
    %cst_219 = arith.constant dense<0.000000e+00> : vector<8x512xf32>
    %263 = tpu.matmul %262, %261, %cst_219 {dimension_numbers = #tpu.dot_dimension_numbers<[1], [0], [0], [1], [0, 0, 1, 1], [], []>} : vector<8x256xbf16>, vector<256x512xbf16>, vector<8x512xf32> -> vector<8x512xf32>
    %264 = arith.addf %259, %263 : vector<8x512xf32>
    %c0_220 = arith.constant 0 : index
    %c0_221 = arith.constant 0 : index
    %265 = vector.load %arg29[%c0_220, %c0_221] : memref<3x512xf32, #tpu.memory_space<vmem>>, vector<1x512xf32>
    %266 = vector.broadcast %265 : vector<1x512xf32> to vector<8x512xf32>
    %267 = arith.addf %264, %266 : vector<8x512xf32>
    %cst_222 = arith.constant 0.000000e+00 : f32
    %268 = vector.broadcast %cst_222 : f32 to vector<8x512xf32>
    %269 = arith.maximumf %267, %268 : vector<8x512xf32>
    %c0_223 = arith.constant 0 : index
    %c0_224 = arith.constant 0 : index
    %c0_225 = arith.constant 0 : index
    %270 = vector.load %arg30[%c0_223, %c0_224, %c0_225] : memref<2x8x8xbf16, #tpu.memory_space<vmem>>, vector<1x8x8xbf16>
    %271 = vector.shape_cast %270 : vector<1x8x8xbf16> to vector<8x8xbf16>
    %272 = arith.truncf %269 : vector<8x512xf32> to vector<8x512xbf16>
    %cst_226 = arith.constant dense<0.000000e+00> : vector<8x512xf32>
    %273 = tpu.matmul %271, %272, %cst_226 {dimension_numbers = #tpu.dot_dimension_numbers<[1], [0], [0], [1], [0, 0, 1, 1], [], []>} : vector<8x8xbf16>, vector<8x512xbf16>, vector<8x512xf32> -> vector<8x512xf32>
    %c0_227 = arith.constant 0 : index
    %c0_228 = arith.constant 0 : index
    %c0_229 = arith.constant 0 : index
    %274 = vector.load %arg28[%c0_227, %c0_228, %c0_229] : memref<3x512x512xbf16, #tpu.memory_space<vmem>>, vector<1x512x512xbf16>
    %275 = vector.shape_cast %274 : vector<1x512x512xbf16> to vector<512x512xbf16>
    %276 = arith.truncf %273 : vector<8x512xf32> to vector<8x512xbf16>
    %cst_230 = arith.constant dense<0.000000e+00> : vector<8x512xf32>
    %277 = tpu.matmul %276, %275, %cst_230 {dimension_numbers = #tpu.dot_dimension_numbers<[1], [0], [0], [1], [0, 0, 1, 1], [], []>} : vector<8x512xbf16>, vector<512x512xbf16>, vector<8x512xf32> -> vector<8x512xf32>
    %c1_231 = arith.constant 1 : index
    %c0_232 = arith.constant 0 : index
    %c0_233 = arith.constant 0 : index
    %278 = vector.load %arg28[%c1_231, %c0_232, %c0_233] : memref<3x512x512xbf16, #tpu.memory_space<vmem>>, vector<1x512x512xbf16>
    %279 = vector.shape_cast %278 : vector<1x512x512xbf16> to vector<512x512xbf16>
    %280 = arith.truncf %269 : vector<8x512xf32> to vector<8x512xbf16>
    %cst_234 = arith.constant dense<0.000000e+00> : vector<8x512xf32>
    %281 = tpu.matmul %280, %279, %cst_234 {dimension_numbers = #tpu.dot_dimension_numbers<[1], [0], [0], [1], [0, 0, 1, 1], [], []>} : vector<8x512xbf16>, vector<512x512xbf16>, vector<8x512xf32> -> vector<8x512xf32>
    %282 = arith.addf %277, %281 : vector<8x512xf32>
    %c1_235 = arith.constant 1 : index
    %c0_236 = arith.constant 0 : index
    %c0_237 = arith.constant 0 : index
    %283 = vector.load %arg30[%c1_235, %c0_236, %c0_237] : memref<2x8x8xbf16, #tpu.memory_space<vmem>>, vector<1x8x8xbf16>
    %284 = vector.shape_cast %283 : vector<1x8x8xbf16> to vector<8x8xbf16>
    %285 = arith.truncf %269 : vector<8x512xf32> to vector<8x512xbf16>
    %cst_238 = arith.constant dense<0.000000e+00> : vector<8x512xf32>
    %286 = tpu.matmul %284, %285, %cst_238 {dimension_numbers = #tpu.dot_dimension_numbers<[1], [0], [0], [1], [0, 0, 1, 1], [], []>} : vector<8x8xbf16>, vector<8x512xbf16>, vector<8x512xf32> -> vector<8x512xf32>
    %c2_239 = arith.constant 2 : index
    %c0_240 = arith.constant 0 : index
    %c0_241 = arith.constant 0 : index
    %287 = vector.load %arg28[%c2_239, %c0_240, %c0_241] : memref<3x512x512xbf16, #tpu.memory_space<vmem>>, vector<1x512x512xbf16>
    %288 = vector.shape_cast %287 : vector<1x512x512xbf16> to vector<512x512xbf16>
    %289 = arith.truncf %286 : vector<8x512xf32> to vector<8x512xbf16>
    %cst_242 = arith.constant dense<0.000000e+00> : vector<8x512xf32>
    %290 = tpu.matmul %289, %288, %cst_242 {dimension_numbers = #tpu.dot_dimension_numbers<[1], [0], [0], [1], [0, 0, 1, 1], [], []>} : vector<8x512xbf16>, vector<512x512xbf16>, vector<8x512xf32> -> vector<8x512xf32>
    %291 = arith.addf %282, %290 : vector<8x512xf32>
    %c1_243 = arith.constant 1 : index
    %c0_244 = arith.constant 0 : index
    %292 = vector.load %arg29[%c1_243, %c0_244] : memref<3x512xf32, #tpu.memory_space<vmem>>, vector<1x512xf32>
    %293 = vector.broadcast %292 : vector<1x512xf32> to vector<8x512xf32>
    %294 = arith.addf %291, %293 : vector<8x512xf32>
    %295 = arith.addf %294, %250 : vector<8x512xf32>
    %cst_245 = arith.constant 0.000000e+00 : f32
    %296 = vector.broadcast %cst_245 : f32 to vector<8x512xf32>
    %297 = arith.maximumf %295, %296 : vector<8x512xf32>
    %c0_246 = arith.constant 0 : index
    %c0_247 = arith.constant 0 : index
    %298 = vector.load %arg33[%c0_246, %c0_247] : memref<2x8xbf16, #tpu.memory_space<vmem>>, vector<2x8xbf16>
    %c0_248 = arith.constant 0 : index
    %c0_249 = arith.constant 0 : index
    %299 = vector.load %arg35[%c0_248, %c0_249] : memref<512x128xbf16, #tpu.memory_space<vmem>>, vector<512x128xbf16>
    %c0_250 = arith.constant 0 : index
    %c0_251 = arith.constant 0 : index
    %300 = vector.load %arg36[%c0_250, %c0_251] : memref<512x128xbf16, #tpu.memory_space<vmem>>, vector<512x128xbf16>
    %c0_252 = arith.constant 0 : index
    %c0_253 = arith.constant 0 : index
    %301 = vector.load %arg37[%c0_252, %c0_253] : memref<1x128xf32, #tpu.memory_space<vmem>>, vector<1x128xf32>
    %c0_254 = arith.constant 0 : index
    %c0_255 = arith.constant 0 : index
    %302 = vector.load %arg38[%c0_254, %c0_255] : memref<128x18xbf16, #tpu.memory_space<vmem>>, vector<128x18xbf16>
    %c0_256 = arith.constant 0 : index
    %c0_257 = arith.constant 0 : index
    %303 = vector.load %arg39[%c0_256, %c0_257] : memref<1x18xf32, #tpu.memory_space<vmem>>, vector<1x18xf32>
    %c0_258 = arith.constant 0 : index
    %c0_259 = arith.constant 0 : index
    %304 = vector.load %arg40[%c0_258, %c0_259] : memref<18x1xbf16, #tpu.memory_space<vmem>>, vector<18x1xbf16>
    %c0_260 = arith.constant 0 : index
    %c0_261 = arith.constant 0 : index
    %305 = vector.load %arg41[%c0_260, %c0_261] : memref<1x1xf32, #tpu.memory_space<vmem>>, vector<1x1xf32>
    %306 = arith.truncf %297 : vector<8x512xf32> to vector<8x512xbf16>
    %cst_262 = arith.constant dense<0.000000e+00> : vector<2x512xf32>
    %307 = tpu.matmul %298, %306, %cst_262 {dimension_numbers = #tpu.dot_dimension_numbers<[1], [0], [0], [1], [0, 0, 1, 1], [], []>} : vector<2x8xbf16>, vector<8x512xbf16>, vector<2x512xf32> -> vector<2x512xf32>
    %c0_263 = arith.constant 0 : index
    %c0_264 = arith.constant 0 : index
    %c0_265 = arith.constant 0 : index
    %308 = vector.load %arg34[%c0_263, %c0_264, %c0_265] : memref<4x2x8xbf16, #tpu.memory_space<vmem>>, vector<1x2x8xbf16>
    %309 = vector.shape_cast %308 : vector<1x2x8xbf16> to vector<2x8xbf16>
    %310 = arith.truncf %297 : vector<8x512xf32> to vector<8x512xbf16>
    %cst_266 = arith.constant dense<0.000000e+00> : vector<2x512xf32>
    %311 = tpu.matmul %309, %310, %cst_266 {dimension_numbers = #tpu.dot_dimension_numbers<[1], [0], [0], [1], [0, 0, 1, 1], [], []>} : vector<2x8xbf16>, vector<8x512xbf16>, vector<2x512xf32> -> vector<2x512xf32>
    %c1_267 = arith.constant 1 : index
    %c0_268 = arith.constant 0 : index
    %c0_269 = arith.constant 0 : index
    %312 = vector.load %arg34[%c1_267, %c0_268, %c0_269] : memref<4x2x8xbf16, #tpu.memory_space<vmem>>, vector<1x2x8xbf16>
    %313 = vector.shape_cast %312 : vector<1x2x8xbf16> to vector<2x8xbf16>
    %314 = arith.truncf %297 : vector<8x512xf32> to vector<8x512xbf16>
    %cst_270 = arith.constant dense<0.000000e+00> : vector<2x512xf32>
    %315 = tpu.matmul %313, %314, %cst_270 {dimension_numbers = #tpu.dot_dimension_numbers<[1], [0], [0], [1], [0, 0, 1, 1], [], []>} : vector<2x8xbf16>, vector<8x512xbf16>, vector<2x512xf32> -> vector<2x512xf32>
    %316 = arith.maximumf %311, %315 : vector<2x512xf32>
    %c2_271 = arith.constant 2 : index
    %c0_272 = arith.constant 0 : index
    %c0_273 = arith.constant 0 : index
    %317 = vector.load %arg34[%c2_271, %c0_272, %c0_273] : memref<4x2x8xbf16, #tpu.memory_space<vmem>>, vector<1x2x8xbf16>
    %318 = vector.shape_cast %317 : vector<1x2x8xbf16> to vector<2x8xbf16>
    %319 = arith.truncf %297 : vector<8x512xf32> to vector<8x512xbf16>
    %cst_274 = arith.constant dense<0.000000e+00> : vector<2x512xf32>
    %320 = tpu.matmul %318, %319, %cst_274 {dimension_numbers = #tpu.dot_dimension_numbers<[1], [0], [0], [1], [0, 0, 1, 1], [], []>} : vector<2x8xbf16>, vector<8x512xbf16>, vector<2x512xf32> -> vector<2x512xf32>
    %321 = arith.maximumf %316, %320 : vector<2x512xf32>
    %c3 = arith.constant 3 : index
    %c0_275 = arith.constant 0 : index
    %c0_276 = arith.constant 0 : index
    %322 = vector.load %arg34[%c3, %c0_275, %c0_276] : memref<4x2x8xbf16, #tpu.memory_space<vmem>>, vector<1x2x8xbf16>
    %323 = vector.shape_cast %322 : vector<1x2x8xbf16> to vector<2x8xbf16>
    %324 = arith.truncf %297 : vector<8x512xf32> to vector<8x512xbf16>
    %cst_277 = arith.constant dense<0.000000e+00> : vector<2x512xf32>
    %325 = tpu.matmul %323, %324, %cst_277 {dimension_numbers = #tpu.dot_dimension_numbers<[1], [0], [0], [1], [0, 0, 1, 1], [], []>} : vector<2x8xbf16>, vector<8x512xbf16>, vector<2x512xf32> -> vector<2x512xf32>
    %326 = arith.maximumf %321, %325 : vector<2x512xf32>
    %327 = arith.truncf %307 : vector<2x512xf32> to vector<2x512xbf16>
    %cst_278 = arith.constant dense<0.000000e+00> : vector<2x128xf32>
    %328 = tpu.matmul %327, %299, %cst_278 {dimension_numbers = #tpu.dot_dimension_numbers<[1], [0], [0], [1], [0, 0, 1, 1], [], []>} : vector<2x512xbf16>, vector<512x128xbf16>, vector<2x128xf32> -> vector<2x128xf32>
    %329 = arith.truncf %326 : vector<2x512xf32> to vector<2x512xbf16>
    %cst_279 = arith.constant dense<0.000000e+00> : vector<2x128xf32>
    %330 = tpu.matmul %329, %300, %cst_279 {dimension_numbers = #tpu.dot_dimension_numbers<[1], [0], [0], [1], [0, 0, 1, 1], [], []>} : vector<2x512xbf16>, vector<512x128xbf16>, vector<2x128xf32> -> vector<2x128xf32>
    %331 = arith.addf %328, %330 : vector<2x128xf32>
    %332 = vector.broadcast %301 : vector<1x128xf32> to vector<2x128xf32>
    %333 = arith.addf %331, %332 : vector<2x128xf32>
    %cst_280 = arith.constant 3.000000e+00 : f32
    %334 = vector.broadcast %cst_280 : f32 to vector<2x128xf32>
    %335 = arith.addf %333, %334 : vector<2x128xf32>
    %cst_281 = arith.constant 0.000000e+00 : f32
    %cst_282 = arith.constant 6.000000e+00 : f32
    %336 = vector.broadcast %cst_281 : f32 to vector<2x128xf32>
    %337 = arith.maximumf %336, %335 : vector<2x128xf32>
    %338 = vector.broadcast %cst_282 : f32 to vector<2x128xf32>
    %339 = arith.minimumf %338, %337 : vector<2x128xf32>
    %340 = arith.mulf %333, %339 : vector<2x128xf32>
    %cst_283 = arith.constant 0.166666672 : f32
    %341 = vector.broadcast %cst_283 : f32 to vector<2x128xf32>
    %342 = arith.mulf %340, %341 : vector<2x128xf32>
    %343 = arith.truncf %342 : vector<2x128xf32> to vector<2x128xbf16>
    %cst_284 = arith.constant dense<0.000000e+00> : vector<2x18xf32>
    %344 = tpu.matmul %343, %302, %cst_284 {dimension_numbers = #tpu.dot_dimension_numbers<[1], [0], [0], [1], [0, 0, 1, 1], [], []>} : vector<2x128xbf16>, vector<128x18xbf16>, vector<2x18xf32> -> vector<2x18xf32>
    %345 = vector.broadcast %303 : vector<1x18xf32> to vector<2x18xf32>
    %346 = arith.addf %344, %345 : vector<2x18xf32>
    %347 = arith.truncf %346 : vector<2x18xf32> to vector<2x18xbf16>
    %cst_285 = arith.constant dense<0.000000e+00> : vector<2x1xf32>
    %348 = tpu.matmul %347, %304, %cst_285 {dimension_numbers = #tpu.dot_dimension_numbers<[1], [0], [0], [1], [0, 0, 1, 1], [], []>} : vector<2x18xbf16>, vector<18x1xbf16>, vector<2x1xf32> -> vector<2x1xf32>
    %349 = vector.broadcast %305 : vector<1x1xf32> to vector<2x1xf32>
    %350 = arith.addf %348, %349 : vector<2x1xf32>
    %351 = arith.negf %350 : vector<2x1xf32>
    %352 = math.exp %351 : vector<2x1xf32>
    %cst_286 = arith.constant 1.000000e+00 : f32
    %353 = vector.broadcast %cst_286 : f32 to vector<2x1xf32>
    %354 = arith.addf %353, %352 : vector<2x1xf32>
    %355 = arith.divf %353, %354 : vector<2x1xf32>
    %c0_287 = arith.constant 0 : index
    %c0_288 = arith.constant 0 : index
    %356 = vector.load %arg42[%c0_287, %c0_288] : memref<2x18xf32, #tpu.memory_space<vmem>>, vector<2x18xf32>
    tpu.vector_store %arg42[%c0_287, %c0_288], %346 {strides = array<i32>} : memref<2x18xf32, #tpu.memory_space<vmem>>, vector<2x18xf32>,
    %c0_289 = arith.constant 0 : index
    %c0_290 = arith.constant 0 : index
    %357 = vector.load %arg43[%c0_289, %c0_290] : memref<2x1xf32, #tpu.memory_space<vmem>>, vector<2x1xf32>
    tpu.vector_store %arg43[%c0_289, %c0_290], %355 {strides = array<i32>} : memref<2x1xf32, #tpu.memory_space<vmem>>, vector<2x1xf32>,
    return
  }
  func.func @transform_0(%arg0: i32) -> (i32, i32) {
    %c0_i32 = arith.constant 0 : i32
    %c0_i32_0 = arith.constant 0 : i32
    %c0_i32_1 = arith.constant 0 : i32
    return %c0_i32, %c0_i32_0 : i32, i32
  }
  func.func @transform_1(%arg0: i32) -> (i32, i32) {
    %c0_i32 = arith.constant 0 : i32
    %c0_i32_0 = arith.constant 0 : i32
    %c0_i32_1 = arith.constant 0 : i32
    return %c0_i32, %c0_i32_0 : i32, i32
  }
  func.func @transform_2(%arg0: i32) -> (i32, i32) {
    %c0_i32 = arith.constant 0 : i32
    %c0_i32_0 = arith.constant 0 : i32
    %c0_i32_1 = arith.constant 0 : i32
    return %c0_i32, %c0_i32_0 : i32, i32
  }
  func.func @transform_3(%arg0: i32) -> (i32, i32) {
    %c0_i32 = arith.constant 0 : i32
    %c0_i32_0 = arith.constant 0 : i32
    %c0_i32_1 = arith.constant 0 : i32
    return %c0_i32, %c0_i32_0 : i32, i32
  }
  func.func @transform_4(%arg0: i32) -> (i32, i32) {
    %c0_i32 = arith.constant 0 : i32
    %c0_i32_0 = arith.constant 0 : i32
    %c0_i32_1 = arith.constant 0 : i32
    return %c0_i32, %c0_i32_0 : i32, i32
  }
  func.func @transform_5(%arg0: i32) -> (i32, i32) {
    %c0_i32 = arith.constant 0 : i32
    %c0_i32_0 = arith.constant 0 : i32
    %c0_i32_1 = arith.constant 0 : i32
    return %c0_i32, %c0_i32_0 : i32, i32
  }
  func.func @transform_6(%arg0: i32) -> (i32, i32) {
    %c0_i32 = arith.constant 0 : i32
    %c0_i32_0 = arith.constant 0 : i32
    %c0_i32_1 = arith.constant 0 : i32
    return %c0_i32, %c0_i32_0 : i32, i32
  }
  func.func @transform_7(%arg0: i32) -> (i32, i32, i32) {
    %c0_i32 = arith.constant 0 : i32
    %c0_i32_0 = arith.constant 0 : i32
    %c0_i32_1 = arith.constant 0 : i32
    %c0_i32_2 = arith.constant 0 : i32
    return %c0_i32, %c0_i32_0, %c0_i32_1 : i32, i32, i32
  }
  func.func @transform_8(%arg0: i32) -> (i32, i32) {
    %c0_i32 = arith.constant 0 : i32
    %c0_i32_0 = arith.constant 0 : i32
    %c0_i32_1 = arith.constant 0 : i32
    return %c0_i32, %c0_i32_0 : i32, i32
  }
  func.func @transform_9(%arg0: i32) -> (i32, i32) {
    %c0_i32 = arith.constant 0 : i32
    %c0_i32_0 = arith.constant 0 : i32
    %c0_i32_1 = arith.constant 0 : i32
    return %c0_i32, %c0_i32_0 : i32, i32
  }
  func.func @transform_10(%arg0: i32) -> (i32, i32, i32) {
    %c0_i32 = arith.constant 0 : i32
    %c0_i32_0 = arith.constant 0 : i32
    %c0_i32_1 = arith.constant 0 : i32
    %c0_i32_2 = arith.constant 0 : i32
    return %c0_i32, %c0_i32_0, %c0_i32_1 : i32, i32, i32
  }
  func.func @transform_11(%arg0: i32) -> (i32, i32, i32) {
    %c0_i32 = arith.constant 0 : i32
    %c0_i32_0 = arith.constant 0 : i32
    %c0_i32_1 = arith.constant 0 : i32
    %c0_i32_2 = arith.constant 0 : i32
    return %c0_i32, %c0_i32_0, %c0_i32_1 : i32, i32, i32
  }
  func.func @transform_12(%arg0: i32) -> (i32, i32) {
    %c0_i32 = arith.constant 0 : i32
    %c0_i32_0 = arith.constant 0 : i32
    %c0_i32_1 = arith.constant 0 : i32
    return %c0_i32, %c0_i32_0 : i32, i32
  }
  func.func @transform_13(%arg0: i32) -> (i32, i32, i32) {
    %c0_i32 = arith.constant 0 : i32
    %c0_i32_0 = arith.constant 0 : i32
    %c0_i32_1 = arith.constant 0 : i32
    %c0_i32_2 = arith.constant 0 : i32
    return %c0_i32, %c0_i32_0, %c0_i32_1 : i32, i32, i32
  }
  func.func @transform_14(%arg0: i32) -> (i32, i32, i32) {
    %c0_i32 = arith.constant 0 : i32
    %c0_i32_0 = arith.constant 0 : i32
    %c0_i32_1 = arith.constant 0 : i32
    %c0_i32_2 = arith.constant 0 : i32
    return %c0_i32, %c0_i32_0, %c0_i32_1 : i32, i32, i32
  }
  func.func @transform_15(%arg0: i32) -> (i32, i32, i32) {
    %c0_i32 = arith.constant 0 : i32
    %c0_i32_0 = arith.constant 0 : i32
    %c0_i32_1 = arith.constant 0 : i32
    %c0_i32_2 = arith.constant 0 : i32
    return %c0_i32, %c0_i32_0, %c0_i32_1 : i32, i32, i32
  }
  func.func @transform_16(%arg0: i32) -> (i32, i32) {
    %c0_i32 = arith.constant 0 : i32
    %c0_i32_0 = arith.constant 0 : i32
    %c0_i32_1 = arith.constant 0 : i32
    return %c0_i32, %c0_i32_0 : i32, i32
  }
  func.func @transform_17(%arg0: i32) -> (i32, i32, i32) {
    %c0_i32 = arith.constant 0 : i32
    %c0_i32_0 = arith.constant 0 : i32
    %c0_i32_1 = arith.constant 0 : i32
    %c0_i32_2 = arith.constant 0 : i32
    return %c0_i32, %c0_i32_0, %c0_i32_1 : i32, i32, i32
  }
  func.func @transform_18(%arg0: i32) -> (i32, i32, i32) {
    %c0_i32 = arith.constant 0 : i32
    %c0_i32_0 = arith.constant 0 : i32
    %c0_i32_1 = arith.constant 0 : i32
    %c0_i32_2 = arith.constant 0 : i32
    return %c0_i32, %c0_i32_0, %c0_i32_1 : i32, i32, i32
  }
  func.func @transform_19(%arg0: i32) -> (i32, i32) {
    %c0_i32 = arith.constant 0 : i32
    %c0_i32_0 = arith.constant 0 : i32
    %c0_i32_1 = arith.constant 0 : i32
    return %c0_i32, %c0_i32_0 : i32, i32
  }
  func.func @transform_20(%arg0: i32) -> (i32, i32, i32) {
    %c0_i32 = arith.constant 0 : i32
    %c0_i32_0 = arith.constant 0 : i32
    %c0_i32_1 = arith.constant 0 : i32
    %c0_i32_2 = arith.constant 0 : i32
    return %c0_i32, %c0_i32_0, %c0_i32_1 : i32, i32, i32
  }
  func.func @transform_21(%arg0: i32) -> (i32, i32, i32) {
    %c0_i32 = arith.constant 0 : i32
    %c0_i32_0 = arith.constant 0 : i32
    %c0_i32_1 = arith.constant 0 : i32
    %c0_i32_2 = arith.constant 0 : i32
    return %c0_i32, %c0_i32_0, %c0_i32_1 : i32, i32, i32
  }
  func.func @transform_22(%arg0: i32) -> (i32, i32) {
    %c0_i32 = arith.constant 0 : i32
    %c0_i32_0 = arith.constant 0 : i32
    %c0_i32_1 = arith.constant 0 : i32
    return %c0_i32, %c0_i32_0 : i32, i32
  }
  func.func @transform_23(%arg0: i32) -> (i32, i32, i32) {
    %c0_i32 = arith.constant 0 : i32
    %c0_i32_0 = arith.constant 0 : i32
    %c0_i32_1 = arith.constant 0 : i32
    %c0_i32_2 = arith.constant 0 : i32
    return %c0_i32, %c0_i32_0, %c0_i32_1 : i32, i32, i32
  }
  func.func @transform_24(%arg0: i32) -> (i32, i32, i32) {
    %c0_i32 = arith.constant 0 : i32
    %c0_i32_0 = arith.constant 0 : i32
    %c0_i32_1 = arith.constant 0 : i32
    %c0_i32_2 = arith.constant 0 : i32
    return %c0_i32, %c0_i32_0, %c0_i32_1 : i32, i32, i32
  }
  func.func @transform_25(%arg0: i32) -> (i32, i32) {
    %c0_i32 = arith.constant 0 : i32
    %c0_i32_0 = arith.constant 0 : i32
    %c0_i32_1 = arith.constant 0 : i32
    return %c0_i32, %c0_i32_0 : i32, i32
  }
  func.func @transform_26(%arg0: i32) -> (i32, i32, i32) {
    %c0_i32 = arith.constant 0 : i32
    %c0_i32_0 = arith.constant 0 : i32
    %c0_i32_1 = arith.constant 0 : i32
    %c0_i32_2 = arith.constant 0 : i32
    return %c0_i32, %c0_i32_0, %c0_i32_1 : i32, i32, i32
  }
  func.func @transform_27(%arg0: i32) -> (i32, i32, i32) {
    %c0_i32 = arith.constant 0 : i32
    %c0_i32_0 = arith.constant 0 : i32
    %c0_i32_1 = arith.constant 0 : i32
    %c0_i32_2 = arith.constant 0 : i32
    return %c0_i32, %c0_i32_0, %c0_i32_1 : i32, i32, i32
  }
  func.func @transform_28(%arg0: i32) -> (i32, i32) {
    %c0_i32 = arith.constant 0 : i32
    %c0_i32_0 = arith.constant 0 : i32
    %c0_i32_1 = arith.constant 0 : i32
    return %c0_i32, %c0_i32_0 : i32, i32
  }
  func.func @transform_29(%arg0: i32) -> (i32, i32, i32) {
    %c0_i32 = arith.constant 0 : i32
    %c0_i32_0 = arith.constant 0 : i32
    %c0_i32_1 = arith.constant 0 : i32
    %c0_i32_2 = arith.constant 0 : i32
    return %c0_i32, %c0_i32_0, %c0_i32_1 : i32, i32, i32
  }
  func.func @transform_30(%arg0: i32) -> (i32, i32, i32) {
    %c0_i32 = arith.constant 0 : i32
    %c0_i32_0 = arith.constant 0 : i32
    %c0_i32_1 = arith.constant 0 : i32
    %c0_i32_2 = arith.constant 0 : i32
    return %c0_i32, %c0_i32_0, %c0_i32_1 : i32, i32, i32
  }
  func.func @transform_31(%arg0: i32) -> (i32, i32) {
    %c0_i32 = arith.constant 0 : i32
    %c0_i32_0 = arith.constant 0 : i32
    %c0_i32_1 = arith.constant 0 : i32
    return %c0_i32, %c0_i32_0 : i32, i32
  }
  func.func @transform_32(%arg0: i32) -> (i32, i32) {
    %c0_i32 = arith.constant 0 : i32
    %c0_i32_0 = arith.constant 0 : i32
    %c0_i32_1 = arith.constant 0 : i32
    return %c0_i32, %c0_i32_0 : i32, i32
  }
  func.func @transform_33(%arg0: i32) -> (i32, i32, i32) {
    %c0_i32 = arith.constant 0 : i32
    %c0_i32_0 = arith.constant 0 : i32
    %c0_i32_1 = arith.constant 0 : i32
    %c0_i32_2 = arith.constant 0 : i32
    return %c0_i32, %c0_i32_0, %c0_i32_1 : i32, i32, i32
  }
  func.func @transform_34(%arg0: i32) -> (i32, i32) {
    %c0_i32 = arith.constant 0 : i32
    %c0_i32_0 = arith.constant 0 : i32
    %c0_i32_1 = arith.constant 0 : i32
    return %c0_i32, %c0_i32_0 : i32, i32
  }
  func.func @transform_35(%arg0: i32) -> (i32, i32) {
    %c0_i32 = arith.constant 0 : i32
    %c0_i32_0 = arith.constant 0 : i32
    %c0_i32_1 = arith.constant 0 : i32
    return %c0_i32, %c0_i32_0 : i32, i32
  }
  func.func @transform_36(%arg0: i32) -> (i32, i32) {
    %c0_i32 = arith.constant 0 : i32
    %c0_i32_0 = arith.constant 0 : i32
    %c0_i32_1 = arith.constant 0 : i32
    return %c0_i32, %c0_i32_0 : i32, i32
  }
  func.func @transform_37(%arg0: i32) -> (i32, i32) {
    %c0_i32 = arith.constant 0 : i32
    %c0_i32_0 = arith.constant 0 : i32
    %c0_i32_1 = arith.constant 0 : i32
    return %c0_i32, %c0_i32_0 : i32, i32
  }
  func.func @transform_38(%arg0: i32) -> (i32, i32) {
    %c0_i32 = arith.constant 0 : i32
    %c0_i32_0 = arith.constant 0 : i32
    %c0_i32_1 = arith.constant 0 : i32
    return %c0_i32, %c0_i32_0 : i32, i32
  }
  func.func @transform_39(%arg0: i32) -> (i32, i32) {
    %c0_i32 = arith.constant 0 : i32
    %c0_i32_0 = arith.constant 0 : i32
    %c0_i32_1 = arith.constant 0 : i32
    return %c0_i32, %c0_i32_0 : i32, i32
  }
  func.func @transform_40(%arg0: i32) -> (i32, i32) {
    %c0_i32 = arith.constant 0 : i32
    %c0_i32_0 = arith.constant 0 : i32
    %c0_i32_1 = arith.constant 0 : i32
    return %c0_i32, %c0_i32_0 : i32, i32
  }
  func.func @transform_41(%arg0: i32) -> (i32, i32) {
    %c0_i32 = arith.constant 0 : i32
    %c0_i32_0 = arith.constant 0 : i32
    %c0_i32_1 = arith.constant 0 : i32
    return %c0_i32, %c0_i32_0 : i32, i32
  }
  func.func @transform_42(%arg0: i32) -> (i32, i32) {
    %c0_i32 = arith.constant 0 : i32
    %c0_i32_0 = arith.constant 0 : i32
    %c0_i32_1 = arith.constant 0 : i32
    return %c0_i32, %c0_i32_0 : i32, i32
  }
}

</mosaic_0001>

<bundles_post_ra>
// kernel: forward.1
= control target key start
LH: loop header
LB: loop body
LE: loop exit
PB: predicated region body
PF: predicated region fallthrough
CT: control target
= control target key end

     0   :  { %s17106_s6 = smov 1   ;;  %s17107_s10 = smov 2   ;;  %s19101_s0 = inlined_call_operand.smem [shape: u32[43], index: -1, kind: input, shape index: {}] }
   0x1   :  { %s17160_s5 = sld [smem:[%s19101_s0]]   ;;  %s17108_s14 = smov 3  }
   0x2   :  { %s17165_s9 = sld [smem:[%s19101_s0 + %s17106_s6]]   ;;  %s17109_s18 = smov 4  }
   0x3   :  { %s17170_s13 = sld [smem:[%s19101_s0 + %s17107_s10]]   ;;  %s17110_s22 = smov 5  }
   0x4   :  { %s17175_s17 = sld [smem:[%s19101_s0 + %s17108_s14]]   ;;  %s17111_s26 = smov 6  }
   0x5   :  { %s17180_s21 = sld [smem:[%s19101_s0 + %s17109_s18]]   ;;  %s17112_s30 = smov 7  }
   0x6   :  { %s17185_s25 = sld [smem:[%s19101_s0 + %s17110_s22]]   ;;  %s17113_s4 = smov 8  }
   0x7   :  { %s17190_s29 = sld [smem:[%s19101_s0 + %s17111_s26]]   ;;  %s17114_s10 = smov 9  }
   0x8   :  { %s17195_s3 = sld [smem:[%s19101_s0 + %s17112_s30]]   ;;  %s17115_s15 = smov 10  }
   0x9   :  { %s17200_s8 = sld [smem:[%s19101_s0 + %s17113_s4]]   ;;  %s17116_s20 = smov 11  }
   0xa   :  { %s17205_s14 = sld [smem:[%s19101_s0 + %s17114_s10]]   ;;  %s17117_s26 = smov 12  }
   0xb   :  { %s17210_s19 = sld [smem:[%s19101_s0 + %s17115_s15]]   ;;  %s17118_s1 = smov 13  }
   0xc   :  { %s17215_s24 = sld [smem:[%s19101_s0 + %s17116_s20]]   ;;  %s17119_s7 = smov 14  }
   0xd   :  { %s17220_s30 = sld [smem:[%s19101_s0 + %s17117_s26]]   ;;  %s17120_s15 = smov 15  }
   0xe   :  { %s17225_s6 = sld [smem:[%s19101_s0 + %s17118_s1]]   ;;  %s17121_s22 = smov 16  }
   0xf   :  { %s17230_s12 = sld [smem:[%s19101_s0 + %s17119_s7]]   ;;  %s17122_s28 = smov 17  }
  0x10   :  { %s17235_s20 = sld [smem:[%s19101_s0 + %s17120_s15]]   ;;  %s17123_s7 = smov 18  }
  0x11   :  { %s17240_s27 = sld [smem:[%s19101_s0 + %s17121_s22]]   ;;  %s17124_s15 = smov 19  }
  0x12   :  { %s17245_s4 = sld [smem:[%s19101_s0 + %s17122_s28]]   ;;  %s17125_s22 = smov 20  }
  0x13   :  { %s17126_s28 = smov 21   ;;  %s17146_s1 = smov 41  }
  0x14   :  { %s17147_s10 = smov 42  }
  0x15   :  { %19124 = sst [smem:[#allocation6_spill]] %s17230_s12 }
  0x16   :  { %19125 = sst [smem:[#allocation7_spill]] %s17235_s20 }
  0x17   :  { %19126 = sst [smem:[#allocation8_spill]] %s17240_s27 }
  0x18   :  { %19127 = sst [smem:[#allocation9_spill]] %s17245_s4 }
  0x19   :  { %s17250_s12 = sld [smem:[%s19101_s0 + %s17123_s7]]   ;;  %s17127_s7 = smov 22  }
  0x1a   :  { %s17255_s20 = sld [smem:[%s19101_s0 + %s17124_s15]]   ;;  %s17128_s15 = smov 23  }
  0x1b   :  { %s17260_s27 = sld [smem:[%s19101_s0 + %s17125_s22]]   ;;  %s17129_s22 = smov 24  }
  0x1c   :  { %s17265_s4 = sld [smem:[%s19101_s0 + %s17126_s28]]   ;;  %s17130_s28 = smov 25  }
  0x1f   :  { %19128 = sst [smem:[#allocation10_spill]] %s17250_s12 }
  0x20   :  { %19129 = sst [smem:[#allocation11_spill]] %s17255_s20 }
  0x21   :  { %19130 = sst [smem:[#allocation12_spill]] %s17260_s27 }
  0x22   :  { %19131 = sst [smem:[#allocation13_spill]] %s17265_s4 }
  0x23   :  { %s17270_s12 = sld [smem:[%s19101_s0 + %s17127_s7]]   ;;  %s17131_s7 = smov 26  }
  0x24   :  { %s17275_s20 = sld [smem:[%s19101_s0 + %s17128_s15]]   ;;  %s17132_s15 = smov 27  }
  0x25   :  { %s17280_s27 = sld [smem:[%s19101_s0 + %s17129_s22]]   ;;  %s17133_s22 = smov 28  }
  0x26   :  { %s17285_s4 = sld [smem:[%s19101_s0 + %s17130_s28]]   ;;  %s17134_s28 = smov 29  }
  0x29   :  { %19132 = sst [smem:[#allocation14_spill]] %s17270_s12 }
  0x2a   :  { %19133 = sst [smem:[#allocation15_spill]] %s17275_s20 }
  0x2b   :  { %19134 = sst [smem:[#allocation16_spill]] %s17280_s27 }
  0x2c   :  { %19135 = sst [smem:[#allocation17_spill]] %s17285_s4 }
  0x2d   :  { %s17290_s12 = sld [smem:[%s19101_s0 + %s17131_s7]]   ;;  %s17135_s7 = smov 30  }
  0x2e   :  { %s17295_s20 = sld [smem:[%s19101_s0 + %s17132_s15]]   ;;  %s17136_s15 = smov 31  }
  0x2f   :  { %s17300_s27 = sld [smem:[%s19101_s0 + %s17133_s22]]   ;;  %s17137_s22 = smov 32  }
  0x30   :  { %s17305_s4 = sld [smem:[%s19101_s0 + %s17134_s28]]   ;;  %s17138_s28 = smov 33  }
  0x33   :  { %19136 = sst [smem:[#allocation18_spill]] %s17290_s12 }
  0x34   :  { %19137 = sst [smem:[#allocation19_spill]] %s17295_s20 }
  0x35   :  { %19138 = sst [smem:[#allocation20_spill]] %s17300_s27 }
  0x36   :  { %19139 = sst [smem:[#allocation21_spill]] %s17305_s4 }
  0x37   :  { %s17310_s12 = sld [smem:[%s19101_s0 + %s17135_s7]]   ;;  %s17139_s7 = smov 34  }
  0x38   :  { %s17315_s20 = sld [smem:[%s19101_s0 + %s17136_s15]]   ;;  %s17140_s15 = smov 35  }
  0x39   :  { %s17320_s27 = sld [smem:[%s19101_s0 + %s17137_s22]]   ;;  %s17141_s22 = smov 36  }
  0x3a   :  { %s17325_s4 = sld [smem:[%s19101_s0 + %s17138_s28]]   ;;  %s17142_s28 = smov 37  }
  0x3d   :  { %19140 = sst [smem:[#allocation22_spill]] %s17310_s12 }
  0x3e   :  { %19141 = sst [smem:[#allocation23_spill]] %s17315_s20 }
  0x3f   :  { %19142 = sst [smem:[#allocation24_spill]] %s17320_s27 }
  0x40   :  { %19143 = sst [smem:[#allocation25_spill]] %s17325_s4 }
  0x41   :  { %s17330_s12 = sld [smem:[%s19101_s0 + %s17139_s7]]   ;;  %s17143_s7 = smov 38  }
  0x42   :  { %s17335_s20 = sld [smem:[%s19101_s0 + %s17140_s15]]   ;;  %s17144_s15 = smov 39  }
  0x43   :  { %s17340_s27 = sld [smem:[%s19101_s0 + %s17141_s22]]   ;;  %s17145_s22 = smov 40  }
  0x44   :  { %s17345_s4 = sld [smem:[%s19101_s0 + %s17142_s28]]  }
  0x47   :  { %19144 = sst [smem:[#allocation26_spill]] %s17330_s12 }
  0x48   :  { %19145 = sst [smem:[#allocation27_spill]] %s17335_s20 }
  0x49   :  { %19146 = sst [smem:[#allocation28_spill]] %s17340_s27 }
  0x4a   :  { %19147 = sst [smem:[#allocation29_spill]] %s17345_s4 }
  0x4b   :  { %s17350_s12 = sld [smem:[%s19101_s0 + %s17143_s7]]  }
  0x4c   :  { %s17355_s20 = sld [smem:[%s19101_s0 + %s17144_s15]]  }
  0x4d   :  { %s12487_s27 = sld [smem:[%s19101_s0 + %s17145_s22]]  }
  0x4e   :  { %s17363_s4 = sld [smem:[%s19101_s0 + %s17146_s1]]  }
  0x51   :  { %19148 = sst [smem:[#allocation30_spill]] %s17350_s12 }
  0x52   :  { %s17368_s12 = sld [smem:[%s19101_s0 + %s17147_s10]]  }
  0x53   :  { %v91_v0 = vstv %s12487_s27 }
  0x54   :  { %92 = vst [vmem:[#allocation2] sm:$0x1] %v91_v0 }
  0x55   :  { %v15501_v1 = vld [vmem:[%s17165_s9 + $0x4] ss:$8 sps:$4 sm:$0xff]   ;;  %v15503_v2 = vld [vmem:[%s17165_s9] ss:$8 sps:$4 sm:$0xff]   ;;  %v15504_v3 = vld [vmem:[%s17165_s9 + $0x14] ss:$8 sps:$4 sm:$0xff]  }
  0x56   :  { %925 = vmatprep.subr.bf16.mxu1 %v15501_v1  ;;  %v15506_v4 = vld [vmem:[%s17165_s9 + $0x10] ss:$8 sps:$4 sm:$0xff]   ;;  %v15507_v5 = vld [vmem:[%s17165_s9 + $0x24] ss:$8 sps:$4 sm:$0xff]   ;;  %v15509_v6 = vld [vmem:[%s17165_s9 + $0x20] ss:$8 sps:$4 sm:$0xff]  }
  0x57   :  { %926 = vmatpush1.bf16.msra.mxu1 %v15503_v2  ;;  %v15510_v7 = vld [vmem:[%s17165_s9 + $0x34] ss:$8 sps:$4 sm:$0xff]   ;;  %v15512_v8 = vld [vmem:[%s17165_s9 + $0x30] ss:$8 sps:$4 sm:$0xff]   ;;  %v15513_v9 = vld [vmem:[%s17165_s9 + $0x44] ss:$8 sps:$4 sm:$0xff]  }
  0x58   :  { %927 = vmatprep.subr.bf16.mxu1 %v15504_v3  ;;  %v15515_v10 = vld [vmem:[%s17165_s9 + $0x40] ss:$8 sps:$4 sm:$0xff]   ;;  %v15516_v11 = vld [vmem:[%s17165_s9 + $0x54] ss:$8 sps:$4 sm:$0xff]   ;;  %v15518_v12 = vld [vmem:[%s17165_s9 + $0x50] ss:$8 sps:$4 sm:$0xff]  }
  0x59   :  { %v15519_v13 = vld [vmem:[%s17165_s9 + $0x64] ss:$8 sps:$4 sm:$0xff]   ;;  %v15521_v15 = vld [vmem:[%s17165_s9 + $0x60] ss:$8 sps:$4 sm:$0xff]   ;;  %v15522_v16 = vld [vmem:[%s17165_s9 + $0x74] ss:$8 sps:$4 sm:$0xff]  }
  0x5a   :  { %v15551_v14 = vld [vmem:[%s17160_s5 + $0x4] ss:$20 sps:$4 sm:$0xff]   ;;  %v15527_v19 = vld [vmem:[%s17165_s9 + $0x80] ss:$8 sps:$4 sm:$0xff]   ;;  %v15528_v20 = vld [vmem:[%s17165_s9 + $0x94] ss:$8 sps:$4 sm:$0xff]  }
  0x5b   :  { %928 = vmatpush1.bf16.msra.mxu1 %v15506_v4  ;;  %957 = vmatprep.mubr.bf16.mxu1 %v15551_v14  ;;  %v15524_v17 = vld [vmem:[%s17165_s9 + $0x70] ss:$8 sps:$4 sm:$0xff]   ;;  %v15525_v18 = vld [vmem:[%s17165_s9 + $0x84] ss:$8 sps:$4 sm:$0xff]   ;;  %v15533_v23 = vld [vmem:[%s17165_s9 + $0xa0] ss:$8 sps:$4 sm:$0xff]  }
  0x5c   :  { %929 = vmatprep.subr.bf16.mxu1 %v15507_v5  ;;  %v15530_v21 = vld [vmem:[%s17165_s9 + $0x90] ss:$8 sps:$4 sm:$0xff]   ;;  %v15531_v22 = vld [vmem:[%s17165_s9 + $0xa4] ss:$8 sps:$4 sm:$0xff]   ;;  %v15534_v24 = vld [vmem:[%s17165_s9 + $0xb4] ss:$8 sps:$4 sm:$0xff]  }
  0x5d   :  { %v15536_v25 = vld [vmem:[%s17165_s9 + $0xb0] ss:$8 sps:$4 sm:$0xff]   ;;  %v15537_v26 = vld [vmem:[%s17165_s9 + $0xc4] ss:$8 sps:$4 sm:$0xff]   ;;  %v15539_v27 = vld [vmem:[%s17165_s9 + $0xc0] ss:$8 sps:$4 sm:$0xff]  }
  0x5e   :  { %v15540_v28 = vld [vmem:[%s17165_s9 + $0xd4] ss:$8 sps:$4 sm:$0xff]   ;;  %v15542_v29 = vld [vmem:[%s17165_s9 + $0xd0] ss:$8 sps:$4 sm:$0xff]   ;;  %v15543_v30 = vld [vmem:[%s17165_s9 + $0xe4] ss:$8 sps:$4 sm:$0xff]  }
  0x5f   :  { %930 = vmatpush1.bf16.msra.mxu1 %v15509_v6  ;;  %v15545_v31 = vld [vmem:[%s17165_s9 + $0xe0] ss:$8 sps:$4 sm:$0xff]   ;;  %v15546_v32 = vld [vmem:[%s17165_s9 + $0xf4] ss:$8 sps:$4 sm:$0xff]   ;;  %v15548_v33 = vld [vmem:[%s17165_s9 + $0xf0] ss:$8 sps:$4 sm:$0xff]  }
  0x60   :  { %931 = vmatprep.subr.bf16.mxu1 %v15510_v7  ;;  %v17148_v34 = vmov 0   ;;  %v15554_v35 = vld [vmem:[%s17165_s9 + $0x104] ss:$8 sps:$4 sm:$0xff]   ;;  %v15549_v36 = vld [vmem:[%s17160_s5] ss:$20 sps:$4 sm:$0xff]  }
  0x61   :  { %15500 = vset.pattern.permute.xlu1 %v17148_v34  ;;  %15499 = vset.pattern.permute.xlu0 %v17148_v34  ;;  %v15552_v37 = vld [vmem:[%s17165_s9 + $0x100] ss:$8 sps:$4 sm:$0xff]   ;;  %v15557_v39 = vld [vmem:[%s17165_s9 + $0x114] ss:$8 sps:$4 sm:$0xff]   ;;  %v15555_v40 = vld [vmem:[%s17165_s9 + $0x110] ss:$8 sps:$4 sm:$0xff]  }
  0x62   :  { %v15558_v38 = vld [vmem:[%s17160_s5 + $0x2c] ss:$20 sps:$4 sm:$0xff]   ;;  %v15560_v42 = vld [vmem:[%s17160_s5 + $0x28] ss:$20 sps:$4 sm:$0xff]   ;;  %v15564_v46 = vld [vmem:[%s17165_s9 + $0x130] ss:$8 sps:$4 sm:$0xff]  }
  0x63   :  { %932 = vmatpush1.bf16.msra.mxu1 %v15512_v8  ;;  %v15563_v41 = vld [vmem:[%s17165_s9 + $0x124] ss:$8 sps:$4 sm:$0xff]   ;;  %v15561_v43 = vld [vmem:[%s17165_s9 + $0x120] ss:$8 sps:$4 sm:$0xff]   ;;  %v15566_v45 = vld [vmem:[%s17165_s9 + $0x134] ss:$8 sps:$4 sm:$0xff]  }
  0x64   :  { %933 = vmatprep.subr.bf16.mxu1 %v15513_v9  ;;  %v15567_v44 = vld [vmem:[%s17160_s5 + $0x54] ss:$20 sps:$4 sm:$0xff]   ;;  %v15569_v47 = vld [vmem:[%s17160_s5 + $0x50] ss:$20 sps:$4 sm:$0xff]   ;;  %v15578_v54 = vld [vmem:[%s17160_s5 + $0x78] ss:$20 sps:$4 sm:$0xff]  }
  0x65   :  { %v15572_v48 = vld [vmem:[%s17165_s9 + $0x144] ss:$8 sps:$4 sm:$0xff]   ;;  %v15570_v49 = vld [vmem:[%s17165_s9 + $0x140] ss:$8 sps:$4 sm:$0xff]   ;;  %v15576_v50 = vld [vmem:[%s17160_s5 + $0x7c] ss:$20 sps:$4 sm:$0xff]  }
  0x66   :  { %v15575_v51 = vld [vmem:[%s17165_s9 + $0x154] ss:$8 sps:$4 sm:$0xff]   ;;  %v15573_v52 = vld [vmem:[%s17165_s9 + $0x150] ss:$8 sps:$4 sm:$0xff]   ;;  %v15581_v53 = vld [vmem:[%s17165_s9 + $0x164] ss:$8 sps:$4 sm:$0xff]  }
  0x67   :  { %934 = vmatpush1.bf16.msra.mxu1 %v15515_v10  ;;  %v15579_v55 = vld [vmem:[%s17165_s9 + $0x160] ss:$8 sps:$4 sm:$0xff]   ;;  %v15585_v56 = vld [vmem:[%s17160_s5 + $0xa4] ss:$20 sps:$4 sm:$0xff]   ;;  %v15584_v57 = vld [vmem:[%s17165_s9 + $0x174] ss:$8 sps:$4 sm:$0xff]  }
  0x68   :  { %935 = vmatprep.subr.bf16.mxu1 %v15516_v11  ;;  %v15582_v58 = vld [vmem:[%s17165_s9 + $0x170] ss:$8 sps:$4 sm:$0xff]   ;;  %v15590_v59 = vld [vmem:[%s17165_s9 + $0x184] ss:$8 sps:$4 sm:$0xff]   ;;  %v15587_v60 = vld [vmem:[%s17160_s5 + $0xa0] ss:$20 sps:$4 sm:$0xff]  }
  0x69   :  { %v15588_v61 = vld [vmem:[%s17165_s9 + $0x180] ss:$8 sps:$4 sm:$0xff]   ;;  %v15593_v63 = vld [vmem:[%s17165_s9 + $0x194] ss:$8 sps:$4 sm:$0xff]   ;;  %v15591_v0 = vld [vmem:[%s17165_s9 + $0x190] ss:$8 sps:$4 sm:$0xff]  }
  0x6a   :  { %v15594_v62 = vld [vmem:[%s17160_s5 + $0xcc] ss:$20 sps:$4 sm:$0xff]   ;;  %v15596_v2 = vld [vmem:[%s17160_s5 + $0xc8] ss:$20 sps:$4 sm:$0xff]   ;;  %v15600_v6 = vld [vmem:[%s17165_s9 + $0x1b0] ss:$8 sps:$4 sm:$0xff]  }
  0x6b   :  { %936 = vmatpush1.bf16.msra.mxu1 %v15518_v12  ;;  %v15599_v1 = vld [vmem:[%s17165_s9 + $0x1a4] ss:$8 sps:$4 sm:$0xff]   ;;  %v15597_v3 = vld [vmem:[%s17165_s9 + $0x1a0] ss:$8 sps:$4 sm:$0xff]   ;;  %v15602_v5 = vld [vmem:[%s17165_s9 + $0x1b4] ss:$8 sps:$4 sm:$0xff]  }
  0x6c   :  { %937 = vmatprep.subr.bf16.mxu1 %v15519_v13  ;;  %v15603_v4 = vld [vmem:[%s17160_s5 + $0xf4] ss:$20 sps:$4 sm:$0xff]   ;;  %v15608_v7 = vld [vmem:[%s17165_s9 + $0x1c4] ss:$8 sps:$4 sm:$0xff]   ;;  %v15612_v10 = vld [vmem:[%s17160_s5 + $0x11c] ss:$20 sps:$4 sm:$0xff]  }
  0x6d   :  { %v15605_v8 = vld [vmem:[%s17160_s5 + $0xf0] ss:$20 sps:$4 sm:$0xff]   ;;  %v15606_v9 = vld [vmem:[%s17165_s9 + $0x1c0] ss:$8 sps:$4 sm:$0xff]   ;;  %v15611_v11 = vld [vmem:[%s17165_s9 + $0x1d4] ss:$8 sps:$4 sm:$0xff]  }
  0x6e   :  { %v15609_v12 = vld [vmem:[%s17165_s9 + $0x1d0] ss:$8 sps:$4 sm:$0xff]   ;;  %v15617_v13 = vld [vmem:[%s17165_s9 + $0x1e4] ss:$8 sps:$4 sm:$0xff]  }
  0x6f   :  { %938 = vmatpush1.bf16.msra.mxu1 %v15521_v15  ;;  %v15614_v14 = vld [vmem:[%s17160_s5 + $0x118] ss:$20 sps:$4 sm:$0xff]   ;;  %v15615_v15 = vld [vmem:[%s17165_s9 + $0x1e0] ss:$8 sps:$4 sm:$0xff]  }
  0x70   :  { %939 = vmatprep.subr.bf16.mxu1 %v15522_v16  ;;  %v15623_v16 = vld [vmem:[%s17160_s5 + $0xc] ss:$20 sps:$4 sm:$0xff]  }
  0x73   :  { %940 = vmatpush1.bf16.msra.mxu1 %v15524_v17  ;;  %v15620_v17 = vld [vmem:[%s17165_s9 + $0x1f4] ss:$8 sps:$4 sm:$0xff]  }
  0x74   :  { %941 = vmatprep.subr.bf16.mxu1 %v15525_v18  ;;  %v15618_v18 = vld [vmem:[%s17165_s9 + $0x1f0] ss:$8 sps:$4 sm:$0xff]  }
  0x77   :  { %942 = vmatpush1.bf16.msra.mxu1 %v15527_v19  ;;  %v15629_v19 = vld [vmem:[%s17165_s9 + $0x204] ss:$8 sps:$4 sm:$0xff]  }
  0x78   :  { %943 = vmatprep.subr.bf16.mxu1 %v15528_v20  ;;  %v15621_v20 = vld [vmem:[%s17160_s5 + $0x8] ss:$20 sps:$4 sm:$0xff]  }
  0x7b   :  { %944 = vmatpush1.bf16.msra.mxu1 %v15530_v21  ;;  %v15624_v21 = vld [vmem:[%s17160_s5 + $0x34] ss:$20 sps:$4 sm:$0xff]  }
  0x7c   :  { %945 = vmatprep.subr.bf16.mxu1 %v15531_v22  ;;  %v15627_v22 = vld [vmem:[%s17165_s9 + $0x200] ss:$8 sps:$4 sm:$0xff]  }
  0x7f   :  { %946 = vmatpush1.bf16.msra.mxu1 %v15533_v23  ;;  %v15635_v23 = vld [vmem:[%s17165_s9 + $0x214] ss:$8 sps:$4 sm:$0xff]  }
  0x80   :  { %947 = vmatprep.subr.bf16.mxu1 %v15534_v24  ;;  %v15633_v24 = vld [vmem:[%s17165_s9 + $0x210] ss:$8 sps:$4 sm:$0xff]  }
  0x83   :  { %948 = vmatpush1.bf16.msra.mxu1 %v15536_v25  ;;  %v15641_v25 = vld [vmem:[%s17165_s9 + $0x224] ss:$8 sps:$4 sm:$0xff]  }
  0x84   :  { %949 = vmatprep.subr.bf16.mxu1 %v15537_v26  ;;  %v15626_v26 = vld [vmem:[%s17160_s5 + $0x30] ss:$20 sps:$4 sm:$0xff]  }
  0x87   :  { %950 = vmatpush1.bf16.msra.mxu1 %v15539_v27  ;;  %v15630_v27 = vld [vmem:[%s17160_s5 + $0x5c] ss:$20 sps:$4 sm:$0xff]  }
  0x88   :  { %951 = vmatprep.subr.bf16.mxu1 %v15540_v28  ;;  %v15639_v28 = vld [vmem:[%s17165_s9 + $0x220] ss:$8 sps:$4 sm:$0xff]  }
  0x8b   :  { %952 = vmatpush1.bf16.msra.mxu1 %v15542_v29  ;;  %v15647_v29 = vld [vmem:[%s17165_s9 + $0x234] ss:$8 sps:$4 sm:$0xff]  }
  0x8c   :  { %953 = vmatprep.subr.bf16.mxu1 %v15543_v30  ;;  %v15645_v30 = vld [vmem:[%s17165_s9 + $0x230] ss:$8 sps:$4 sm:$0xff]  }
  0x8f   :  { %954 = vmatpush1.bf16.msra.mxu1 %v15545_v31  ;;  %v15653_v31 = vld [vmem:[%s17165_s9 + $0x244] ss:$8 sps:$4 sm:$0xff]  }
  0x90   :  { %955 = vmatprep.subr.bf16.mxu1 %v15546_v32  ;;  %v15632_v32 = vld [vmem:[%s17160_s5 + $0x58] ss:$20 sps:$4 sm:$0xff]  }
  0x93   :  { %956 = vmatpush1.bf16.msra.mxu1 %v15548_v33  ;;  %v15636_v33 = vld [vmem:[%s17160_s5 + $0x84] ss:$20 sps:$4 sm:$0xff]  }
  0x94   :  { %1038 = vmatprep.subr.bf16.mxu1 %v15554_v35  ;;  %v15651_v35 = vld [vmem:[%s17165_s9 + $0x240] ss:$8 sps:$4 sm:$0xff]  }
  0x96   :  { %958 = vmatmul.mubr.bf16.vlgmr.msra.gmra.mrb[0].mxu1 %v15549_v36  ;;  %v15659_v36 = vld [vmem:[%s17165_s9 + $0x254] ss:$8 sps:$4 sm:$0xff]  }
  0x97   :  { %1039 = vmatpush1.bf16.msra.mxu1 %v15552_v37  ;;  %967 = vmatprep.mubr.bf16.mxu1 %v15558_v38  ;;  %v15657_v37 = vld [vmem:[%s17165_s9 + $0x250] ss:$8 sps:$4 sm:$0xff]   ;;  %v15665_v38 = vld [vmem:[%s17165_s9 + $0x264] ss:$8 sps:$4 sm:$0xff]  }
  0x98   :  { %1040 = vmatprep.subr.bf16.mxu1 %v15557_v39  ;;  %v15638_v39 = vld [vmem:[%s17160_s5 + $0x80] ss:$20 sps:$4 sm:$0xff]  }
  0x9b   :  { %1041 = vmatpush1.bf16.msra.mxu1 %v15555_v40  ;;  %v15642_v40 = vld [vmem:[%s17160_s5 + $0xac] ss:$20 sps:$4 sm:$0xff]  }
  0x9c   :  { %1042 = vmatprep.subr.bf16.mxu1 %v15563_v41  ;;  %v15663_v41 = vld [vmem:[%s17165_s9 + $0x260] ss:$8 sps:$4 sm:$0xff]  }
  0x9e   :  { %968 = vmatmul.mubr.bf16.gmra.mrb[4].mxu1 %v15560_v42  ;;  %v15668_v42 = vld [vmem:[%s17165_s9 + $0x274] ss:$8 sps:$4 sm:$0xff]  }
  0x9f   :  { %1043 = vmatpush1.bf16.msra.mxu1 %v15561_v43  ;;  %977 = vmatprep.mubr.bf16.mxu1 %v15567_v44  ;;  %v15666_v43 = vld [vmem:[%s17165_s9 + $0x270] ss:$8 sps:$4 sm:$0xff]   ;;  %v15677_v44 = vld [vmem:[%s17175_s17 + $0x40] sm:$0xff]  }
  0xa0   :  { %1044 = vmatprep.subr.bf16.mxu1 %v15566_v45  ;;  %v15644_v45 = vld [vmem:[%s17160_s5 + $0xa8] ss:$20 sps:$4 sm:$0xff]  }
  0xa3   :  { %1045 = vmatpush1.bf16.msra.mxu1 %v15564_v46  ;;  %v15648_v46 = vld [vmem:[%s17160_s5 + $0xd4] ss:$20 sps:$4 sm:$0xff]  }
  0xa4   :  { %1046 = vmatprep.subr.bf16.mxu1 %v15572_v48  ;;  %v15654_v48 = vld [vmem:[%s17160_s5 + $0xfc] ss:$20 sps:$4 sm:$0xff]  }
  0xa6   :  { %978 = vmatmul.mubr.bf16.gmra.mrb[8].mxu1 %v15569_v47  ;;  %v15650_v47 = vld [vmem:[%s17160_s5 + $0xd0] ss:$20 sps:$4 sm:$0xff]  }
  0xa7   :  { %1047 = vmatpush1.bf16.msra.mxu1 %v15570_v49  ;;  %987 = vmatprep.mubr.bf16.mxu1 %v15576_v50  ;;  %v15656_v49 = vld [vmem:[%s17160_s5 + $0xf8] ss:$20 sps:$4 sm:$0xff]  }
  0xa8   :  { %1048 = vmatprep.subr.bf16.mxu1 %v15575_v51  ;;  %v15660_v50 = vld [vmem:[%s17160_s5 + $0x124] ss:$20 sps:$4 sm:$0xff]   ;;  %v15662_v51 = vld [vmem:[%s17160_s5 + $0x120] ss:$20 sps:$4 sm:$0xff]  }
  0xab   :  { %1049 = vmatpush1.bf16.msra.mxu1 %v15573_v52  ;;  %v15669_v52 = vld [vmem:[%s17160_s5 + $0x10] ss:$20 sps:$4 sm:$0xff]  }
  0xac   :  { %1050 = vmatprep.subr.bf16.mxu1 %v15581_v53  ;;  %v15678_v53 = vld [vmem:[%s17175_s17] sm:$0xff]  }
  0xae   :  { %988 = vmatmul.mubr.bf16.gmra.mrb[12].mxu1 %v15578_v54  ;;  %v15679_v54 = vld [vmem:[%s17175_s17 + $0x48] sm:$0xff]  }
  0xaf   :  { %1051 = vmatpush1.bf16.msra.mxu1 %v15579_v55  ;;  %997 = vmatprep.mubr.bf16.mxu1 %v15585_v56  ;;  %v15680_v55 = vld [vmem:[%s17175_s17 + $0x8] sm:$0xff]   ;;  %v15681_v56 = vld [vmem:[%s17175_s17 + $0x50] sm:$0xff]  }
  0xb0   :  { %1052 = vmatprep.subr.bf16.mxu1 %v15584_v57  ;;  %v15670_v57 = vld [vmem:[%s17160_s5 + $0x38] ss:$20 sps:$4 sm:$0xff]  }
  0xb3   :  { %1053 = vmatpush1.bf16.msra.mxu1 %v15582_v58  ;;  %v15682_v58 = vld [vmem:[%s17175_s17 + $0x10] sm:$0xff]  }
  0xb4   :  { %1054 = vmatprep.subr.bf16.mxu1 %v15590_v59  ;;  %v15683_v59 = vld [vmem:[%s17175_s17 + $0x58] sm:$0xff]  }
  0xb6   :  { %998 = vmatmul.mubr.bf16.gmra.mrb[16].mxu1 %v15587_v60  ;;  %v15684_v60 = vld [vmem:[%s17175_s17 + $0x18] sm:$0xff]  }
  0xb7   :  { %1055 = vmatpush1.bf16.msra.mxu1 %v15588_v61  ;;  %1007 = vmatprep.mubr.bf16.mxu1 %v15594_v62  ;;  %v15685_v61 = vld [vmem:[%s17175_s17 + $0x60] sm:$0xff]  }
  0xb8   :  { %1056 = vmatprep.subr.bf16.mxu1 %v15593_v63  ;;  %v15671_v62 = vld [vmem:[%s17160_s5 + $0x60] ss:$20 sps:$4 sm:$0xff]  }
  0xb9   :  { %v15686_v63 = vld [vmem:[%s17175_s17 + $0x20] sm:$0xff]  }
  0xbb   :  { %1057 = vmatpush1.bf16.msra.mxu1 %v15591_v0  ;;  %v15687_v0 = vld [vmem:[%s17175_s17 + $0x68] sm:$0xff]  }
  0xbc   :  { %1058 = vmatprep.subr.bf16.mxu1 %v15599_v1  ;;  %v15672_v1 = vld [vmem:[%s17160_s5 + $0x88] ss:$20 sps:$4 sm:$0xff]  }
  0xbe   :  { %1008 = vmatmul.mubr.bf16.gmra.mrb[20].mxu1 %v15596_v2  ;;  %v15673_v2 = vld [vmem:[%s17160_s5 + $0xb0] ss:$20 sps:$4 sm:$0xff]  }
  0xbf   :  { %1059 = vmatpush1.bf16.msra.mxu1 %v15597_v3  ;;  %1017 = vmatprep.mubr.bf16.mxu1 %v15603_v4  ;;  %v15674_v3 = vld [vmem:[%s17160_s5 + $0xd8] ss:$20 sps:$4 sm:$0xff]   ;;  %v15675_v4 = vld [vmem:[%s17160_s5 + $0x100] ss:$20 sps:$4 sm:$0xff]  }
  0xc0   :  { %1060 = vmatprep.subr.bf16.mxu1 %v15602_v5  ;;  %v15676_v5 = vld [vmem:[%s17160_s5 + $0x128] ss:$20 sps:$4 sm:$0xff]  }
  0xc3   :  { %1061 = vmatpush1.bf16.msra.mxu1 %v15600_v6  ;;  %v15688_v6 = vld [vmem:[%s17175_s17 + $0x28] sm:$0xff]  }
  0xc4   :  { %1062 = vmatprep.subr.bf16.mxu1 %v15608_v7  ;;  %v15689_v7 = vld [vmem:[%s17175_s17 + $0x70] sm:$0xff]  }
  0xc6   :  { %1018 = vmatmul.mubr.bf16.gmra.mrb[24].mxu1 %v15605_v8  ;;  %v15690_v8 = vld [vmem:[%s17175_s17 + $0x30] sm:$0xff]  }
  0xc7   :  { %1063 = vmatpush1.bf16.msra.mxu1 %v15606_v9  ;;  %1027 = vmatprep.mubr.bf16.mxu1 %v15612_v10  ;;  %v15691_v9 = vld [vmem:[%s17175_s17 + $0x78] sm:$0xff]  }
  0xc8   :  { %1064 = vmatprep.subr.bf16.mxu1 %v15611_v11  ;;  %v15692_v10 = vld [vmem:[%s17175_s17 + $0x38] sm:$0xff]   ;;  %v307_v11 = vlaneseq }
  0xcb   :  { %1065 = vmatpush1.bf16.msra.mxu1 %v15609_v12  ;;  %v17516_v12 = vshrl.u32 %v307_v11, 7 }
  0xcc   :  { %1066 = vmatprep.subr.bf16.mxu1 %v15617_v13  ;;  %v305_v13 = vld [vmem:[%s17170_s13] sm:$0x3] }
  0xce   :  { %1028 = vmatmul.mubr.bf16.gmra.mrb[28].mxu1 %v15614_v14  ;;  %v17520_v14 = vsub.s32 0, %v17516_v12 }
  0xcf   :  { %1067 = vmatpush1.bf16.msra.mxu1 %v15615_v15  ;;  %1070 = vmatprep.mubr.bf16.mxu1 %v15623_v16  ;;  %v17523_v15 = vsub.s32 1, %v17516_v12 }
  0xd0   :  { %1068 = vmatprep.subr.bf16.mxu1 %v15620_v17  ;;  %v17526_v16 = vrot.slane %v305_v13, %v17520_v14 }
  0xd1   :  { %v17529_v17 = vrot.slane %v305_v13, %v17523_v15 }
  0xd3   :  { %1069 = vmatpush1.bf16.msra.mxu1 %v15618_v18 }
  0xd4   :  { %1151 = vmatprep.subr.bf16.mxu1 %v15629_v19 }
  0xd6   :  { %1071 = vmatmul.mubr.bf16.vlgmr.msra.gmra.mrb[0].mxu1 %v15621_v20 }
  0xd7   :  { %1080 = vmatprep.mubr.bf16.mxu1 %v15624_v21  ;;  %1152 = vmatpush1.bf16.msra.mxu1 %v15627_v22 }
  0xd8   :  { %1153 = vmatprep.subr.bf16.mxu1 %v15635_v23 }
  0xdb   :  { %1154 = vmatpush1.bf16.msra.mxu1 %v15633_v24 }
  0xdc   :  { %1155 = vmatprep.subr.bf16.mxu1 %v15641_v25 }
  0xde   :  { %1081 = vmatmul.mubr.bf16.gmra.mrb[4].mxu1 %v15626_v26 }
  0xdf   :  { %1090 = vmatprep.mubr.bf16.mxu1 %v15630_v27  ;;  %1156 = vmatpush1.bf16.msra.mxu1 %v15639_v28 }
  0xe0   :  { %1157 = vmatprep.subr.bf16.mxu1 %v15647_v29 }
  0xe3   :  { %1158 = vmatpush1.bf16.msra.mxu1 %v15645_v30 }
  0xe4   :  { %1159 = vmatprep.subr.bf16.mxu1 %v15653_v31 }
  0xe6   :  { %1091 = vmatmul.mubr.bf16.gmra.mrb[8].mxu1 %v15632_v32 }
  0xe7   :  { %1100 = vmatprep.mubr.bf16.mxu1 %v15636_v33  ;;  %1160 = vmatpush1.bf16.msra.mxu1 %v15651_v35 }
  0xe8   :  { %1161 = vmatprep.subr.bf16.mxu1 %v15659_v36 }
  0xeb   :  { %1162 = vmatpush1.bf16.msra.mxu1 %v15657_v37 }
  0xec   :  { %1163 = vmatprep.subr.bf16.mxu1 %v15665_v38 }
  0xee   :  { %1101 = vmatmul.mubr.bf16.gmra.mrb[12].mxu1 %v15638_v39 }
  0xef   :  { %1110 = vmatprep.mubr.bf16.mxu1 %v15642_v40  ;;  %1164 = vmatpush1.bf16.msra.mxu1 %v15663_v41 }
  0xf0   :  { %1165 = vmatprep.subr.bf16.mxu1 %v15668_v42 }
  0xf3   :  { %1166 = vmatpush1.bf16.msra.mxu1 %v15666_v43 }
  0xf4   :  { %14330 = vmatprep.subr.bf16.mxu1 %v15677_v44 }
  0xf6   :  { %1111 = vmatmul.mubr.bf16.gmra.mrb[16].mxu1 %v15644_v45 }
  0xf7   :  { %1120 = vmatprep.mubr.bf16.mxu1 %v15648_v46 }
  0xfe   :  { %1121 = vmatmul.mubr.bf16.gmra.mrb[20].mxu1 %v15650_v47 }
  0xff   :  { %1130 = vmatprep.mubr.bf16.mxu1 %v15654_v48 }
 0x106   :  { %1131 = vmatmul.mubr.bf16.gmra.mrb[24].mxu1 %v15656_v49 }
 0x107   :  { %1140 = vmatprep.mubr.bf16.mxu1 %v15660_v50 }
 0x10e   :  { %1141 = vmatmul.mubr.bf16.gmra.mrb[28].mxu1 %v15662_v51 }
 0x10f   :  { %1183 = vmatprep.mubr.bf16.mxu1 %v17148_v34 }
 0x116   :  { %1184 = vmatmul.mubr.bf16.vlgmr.msra.gmra.mrb[0].mxu1 %v15669_v52 }
 0x117   :  { %1193 = vmatprep.mubr.bf16.mxu1 %v17148_v34  ;;  %14331 = vmatpush3.bf16.msra.mxu1 %v15678_v53 }
 0x118   :  { %14332 = vmatprep.subr.bf16.mxu1 %v15679_v54 }
 0x11b   :  { %14333 = vmatpush3.bf16.msra.mxu1 %v15680_v55 }
 0x11c   :  { %14334 = vmatprep.subr.bf16.mxu1 %v15681_v56 }
 0x11e   :  { %1194 = vmatmul.mubr.bf16.gmra.mrb[4].mxu1 %v15670_v57 }
 0x11f   :  { %1203 = vmatprep.mubr.bf16.mxu1 %v17148_v34  ;;  %14335 = vmatpush3.bf16.msra.mxu1 %v15682_v58 }
 0x120   :  { %14336 = vmatprep.subr.bf16.mxu1 %v15683_v59 }
 0x123   :  { %14337 = vmatpush3.bf16.msra.mxu1 %v15684_v60 }
 0x124   :  { %14338 = vmatprep.subr.bf16.mxu1 %v15685_v61 }
 0x126   :  { %1204 = vmatmul.mubr.bf16.gmra.mrb[8].mxu1 %v15671_v62 }
 0x127   :  { %1213 = vmatprep.mubr.bf16.mxu1 %v17148_v34  ;;  %14339 = vmatpush3.bf16.msra.mxu1 %v15686_v63 }
 0x128   :  { %14340 = vmatprep.subr.bf16.mxu1 %v15687_v0 }
 0x12b   :  { %14341 = vmatpush3.bf16.msra.mxu1 %v15688_v6 }
 0x12c   :  { %14342 = vmatprep.subr.bf16.mxu1 %v15689_v7 }
 0x12e   :  { %1214 = vmatmul.mubr.bf16.gmra.mrb[12].mxu1 %v15672_v1 }
 0x12f   :  { %1223 = vmatprep.mubr.bf16.mxu1 %v17148_v34  ;;  %14343 = vmatpush3.bf16.msra.mxu1 %v15690_v8 }
 0x130   :  { %14344 = vmatprep.subr.bf16.mxu1 %v15691_v9 }
 0x133   :  { %14345 = vmatpush3.bf16.msra.mxu1 %v15692_v10 }
 0x136   :  { %1224 = vmatmul.mubr.bf16.gmra.mrb[16].mxu1 %v15673_v2 }
 0x137   :  { %1233 = vmatprep.mubr.bf16.mxu1 %v17148_v34 }
 0x13e   :  { %1234 = vmatmul.mubr.bf16.gmra.mrb[20].mxu1 %v15674_v3 }
 0x13f   :  { %1243 = vmatprep.mubr.bf16.mxu1 %v17148_v34 }
 0x146   :  { %1244 = vmatmul.mubr.bf16.gmra.mrb[24].mxu1 %v15675_v4 }
 0x147   :  { %1253 = vmatprep.mubr.bf16.mxu1 %v17148_v34 }
 0x14e   :  { %1254 = vmatmul.mubr.bf16.gmra.mrb[28].mxu1 %v15676_v5 }
 0x1e9   :  { %v1185_v18 = vpop.f32.mrb[0].mxu1 }
 0x1ea   :  { %v15212_v19 = vadd.f32 %v1185_v18, %v17526_v16  ;;  %v1187_v20 = vpop.f32.mrb[1].mxu1 }
 0x1eb   :  { %v15213_v21 = vadd.f32 %v1187_v20, %v17529_v17  ;;  %v1189_v22 = vpop.f32.mrb[2].mxu1 }
 0x1ec   :  { %v15214_v23 = vadd.f32 %v1189_v22, %v17526_v16  ;;  %v1191_v24 = vpop.f32.mrb[3].mxu1  ;;  %v1264_v26 = vmax.f32 %v15212_v19, 0.0 }
 0x1ed   :  { %v15215_v25 = vadd.f32 %v1191_v24, %v17529_v17  ;;  %v1265_v28 = vmax.f32 %v15213_v21, 0.0 }
 0x1ee   :  { %v1266_v27 = vmax.f32 %v15214_v23, 0.0 }
 0x1ef   :  { %v1267_v29 = vmax.f32 %v15215_v25, 0.0 }
 0x1f0   :  { %v1328_v30 = vpack.c.bf16 %v1266_v27, %v1264_v26 }
 0x1f1   :  { %v1195_v31 = vpop.f32.mrb[4].mxu1  ;;  %v1329_v32 = vpack.c.bf16 %v1267_v29, %v1265_v28 }
 0x1f2   :  { %v15216_v33 = vadd.f32 %v1195_v31, %v17526_v16  ;;  %v1197_v35 = vpop.f32.mrb[5].mxu1 }
 0x1f3   :  { %v15217_v36 = vadd.f32 %v1197_v35, %v17529_v17  ;;  %v1199_v37 = vpop.f32.mrb[6].mxu1  ;;  %1472 = vmatprep.mubr.bf16.mxu1 %v1329_v32 }
 0x1f4   :  { %v15218_v38 = vadd.f32 %v1199_v37, %v17526_v16  ;;  %v1201_v39 = vpop.f32.mrb[7].mxu1  ;;  %1473 = vmatmul.mubr.bf16.vlgmr.msra.gmra.mrb[32].mxu1 %v1328_v30  ;;  %v1268_v41 = vmax.f32 %v15216_v33, 0.0 }
 0x1f5   :  { %v15219_v40 = vadd.f32 %v1201_v39, %v17529_v17  ;;  %v1269_v43 = vmax.f32 %v15217_v36, 0.0 }
 0x1f6   :  { %v1270_v42 = vmax.f32 %v15218_v38, 0.0 }
 0x1f7   :  { %v1271_v44 = vmax.f32 %v15219_v40, 0.0 }
 0x1f8   :  { %v1330_v45 = vpack.c.bf16 %v1270_v42, %v1268_v41 }
 0x1f9   :  { %v1205_v46 = vpop.f32.mrb[8].mxu1  ;;  %v1331_v47 = vpack.c.bf16 %v1271_v44, %v1269_v43 }
 0x1fa   :  { %v15220_v48 = vadd.f32 %v1205_v46, %v17526_v16  ;;  %v1207_v49 = vpop.f32.mrb[9].mxu1 }
 0x1fb   :  { %v15221_v50 = vadd.f32 %v1207_v49, %v17529_v17  ;;  %v1209_v51 = vpop.f32.mrb[10].mxu1  ;;  %1480 = vmatprep.mubr.bf16.mxu1 %v1331_v47 }
 0x1fc   :  { %v15222_v52 = vadd.f32 %v1209_v51, %v17526_v16  ;;  %v1211_v53 = vpop.f32.mrb[11].mxu1  ;;  %1481 = vmatmul.mubr.bf16.gmra.mrb[36].mxu1 %v1330_v45  ;;  %v1272_v55 = vmax.f32 %v15220_v48, 0.0 }
 0x1fd   :  { %v15223_v54 = vadd.f32 %v1211_v53, %v17529_v17  ;;  %v1273_v57 = vmax.f32 %v15221_v50, 0.0 }
 0x1fe   :  { %v1274_v56 = vmax.f32 %v15222_v52, 0.0 }
 0x1ff   :  { %v1275_v58 = vmax.f32 %v15223_v54, 0.0 }
 0x200   :  { %v1332_v59 = vpack.c.bf16 %v1274_v56, %v1272_v55 }
 0x201   :  { %v1215_v60 = vpop.f32.mrb[12].mxu1  ;;  %v1333_v61 = vpack.c.bf16 %v1275_v58, %v1273_v57 }
 0x202   :  { %v15224_v62 = vadd.f32 %v1215_v60, %v17526_v16  ;;  %v1217_v63 = vpop.f32.mrb[13].mxu1 }
 0x203   :  { %v15225_v0 = vadd.f32 %v1217_v63, %v17529_v17  ;;  %v1219_v1 = vpop.f32.mrb[14].mxu1  ;;  %1488 = vmatprep.mubr.bf16.mxu1 %v1333_v61 }
 0x204   :  { %v15226_v2 = vadd.f32 %v1219_v1, %v17526_v16  ;;  %v1221_v3 = vpop.f32.mrb[15].mxu1  ;;  %1489 = vmatmul.mubr.bf16.gmra.mrb[40].mxu1 %v1332_v59  ;;  %v1276_v5 = vmax.f32 %v15224_v62, 0.0 }
 0x205   :  { %v15227_v4 = vadd.f32 %v1221_v3, %v17529_v17  ;;  %v1277_v7 = vmax.f32 %v15225_v0, 0.0 }
 0x206   :  { %v1278_v6 = vmax.f32 %v15226_v2, 0.0 }
 0x207   :  { %v1279_v8 = vmax.f32 %v15227_v4, 0.0 }
 0x208   :  { %v1334_v9 = vpack.c.bf16 %v1278_v6, %v1276_v5 }
 0x209   :  { %v1335_v10 = vpack.c.bf16 %v1279_v8, %v1277_v7  ;;  %v1225_v11 = vpop.f32.mrb[16].mxu1 }
 0x20a   :  { %v15228_v13 = vadd.f32 %v1225_v11, %v17526_v16  ;;  %v1227_v18 = vpop.f32.mrb[17].mxu1 }
 0x20b   :  { %v15229_v19 = vadd.f32 %v1227_v18, %v17529_v17  ;;  %v1229_v20 = vpop.f32.mrb[18].mxu1  ;;  %1496 = vmatprep.mubr.bf16.mxu1 %v1335_v10 }
 0x20c   :  { %v15230_v21 = vadd.f32 %v1229_v20, %v17526_v16  ;;  %v1231_v22 = vpop.f32.mrb[19].mxu1  ;;  %1497 = vmatmul.mubr.bf16.gmra.mrb[44].mxu1 %v1334_v9  ;;  %v1280_v24 = vmax.f32 %v15228_v13, 0.0 }
 0x20d   :  { %v15231_v23 = vadd.f32 %v1231_v22, %v17529_v17  ;;  %v1281_v26 = vmax.f32 %v15229_v19, 0.0 }
 0x20e   :  { %v1282_v25 = vmax.f32 %v15230_v21, 0.0 }
 0x20f   :  { %v1283_v27 = vmax.f32 %v15231_v23, 0.0 }
 0x210   :  { %v1336_v28 = vpack.c.bf16 %v1282_v25, %v1280_v24 }
 0x211   :  { %v1337_v29 = vpack.c.bf16 %v1283_v27, %v1281_v26  ;;  %v1235_v30 = vpop.f32.mrb[20].mxu1 }
 0x212   :  { %v15232_v31 = vadd.f32 %v1235_v30, %v17526_v16  ;;  %v1237_v32 = vpop.f32.mrb[21].mxu1 }
 0x213   :  { %v15233_v33 = vadd.f32 %v1237_v32, %v17529_v17  ;;  %v1239_v35 = vpop.f32.mrb[22].mxu1  ;;  %1504 = vmatprep.mubr.bf16.mxu1 %v1337_v29 }
 0x214   :  { %v15234_v36 = vadd.f32 %v1239_v35, %v17526_v16  ;;  %v1241_v37 = vpop.f32.mrb[23].mxu1  ;;  %1505 = vmatmul.mubr.bf16.gmra.mrb[48].mxu1 %v1336_v28  ;;  %v1284_v39 = vmax.f32 %v15232_v31, 0.0 }
 0x215   :  { %v15235_v38 = vadd.f32 %v1241_v37, %v17529_v17  ;;  %v1285_v41 = vmax.f32 %v15233_v33, 0.0 }
 0x216   :  { %v1286_v40 = vmax.f32 %v15234_v36, 0.0 }
 0x217   :  { %v1287_v42 = vmax.f32 %v15235_v38, 0.0 }
 0x218   :  { %v1338_v43 = vpack.c.bf16 %v1286_v40, %v1284_v39 }
 0x219   :  { %v1339_v44 = vpack.c.bf16 %v1287_v42, %v1285_v41  ;;  %v1245_v45 = vpop.f32.mrb[24].mxu1 }
 0x21a   :  { %v15236_v46 = vadd.f32 %v1245_v45, %v17526_v16  ;;  %v1247_v47 = vpop.f32.mrb[25].mxu1 }
 0x21b   :  { %v15237_v48 = vadd.f32 %v1247_v47, %v17529_v17  ;;  %v1249_v49 = vpop.f32.mrb[26].mxu1  ;;  %1512 = vmatprep.mubr.bf16.mxu1 %v1339_v44 }
 0x21c   :  { %v15238_v50 = vadd.f32 %v1249_v49, %v17526_v16  ;;  %v1251_v51 = vpop.f32.mrb[27].mxu1  ;;  %1513 = vmatmul.mubr.bf16.gmra.mrb[52].mxu1 %v1338_v43  ;;  %v1288_v53 = vmax.f32 %v15236_v46, 0.0 }
 0x21d   :  { %v15239_v52 = vadd.f32 %v1251_v51, %v17529_v17  ;;  %v1289_v55 = vmax.f32 %v15237_v48, 0.0 }
 0x21e   :  { %v1290_v54 = vmax.f32 %v15238_v50, 0.0 }
 0x21f   :  { %v1291_v56 = vmax.f32 %v15239_v52, 0.0 }
 0x220   :  { %v1340_v57 = vpack.c.bf16 %v1290_v54, %v1288_v53 }
 0x221   :  { %v1341_v58 = vpack.c.bf16 %v1291_v56, %v1289_v55  ;;  %v1255_v59 = vpop.f32.mrb[28].mxu1 }
 0x222   :  { %v15240_v60 = vadd.f32 %v1255_v59, %v17526_v16  ;;  %v1257_v61 = vpop.f32.mrb[29].mxu1 }
 0x223   :  { %v15241_v62 = vadd.f32 %v1257_v61, %v17529_v17  ;;  %v1259_v63 = vpop.f32.mrb[30].mxu1  ;;  %1520 = vmatprep.mubr.bf16.mxu1 %v1341_v58 }
 0x224   :  { %v15242_v0 = vadd.f32 %v1259_v63, %v17526_v16  ;;  %v1261_v1 = vpop.f32.mrb[31].mxu1  ;;  %1521 = vmatmul.mubr.bf16.gmra.mrb[56].mxu1 %v1340_v57  ;;  %v1292_v3 = vmax.f32 %v15240_v60, 0.0 }
 0x225   :  { %v15243_v2 = vadd.f32 %v1261_v1, %v17529_v17  ;;  %v1293_v5 = vmax.f32 %v15241_v62, 0.0 }
 0x226   :  { %v1294_v4 = vmax.f32 %v15242_v0, 0.0 }
 0x227   :  { %v1295_v6 = vmax.f32 %v15243_v2, 0.0 }
 0x228   :  { %v1342_v7 = vpack.c.bf16 %v1294_v4, %v1292_v3 }
 0x229   :  { %v1343_v8 = vpack.c.bf16 %v1295_v6, %v1293_v5 }
 0x22b   :  { %1528 = vmatprep.mubr.bf16.mxu1 %v1343_v8 }
 0x22c   :  { %1529 = vmatmul.mubr.bf16.gmra.mrb[60].mxu1 %v1342_v7 }
 0x22d   :  { %93 = vsyncpa [#allocation4], 0  ;;  %v17149_v9 = vmov 0.0   ;;  %vm17150_vm0 = vmmov 0   ;;  %v1546_v6 = vld [vmem:[%s17190_s29] sm:$0x1] }
 0x22e   :  { %14720 = vmatprep.subr.bf16.mxu1 %v17149_v9  ;;  %14736 = vmatprep.mubr.msk.bf16.mxu1 %vm17150_vm0, %v17149_v9  ;;  %v15693_v7 = vld [vmem:[%s17180_s21] sm:$0xff]   ;;  %v15694_v8 = vld [vmem:[%s17180_s21 + $0x8] sm:$0xff]   ;;  %vm1670_vm1 = vcmask 1041408   ;;  %vm1620_vm2 = vcmask 523264   ;;  %vm1666_vm3 = vcmask 31744   ;;  %vm2106_vm4 = vcmask 15360  }
 0x22f   :  { %vm2119_vm5 = vcmask 1040384   ;;  %s19149_s0 = sld [smem:[#allocation10_spill]]  ;;  %s19150_s5 = sld [smem:[#allocation11_spill]]  ;;  %vm3886_vm6 = vcmask 261120   ;;  %vm5142_vm7 = vcmask 130048   ;;  %vm8060_vm8 = vcmask 1043456  }
 0x230   :  { %s19151_s9 = sld [smem:[#allocation6_spill]]  ;;  %s19152_s13 = sld [smem:[#allocation9_spill]]  ;;  %vm8056_vm9 = vcmask 64512   ;;  %vm12426_vm10 = vcmask 140288   ;;  %vm12373_vm11 = vcmask 146432  }
 0x231   :  { %s19153_s17 = sld [smem:[#allocation7_spill]]  ;;  %s19156_s29 = sld [smem:[#allocation16_spill]] }
 0x232   :  { %s19164_s27 = sld [smem:[#allocation19_spill]]  ;;  %s19165_s15 = sld [smem:[#allocation20_spill]] }
 0x233   :  { %s19166_s16 = sld [smem:[#allocation21_spill]]  ;;  %s19167_s18 = sld [smem:[#allocation24_spill]] }
 0x234   :  { %s19168_s22 = sld [smem:[#allocation25_spill]]  ;;  %s19169_s23 = sld [smem:[#allocation27_spill]] }
 0x235   :  { %s19170_s26 = sld [smem:[#allocation26_spill]]  ;;  %s19171_s1 = sld [smem:[#allocation29_spill]] }
 0x236   :  { %s19172_s28 = sld [smem:[#allocation28_spill]]  ;;  %s19173_s2 = sld [smem:[#allocation30_spill]] }
 0x237   :  { %s17151_s10 = smov [#allocation3]  }
 0x238   :  { %s12436_s7 = sshll.u32 %s17151_s10, 4  ;;  %s12437_s7 = int_to_ptr.vmem [resolvable:$true] %s12436_s7 }
 0x239   :  { %s17082_s11 = scalar_lea.vmem %s12437_s7, 32  ;;  %p17087_p1 = scmp.lt.s32.totalorder %s12437_s7, %s12437_s7 }
 0x23a   :  { %p17083_p0 = scmp.ne.s32.totalorder %s12437_s7, %s17082_s11  ;;  %p17088_p2 = scmp.lt.s32.totalorder %s17082_s11, %s17082_s11 }
 0x23c   :  { %p17089_p3 = por %p17088_p2, %p17087_p1 }
 0x23e   :  { %p17090_p4 = pnand %p17089_p3, %p17083_p0 }
 0x2c7   :  { %v14346_v16 = vpop.f32.mrb[32].mxu1 }
 0x2c8   :  { %v14347_v10 = vpop.f32.mrb[33].mxu1 }
 0x2c9   :  { %v14348_v11 = vadd.f32 %v14347_v10, %v14346_v16  ;;  %v14349_v17 = vpop.f32.mrb[34].mxu1  ;;  %v15695_v16 = vld [vmem:[%s17180_s21 + $0x10] sm:$0xff]   ;;  %v15696_v10 = vld [vmem:[%s17180_s21 + $0x18] sm:$0xff]   ;;  %s19154_s21 = sld [smem:[#allocation8_spill]] }
 0x2ca   :  { %v14350_v13 = vpop.f32.mrb[35].mxu1 }
 0x2cb   :  { %v14351_v18 = vadd.f32 %v14350_v13, %v14349_v17 }
 0x2cd   :  { %v17566_v19 = vpack.c.bf16 %v14351_v18, %v14348_v11  ;;  %v1545_v11 = vld [vmem:[%s17185_s25] sm:$0x3]  ;;  %s19155_s25 = sld [smem:[#allocation12_spill]] }
 0x2cf   :  { %v14352_v20 = vpop.f32.mrb[36].mxu1  ;;  %14721 = vmatpush3.bf16.msra.mxu1 %v17566_v19 }
 0x2d0   :  { %v14353_v21 = vpop.f32.mrb[37].mxu1  ;;  %14722 = vmatprep.subr.bf16.mxu1 %v17149_v9 }
 0x2d1   :  { %v14354_v22 = vadd.f32 %v14353_v21, %v14352_v20  ;;  %v14355_v23 = vpop.f32.mrb[38].mxu1  ;;  %v1672_v20 = vsel %vm1670_vm1, %v1545_v11, 0 }
 0x2d2   :  { %v14356_v24 = vpop.f32.mrb[39].mxu1 }
 0x2d3   :  { %v14357_v25 = vadd.f32 %v14356_v24, %v14355_v23 }
 0x2d5   :  { %v17570_v26 = vpack.c.bf16 %v14357_v25, %v14354_v22 }
 0x2d7   :  { %v14358_v27 = vpop.f32.mrb[40].mxu1  ;;  %14723 = vmatpush3.bf16.msra.mxu1 %v17570_v26 }
 0x2d8   :  { %v14359_v28 = vpop.f32.mrb[41].mxu1  ;;  %14724 = vmatprep.subr.bf16.mxu1 %v17149_v9 }
 0x2d9   :  { %v14360_v29 = vadd.f32 %v14359_v28, %v14358_v27  ;;  %v14361_v30 = vpop.f32.mrb[42].mxu1  ;;  %v15697_v28 = vld [vmem:[%s17195_s3] sm:$0xff]  }
 0x2da   :  { %v14362_v31 = vpop.f32.mrb[43].mxu1 }
 0x2db   :  { %v14363_v32 = vadd.f32 %v14362_v31, %v14361_v30  ;;  %v15698_v31 = vld [vmem:[%s17195_s3 + $0x8] sm:$0xff]  }
 0x2dd   :  { %v17574_v33 = vpack.c.bf16 %v14363_v32, %v14360_v29  ;;  %v15699_v32 = vld [vmem:[%s17195_s3 + $0x10] sm:$0xff]  }
 0x2df   :  { %v14364_v35 = vpop.f32.mrb[44].mxu1  ;;  %14725 = vmatpush3.bf16.msra.mxu1 %v17574_v33 }
 0x2e0   :  { %v14365_v36 = vpop.f32.mrb[45].mxu1  ;;  %14726 = vmatprep.subr.bf16.mxu1 %v17149_v9 }
 0x2e1   :  { %v14366_v37 = vadd.f32 %v14365_v36, %v14364_v35  ;;  %v14367_v38 = vpop.f32.mrb[46].mxu1  ;;  %v15700_v35 = vld [vmem:[%s17195_s3 + $0x18] sm:$0xff]   ;;  %v15701_v36 = vld [vmem:[%s17195_s3 + $0x20] sm:$0xff]  }
 0x2e2   :  { %v14368_v39 = vpop.f32.mrb[47].mxu1 }
 0x2e3   :  { %v14369_v40 = vadd.f32 %v14368_v39, %v14367_v38  ;;  %v15703_v38 = vld [vmem:[%s17195_s3 + $0x30] sm:$0xff]   ;;  %v15704_v39 = vld [vmem:[%s17195_s3 + $0x38] sm:$0xff]  }
 0x2e5   :  { %v17578_v41 = vpack.c.bf16 %v14369_v40, %v14366_v37  ;;  %v15702_v37 = vld [vmem:[%s17195_s3 + $0x28] sm:$0xff]   ;;  %v15705_v40 = vld [vmem:[%s17195_s3 + $0x40] sm:$0xff]  }
 0x2e7   :  { %v14370_v42 = vpop.f32.mrb[48].mxu1  ;;  %14727 = vmatpush3.bf16.msra.mxu1 %v17578_v41 }
 0x2e8   :  { %v14371_v43 = vpop.f32.mrb[49].mxu1  ;;  %14728 = vmatprep.subr.bf16.mxu1 %v17149_v9 }
 0x2e9   :  { %v14372_v44 = vadd.f32 %v14371_v43, %v14370_v42  ;;  %v14373_v45 = vpop.f32.mrb[50].mxu1  ;;  %v1722_v42 = vld [vmem:[%s17200_s8 + $0x10] sm:$0xff]  ;;  %v1720_v43 = vld [vmem:[%s17200_s8] sm:$0xff] }
 0x2ea   :  { %v14374_v46 = vpop.f32.mrb[51].mxu1  ;;  %1756 = vperm.xlu1 %15500, %v1722_v42   ;;  %1746 = vperm.xlu0 %15499, %v1720_v43  }
 0x2eb   :  { %v14375_v47 = vadd.f32 %v14374_v46, %v14373_v45  ;;  %v1721_v45 = vld [vmem:[%s17200_s8 + $0x8] sm:$0xff] }
 0x2ec   :  { %v1725_v46 = vld [vmem:[%s17200_s8 + $0x28] sm:$0xff] }
 0x2ed   :  { %v17582_v48 = vpack.c.bf16 %v14375_v47, %v14372_v44  ;;  %v1723_v44 = vld [vmem:[%s17200_s8 + $0x18] sm:$0xff]  ;;  %v1724_v47 = vld [vmem:[%s17200_s8 + $0x20] sm:$0xff] }
 0x2ee   :  { %1761 = vperm.xlu1 %15500, %v1723_v44   ;;  %1751 = vperm.xlu0 %15499, %v1721_v45  }
 0x2ef   :  { %v14376_v49 = vpop.f32.mrb[52].mxu1  ;;  %14729 = vmatpush3.bf16.msra.mxu1 %v17582_v48 }
 0x2f0   :  { %v14377_v50 = vpop.f32.mrb[53].mxu1  ;;  %14730 = vmatprep.subr.bf16.mxu1 %v17149_v9 }
 0x2f1   :  { %v14378_v51 = vadd.f32 %v14377_v50, %v14376_v49  ;;  %v14379_v52 = vpop.f32.mrb[54].mxu1  ;;  %v1726_v49 = vld [vmem:[%s17200_s8 + $0x30] sm:$0xff] }
 0x2f2   :  { %v14380_v53 = vpop.f32.mrb[55].mxu1  ;;  %1771 = vperm.xlu1 %15500, %v1725_v46   ;;  %1766 = vperm.xlu0 %15499, %v1724_v47  }
 0x2f3   :  { %v14381_v54 = vadd.f32 %v14380_v53, %v14379_v52 }
 0x2f5   :  { %v17586_v55 = vpack.c.bf16 %v14381_v54, %v14378_v51 }
 0x2f6   :  { %1776 = vperm.xlu0 %15499, %v1726_v49  }
 0x2f7   :  { %v14382_v56 = vpop.f32.mrb[56].mxu1  ;;  %14731 = vmatpush3.bf16.msra.mxu1 %v17586_v55 }
 0x2f8   :  { %v14383_v57 = vpop.f32.mrb[57].mxu1  ;;  %14732 = vmatprep.subr.bf16.mxu1 %v17149_v9 }
 0x2f9   :  { %v14384_v58 = vadd.f32 %v14383_v57, %v14382_v56  ;;  %v14385_v59 = vpop.f32.mrb[58].mxu1 }
 0x2fa   :  { %v14386_v60 = vpop.f32.mrb[59].mxu1 }
 0x2fb   :  { %v14387_v61 = vadd.f32 %v14386_v60, %v14385_v59  ;;  %v15710_v60 = vld [vmem:[%s17205_s14 + $0x8] sm:$0xff]  }
 0x2fd   :  { %v17590_v62 = vpack.c.bf16 %v14387_v61, %v14384_v58  ;;  %v15711_v61 = vld [vmem:[%s17205_s14 + $0x10] sm:$0xff]  }
 0x2ff   :  { %v14388_v63 = vpop.f32.mrb[60].mxu1  ;;  %14733 = vmatpush3.bf16.msra.mxu1 %v17590_v62 }
 0x300   :  { %v14389_v0 = vpop.f32.mrb[61].mxu1  ;;  %14734 = vmatprep.subr.bf16.mxu1 %v17149_v9 }
 0x301   :  { %v14390_v1 = vadd.f32 %v14389_v0, %v14388_v63  ;;  %v14391_v2 = vpop.f32.mrb[62].mxu1 }
 0x302   :  { %v14392_v3 = vpop.f32.mrb[63].mxu1 }
 0x303   :  { %v14393_v4 = vadd.f32 %v14392_v3, %v14391_v2  ;;  %v15712_v2 = vld [vmem:[%s17205_s14 + $0x18] sm:$0xff]  }
 0x305   :  { %v17594_v5 = vpack.c.bf16 %v14393_v4, %v14390_v1 }
 0x307   :  { %14735 = vmatpush3.bf16.msra.mxu1 %v17594_v5 }
 0x308   :  { %14740 = vmatprep.subr.bf16.mxu1 %v17149_v9 }
 0x30a   :  { %14737 = vmatmul.mubr.bf16.vlgmr.msra.gmra.mrb[64].mxu1 %v1546_v6 }
 0x30b   :  { %14741 = vmatpush3.bf16.msra.mxu1 %v15693_v7  ;;  %14748 = vmatprep.mubr.msk.bf16.mxu1 %vm17150_vm0, %v17149_v9 }
 0x30c   :  { %14742 = vmatprep.subr.bf16.mxu1 %v17149_v9 }
 0x30f   :  { %14743 = vmatpush3.bf16.msra.mxu1 %v15694_v8 }
 0x310   :  { %14744 = vmatprep.subr.bf16.mxu1 %v17149_v9 }
 0x313   :  { %14745 = vmatpush3.bf16.msra.mxu1 %v15695_v16 }
 0x314   :  { %14746 = vmatprep.subr.bf16.mxu1 %v17149_v9 }
 0x317   :  { %14747 = vmatpush3.bf16.msra.mxu1 %v15696_v10 }
 0x318   :  { %14752 = vmatprep.subr.bf16.mxu1 %v17149_v9 }
 0x3dd   :  { %v1589_v17 = vpop.f32.mrb[64].mxu1 }
 0x3de   :  { %v1595_v13 = vpack.c.bf16 %v1589_v17, %v1589_v17  ;;  %v14738_v18 = vpop.f32.mrb[65].mxu1 }
 0x3df   :  { %v1592_v21 = vpop.f32.mrb[66].mxu1 }
 0x3e0   :  { %v14739_v22 = vpop.f32.mrb[67].mxu1  ;;  %14749 = vmatmul.mubr.msk.bf16.vlgmr.msra.gmra.mrb[68].mxu1 %vm1620_vm2, %v1595_v13  ;;  %v1757_v21 = vpop.permute.xlu1 %1756 }
 0x3e1   :  { %14753 = vmatpush3.bf16.msra.mxu1 %v1672_v20  ;;  %14754 = vmatprep.mubr.msk.bf16.mxu1 %vm17150_vm0, %v17149_v9  ;;  %v1747_v20 = vpop.permute.xlu0 %1746 }
 0x3e2   :  { %14758 = vmatprep.subr.bf16.mxu1 %v17566_v19 }
 0x3e5   :  { %v1752_v22 = vpop.permute.xlu0 %1751 }
 0x4b3   :  { %v1658_v23 = vpop.f32.mrb[68].mxu1 }
 0x4b4   :  { %v1664_v24 = vmax.f32 %v1658_v23, 0.0  ;;  %v14750_v25 = vpop.f32.mrb[69].mxu1  ;;  %v1762_v23 = vpop.permute.xlu1 %1761 }
 0x4b5   :  { %v1661_v27 = vpop.f32.mrb[70].mxu1 }
 0x4b6   :  { %v1665_v29 = vpack.c.bf16 %v1664_v24, %v1664_v24  ;;  %v14751_v30 = vpop.f32.mrb[71].mxu1  ;;  %v1767_v24 = vpop.permute.xlu0 %1766 }
 0x4b8   :  { %14755 = vmatmul.mubr.msk.bf16.vlgmr.msra.gmra.mrb[72].mxu1 %vm1666_vm3, %v1665_v29  ;;  %v1772_v29 = vpop.permute.xlu1 %1771 }
 0x4b9   :  { %14759 = vmatpush3.bf16.msra.mxu1 %v17566_v19  ;;  %14774 = vmatprep.mubr.bf16.mxu1 %v15697_v28 }
 0x4ba   :  { %14760 = vmatprep.subr.bf16.mxu1 %v17570_v26 }
 0x4bd   :  { %14761 = vmatpush3.bf16.msra.mxu1 %v17570_v26 }
 0x4be   :  { %14762 = vmatprep.subr.bf16.mxu1 %v17574_v33 }
 0x4c1   :  { %14763 = vmatpush3.bf16.msra.mxu1 %v17574_v33 }
 0x4c2   :  { %14764 = vmatprep.subr.bf16.mxu1 %v17578_v41 }
 0x4c5   :  { %14765 = vmatpush3.bf16.msra.mxu1 %v17578_v41 }
 0x4c6   :  { %14766 = vmatprep.subr.bf16.mxu1 %v17582_v48 }
 0x4c9   :  { %14767 = vmatpush3.bf16.msra.mxu1 %v17582_v48 }
 0x4ca   :  { %14768 = vmatprep.subr.bf16.mxu1 %v17586_v55 }
 0x4cd   :  { %14769 = vmatpush3.bf16.msra.mxu1 %v17586_v55 }
 0x4ce   :  { %14770 = vmatprep.subr.bf16.mxu1 %v17590_v62 }
 0x4d1   :  { %14771 = vmatpush3.bf16.msra.mxu1 %v17590_v62 }
 0x4d2   :  { %14772 = vmatprep.subr.bf16.mxu1 %v17594_v5 }
 0x4d5   :  { %14773 = vmatpush3.bf16.msra.mxu1 %v17594_v5 }
 0x4d6   :  { %14782 = vmatprep.subr.bf16.mxu1 %v17566_v19 }
 0x4d8   :  { %14775 = vmatmul.mubr.bf16.vlgmr.msra.gmra.mrb[76].mxu1 %v15698_v31 }
 0x4d9   :  { %14783 = vmatpush3.bf16.msra.mxu1 %v17566_v19  ;;  %14778 = vmatprep.mubr.bf16.mxu1 %v15699_v32 }
 0x4da   :  { %14784 = vmatprep.subr.bf16.mxu1 %v17570_v26 }
 0x4dd   :  { %14785 = vmatpush3.bf16.msra.mxu1 %v17570_v26 }
 0x4de   :  { %14786 = vmatprep.subr.bf16.mxu1 %v17574_v33 }
 0x4e0   :  { %14779 = vmatmul.mubr.bf16.gmra.mrb[80].mxu1 %v15700_v35 }
 0x4e1   :  { %14787 = vmatpush3.bf16.msra.mxu1 %v17574_v33  ;;  %14798 = vmatprep.mubr.bf16.mxu1 %v15701_v36 }
 0x4e2   :  { %14788 = vmatprep.subr.bf16.mxu1 %v17578_v41 }
 0x4e5   :  { %14789 = vmatpush3.bf16.msra.mxu1 %v17578_v41 }
 0x4e6   :  { %14790 = vmatprep.subr.bf16.mxu1 %v17582_v48 }
 0x4e9   :  { %14791 = vmatpush3.bf16.msra.mxu1 %v17582_v48 }
 0x4ea   :  { %14792 = vmatprep.subr.bf16.mxu1 %v17586_v55 }
 0x4ed   :  { %14793 = vmatpush3.bf16.msra.mxu1 %v17586_v55 }
 0x4ee   :  { %14794 = vmatprep.subr.bf16.mxu1 %v17590_v62 }
 0x4f1   :  { %14795 = vmatpush3.bf16.msra.mxu1 %v17590_v62 }
 0x4f2   :  { %14796 = vmatprep.subr.bf16.mxu1 %v17594_v5 }
 0x4f5   :  { %14797 = vmatpush3.bf16.msra.mxu1 %v17594_v5 }
 0x4f6   :  { %14806 = vmatprep.subr.bf16.mxu1 %v17566_v19 }
 0x4f8   :  { %14799 = vmatmul.mubr.bf16.vlgmr.msra.gmra.mrb[84].mxu1 %v15702_v37 }
 0x4f9   :  { %14807 = vmatpush3.bf16.msra.mxu1 %v17566_v19  ;;  %14802 = vmatprep.mubr.bf16.mxu1 %v15703_v38  ;;  %v15706_v19 = vld [vmem:[%s17195_s3 + $0x48] sm:$0xff]  }
 0x4fa   :  { %14808 = vmatprep.subr.bf16.mxu1 %v17570_v26 }
 0x4fd   :  { %14809 = vmatpush3.bf16.msra.mxu1 %v17570_v26  ;;  %v15707_v26 = vld [vmem:[%s17195_s3 + $0x50] sm:$0xff]  }
 0x4fe   :  { %14810 = vmatprep.subr.bf16.mxu1 %v17574_v33 }
 0x500   :  { %14803 = vmatmul.mubr.bf16.gmra.mrb[88].mxu1 %v15704_v39 }
 0x501   :  { %14811 = vmatpush3.bf16.msra.mxu1 %v17574_v33  ;;  %14822 = vmatprep.mubr.bf16.mxu1 %v15705_v40  ;;  %v15708_v33 = vld [vmem:[%s17195_s3 + $0x58] sm:$0xff]   ;;  %s19157_s3 = sld [smem:[#allocation17_spill]] }
 0x502   :  { %14812 = vmatprep.subr.bf16.mxu1 %v17578_v41 }
 0x505   :  { %14813 = vmatpush3.bf16.msra.mxu1 %v17578_v41  ;;  %v15709_v41 = vld [vmem:[%s17205_s14] sm:$0xff]   ;;  %s19159_s14 = sld [smem:[#allocation13_spill]] }
 0x506   :  { %14814 = vmatprep.subr.bf16.mxu1 %v17582_v48 }
 0x509   :  { %14815 = vmatpush3.bf16.msra.mxu1 %v17582_v48  ;;  %v1727_v48 = vld [vmem:[%s17200_s8 + $0x38] sm:$0xff]  ;;  %s19158_s8 = sld [smem:[#allocation14_spill]] }
 0x50a   :  { %14816 = vmatprep.subr.bf16.mxu1 %v17586_v55  ;;  %1781 = vperm.xlu1 %15500, %v1727_v48  }
 0x50d   :  { %14817 = vmatpush3.bf16.msra.mxu1 %v17586_v55 }
 0x50e   :  { %14818 = vmatprep.subr.bf16.mxu1 %v17590_v62 }
 0x511   :  { %14819 = vmatpush3.bf16.msra.mxu1 %v17590_v62 }
 0x512   :  { %14820 = vmatprep.subr.bf16.mxu1 %v17594_v5 }
 0x515   :  { %14821 = vmatpush3.bf16.msra.mxu1 %v17594_v5 }
 0x518   :  { %14823 = vmatmul.mubr.bf16.vlgmr.msra.gmra.mrb[92].mxu1 %v15706_v19 }
 0x519   :  { %14826 = vmatprep.mubr.bf16.mxu1 %v15707_v26  ;;  %v1777_v26 = vpop.permute.xlu0 %1776 }
 0x520   :  { %14827 = vmatmul.mubr.bf16.gmra.mrb[96].mxu1 %v15708_v33 }
 0x521   :  { %14832 = vmatprep.mubr.msk.bf16.mxu1 %vm2106_vm4, %v15709_v41 }
 0x589   :  { %v1782_v42 = vpop.permute.xlu1 %1781 }
 0x58b   :  { %v1708_v50 = vpop.f32.mrb[72].mxu1 }
 0x58c   :  { %v12632_v51 = vmul.f32 -1.442695, %v1708_v50  ;;  %v14756_v52 = vpop.f32.mrb[73].mxu1 }
 0x58d   :  { %v1711_v53 = vpop.f32.mrb[74].mxu1 }
 0x58e   :  { %17074 = vpow2.f32 %v12632_v51  ;;  %v14757_v54 = vpop.f32.mrb[75].mxu1 }
 0x598   :  { %v17075_v55 = vpop.eup %17074 }
 0x599   :  { %v1717_v56 = vadd.f32 1.0, %v17075_v55 }
 0x59b   :  { %17076 = vrcp.f32 %v1717_v56 }
 0x5a5   :  { %v17077_v57 = vpop.eup %17076 }
 0x5a6   :  { %v2085_v58 = vpack.c.bf16 %v17077_v57, %v17077_v57 }
 0x5a8   :  { %15452 = vmatprep.subr.msk.bf16.mxu1 %vm2119_vm5, %v2085_v58  ;;  %v2121_v59 = vsel %vm2119_vm5, %v2085_v58, 0 }
 0x5a9   :  { %14831 = vmatpush3.bf16.msra.mxu1 %v2121_v59 }
 0x5ab   :  { %v14776_v62 = vpop.f32.mrb[76].mxu1 }
 0x5ac   :  { %14833 = vmatmul.mubr.msk.bf16.vlgmr.msra.gmra.mrb[100].mxu1 %vm2106_vm4, %v15710_v60  ;;  %v1842_v63 = vpop.f32.mrb[77].mxu1  ;;  %v1851_v25 = vadd.f32 %v14776_v62, %v1757_v21  ;;  %v17692_v60 = vld [vmem:[%s17225_s6] sm:$0xff]  }
 0x5ad   :  { %14836 = vmatprep.mubr.msk.bf16.mxu1 %vm2106_vm4, %v15711_v61  ;;  %v14777_v0 = vpop.f32.mrb[78].mxu1  ;;  %v1843_v27 = vadd.f32 %v1842_v63, %v1747_v20  ;;  %v17697_v61 = vld [vmem:[%s17225_s6 + $0x20] sm:$0xff]  }
 0x5ae   :  { %v1845_v1 = vpop.f32.mrb[79].mxu1  ;;  %v1854_v32 = vadd.f32 %v14777_v0, %v1762_v23  ;;  %14864 = vmatprep.mubr.msk.bf16.mxu0 %vm1620_vm2, %v17697_v61  ;;  %v15715_v23 = vld [vmem:[%s17210_s19 + $0x20] sm:$0xff]  }
 0x5af   :  { %v1846_v37 = vadd.f32 %v1845_v1, %v1752_v22 }
 0x5b3   :  { %v14780_v3 = vpop.f32.mrb[80].mxu1 }
 0x5b4   :  { %14837 = vmatmul.mubr.msk.bf16.gmra.mrb[104].mxu1 %vm2106_vm4, %v15712_v2  ;;  %v1858_v4 = vpop.f32.mrb[81].mxu1  ;;  %v1867_v44 = vadd.f32 %v14780_v3, %v1777_v26 }
 0x5b5   :  { %v14781_v5 = vpop.f32.mrb[82].mxu1  ;;  %v1859_v45 = vadd.f32 %v1858_v4, %v1767_v24  ;;  %14848 = vmatprep.mubr.msk.bf16.mxu1 %vm1620_vm2, %v17692_v60  ;;  %v17727_v24 = vld [vmem:[%s17225_s6 + $0x8] sm:$0xff]  }
 0x5b6   :  { %v1861_v6 = vpop.f32.mrb[83].mxu1  ;;  %v1870_v49 = vadd.f32 %v14781_v5, %v1782_v42 }
 0x5b7   :  { %v1862_v50 = vadd.f32 %v1861_v6, %v1772_v29  ;;  %v17737_v29 = vld [vmem:[%s17225_s6 + $0x30] sm:$0xff]  }
 0x5cb   :  { %v14800_v7 = vpop.f32.mrb[84].mxu1 }
 0x5cc   :  { %v1940_v8 = vpop.f32.mrb[85].mxu1 }
 0x5cd   :  { %v14801_v16 = vpop.f32.mrb[86].mxu1 }
 0x5ce   :  { %v1943_v10 = vpop.f32.mrb[87].mxu1 }
 0x5d3   :  { %v14804_v11 = vpop.f32.mrb[88].mxu1 }
 0x5d4   :  { %v1956_v17 = vpop.f32.mrb[89].mxu1 }
 0x5d5   :  { %v14805_v13 = vpop.f32.mrb[90].mxu1 }
 0x5d6   :  { %v1959_v18 = vpop.f32.mrb[91].mxu1 }
 0x5eb   :  { %v14824_v28 = vpop.f32.mrb[92].mxu1 }
 0x5ec   :  { %v2071_v30 = vmax.f32 %v14800_v7, %v14824_v28  ;;  %v2038_v31 = vpop.f32.mrb[93].mxu1  ;;  %v15716_v28 = vld [vmem:[%s17210_s19 + $0x28] sm:$0xff]  }
 0x5ed   :  { %v2069_v35 = vmax.f32 %v1940_v8, %v2038_v31  ;;  %v14825_v36 = vpop.f32.mrb[94].mxu1  ;;  %v17749_v31 = vld [vmem:[%s17225_s6 + $0x18] sm:$0xff]  }
 0x5ee   :  { %v2072_v38 = vmax.f32 %v14801_v16, %v14825_v36  ;;  %v2041_v39 = vpop.f32.mrb[95].mxu1  ;;  %v2079_v40 = vmax.f32 %v2071_v30, %v1851_v25  ;;  %v17730_v25 = vld [vmem:[%s17225_s6 + $0x28] sm:$0xff]   ;;  %v15719_v30 = vld [vmem:[%s17210_s19 + $0x30] sm:$0xff]   ;;  %v15725_v36 = vld [vmem:[%s17210_s19] sm:$0xff]  }
 0x5ef   :  { %v2070_v19 = vmax.f32 %v1943_v10, %v2041_v39  ;;  %v2077_v33 = vmax.f32 %v2069_v35, %v1843_v27  ;;  %v17733_v27 = vld [vmem:[%s17225_s6 + $0x10] sm:$0xff]   ;;  %v15720_v35 = vld [vmem:[%s17210_s19 + $0x38] sm:$0xff]  }
 0x5f0   :  { %v2080_v41 = vmax.f32 %v2072_v38, %v1854_v32  ;;  %v17752_v32 = vld [vmem:[%s17225_s6 + $0x38] sm:$0xff]   ;;  %v15727_v38 = vld [vmem:[%s17210_s19 + $0x10] sm:$0xff]   ;;  %s19163_s6 = sld [smem:[#allocation23_spill]] }
 0x5f1   :  { %v2078_v43 = vmax.f32 %v2070_v19, %v1846_v37  ;;  %v15726_v37 = vld [vmem:[%s17210_s19 + $0x8] sm:$0xff]   ;;  %v15728_v39 = vld [vmem:[%s17210_s19 + $0x18] sm:$0xff]  }
 0x5f3   :  { %v14828_v46 = vpop.f32.mrb[96].mxu1 }
 0x5f4   :  { %v2075_v47 = vmax.f32 %v14804_v11, %v14828_v46  ;;  %v2054_v48 = vpop.f32.mrb[97].mxu1 }
 0x5f5   :  { %v2073_v51 = vmax.f32 %v1956_v17, %v2054_v48  ;;  %v14829_v52 = vpop.f32.mrb[98].mxu1 }
 0x5f6   :  { %v2076_v53 = vmax.f32 %v14805_v13, %v14829_v52  ;;  %v2057_v54 = vpop.f32.mrb[99].mxu1  ;;  %v2083_v55 = vmax.f32 %v2075_v47, %v1867_v44 }
 0x5f7   :  { %v2074_v56 = vmax.f32 %v1959_v18, %v2057_v54  ;;  %v2081_v57 = vmax.f32 %v2073_v51, %v1859_v45  ;;  %v15731_v54 = vld [vmem:[%s17210_s19 + $0x50] sm:$0xff]  }
 0x5f8   :  { %v2084_v58 = vmax.f32 %v2076_v53, %v1870_v49 }
 0x5f9   :  { %v2082_v59 = vmax.f32 %v2074_v56, %v1862_v50  ;;  %v15730_v50 = vld [vmem:[%s17210_s19 + $0x48] sm:$0xff]  }
 0x67f   :  { %v14834_v62 = vpop.f32.mrb[100].mxu1 }
 0x680   :  { %v17701_v63 = vmul.f32 %v14834_v62, %v2079_v40  ;;  %v2157_v0 = vpop.f32.mrb[101].mxu1  ;;  %v15729_v40 = vld [vmem:[%s17210_s19 + $0x40] sm:$0xff]  }
 0x681   :  { %v17703_v1 = vmul.f32 %v2157_v0, %v2077_v33  ;;  %v14835_v2 = vpop.f32.mrb[102].mxu1 }
 0x682   :  { %v17705_v3 = vmul.f32 %v14835_v2, %v2080_v41  ;;  %v2160_v4 = vpop.f32.mrb[103].mxu1 }
 0x683   :  { %v17707_v5 = vmul.f32 %v2160_v4, %v2078_v43  ;;  %v15732_v4 = vld [vmem:[%s17210_s19 + $0x58] sm:$0xff]   ;;  %s19160_s19 = sld [smem:[#allocation15_spill]] }
 0x684   :  { %v2205_v7 = vpack.c.bf16 %v17705_v3, %v17701_v63 }
 0x685   :  { %v2204_v6 = vpack.c.bf16 %v17707_v5, %v17703_v1 }
 0x687   :  { %v14838_v8 = vpop.f32.mrb[104].mxu1  ;;  %14840 = vmatprep.subr.bf16.mxu1 %v2204_v6  ;;  %14856 = vmatprep.subr.bf16.mxu0 %v2204_v6 }
 0x688   :  { %v17713_v16 = vmul.f32 %v14838_v8, %v2083_v55  ;;  %v2173_v10 = vpop.f32.mrb[105].mxu1  ;;  %14841 = vmatpush3.bf16.msra.mxu1 %v2204_v6  ;;  %14857 = vmatpush3.bf16.msra.mxu0 %v2204_v6 }
 0x689   :  { %v17715_v11 = vmul.f32 %v2173_v10, %v2081_v57  ;;  %v14839_v17 = vpop.f32.mrb[106].mxu1  ;;  %14842 = vmatprep.subr.bf16.mxu1 %v2205_v7  ;;  %14858 = vmatprep.subr.bf16.mxu0 %v2205_v7 }
 0x68a   :  { %v17717_v13 = vmul.f32 %v14839_v17, %v2084_v58  ;;  %v2176_v18 = vpop.f32.mrb[107].mxu1 }
 0x68b   :  { %v17719_v20 = vmul.f32 %v2176_v18, %v2082_v59 }
 0x68c   :  { %14843 = vmatpush3.bf16.msra.mxu1 %v2205_v7  ;;  %14859 = vmatpush3.bf16.msra.mxu0 %v2205_v7  ;;  %v2207_v22 = vpack.c.bf16 %v17717_v13, %v17713_v16 }
 0x68d   :  { %v2206_v21 = vpack.c.bf16 %v17719_v20, %v17715_v11 }
 0x68f   :  { %14844 = vmatprep.subr.bf16.mxu1 %v2206_v21  ;;  %14860 = vmatprep.subr.bf16.mxu0 %v2206_v21 }
 0x690   :  { %14845 = vmatpush3.bf16.msra.mxu1 %v2206_v21  ;;  %14861 = vmatpush3.bf16.msra.mxu0 %v2206_v21 }
 0x691   :  { %14846 = vmatprep.subr.bf16.mxu1 %v2207_v22  ;;  %14862 = vmatprep.subr.bf16.mxu0 %v2207_v22 }
 0x694   :  { %14847 = vmatpush3.bf16.msra.mxu1 %v2207_v22  ;;  %14863 = vmatpush3.bf16.msra.mxu0 %v2207_v22 }
 0x695   :  { %14872 = vmatprep.subr.bf16.mxu1 %v15715_v23 }
 0x697   :  { %14849 = vmatmul.mubr.msk.bf16.vlgmr.msra.gmra.mrb[108].mxu1 %vm1620_vm2, %v17727_v24  ;;  %14865 = vmatmul.mubr.msk.bf16.vlgmr.msra.gmra.mrb[0].mxu0 %vm1620_vm2, %v17730_v25 }
 0x698   :  { %14873 = vmatpush3.bf16.msra.mxu1 %v15715_v23  ;;  %14852 = vmatprep.mubr.msk.bf16.mxu1 %vm1620_vm2, %v17733_v27 }
 0x699   :  { %14874 = vmatprep.subr.bf16.mxu1 %v15716_v28  ;;  %14868 = vmatprep.mubr.msk.bf16.mxu0 %vm1620_vm2, %v17737_v29 }
 0x69c   :  { %14875 = vmatpush3.bf16.msra.mxu1 %v15716_v28 }
 0x69d   :  { %14876 = vmatprep.subr.bf16.mxu1 %v15719_v30 }
 0x69f   :  { %14853 = vmatmul.mubr.msk.bf16.gmra.mrb[112].mxu1 %vm1620_vm2, %v17749_v31  ;;  %14869 = vmatmul.mubr.msk.bf16.gmra.mrb[4].mxu0 %vm1620_vm2, %v17752_v32 }
 0x6a0   :  { %14877 = vmatpush3.bf16.msra.mxu1 %v15719_v30  ;;  %14880 = vmatprep.mubr.msk.bf16.mxu1 %vm1620_vm2, %v2204_v6  ;;  %v12733_v6 = vld [vmem:[%s17220_s30] ss:$0 sm:$0xff] }
 0x6a1   :  { %14878 = vmatprep.subr.bf16.mxu1 %v15720_v35  ;;  %14928 = vmatprep.mubr.msk.bf16.mxu0 %vm1620_vm2, %v17692_v60 }
 0x6a4   :  { %14879 = vmatpush3.bf16.msra.mxu1 %v15720_v35 }
 0x6a5   :  { %14888 = vmatprep.subr.bf16.mxu1 %v15725_v36 }
 0x6a7   :  { %14881 = vmatmul.mubr.msk.bf16.vlgmr.msra.gmra.mrb[116].mxu1 %vm1620_vm2, %v2205_v7 }
 0x6a8   :  { %14884 = vmatprep.mubr.msk.bf16.mxu1 %vm1620_vm2, %v2206_v21  ;;  %14889 = vmatpush3.bf16.msra.mxu1 %v15725_v36 }
 0x6a9   :  { %14890 = vmatprep.subr.bf16.mxu1 %v15726_v37 }
 0x6ac   :  { %14891 = vmatpush3.bf16.msra.mxu1 %v15726_v37 }
 0x6ad   :  { %14892 = vmatprep.subr.bf16.mxu1 %v15727_v38 }
 0x6af   :  { %14885 = vmatmul.mubr.msk.bf16.gmra.mrb[120].mxu1 %vm1620_vm2, %v2207_v22 }
 0x6b0   :  { %14893 = vmatpush3.bf16.msra.mxu1 %v15727_v38 }
 0x6b1   :  { %14894 = vmatprep.subr.bf16.mxu1 %v15728_v39 }
 0x6b4   :  { %14895 = vmatpush3.bf16.msra.mxu1 %v15728_v39 }
 0x6b5   :  { %14904 = vmatprep.subr.bf16.mxu1 %v15729_v40 }
 0x76a   :  { %v14850_v19 = vpop.f32.mrb[108].mxu1  ;;  %v14866_v26 = vpop.f32.mrb[0].mxu0 }
 0x76b   :  { %v2274_v33 = vpop.f32.mrb[109].mxu1  ;;  %v2380_v41 = vpop.f32.mrb[1].mxu0 }
 0x76c   :  { %v14851_v42 = vpop.f32.mrb[110].mxu1  ;;  %v14867_v43 = vpop.f32.mrb[2].mxu0 }
 0x76d   :  { %v2420_v44 = vpack.c.bf16 %v14851_v42, %v14850_v19  ;;  %v2277_v45 = vpop.f32.mrb[111].mxu1  ;;  %v2644_v46 = vpack.c.bf16 %v14867_v43, %v14866_v26  ;;  %v2383_v47 = vpop.f32.mrb[3].mxu0 }
 0x76e   :  { %v2419_v48 = vpack.c.bf16 %v2277_v45, %v2274_v33  ;;  %v2643_v49 = vpack.c.bf16 %v2383_v47, %v2380_v41 }
 0x770   :  { %14896 = vmatprep.mubr.msk.bf16.mxu1 %vm1620_vm2, %v2419_v48 }
 0x771   :  { %14897 = vmatmul.mubr.msk.bf16.vlgmr.msra.gmra.mrb[116].mxu1 %vm1620_vm2, %v2420_v44 }
 0x772   :  { %v14854_v51 = vpop.f32.mrb[112].mxu1  ;;  %14905 = vmatpush3.bf16.msra.mxu1 %v15729_v40  ;;  %v14870_v52 = vpop.f32.mrb[4].mxu0 }
 0x773   :  { %v2290_v53 = vpop.f32.mrb[113].mxu1  ;;  %14906 = vmatprep.subr.bf16.mxu1 %v15730_v50  ;;  %v2396_v55 = vpop.f32.mrb[5].mxu0 }
 0x774   :  { %v14855_v56 = vpop.f32.mrb[114].mxu1  ;;  %v14871_v57 = vpop.f32.mrb[6].mxu0 }
 0x775   :  { %v2422_v58 = vpack.c.bf16 %v14855_v56, %v14854_v51  ;;  %v2293_v59 = vpop.f32.mrb[115].mxu1  ;;  %v2646_v60 = vpack.c.bf16 %v14871_v57, %v14870_v52  ;;  %v2399_v62 = vpop.f32.mrb[7].mxu0  ;;  %v15735_v51 = vld [vmem:[%s17215_s24 + $0x30] sm:$0xff]   ;;  %v15736_v52 = vld [vmem:[%s17215_s24 + $0x38] sm:$0xff]  }
 0x776   :  { %v2421_v0 = vpack.c.bf16 %v2293_v59, %v2290_v53  ;;  %14907 = vmatpush3.bf16.msra.mxu1 %v15730_v50  ;;  %v2645_v2 = vpack.c.bf16 %v2399_v62, %v2396_v55  ;;  %v15734_v50 = vld [vmem:[%s17215_s24 + $0x28] sm:$0xff]  }
 0x777   :  { %14908 = vmatprep.subr.bf16.mxu1 %v15731_v54 }
 0x778   :  { %14900 = vmatprep.mubr.msk.bf16.mxu1 %vm1620_vm2, %v2421_v0 }
 0x779   :  { %14901 = vmatmul.mubr.msk.bf16.gmra.mrb[120].mxu1 %vm1620_vm2, %v2422_v58 }
 0x77a   :  { %14909 = vmatpush3.bf16.msra.mxu1 %v15731_v54  ;;  %14912 = vmatprep.mubr.msk.bf16.mxu1 %vm1620_vm2, %v2643_v49  ;;  %v15733_v49 = vld [vmem:[%s17215_s24 + $0x20] sm:$0xff]  }
 0x77b   :  { %14910 = vmatprep.subr.bf16.mxu1 %v15732_v4 }
 0x77e   :  { %14911 = vmatpush3.bf16.msra.mxu1 %v15732_v4  ;;  %v15742_v4 = vld [vmem:[%s17215_s24 + $0x48] sm:$0xff]  }
 0x781   :  { %14913 = vmatmul.mubr.msk.bf16.vlgmr.msra.gmra.mrb[116].mxu1 %vm1620_vm2, %v2644_v46 }
 0x782   :  { %14916 = vmatprep.mubr.msk.bf16.mxu1 %vm1620_vm2, %v2645_v2 }
 0x789   :  { %14917 = vmatmul.mubr.msk.bf16.gmra.mrb[120].mxu1 %vm1620_vm2, %v2646_v60 }
 0x78a   :  { %14976 = vmatprep.mubr.msk.bf16.mxu1 %vm1620_vm2, %v17697_v61 }
 0x854   :  { %v14914_v7 = vpop.f32.mrb[116].mxu1 }
 0x855   :  { %v2763_v8 = vadd.f32 %v14914_v7, %v12733_v6  ;;  %v2717_v10 = vpop.f32.mrb[117].mxu1 }
 0x856   :  { %v2761_v17 = vadd.f32 %v12733_v6, %v2717_v10  ;;  %v14915_v18 = vpop.f32.mrb[118].mxu1  ;;  %v15743_v10 = vld [vmem:[%s17215_s24 + $0x50] sm:$0xff]  }
 0x857   :  { %v2764_v21 = vadd.f32 %v14915_v18, %v12733_v6  ;;  %v2720_v22 = vpop.f32.mrb[119].mxu1  ;;  %v2771_v28 = vmax.f32 %v2763_v8, 0.0 }
 0x858   :  { %v2762_v23 = vadd.f32 %v12733_v6, %v2720_v22  ;;  %v2769_v35 = vmax.f32 %v2761_v17, 0.0 }
 0x859   :  { %v2772_v30 = vmax.f32 %v2764_v21, 0.0 }
 0x85a   :  { %v2770_v36 = vmax.f32 %v2762_v23, 0.0 }
 0x85b   :  { %v2778_v37 = vpack.c.bf16 %v2772_v30, %v2771_v28 }
 0x85c   :  { %v2777_v38 = vpack.c.bf16 %v2770_v36, %v2769_v35  ;;  %v14918_v39 = vpop.f32.mrb[120].mxu1 }
 0x85d   :  { %v2767_v40 = vadd.f32 %v14918_v39, %v12733_v6  ;;  %v2733_v19 = vpop.f32.mrb[121].mxu1  ;;  %v15746_v39 = vld [vmem:[%s19149_s0] sm:$0xff]  }
 0x85e   :  { %v2765_v26 = vadd.f32 %v12733_v6, %v2733_v19  ;;  %v14919_v61 = vpop.f32.mrb[122].mxu1  ;;  %14920 = vmatprep.subr.bf16.mxu0 %v2777_v38  ;;  %14968 = vmatprep.subr.bf16.mxu1 %v2777_v38 }
 0x85f   :  { %v2768_v33 = vadd.f32 %v14919_v61, %v12733_v6  ;;  %v2736_v41 = vpop.f32.mrb[123].mxu1  ;;  %14921 = vmatpush3.bf16.msra.mxu0 %v2777_v38  ;;  %14969 = vmatpush3.bf16.msra.mxu1 %v2777_v38  ;;  %v2775_v43 = vmax.f32 %v2767_v40, 0.0  ;;  %v12782_v40 = vld [vmem:[%s17220_s30 + $0x1] ss:$0 sm:$0xff]  ;;  %s19162_s30 = sld [smem:[#allocation22_spill]] }
 0x860   :  { %v2766_v42 = vadd.f32 %v12733_v6, %v2736_v41  ;;  %14922 = vmatprep.subr.bf16.mxu0 %v2778_v37  ;;  %14970 = vmatprep.subr.bf16.mxu1 %v2778_v37  ;;  %v2773_v45 = vmax.f32 %v2765_v26, 0.0 }
 0x861   :  { %v2776_v44 = vmax.f32 %v2768_v33, 0.0 }
 0x862   :  { %v2774_v46 = vmax.f32 %v2766_v42, 0.0 }
 0x863   :  { %v2780_v47 = vpack.c.bf16 %v2776_v44, %v2775_v43  ;;  %14923 = vmatpush3.bf16.msra.mxu0 %v2778_v37  ;;  %14971 = vmatpush3.bf16.msra.mxu1 %v2778_v37 }
 0x864   :  { %v2779_v48 = vpack.c.bf16 %v2774_v46, %v2773_v45 }
 0x866   :  { %14924 = vmatprep.subr.bf16.mxu0 %v2779_v48  ;;  %14972 = vmatprep.subr.bf16.mxu1 %v2779_v48 }
 0x867   :  { %14925 = vmatpush3.bf16.msra.mxu0 %v2779_v48  ;;  %14973 = vmatpush3.bf16.msra.mxu1 %v2779_v48 }
 0x868   :  { %14926 = vmatprep.subr.bf16.mxu0 %v2780_v47  ;;  %14974 = vmatprep.subr.bf16.mxu1 %v2780_v47 }
 0x86b   :  { %14927 = vmatpush3.bf16.msra.mxu0 %v2780_v47  ;;  %14975 = vmatpush3.bf16.msra.mxu1 %v2780_v47 }
 0x86c   :  { %14936 = vmatprep.subr.bf16.mxu0 %v15733_v49 }
 0x86e   :  { %14929 = vmatmul.mubr.msk.bf16.vlgmr.msra.gmra.mrb[8].mxu0 %vm1620_vm2, %v17727_v24  ;;  %14977 = vmatmul.mubr.msk.bf16.vlgmr.msra.gmra.mrb[124].mxu1 %vm1620_vm2, %v17730_v25  ;;  %v15737_v24 = vld [vmem:[%s17215_s24] sm:$0xff]   ;;  %v15738_v25 = vld [vmem:[%s17215_s24 + $0x8] sm:$0xff]  }
 0x86f   :  { %14937 = vmatpush3.bf16.msra.mxu0 %v15733_v49  ;;  %14932 = vmatprep.mubr.msk.bf16.mxu0 %vm1620_vm2, %v17733_v27  ;;  %v15739_v27 = vld [vmem:[%s17215_s24 + $0x10] sm:$0xff]  }
 0x870   :  { %14938 = vmatprep.subr.bf16.mxu0 %v15734_v50  ;;  %14980 = vmatprep.mubr.msk.bf16.mxu1 %vm1620_vm2, %v17737_v29  ;;  %v15740_v29 = vld [vmem:[%s17215_s24 + $0x18] sm:$0xff]  }
 0x873   :  { %14939 = vmatpush3.bf16.msra.mxu0 %v15734_v50 }
 0x874   :  { %14940 = vmatprep.subr.bf16.mxu0 %v15735_v51 }
 0x876   :  { %14933 = vmatmul.mubr.msk.bf16.gmra.mrb[12].mxu0 %vm1620_vm2, %v17749_v31  ;;  %14981 = vmatmul.mubr.msk.bf16.gmra.mrb[128].mxu1 %vm1620_vm2, %v17752_v32  ;;  %v15741_v31 = vld [vmem:[%s17215_s24 + $0x40] sm:$0xff]  }
 0x877   :  { %14941 = vmatpush3.bf16.msra.mxu0 %v15735_v51  ;;  %14944 = vmatprep.mubr.msk.bf16.mxu0 %vm1620_vm2, %v2777_v38  ;;  %v15745_v38 = vld [vmem:[%s19149_s0 + $0x10] sm:$0xff]  }
 0x878   :  { %14942 = vmatprep.subr.bf16.mxu0 %v15736_v52  ;;  %15008 = vmatprep.mubr.msk.bf16.mxu1 %vm1620_vm2, %v15746_v39 }
 0x87b   :  { %14943 = vmatpush3.bf16.msra.mxu0 %v15736_v52 }
 0x87c   :  { %14952 = vmatprep.subr.bf16.mxu0 %v15737_v24 }
 0x87e   :  { %14945 = vmatmul.mubr.msk.bf16.vlgmr.msra.gmra.mrb[16].mxu0 %vm1620_vm2, %v2778_v37  ;;  %v15744_v37 = vld [vmem:[%s17215_s24 + $0x58] sm:$0xff]   ;;  %s19161_s24 = sld [smem:[#allocation18_spill]] }
 0x87f   :  { %14948 = vmatprep.mubr.msk.bf16.mxu0 %vm1620_vm2, %v2779_v48  ;;  %14953 = vmatpush3.bf16.msra.mxu0 %v15737_v24 }
 0x880   :  { %14954 = vmatprep.subr.bf16.mxu0 %v15738_v25 }
 0x883   :  { %14955 = vmatpush3.bf16.msra.mxu0 %v15738_v25 }
 0x884   :  { %14956 = vmatprep.subr.bf16.mxu0 %v15739_v27 }
 0x886   :  { %14949 = vmatmul.mubr.msk.bf16.gmra.mrb[20].mxu0 %vm1620_vm2, %v2780_v47 }
 0x887   :  { %14957 = vmatpush3.bf16.msra.mxu0 %v15739_v27 }
 0x888   :  { %14958 = vmatprep.subr.bf16.mxu0 %v15740_v29 }
 0x88b   :  { %14959 = vmatpush3.bf16.msra.mxu0 %v15740_v29 }
 0x88c   :  { %14984 = vmatprep.subr.bf16.mxu0 %v15741_v31 }
 0x941   :  { %v14930_v32 = vpop.f32.mrb[8].mxu0  ;;  %v14978_v53 = vpop.f32.mrb[124].mxu1 }
 0x942   :  { %v2815_v54 = vpop.f32.mrb[9].mxu0  ;;  %v3103_v55 = vpop.f32.mrb[125].mxu1 }
 0x943   :  { %v14931_v56 = vpop.f32.mrb[10].mxu0  ;;  %v14979_v57 = vpop.f32.mrb[126].mxu1 }
 0x944   :  { %v2855_v58 = vpack.c.bf16 %v14931_v56, %v14930_v32  ;;  %v2818_v59 = vpop.f32.mrb[11].mxu0  ;;  %v3144_v60 = vpack.c.bf16 %v14979_v57, %v14978_v53  ;;  %v3106_v62 = vpop.f32.mrb[127].mxu1 }
 0x945   :  { %v2854_v0 = vpack.c.bf16 %v2818_v59, %v2815_v54  ;;  %v3143_v2 = vpack.c.bf16 %v3106_v62, %v3103_v55  ;;  %v15748_v62 = vld [vmem:[%s19149_s0 + $0x8] sm:$0xff]  }
 0x947   :  { %14960 = vmatprep.mubr.msk.bf16.mxu0 %vm1620_vm2, %v2854_v0  ;;  %v15749_v0 = vld [vmem:[%s19149_s0 + $0x20] sm:$0xff]  }
 0x948   :  { %14961 = vmatmul.mubr.msk.bf16.vlgmr.msra.gmra.mrb[16].mxu0 %vm1620_vm2, %v2855_v58 }
 0x949   :  { %v14934_v6 = vpop.f32.mrb[12].mxu0  ;;  %14985 = vmatpush3.bf16.msra.mxu0 %v15741_v31  ;;  %v14982_v7 = vpop.f32.mrb[128].mxu1 }
 0x94a   :  { %v2831_v8 = vpop.f32.mrb[13].mxu0  ;;  %14986 = vmatprep.subr.bf16.mxu0 %v15742_v4  ;;  %v3119_v17 = vpop.f32.mrb[129].mxu1 }
 0x94b   :  { %v14935_v18 = vpop.f32.mrb[14].mxu0  ;;  %v14983_v21 = vpop.f32.mrb[130].mxu1 }
 0x94c   :  { %v2857_v22 = vpack.c.bf16 %v14935_v18, %v14934_v6  ;;  %v2834_v23 = vpop.f32.mrb[15].mxu0  ;;  %v3146_v28 = vpack.c.bf16 %v14983_v21, %v14982_v7  ;;  %v3122_v30 = vpop.f32.mrb[131].mxu1  ;;  %v15750_v6 = vld [vmem:[%s19149_s0 + $0x28] sm:$0xff]   ;;  %v15758_v18 = vld [vmem:[%s19150_s5 + $0x18] sm:$0xff]   ;;  %v15759_v21 = vld [vmem:[%s19151_s9] sm:$0xff]  }
 0x94d   :  { %v2856_v35 = vpack.c.bf16 %v2834_v23, %v2831_v8  ;;  %14987 = vmatpush3.bf16.msra.mxu0 %v15742_v4  ;;  %v3145_v36 = vpack.c.bf16 %v3122_v30, %v3119_v17  ;;  %v15751_v4 = vld [vmem:[%s19151_s9 + $0x20] sm:$0xff]   ;;  %v15753_v7 = vld [vmem:[%s19151_s9 + $0x28] sm:$0xff]   ;;  %v15755_v8 = vld [vmem:[%s19151_s9 + $0x30] sm:$0xff]  }
 0x94e   :  { %14988 = vmatprep.subr.bf16.mxu0 %v15743_v10  ;;  %v15757_v17 = vld [vmem:[%s19151_s9 + $0x38] sm:$0xff]  }
 0x94f   :  { %14964 = vmatprep.mubr.msk.bf16.mxu0 %vm1620_vm2, %v2856_v35 }
 0x950   :  { %14965 = vmatmul.mubr.msk.bf16.gmra.mrb[20].mxu0 %vm1620_vm2, %v2857_v22 }
 0x951   :  { %14989 = vmatpush3.bf16.msra.mxu0 %v15743_v10  ;;  %14992 = vmatprep.mubr.msk.bf16.mxu0 %vm1620_vm2, %v3143_v2  ;;  %v15754_v2 = vld [vmem:[%s19150_s5 + $0x8] sm:$0xff]   ;;  %v15756_v10 = vld [vmem:[%s19150_s5 + $0x10] sm:$0xff]  }
 0x952   :  { %14990 = vmatprep.subr.bf16.mxu0 %v15744_v37 }
 0x955   :  { %14991 = vmatpush3.bf16.msra.mxu0 %v15744_v37 }
 0x958   :  { %14993 = vmatmul.mubr.msk.bf16.vlgmr.msra.gmra.mrb[16].mxu0 %vm1620_vm2, %v3144_v60 }
 0x959   :  { %14996 = vmatprep.mubr.msk.bf16.mxu0 %vm1620_vm2, %v3145_v36 }
 0x960   :  { %14997 = vmatmul.mubr.msk.bf16.gmra.mrb[20].mxu0 %vm1620_vm2, %v3146_v28 }
 0x961   :  { %15020 = vmatprep.mubr.msk.bf16.mxu0 %vm1620_vm2, %v15745_v38 }
 0xa2b   :  { %v14994_v19 = vpop.f32.mrb[16].mxu0 }
 0xa2c   :  { %v3263_v26 = vadd.f32 %v14994_v19, %v12782_v40  ;;  %v3217_v61 = vpop.f32.mrb[17].mxu0 }
 0xa2d   :  { %v3261_v33 = vadd.f32 %v12782_v40, %v3217_v61  ;;  %v14995_v41 = vpop.f32.mrb[18].mxu0  ;;  %v15760_v61 = vld [vmem:[%s19151_s9 + $0x8] sm:$0xff]  }
 0xa2e   :  { %v3271_v42 = vadd.f32 %v3263_v26, %v17701_v63  ;;  %v3264_v43 = vadd.f32 %v14995_v41, %v12782_v40  ;;  %v3220_v44 = vpop.f32.mrb[19].mxu0  ;;  %v15762_v41 = vld [vmem:[%s19151_s9 + $0x18] sm:$0xff]  }
 0xa2f   :  { %v3269_v45 = vadd.f32 %v3261_v33, %v17703_v1  ;;  %v3262_v46 = vadd.f32 %v12782_v40, %v3220_v44  ;;  %v15761_v33 = vld [vmem:[%s19151_s9 + $0x10] sm:$0xff]  }
 0xa30   :  { %v3272_v47 = vadd.f32 %v3264_v43, %v17705_v3  ;;  %v3279_v49 = vmax.f32 %v3271_v42, 0.0  ;;  %v15763_v43 = vld [vmem:[%s19151_s9 + $0x40] sm:$0xff]  }
 0xa31   :  { %v3270_v48 = vadd.f32 %v3262_v46, %v17707_v5  ;;  %v3277_v51 = vmax.f32 %v3269_v45, 0.0 }
 0xa32   :  { %v3280_v50 = vmax.f32 %v3272_v47, 0.0 }
 0xa33   :  { %v3278_v52 = vmax.f32 %v3270_v48, 0.0  ;;  %v14998_v24 = vpop.f32.mrb[20].mxu0 }
 0xa34   :  { %v3290_v25 = vpack.c.bf16 %v3280_v50, %v3279_v49  ;;  %v3267_v27 = vadd.f32 %v14998_v24, %v12782_v40  ;;  %v3233_v29 = vpop.f32.mrb[21].mxu0  ;;  %v15764_v49 = vld [vmem:[%s19151_s9 + $0x48] sm:$0xff]   ;;  %v15765_v50 = vld [vmem:[%s19151_s9 + $0x50] sm:$0xff]   ;;  %v15779_v24 = vld [vmem:[%s19153_s17] sm:$0xff]  }
 0xa35   :  { %v3289_v31 = vpack.c.bf16 %v3278_v52, %v3277_v51  ;;  %v3265_v32 = vadd.f32 %v12782_v40, %v3233_v29  ;;  %v14999_v63 = vpop.f32.mrb[22].mxu0  ;;  %v15766_v51 = vld [vmem:[%s19151_s9 + $0x58] sm:$0xff]   ;;  %v15767_v52 = vld [vmem:[%s19152_s13] sm:$0xff]  }
 0xa36   :  { %v3275_v53 = vadd.f32 %v3267_v27, %v17713_v16  ;;  %v3268_v54 = vadd.f32 %v14999_v63, %v12782_v40  ;;  %v3236_v1 = vpop.f32.mrb[23].mxu0  ;;  %v15781_v27 = vld [vmem:[%s19153_s17 + $0x10] sm:$0xff]   ;;  %v15782_v29 = vld [vmem:[%s19153_s17 + $0x18] sm:$0xff]  }
 0xa37   :  { %v3273_v55 = vadd.f32 %v3265_v32, %v17715_v11  ;;  %v3266_v3 = vadd.f32 %v12782_v40, %v3236_v1  ;;  %15000 = vmatprep.subr.bf16.mxu1 %v3289_v31  ;;  %15012 = vmatprep.subr.bf16.mxu0 %v3289_v31  ;;  %v15784_v32 = vld [vmem:[%s19153_s17 + $0x28] sm:$0xff]   ;;  %v15785_v63 = vld [vmem:[%s19153_s17 + $0x30] sm:$0xff]  }
 0xa38   :  { %v3276_v5 = vadd.f32 %v3268_v54, %v17717_v13  ;;  %15001 = vmatpush3.bf16.msra.mxu1 %v3289_v31  ;;  %15013 = vmatpush3.bf16.msra.mxu0 %v3289_v31  ;;  %v3283_v57 = vmax.f32 %v3275_v53, 0.0  ;;  %v15752_v13 = vld [vmem:[%s19150_s5] sm:$0xff]  }
 0xa39   :  { %v3274_v56 = vadd.f32 %v3266_v3, %v17719_v20  ;;  %15002 = vmatprep.subr.bf16.mxu1 %v3290_v25  ;;  %15014 = vmatprep.subr.bf16.mxu0 %v3290_v25  ;;  %v3281_v58 = vmax.f32 %v3273_v55, 0.0  ;;  %v15747_v20 = vld [vmem:[%s19149_s0 + $0x18] sm:$0xff]   ;;  %v12844_v3 = vld [vmem:[%s19154_s21] ss:$0 sm:$0xff] }
 0xa3a   :  { %v3284_v16 = vmax.f32 %v3276_v5, 0.0 }
 0xa3b   :  { %v3282_v59 = vmax.f32 %v3274_v56, 0.0 }
 0xa3c   :  { %v3292_v11 = vpack.c.bf16 %v3284_v16, %v3283_v57  ;;  %15003 = vmatpush3.bf16.msra.mxu1 %v3290_v25  ;;  %15015 = vmatpush3.bf16.msra.mxu0 %v3290_v25 }
 0xa3d   :  { %v3291_v60 = vpack.c.bf16 %v3282_v59, %v3281_v58 }
 0xa3f   :  { %15004 = vmatprep.subr.bf16.mxu1 %v3291_v60  ;;  %15016 = vmatprep.subr.bf16.mxu0 %v3291_v60 }
 0xa40   :  { %15005 = vmatpush3.bf16.msra.mxu1 %v3291_v60  ;;  %15017 = vmatpush3.bf16.msra.mxu0 %v3291_v60 }
 0xa41   :  { %15006 = vmatprep.subr.bf16.mxu1 %v3292_v11  ;;  %15018 = vmatprep.subr.bf16.mxu0 %v3292_v11 }
 0xa44   :  { %15007 = vmatpush3.bf16.msra.mxu1 %v3292_v11  ;;  %15019 = vmatpush3.bf16.msra.mxu0 %v3292_v11 }
 0xa45   :  { %15024 = vmatprep.subr.bf16.mxu1 %v3289_v31  ;;  %15036 = vmatprep.subr.bf16.mxu0 %v15752_v13 }
 0xa47   :  { %15021 = vmatmul.mubr.msk.bf16.vlgmr.msra.gmra.mrb[24].mxu0 %vm1620_vm2, %v15747_v20  ;;  %15009 = vmatmul.mubr.msk.bf16.vlgmr.msra.gmra.mrb[132].mxu1 %vm1620_vm2, %v15748_v62 }
 0xa48   :  { %15025 = vmatpush3.bf16.msra.mxu1 %v3289_v31  ;;  %15032 = vmatprep.mubr.msk.bf16.mxu1 %vm1620_vm2, %v15749_v0  ;;  %v15783_v31 = vld [vmem:[%s19153_s17 + $0x20] sm:$0xff]  }
 0xa49   :  { %15026 = vmatprep.subr.bf16.mxu1 %v3290_v25  ;;  %15037 = vmatpush3.bf16.msra.mxu0 %v15752_v13 }
 0xa4a   :  { %15038 = vmatprep.subr.bf16.mxu0 %v15754_v2 }
 0xa4c   :  { %15027 = vmatpush3.bf16.msra.mxu1 %v3290_v25  ;;  %v15780_v25 = vld [vmem:[%s19153_s17 + $0x8] sm:$0xff]  }
 0xa4d   :  { %15028 = vmatprep.subr.bf16.mxu1 %v3291_v60  ;;  %15039 = vmatpush3.bf16.msra.mxu0 %v15754_v2 }
 0xa4e   :  { %15040 = vmatprep.subr.bf16.mxu0 %v15756_v10 }
 0xa50   :  { %15029 = vmatpush3.bf16.msra.mxu1 %v3291_v60 }
 0xa51   :  { %15030 = vmatprep.subr.bf16.mxu1 %v3292_v11  ;;  %15041 = vmatpush3.bf16.msra.mxu0 %v15756_v10  ;;  %v15771_v10 = vld [vmem:[%s19153_s17 + $0x50] sm:$0xff]  }
 0xa52   :  { %15042 = vmatprep.subr.bf16.mxu0 %v15758_v18 }
 0xa54   :  { %15031 = vmatpush3.bf16.msra.mxu1 %v3292_v11 }
 0xa55   :  { %15048 = vmatprep.subr.bf16.mxu1 %v15751_v4  ;;  %15043 = vmatpush3.bf16.msra.mxu0 %v15758_v18  ;;  %v15773_v18 = vld [vmem:[%s19153_s17 + $0x60] sm:$0xff]  }
 0xa56   :  { %15112 = vmatprep.subr.bf16.mxu0 %v15779_v24 }
 0xa57   :  { %15033 = vmatmul.mubr.msk.bf16.vlgmr.msra.gmra.mrb[136].mxu1 %vm1620_vm2, %v15750_v6  ;;  %v15769_v6 = vld [vmem:[%s19153_s17 + $0x40] sm:$0xff]  }
 0xa58   :  { %15049 = vmatpush3.bf16.msra.mxu1 %v15751_v4 }
 0xa59   :  { %15050 = vmatprep.subr.bf16.mxu1 %v15753_v7 }
 0xa5c   :  { %15051 = vmatpush3.bf16.msra.mxu1 %v15753_v7  ;;  %v15768_v7 = vld [vmem:[%s19152_s13 + $0x8] sm:$0xff]  }
 0xa5d   :  { %15052 = vmatprep.subr.bf16.mxu1 %v15755_v8 }
 0xa60   :  { %15053 = vmatpush3.bf16.msra.mxu1 %v15755_v8  ;;  %v15770_v8 = vld [vmem:[%s19153_s17 + $0x48] sm:$0xff]  }
 0xa61   :  { %15054 = vmatprep.subr.bf16.mxu1 %v15757_v17 }
 0xa64   :  { %15055 = vmatpush3.bf16.msra.mxu1 %v15757_v17  ;;  %v15772_v17 = vld [vmem:[%s19153_s17 + $0x58] sm:$0xff]  }
 0xa65   :  { %15060 = vmatprep.subr.bf16.mxu1 %v15759_v21 }
 0xb1a   :  { %v15022_v22 = vpop.f32.mrb[24].mxu0  ;;  %v15010_v23 = vpop.f32.mrb[132].mxu1 }
 0xb1b   :  { %v3413_v28 = vpop.f32.mrb[25].mxu0  ;;  %v3343_v30 = vpop.f32.mrb[133].mxu1 }
 0xb1c   :  { %v15023_v35 = vpop.f32.mrb[26].mxu0  ;;  %v15011_v36 = vpop.f32.mrb[134].mxu1 }
 0xb1d   :  { %v3507_v37 = vpack.c.bf16 %v15023_v35, %v15022_v22  ;;  %v3416_v38 = vpop.f32.mrb[27].mxu0  ;;  %v3601_v39 = vpack.c.bf16 %v15011_v36, %v15010_v23  ;;  %v3346_v40 = vpop.f32.mrb[135].mxu1  ;;  %v15775_v22 = vld [vmem:[%s19153_s17 + $0x70] sm:$0xff]   ;;  %v15776_v23 = vld [vmem:[%s19153_s17 + $0x78] sm:$0xff]   ;;  %v15787_v36 = vld [vmem:[%s19153_s17 + $0x80] sm:$0xff]  }
 0xb1e   :  { %v3506_v19 = vpack.c.bf16 %v3416_v38, %v3413_v28  ;;  %v3600_v26 = vpack.c.bf16 %v3346_v40, %v3343_v30  ;;  %v15777_v28 = vld [vmem:[%s19152_s13 + $0x10] sm:$0xff]   ;;  %v15778_v30 = vld [vmem:[%s19152_s13 + $0x18] sm:$0xff]  }
 0xb1f   :  { %v15786_v35 = vld [vmem:[%s19153_s17 + $0x38] sm:$0xff]  }
 0xb20   :  { %15056 = vmatprep.mubr.msk.bf16.mxu1 %vm1620_vm2, %v3506_v19  ;;  %15044 = vmatprep.mubr.msk.bf16.mxu0 %vm1620_vm2, %v3506_v19 }
 0xb21   :  { %15057 = vmatmul.mubr.msk.bf16.vlgmr.msra.gmra.mrb[140].mxu1 %vm1620_vm2, %v3507_v37  ;;  %15045 = vmatmul.mubr.msk.bf16.vlgmr.msra.gmra.mrb[28].mxu0 %vm1620_vm2, %v3507_v37 }
 0xb22   :  { %15061 = vmatpush3.bf16.msra.mxu1 %v15759_v21  ;;  %15068 = vmatprep.mubr.msk.bf16.mxu1 %vm1620_vm2, %v3600_v26  ;;  %v15774_v21 = vld [vmem:[%s19153_s17 + $0x68] sm:$0xff]  }
 0xb23   :  { %15062 = vmatprep.subr.bf16.mxu1 %v15760_v61  ;;  %15113 = vmatpush3.bf16.msra.mxu0 %v15779_v24 }
 0xb24   :  { %15114 = vmatprep.subr.bf16.mxu0 %v15780_v25 }
 0xb26   :  { %15063 = vmatpush3.bf16.msra.mxu1 %v15760_v61  ;;  %v15788_v61 = vld [vmem:[%s19153_s17 + $0x88] sm:$0xff]  }
 0xb27   :  { %15064 = vmatprep.subr.bf16.mxu1 %v15761_v33  ;;  %15115 = vmatpush3.bf16.msra.mxu0 %v15780_v25 }
 0xb28   :  { %15116 = vmatprep.subr.bf16.mxu0 %v15781_v27 }
 0xb2a   :  { %15065 = vmatpush3.bf16.msra.mxu1 %v15761_v33  ;;  %v15034_v42 = vpop.f32.mrb[136].mxu1  ;;  %v15789_v33 = vld [vmem:[%s19153_s17 + $0x90] sm:$0xff]  }
 0xb2b   :  { %15066 = vmatprep.subr.bf16.mxu1 %v15762_v41  ;;  %v3483_v44 = vpop.f32.mrb[137].mxu1  ;;  %15117 = vmatpush3.bf16.msra.mxu0 %v15781_v27 }
 0xb2c   :  { %v15035_v45 = vpop.f32.mrb[138].mxu1  ;;  %15118 = vmatprep.subr.bf16.mxu0 %v15782_v29 }
 0xb2d   :  { %v3773_v46 = vpack.c.bf16 %v15035_v45, %v15034_v42  ;;  %v3486_v47 = vpop.f32.mrb[139].mxu1  ;;  %v15791_v42 = vld [vmem:[%s19153_s17 + $0xa0] sm:$0xff]  }
 0xb2e   :  { %15067 = vmatpush3.bf16.msra.mxu1 %v15762_v41  ;;  %v3772_v48 = vpack.c.bf16 %v3486_v47, %v3483_v44  ;;  %v15790_v41 = vld [vmem:[%s19153_s17 + $0x98] sm:$0xff]   ;;  %v15793_v44 = vld [vmem:[%s19153_s17 + $0xb0] sm:$0xff]   ;;  %v12803_v45 = vld [vmem:[%s19154_s21 + $0x2] ss:$0 sm:$0xff] }
 0xb2f   :  { %15072 = vmatprep.subr.bf16.mxu1 %v15763_v43  ;;  %15119 = vmatpush3.bf16.msra.mxu0 %v15782_v29 }
 0xb30   :  { %15120 = vmatprep.subr.bf16.mxu0 %v15783_v31 }
 0xb31   :  { %15069 = vmatmul.mubr.msk.bf16.vlgmr.msra.gmra.mrb[140].mxu1 %vm1620_vm2, %v3601_v39 }
 0xb32   :  { %15073 = vmatpush3.bf16.msra.mxu1 %v15763_v43  ;;  %15080 = vmatprep.mubr.msk.bf16.mxu1 %vm1620_vm2, %v3772_v48  ;;  %v15792_v43 = vld [vmem:[%s19153_s17 + $0xa8] sm:$0xff]  }
 0xb33   :  { %15074 = vmatprep.subr.bf16.mxu1 %v15764_v49  ;;  %15121 = vmatpush3.bf16.msra.mxu0 %v15783_v31 }
 0xb34   :  { %15122 = vmatprep.subr.bf16.mxu0 %v15784_v32 }
 0xb36   :  { %15075 = vmatpush3.bf16.msra.mxu1 %v15764_v49 }
 0xb37   :  { %15076 = vmatprep.subr.bf16.mxu1 %v15765_v50  ;;  %15123 = vmatpush3.bf16.msra.mxu0 %v15784_v32 }
 0xb38   :  { %15124 = vmatprep.subr.bf16.mxu0 %v15785_v63 }
 0xb3a   :  { %15077 = vmatpush3.bf16.msra.mxu1 %v15765_v50 }
 0xb3b   :  { %15078 = vmatprep.subr.bf16.mxu1 %v15766_v51  ;;  %15125 = vmatpush3.bf16.msra.mxu0 %v15785_v63 }
 0xb3c   :  { %15126 = vmatprep.subr.bf16.mxu0 %v15786_v35 }
 0xb3e   :  { %15079 = vmatpush3.bf16.msra.mxu1 %v15766_v51 }
 0xb3f   :  { %15127 = vmatpush3.bf16.msra.mxu0 %v15786_v35 }
 0xb40   :  { %15140 = vmatprep.subr.bf16.mxu0 %v15787_v36 }
 0xb41   :  { %15081 = vmatmul.mubr.msk.bf16.vlgmr.msra.gmra.mrb[140].mxu1 %vm1620_vm2, %v3773_v46  ;;  %v15794_v46 = vld [vmem:[%s19153_s17 + $0xb8] sm:$0xff]  }
 0xb42   :  { %15088 = vmatprep.mubr.msk.bf16.mxu1 %vm3886_vm6, %v15767_v52 }
 0xbf4   :  { %v17874_v53 = vpop.f32.mrb[28].mxu0 }
 0xbf5   :  { %v17876_v54 = vpop.f32.mrb[29].mxu0  ;;  %v3586_v47 = vadd.f32 %v17874_v53, %v12803_v45 }
 0xbf6   :  { %v17878_v1 = vpop.f32.mrb[30].mxu0  ;;  %v3578_v48 = vadd.f32 %v12803_v45, %v17876_v54 }
 0xbf7   :  { %v17880_v55 = vpop.f32.mrb[31].mxu0  ;;  %v3589_v50 = vadd.f32 %v17878_v1, %v12803_v45 }
 0xbf8   :  { %v3581_v24 = vadd.f32 %v12803_v45, %v17880_v55  ;;  %v15798_v55 = vld [vmem:[%s19155_s25 + $0x80] ss:$8 sps:$4 sm:$0xff]  }
 0xbf9   :  { %v15816_v45 = vld [vmem:[%s19157_s3 + $0x20] ss:$8 sps:$4 sm:$0xff]  }
 0xc14   :  { %v15082_v5 = vpop.f32.mrb[140].mxu1 }
 0xc15   :  { %v3864_v56 = vadd.f32 %v15082_v5, %v12844_v3  ;;  %v3838_v57 = vpop.f32.mrb[141].mxu1 }
 0xc16   :  { %v3862_v16 = vadd.f32 %v12844_v3, %v3838_v57  ;;  %v15083_v58 = vpop.f32.mrb[142].mxu1  ;;  %v15803_v57 = vld [vmem:[%s19155_s25 + $0x94] ss:$8 sps:$4 sm:$0xff]  }
 0xc17   :  { %v3865_v59 = vadd.f32 %v15083_v58, %v12844_v3  ;;  %v3841_v11 = vpop.f32.mrb[143].mxu1  ;;  %v3868_v13 = vmax.f32 %v3864_v56, 0.0  ;;  %v15800_v56 = vld [vmem:[%s19155_s25 + $0x84] ss:$8 sps:$4 sm:$0xff]  }
 0xc18   :  { %v3863_v60 = vadd.f32 %v12844_v3, %v3841_v11  ;;  %v3866_v62 = vmax.f32 %v3862_v16, 0.0  ;;  %v15801_v16 = vld [vmem:[%s19155_s25 + $0x90] ss:$8 sps:$4 sm:$0xff]   ;;  %v15809_v58 = vld [vmem:[%s19155_s25 + $0xa4] ss:$8 sps:$4 sm:$0xff]  }
 0xc19   :  { %v3869_v20 = vmax.f32 %v3865_v59, 0.0  ;;  %v15807_v59 = vld [vmem:[%s19155_s25 + $0xa0] ss:$8 sps:$4 sm:$0xff]   ;;  %v15815_v11 = vld [vmem:[%s19155_s25 + $0xb4] ss:$8 sps:$4 sm:$0xff]  }
 0xc1a   :  { %v3867_v0 = vmax.f32 %v3863_v60, 0.0  ;;  %v15813_v60 = vld [vmem:[%s19155_s25 + $0xb0] ss:$8 sps:$4 sm:$0xff]  }
 0xc1b   :  { %v3875_v2 = vpack.c.bf16 %v3869_v20, %v3868_v13  ;;  %v15821_v13 = vld [vmem:[%s19155_s25 + $0xc4] ss:$8 sps:$4 sm:$0xff]   ;;  %v15819_v20 = vld [vmem:[%s19155_s25 + $0xc0] ss:$8 sps:$4 sm:$0xff]  }
 0xc1c   :  { %v3874_v4 = vpack.c.bf16 %v3867_v0, %v3866_v62  ;;  %v15827_v62 = vld [vmem:[%s19155_s25 + $0xd4] ss:$8 sps:$4 sm:$0xff]   ;;  %v15825_v0 = vld [vmem:[%s19155_s25 + $0xd0] ss:$8 sps:$4 sm:$0xff]  }
 0xc1e   :  { %15084 = vmatprep.subr.bf16.mxu1 %v3874_v4 }
 0xc1f   :  { %15085 = vmatpush3.bf16.msra.mxu1 %v3874_v4 }
 0xc20   :  { %15086 = vmatprep.subr.bf16.mxu1 %v3875_v2 }
 0xc23   :  { %15087 = vmatpush3.bf16.msra.mxu1 %v3875_v2 }
 0xc24   :  { %15092 = vmatprep.subr.bf16.mxu1 %v15769_v6 }
 0xc26   :  { %15089 = vmatmul.mubr.msk.bf16.vlgmr.msra.gmra.mrb[144].mxu1 %vm3886_vm6, %v15768_v7 }
 0xc27   :  { %15093 = vmatpush3.bf16.msra.mxu1 %v15769_v6  ;;  %15108 = vmatprep.mubr.bf16.mxu1 %v3874_v4 }
 0xc28   :  { %15094 = vmatprep.subr.bf16.mxu1 %v15770_v8 }
 0xc2b   :  { %15095 = vmatpush3.bf16.msra.mxu1 %v15770_v8 }
 0xc2c   :  { %15096 = vmatprep.subr.bf16.mxu1 %v15771_v10 }
 0xc2f   :  { %15097 = vmatpush3.bf16.msra.mxu1 %v15771_v10 }
 0xc30   :  { %15098 = vmatprep.subr.bf16.mxu1 %v15772_v17 }
 0xc33   :  { %15099 = vmatpush3.bf16.msra.mxu1 %v15772_v17 }
 0xc34   :  { %15100 = vmatprep.subr.bf16.mxu1 %v15773_v18 }
 0xc37   :  { %15101 = vmatpush3.bf16.msra.mxu1 %v15773_v18 }
 0xc38   :  { %15102 = vmatprep.subr.bf16.mxu1 %v15774_v21 }
 0xc3b   :  { %15103 = vmatpush3.bf16.msra.mxu1 %v15774_v21 }
 0xc3c   :  { %15104 = vmatprep.subr.bf16.mxu1 %v15775_v22 }
 0xc3f   :  { %15105 = vmatpush3.bf16.msra.mxu1 %v15775_v22 }
 0xc40   :  { %15106 = vmatprep.subr.bf16.mxu1 %v15776_v23 }
 0xc43   :  { %15107 = vmatpush3.bf16.msra.mxu1 %v15776_v23 }
 0xc44   :  { %15132 = vmatprep.subr.bf16.mxu1 %v3874_v4 }
 0xc46   :  { %15109 = vmatmul.mubr.bf16.vlgmr.msra.gmra.mrb[148].mxu1 %v3875_v2 }
 0xc47   :  { %15133 = vmatpush3.bf16.msra.mxu1 %v3874_v4  ;;  %15136 = vmatprep.mubr.msk.bf16.mxu1 %vm3886_vm6, %v15777_v28  ;;  %v12913_v4 = vld [vmem:[%s19154_s21 + $0x1] ss:$0 sm:$0xff] }
 0xc48   :  { %15134 = vmatprep.subr.bf16.mxu1 %v3875_v2 }
 0xc4b   :  { %15135 = vmatpush3.bf16.msra.mxu1 %v3875_v2 }
 0xc4c   :  { %15160 = vmatprep.subr.bf16.mxu1 %v17149_v9 }
 0xc4e   :  { %15137 = vmatmul.mubr.msk.bf16.vlgmr.msra.gmra.mrb[152].mxu1 %vm3886_vm6, %v15778_v30 }
 0xc4f   :  { %15164 = vmatprep.mubr.msk.bf16.mxu1 %vm17150_vm0, %v17149_v9 }
 0xcf9   :  { %v15090_v37 = vpop.f32.mrb[144].mxu1 }
 0xcfa   :  { %v3927_v38 = vpop.f32.mrb[145].mxu1 }
 0xcfb   :  { %v15091_v39 = vpop.f32.mrb[146].mxu1 }
 0xcfc   :  { %v3959_v40 = vpack.c.bf16 %v15091_v39, %v15090_v37  ;;  %v3930_v19 = vpop.f32.mrb[147].mxu1 }
 0xcfd   :  { %v3958_v26 = vpack.c.bf16 %v3930_v19, %v3927_v38  ;;  %v15795_v19 = vld [vmem:[%s19156_s29] sm:$0xff]  }
 0xcff   :  { %15128 = vmatprep.mubr.bf16.mxu0 %v3958_v26  ;;  %v15796_v26 = vld [vmem:[%s19156_s29 + $0x8] sm:$0xff]  }
 0xd00   :  { %15129 = vmatmul.mubr.bf16.vlgmr.msra.gmra.mrb[32].mxu0 %v3959_v40 }
 0xd01   :  { %15141 = vmatpush3.bf16.msra.mxu0 %v15787_v36 }
 0xd02   :  { %15142 = vmatprep.subr.bf16.mxu0 %v15788_v61 }
 0xd05   :  { %15143 = vmatpush3.bf16.msra.mxu0 %v15788_v61  ;;  %v15806_v61 = vld [vmem:[%s19157_s3 + $0x4] ss:$8 sps:$4 sm:$0xff]  }
 0xd06   :  { %15144 = vmatprep.subr.bf16.mxu0 %v15789_v33 }
 0xd09   :  { %15145 = vmatpush3.bf16.msra.mxu0 %v15789_v33  ;;  %v15797_v33 = vld [vmem:[%s19156_s29 + $0x10] sm:$0xff]  }
 0xd0a   :  { %15146 = vmatprep.subr.bf16.mxu0 %v15790_v41 }
 0xd0d   :  { %15147 = vmatpush3.bf16.msra.mxu0 %v15790_v41  ;;  %v15804_v41 = vld [vmem:[%s19157_s3] ss:$8 sps:$4 sm:$0xff]  }
 0xd0e   :  { %15148 = vmatprep.subr.bf16.mxu0 %v15791_v42 }
 0xd11   :  { %15149 = vmatpush3.bf16.msra.mxu0 %v15791_v42  ;;  %v15812_v42 = vld [vmem:[%s19157_s3 + $0x14] ss:$8 sps:$4 sm:$0xff]  }
 0xd12   :  { %15150 = vmatprep.subr.bf16.mxu0 %v15792_v43 }
 0xd15   :  { %15151 = vmatpush3.bf16.msra.mxu0 %v15792_v43  ;;  %v15810_v43 = vld [vmem:[%s19157_s3 + $0x10] ss:$8 sps:$4 sm:$0xff]  }
 0xd16   :  { %15152 = vmatprep.subr.bf16.mxu0 %v15793_v44 }
 0xd19   :  { %v15110_v49 = vpop.f32.mrb[148].mxu1  ;;  %15153 = vmatpush3.bf16.msra.mxu0 %v15793_v44  ;;  %v15818_v44 = vld [vmem:[%s19157_s3 + $0x24] ss:$8 sps:$4 sm:$0xff]  }
 0xd1a   :  { %v15245_v51 = vadd.f32 %v15110_v49, %v3586_v47  ;;  %v4059_v52 = vpop.f32.mrb[149].mxu1  ;;  %15154 = vmatprep.subr.bf16.mxu0 %v15794_v46  ;;  %v15822_v47 = vld [vmem:[%s19157_s3 + $0x30] ss:$8 sps:$4 sm:$0xff]   ;;  %v15828_v49 = vld [vmem:[%s19157_s3 + $0x40] ss:$8 sps:$4 sm:$0xff]  }
 0xd1b   :  { %v15249_v25 = vadd.f32 %v4059_v52, %v3578_v48  ;;  %v15111_v27 = vpop.f32.mrb[150].mxu1  ;;  %v15830_v48 = vld [vmem:[%s19157_s3 + $0x44] ss:$8 sps:$4 sm:$0xff]  }
 0xd1c   :  { %v15253_v29 = vadd.f32 %v15111_v27, %v3589_v50  ;;  %v4062_v31 = vpop.f32.mrb[151].mxu1  ;;  %v15836_v50 = vld [vmem:[%s19157_s3 + $0x54] ss:$8 sps:$4 sm:$0xff]   ;;  %v15833_v52 = vld [vmem:[%s19155_s25 + $0xe4] ss:$8 sps:$4 sm:$0xff]  }
 0xd1d   :  { %v15257_v32 = vadd.f32 %v4062_v31, %v3581_v24  ;;  %15155 = vmatpush3.bf16.msra.mxu0 %v15794_v46  ;;  %v15824_v46 = vld [vmem:[%s19157_s3 + $0x34] ss:$8 sps:$4 sm:$0xff]   ;;  %v15834_v24 = vld [vmem:[%s19157_s3 + $0x50] ss:$8 sps:$4 sm:$0xff]   ;;  %v15840_v27 = vld [vmem:[%s19157_s3 + $0x60] ss:$8 sps:$4 sm:$0xff]  }
 0xd1e   :  { %4802 = vmatprep.subr.bf16.mxu0 %v15800_v56  ;;  %v15837_v31 = vld [vmem:[%s19155_s25 + $0xf0] ss:$8 sps:$4 sm:$0xff]  }
 0xd21   :  { %v15138_v63 = vpop.f32.mrb[152].mxu1 }
 0xd22   :  { %v4226_v53 = vpop.f32.mrb[153].mxu1 }
 0xd23   :  { %v15139_v54 = vpop.f32.mrb[154].mxu1 }
 0xd24   :  { %v4259_v1 = vpack.c.bf16 %v15139_v54, %v15138_v63  ;;  %v4229_v3 = vpop.f32.mrb[155].mxu1  ;;  %v15846_v63 = vld [vmem:[%s19157_s3 + $0x70] ss:$8 sps:$4 sm:$0xff]  }
 0xd25   :  { %v4258_v5 = vpack.c.bf16 %v4229_v3, %v4226_v53  ;;  %v15845_v53 = vld [vmem:[%s19155_s25 + $0x4] ss:$8 sps:$4 sm:$0xff]  }
 0xd27   :  { %15156 = vmatprep.mubr.bf16.mxu0 %v4258_v5 }
 0xd28   :  { %15157 = vmatmul.mubr.bf16.vlgmr.msra.gmra.mrb[32].mxu0 %v4259_v1 }
 0xd29   :  { %4834 = vmatprep.mubr.bf16.mxu0 %v17148_v34  ;;  %4803 = vmatpush1.bf16.msra.mxu0 %v15798_v55 }
 0xd2a   :  { %4804 = vmatprep.subr.bf16.mxu0 %v15803_v57 }
 0xd2d   :  { %4805 = vmatpush1.bf16.msra.mxu0 %v15801_v16 }
 0xd2e   :  { %4806 = vmatprep.subr.bf16.mxu0 %v15809_v58  ;;  %v15843_v58 = vld [vmem:[%s19155_s25] ss:$8 sps:$4 sm:$0xff]  }
 0xd31   :  { %4807 = vmatpush1.bf16.msra.mxu0 %v15807_v59 }
 0xd32   :  { %4808 = vmatprep.subr.bf16.mxu0 %v15815_v11 }
 0xd35   :  { %4809 = vmatpush1.bf16.msra.mxu0 %v15813_v60  ;;  %v15851_v60 = vld [vmem:[%s19155_s25 + $0x14] ss:$8 sps:$4 sm:$0xff]  }
 0xd36   :  { %4810 = vmatprep.subr.bf16.mxu0 %v15821_v13  ;;  %v15849_v13 = vld [vmem:[%s19155_s25 + $0x10] ss:$8 sps:$4 sm:$0xff]  }
 0xd39   :  { %4811 = vmatpush1.bf16.msra.mxu0 %v15819_v20  ;;  %v15854_v20 = vld [vmem:[%s19155_s25 + $0x24] ss:$8 sps:$4 sm:$0xff]  }
 0xd3a   :  { %4812 = vmatprep.subr.bf16.mxu0 %v15827_v62 }
 0xd3d   :  { %4813 = vmatpush1.bf16.msra.mxu0 %v15825_v0 }
 0xd3e   :  { %4814 = vmatprep.subr.bf16.mxu0 %v15833_v52 }
 0xdfb   :  { %v15158_v2 = vpop.f32.mrb[32].mxu0 }
 0xdfc   :  { %v15246_v6 = vadd.f32 %v15245_v51, %v15158_v2  ;;  %v4342_v7 = vpop.f32.mrb[33].mxu0  ;;  %v15831_v51 = vld [vmem:[%s19155_s25 + $0xe0] ss:$8 sps:$4 sm:$0xff]  }
 0xdfd   :  { %v15250_v8 = vadd.f32 %v15249_v25, %v4342_v7  ;;  %v15159_v10 = vpop.f32.mrb[34].mxu0  ;;  %4815 = vmatpush1.bf16.msra.mxu0 %v15831_v51  ;;  %v15842_v25 = vld [vmem:[%s19157_s3 + $0x64] ss:$8 sps:$4 sm:$0xff]   ;;  %v15852_v2 = vld [vmem:[%s19155_s25 + $0x20] ss:$8 sps:$4 sm:$0xff]  }
 0xdfe   :  { %v15247_v17 = vadd.f32 %v15246_v6, %v12913_v4  ;;  %v15254_v18 = vadd.f32 %v15253_v29, %v15159_v10  ;;  %v4345_v21 = vpop.f32.mrb[35].mxu0  ;;  %v15839_v29 = vld [vmem:[%s19155_s25 + $0xf4] ss:$8 sps:$4 sm:$0xff]   ;;  %v15855_v10 = vld [vmem:[%s19155_s25 + $0x30] ss:$8 sps:$4 sm:$0xff]  }
 0xdff   :  { %v15251_v22 = vadd.f32 %v15250_v8, %v12913_v4  ;;  %v15258_v23 = vadd.f32 %v15257_v32, %v4345_v21  ;;  %4816 = vmatprep.subr.bf16.mxu0 %v15839_v29  ;;  %v15848_v32 = vld [vmem:[%s19157_s3 + $0x74] ss:$8 sps:$4 sm:$0xff]  }
 0xe00   :  { %v15255_v28 = vadd.f32 %v15254_v18, %v12913_v4  ;;  %v4376_v35 = vmax.f32 %v15247_v17, 0.0  ;;  %v15857_v6 = vld [vmem:[%s19155_s25 + $0x34] ss:$8 sps:$4 sm:$0xff]   ;;  %v15860_v17 = vld [vmem:[%s19155_s25 + $0x44] ss:$8 sps:$4 sm:$0xff]  }
 0xe01   :  { %v15259_v30 = vadd.f32 %v15258_v23, %v12913_v4  ;;  %v4374_v37 = vmax.f32 %v15251_v22, 0.0  ;;  %4817 = vmatpush1.bf16.msra.mxu0 %v15837_v31  ;;  %v15858_v18 = vld [vmem:[%s19155_s25 + $0x40] ss:$8 sps:$4 sm:$0xff]   ;;  %v15863_v21 = vld [vmem:[%s19155_s25 + $0x54] ss:$8 sps:$4 sm:$0xff]  }
 0xe02   :  { %v4377_v36 = vmax.f32 %v15255_v28, 0.0  ;;  %4925 = vmatprep.subr.bf16.mxu0 %v15845_v53  ;;  %v15861_v22 = vld [vmem:[%s19155_s25 + $0x50] ss:$8 sps:$4 sm:$0xff]   ;;  %v15866_v23 = vld [vmem:[%s19155_s25 + $0x64] ss:$8 sps:$4 sm:$0xff]  }
 0xe03   :  { %v4375_v38 = vmax.f32 %v15259_v30, 0.0  ;;  %v15864_v28 = vld [vmem:[%s19155_s25 + $0x60] ss:$8 sps:$4 sm:$0xff]   ;;  %v15869_v30 = vld [vmem:[%s19155_s25 + $0x74] ss:$8 sps:$4 sm:$0xff]  }
 0xe04   :  { %v4381_v39 = vpack.c.bf16 %v4377_v36, %v4376_v35  ;;  %v15867_v35 = vld [vmem:[%s19155_s25 + $0x70] ss:$8 sps:$4 sm:$0xff]   ;;  %v15872_v36 = vld [vmem:[%s19155_s25 + $0x104] ss:$8 sps:$4 sm:$0xff]  }
 0xe05   :  { %v4380_v40 = vpack.c.bf16 %v4375_v38, %v4374_v37  ;;  %v15870_v37 = vld [vmem:[%s19155_s25 + $0x100] ss:$8 sps:$4 sm:$0xff]   ;;  %v15875_v38 = vld [vmem:[%s19155_s25 + $0x114] ss:$8 sps:$4 sm:$0xff]  }
 0xe07   :  { %15161 = vmatpush3.bf16.msra.mxu1 %v4380_v40 }
 0xe08   :  { %15162 = vmatprep.subr.bf16.mxu1 %v17149_v9 }
 0xe0b   :  { %15163 = vmatpush3.bf16.msra.mxu1 %v4381_v39 }
 0xe0c   :  { %15168 = vmatprep.subr.bf16.mxu1 %v17149_v9 }
 0xe0e   :  { %15165 = vmatmul.mubr.msk.bf16.vlgmr.msra.gmra.mrb[156].mxu1 %vm3886_vm6, %v15795_v19  ;;  %v15876_v19 = vld [vmem:[%s19155_s25 + $0x120] ss:$8 sps:$4 sm:$0xff]  }
 0xe0f   :  { %15169 = vmatpush3.bf16.msra.mxu1 %v4380_v40  ;;  %15172 = vmatprep.mubr.msk.bf16.mxu1 %vm17150_vm0, %v17149_v9 }
 0xe10   :  { %15170 = vmatprep.subr.bf16.mxu1 %v17149_v9 }
 0xe13   :  { %15171 = vmatpush3.bf16.msra.mxu1 %v4381_v39 }
 0xe14   :  { %15176 = vmatprep.subr.bf16.mxu1 %v17149_v9 }
 0xe16   :  { %15173 = vmatmul.mubr.msk.bf16.vlgmr.msra.gmra.mrb[160].mxu1 %vm3886_vm6, %v15796_v26  ;;  %v15881_v26 = vld [vmem:[%s19155_s25 + $0x134] ss:$8 sps:$4 sm:$0xff]  }
 0xe17   :  { %15177 = vmatpush3.bf16.msra.mxu1 %v4380_v40  ;;  %15180 = vmatprep.mubr.msk.bf16.mxu1 %vm17150_vm0, %v17149_v9  ;;  %v15878_v40 = vld [vmem:[%s19155_s25 + $0x124] ss:$8 sps:$4 sm:$0xff]  }
 0xe18   :  { %15178 = vmatprep.subr.bf16.mxu1 %v17149_v9 }
 0xe1b   :  { %15179 = vmatpush3.bf16.msra.mxu1 %v4381_v39  ;;  %v15873_v39 = vld [vmem:[%s19155_s25 + $0x110] ss:$8 sps:$4 sm:$0xff]  }
 0xe1c   :  { %4645 = vmatprep.subr.bf16.mxu1 %v15806_v61  ;;  %v15879_v61 = vld [vmem:[%s19155_s25 + $0x130] ss:$8 sps:$4 sm:$0xff]  }
 0xe1e   :  { %15181 = vmatmul.mubr.msk.bf16.vlgmr.msra.gmra.mrb[164].mxu1 %vm3886_vm6, %v15797_v33  ;;  %v15884_v33 = vld [vmem:[%s19155_s25 + $0x144] ss:$8 sps:$4 sm:$0xff]  }
 0xe1f   :  { %4646 = vmatpush1.bf16.msra.mxu1 %v15804_v41  ;;  %4677 = vmatprep.mubr.bf16.mxu1 %v17148_v34  ;;  %v15882_v41 = vld [vmem:[%s19155_s25 + $0x140] ss:$8 sps:$4 sm:$0xff]  }
 0xe20   :  { %4647 = vmatprep.subr.bf16.mxu1 %v15812_v42  ;;  %v15887_v42 = vld [vmem:[%s19155_s25 + $0x154] ss:$8 sps:$4 sm:$0xff]  }
 0xe23   :  { %4648 = vmatpush1.bf16.msra.mxu1 %v15810_v43  ;;  %v15885_v43 = vld [vmem:[%s19155_s25 + $0x150] ss:$8 sps:$4 sm:$0xff]  }
 0xe24   :  { %4649 = vmatprep.subr.bf16.mxu1 %v15818_v44  ;;  %v15890_v44 = vld [vmem:[%s19155_s25 + $0x164] ss:$8 sps:$4 sm:$0xff]  }
 0xe27   :  { %4650 = vmatpush1.bf16.msra.mxu1 %v15816_v45  ;;  %v15888_v45 = vld [vmem:[%s19155_s25 + $0x160] ss:$8 sps:$4 sm:$0xff]  }
 0xe28   :  { %4651 = vmatprep.subr.bf16.mxu1 %v15824_v46  ;;  %v15893_v46 = vld [vmem:[%s19155_s25 + $0x174] ss:$8 sps:$4 sm:$0xff]  }
 0xe2b   :  { %4652 = vmatpush1.bf16.msra.mxu1 %v15822_v47  ;;  %v15891_v47 = vld [vmem:[%s19155_s25 + $0x170] ss:$8 sps:$4 sm:$0xff]  }
 0xe2c   :  { %4653 = vmatprep.subr.bf16.mxu1 %v15830_v48  ;;  %v5113_v48 = vld [vmem:[%s19158_s8] ss:$4 sm:$0x3] }
 0xe2f   :  { %4654 = vmatpush1.bf16.msra.mxu1 %v15828_v49  ;;  %v5118_v49 = vrot.slane %v5113_v48, %v17520_v14 }
 0xe30   :  { %4655 = vmatprep.subr.bf16.mxu1 %v15836_v50  ;;  %v5122_v50 = vrot.slane %v5113_v48, %v17523_v15  ;;  %v15958_v48 = vld [vmem:[%s19159_s14 + $0x44] ss:$8 sps:$4 sm:$0xff]  }
 0xe33   :  { %4656 = vmatpush1.bf16.msra.mxu1 %v15834_v24 }
 0xe34   :  { %4657 = vmatprep.subr.bf16.mxu1 %v15842_v25 }
 0xe37   :  { %4658 = vmatpush1.bf16.msra.mxu1 %v15840_v27 }
 0xe38   :  { %4659 = vmatprep.subr.bf16.mxu1 %v15848_v32 }
 0xe3b   :  { %4660 = vmatpush1.bf16.msra.mxu1 %v15846_v63 }
 0xee1   :  { %v4424_v54 = vpop.f32.mrb[156].mxu1 }
 0xee2   :  { %v15166_v1 = vpop.f32.mrb[157].mxu1 }
 0xee3   :  { %v4427_v3 = vpop.f32.mrb[158].mxu1 }
 0xee4   :  { %v4704_v5 = vpack.c.bf16 %v4427_v3, %v4424_v54  ;;  %v15167_v55 = vpop.f32.mrb[159].mxu1 }
 0xee5   :  { %v15897_v55 = vld [vmem:[%s19159_s14 + $0x104] ss:$8 sps:$4 sm:$0xff]  }
 0xee9   :  { %v4476_v56 = vpop.f32.mrb[160].mxu1 }
 0xeea   :  { %v15174_v57 = vpop.f32.mrb[161].mxu1 }
 0xeeb   :  { %v4479_v16 = vpop.f32.mrb[162].mxu1  ;;  %v15943_v57 = vld [vmem:[%s19160_s19 + $0x8] sm:$0xff]  }
 0xeec   :  { %v4551_v59 = vpack.c.bf16 %v4479_v16, %v4476_v56  ;;  %v15175_v11 = vpop.f32.mrb[163].mxu1  ;;  %v15894_v56 = vld [vmem:[%s19160_s19] sm:$0xff]  }
 0xeed   :  { %v15895_v16 = vld [vmem:[%s19159_s14 + $0x100] ss:$8 sps:$4 sm:$0xff]   ;;  %v15903_v11 = vld [vmem:[%s19159_s14 + $0x124] ss:$8 sps:$4 sm:$0xff]  }
 0xeee   :  { %4835 = vmatmul.mubr.bf16.vlgmr.msra.gmra.mrb[36].mxu0 %v4551_v59  ;;  %4678 = vmatmul.mubr.bf16.vlgmr.msra.gmra.mrb[168].mxu1 %v4551_v59  ;;  %v15898_v59 = vld [vmem:[%s19159_s14 + $0x110] ss:$8 sps:$4 sm:$0xff]  }
 0xeef   :  { %4926 = vmatpush1.bf16.msra.mxu0 %v15843_v58  ;;  %4957 = vmatprep.mubr.bf16.mxu0 %v17148_v34  ;;  %v15900_v58 = vld [vmem:[%s19159_s14 + $0x114] ss:$8 sps:$4 sm:$0xff]  }
 0xef0   :  { %4927 = vmatprep.subr.bf16.mxu0 %v15851_v60  ;;  %5178 = vmatprep.mubr.bf16.mxu1 %v17148_v34  ;;  %v15901_v60 = vld [vmem:[%s19159_s14 + $0x120] ss:$8 sps:$4 sm:$0xff]  }
 0xef1   :  { %v17971_v62 = vpop.f32.mrb[164].mxu1 }
 0xef2   :  { %v15182_v0 = vpop.f32.mrb[165].mxu1 }
 0xef3   :  { %4928 = vmatpush1.bf16.msra.mxu0 %v15849_v13  ;;  %v4531_v4 = vpop.f32.mrb[166].mxu1  ;;  %v15906_v13 = vld [vmem:[%s19159_s14 + $0x134] ss:$8 sps:$4 sm:$0xff]   ;;  %v15907_v0 = vld [vmem:[%s19159_s14 + $0x140] ss:$8 sps:$4 sm:$0xff]  }
 0xef4   :  { %4929 = vmatprep.subr.bf16.mxu0 %v15854_v20  ;;  %v4985_v7 = vpack.c.bf16 %v4531_v4, %v17971_v62  ;;  %v15183_v8 = vpop.f32.mrb[167].mxu1  ;;  %v15904_v20 = vld [vmem:[%s19159_s14 + $0x130] ss:$8 sps:$4 sm:$0xff]   ;;  %v15909_v62 = vld [vmem:[%s19159_s14 + $0x144] ss:$8 sps:$4 sm:$0xff]  }
 0xef5   :  { %v15910_v4 = vld [vmem:[%s19159_s14 + $0x150] ss:$8 sps:$4 sm:$0xff]   ;;  %v15918_v8 = vld [vmem:[%s19159_s14 + $0x174] ss:$8 sps:$4 sm:$0xff]  }
 0xef7   :  { %4930 = vmatpush1.bf16.msra.mxu0 %v15852_v2  ;;  %v15912_v2 = vld [vmem:[%s19159_s14 + $0x154] ss:$8 sps:$4 sm:$0xff]  }
 0xef8   :  { %4931 = vmatprep.subr.bf16.mxu0 %v15857_v6  ;;  %v15915_v6 = vld [vmem:[%s19159_s14 + $0x164] ss:$8 sps:$4 sm:$0xff]  }
 0xefb   :  { %4932 = vmatpush1.bf16.msra.mxu0 %v15855_v10  ;;  %v15916_v10 = vld [vmem:[%s19159_s14 + $0x170] ss:$8 sps:$4 sm:$0xff]  }
 0xefc   :  { %4933 = vmatprep.subr.bf16.mxu0 %v15860_v17  ;;  %v15921_v17 = vld [vmem:[%s19159_s14 + $0x184] ss:$8 sps:$4 sm:$0xff]  }
 0xeff   :  { %4934 = vmatpush1.bf16.msra.mxu0 %v15858_v18  ;;  %v15919_v18 = vld [vmem:[%s19159_s14 + $0x180] ss:$8 sps:$4 sm:$0xff]  }
 0xf00   :  { %4935 = vmatprep.subr.bf16.mxu0 %v15863_v21  ;;  %v15924_v21 = vld [vmem:[%s19159_s14 + $0x194] ss:$8 sps:$4 sm:$0xff]  }
 0xf03   :  { %4936 = vmatpush1.bf16.msra.mxu0 %v15861_v22  ;;  %v15922_v22 = vld [vmem:[%s19159_s14 + $0x190] ss:$8 sps:$4 sm:$0xff]  }
 0xf04   :  { %4937 = vmatprep.subr.bf16.mxu0 %v15866_v23  ;;  %v15927_v23 = vld [vmem:[%s19159_s14 + $0x1a4] ss:$8 sps:$4 sm:$0xff]  }
 0xf07   :  { %4938 = vmatpush1.bf16.msra.mxu0 %v15864_v28  ;;  %v15925_v28 = vld [vmem:[%s19159_s14 + $0x1a0] ss:$8 sps:$4 sm:$0xff]  }
 0xf08   :  { %4939 = vmatprep.subr.bf16.mxu0 %v15869_v30  ;;  %v15930_v30 = vld [vmem:[%s19159_s14 + $0x1b4] ss:$8 sps:$4 sm:$0xff]  }
 0xf0b   :  { %4940 = vmatpush1.bf16.msra.mxu0 %v15867_v35  ;;  %v15928_v35 = vld [vmem:[%s19159_s14 + $0x1b0] ss:$8 sps:$4 sm:$0xff]  }
 0xf0c   :  { %5066 = vmatprep.subr.bf16.mxu0 %v15872_v36  ;;  %v15933_v36 = vld [vmem:[%s19159_s14 + $0x1c4] ss:$8 sps:$4 sm:$0xff]  }
 0xf0e   :  { %4958 = vmatmul.mubr.bf16.vlgmr.msra.gmra.mrb[36].mxu0 %v4704_v5 }
 0xf0f   :  { %5067 = vmatpush1.bf16.msra.mxu0 %v15870_v37  ;;  %5098 = vmatprep.mubr.bf16.mxu0 %v17148_v34  ;;  %v15931_v37 = vld [vmem:[%s19159_s14 + $0x1c0] ss:$8 sps:$4 sm:$0xff]  }
 0xf10   :  { %5068 = vmatprep.subr.bf16.mxu0 %v15875_v38  ;;  %v15936_v38 = vld [vmem:[%s19159_s14 + $0x1d4] ss:$8 sps:$4 sm:$0xff]  }
 0xf13   :  { %5069 = vmatpush1.bf16.msra.mxu0 %v15873_v39  ;;  %v15934_v39 = vld [vmem:[%s19159_s14 + $0x1d0] ss:$8 sps:$4 sm:$0xff]  }
 0xf14   :  { %5070 = vmatprep.subr.bf16.mxu0 %v15878_v40  ;;  %v15939_v40 = vld [vmem:[%s19159_s14 + $0x1e4] ss:$8 sps:$4 sm:$0xff]  }
 0xf17   :  { %5071 = vmatpush1.bf16.msra.mxu0 %v15876_v19  ;;  %v15937_v19 = vld [vmem:[%s19159_s14 + $0x1e0] ss:$8 sps:$4 sm:$0xff]  }
 0xf18   :  { %5072 = vmatprep.subr.bf16.mxu0 %v15881_v26  ;;  %v15942_v26 = vld [vmem:[%s19159_s14 + $0x1f4] ss:$8 sps:$4 sm:$0xff]  }
 0xf1b   :  { %5073 = vmatpush1.bf16.msra.mxu0 %v15879_v61  ;;  %v15940_v61 = vld [vmem:[%s19159_s14 + $0x1f0] ss:$8 sps:$4 sm:$0xff]  }
 0xf1c   :  { %5074 = vmatprep.subr.bf16.mxu0 %v15884_v33  ;;  %v15946_v33 = vld [vmem:[%s19159_s14 + $0x4] ss:$8 sps:$4 sm:$0xff]  }
 0xf1f   :  { %5075 = vmatpush1.bf16.msra.mxu0 %v15882_v41  ;;  %v15944_v41 = vld [vmem:[%s19159_s14] ss:$8 sps:$4 sm:$0xff]  }
 0xf20   :  { %5076 = vmatprep.subr.bf16.mxu0 %v15887_v42  ;;  %v15949_v42 = vld [vmem:[%s19159_s14 + $0x14] ss:$8 sps:$4 sm:$0xff]  }
 0xf23   :  { %5077 = vmatpush1.bf16.msra.mxu0 %v15885_v43  ;;  %v15947_v43 = vld [vmem:[%s19159_s14 + $0x10] ss:$8 sps:$4 sm:$0xff]  }
 0xf24   :  { %5078 = vmatprep.subr.bf16.mxu0 %v15890_v44  ;;  %v15952_v44 = vld [vmem:[%s19159_s14 + $0x24] ss:$8 sps:$4 sm:$0xff]  }
 0xf27   :  { %5079 = vmatpush1.bf16.msra.mxu0 %v15888_v45  ;;  %v15950_v45 = vld [vmem:[%s19159_s14 + $0x20] ss:$8 sps:$4 sm:$0xff]  }
 0xf28   :  { %5080 = vmatprep.subr.bf16.mxu0 %v15893_v46  ;;  %v15955_v46 = vld [vmem:[%s19159_s14 + $0x34] ss:$8 sps:$4 sm:$0xff]  }
 0xf2b   :  { %5081 = vmatpush1.bf16.msra.mxu0 %v15891_v47  ;;  %v15953_v47 = vld [vmem:[%s19159_s14 + $0x30] ss:$8 sps:$4 sm:$0xff]  }
 0xf2e   :  { %5099 = vmatmul.mubr.bf16.vlgmr.msra.gmra.mrb[36].mxu0 %v4985_v7  ;;  %v15913_v7 = vld [vmem:[%s19159_s14 + $0x160] ss:$8 sps:$4 sm:$0xff]  }
 0xf2f   :  { %5705 = vmatprep.mubr.bf16.mxu0 %v17148_v34 }
0x1001   :  { %v5100_v51 = vpop.f32.mrb[36].mxu0 }
0x1002   :  { %v5125_v52 = vadd.f32 %v5118_v49, %v5100_v51  ;;  %v5102_v24 = vpop.f32.mrb[37].mxu0  ;;  %v15959_v51 = vld [vmem:[%s19159_s14 + $0x50] ss:$8 sps:$4 sm:$0xff]  }
0x1003   :  { %v5126_v25 = vadd.f32 %v5122_v50, %v5102_v24  ;;  %v5104_v27 = vpop.f32.mrb[38].mxu0  ;;  %v15962_v24 = vld [vmem:[%s19159_s14 + $0x60] ss:$8 sps:$4 sm:$0xff]  }
0x1004   :  { %v5127_v29 = vadd.f32 %v5118_v49, %v5104_v27  ;;  %v5106_v31 = vpop.f32.mrb[39].mxu0  ;;  %v5129_v63 = vmax.f32 %v5125_v52, 0.0  ;;  %v15956_v49 = vld [vmem:[%s19159_s14 + $0x40] ss:$8 sps:$4 sm:$0xff]   ;;  %v15964_v52 = vld [vmem:[%s19159_s14 + $0x64] ss:$8 sps:$4 sm:$0xff]  }
0x1005   :  { %v5128_v32 = vadd.f32 %v5122_v50, %v5106_v31  ;;  %v5130_v54 = vmax.f32 %v5126_v25, 0.0  ;;  %v15961_v50 = vld [vmem:[%s19159_s14 + $0x54] ss:$8 sps:$4 sm:$0xff]   ;;  %v15965_v27 = vld [vmem:[%s19159_s14 + $0x70] ss:$8 sps:$4 sm:$0xff]  }
0x1006   :  { %v5131_v53 = vmax.f32 %v5127_v29, 0.0  ;;  %v15967_v25 = vld [vmem:[%s19159_s14 + $0x74] ss:$8 sps:$4 sm:$0xff]   ;;  %v15970_v29 = vld [vmem:[%s19159_s14 + $0x84] ss:$8 sps:$4 sm:$0xff]  }
0x1007   :  { %v5132_v1 = vmax.f32 %v5128_v32, 0.0  ;;  %v15968_v31 = vld [vmem:[%s19159_s14 + $0x80] ss:$8 sps:$4 sm:$0xff]   ;;  %v15973_v32 = vld [vmem:[%s19159_s14 + $0x94] ss:$8 sps:$4 sm:$0xff]  }
0x1008   :  { %v18006_v3 = vpack.c.bf16 %v5131_v53, %v5129_v63  ;;  %v15971_v63 = vld [vmem:[%s19159_s14 + $0x90] ss:$8 sps:$4 sm:$0xff]   ;;  %v15976_v53 = vld [vmem:[%s19159_s14 + $0xa4] ss:$8 sps:$4 sm:$0xff]  }
0x1009   :  { %v5136_v5 = vpack.c.bf16 %v5132_v1, %v5130_v54  ;;  %v15974_v54 = vld [vmem:[%s19159_s14 + $0xa0] ss:$8 sps:$4 sm:$0xff]   ;;  %v15979_v1 = vld [vmem:[%s19159_s14 + $0xb4] ss:$8 sps:$4 sm:$0xff]  }
0x100b   :  { %5146 = vmatprep.subr.bf16.mxu1 %v5136_v5  ;;  %5673 = vmatprep.subr.bf16.mxu0 %v5136_v5 }
0x100c   :  { %5147 = vmatpush1.bf16.msra.mxu1 %v18006_v3  ;;  %5674 = vmatpush1.bf16.msra.mxu0 %v18006_v3 }
0x100d   :  { %5416 = vmatprep.subr.bf16.mxu1 %v15897_v55  ;;  %v15980_v55 = vld [vmem:[%s19159_s14 + $0xc0] ss:$8 sps:$4 sm:$0xff]  }
0x100f   :  { %13022 = vmatmul.mubr.msk.bf16.vlgmr.msra.gmra.mrb[172].mxu1 %vm5142_vm7, %v15894_v56  ;;  %13122 = vmatmul.mubr.msk.bf16.vlgmr.msra.gmra.mrb[40].mxu0 %vm5142_vm7, %v15943_v57  ;;  %v15985_v56 = vld [vmem:[%s19159_s14 + $0xd4] ss:$8 sps:$4 sm:$0xff]   ;;  %v15983_v57 = vld [vmem:[%s19159_s14 + $0xd0] ss:$8 sps:$4 sm:$0xff]  }
0x1010   :  { %5417 = vmatpush1.bf16.msra.mxu1 %v15895_v16  ;;  %5448 = vmatprep.mubr.bf16.mxu1 %v5136_v5  ;;  %v15982_v5 = vld [vmem:[%s19159_s14 + $0xc4] ss:$8 sps:$4 sm:$0xff]  }
0x1011   :  { %5418 = vmatprep.subr.bf16.mxu1 %v15900_v58  ;;  %6021 = vmatprep.mubr.bf16.mxu0 %v17148_v34  ;;  %v15988_v16 = vld [vmem:[%s19159_s14 + $0xe4] ss:$8 sps:$4 sm:$0xff]   ;;  %v15986_v58 = vld [vmem:[%s19159_s14 + $0xe0] ss:$8 sps:$4 sm:$0xff]  }
0x1014   :  { %5419 = vmatpush1.bf16.msra.mxu1 %v15898_v59  ;;  %v15991_v59 = vld [vmem:[%s19159_s14 + $0xf4] ss:$8 sps:$4 sm:$0xff]  }
0x1015   :  { %5420 = vmatprep.subr.bf16.mxu1 %v15903_v11  ;;  %v15989_v11 = vld [vmem:[%s19159_s14 + $0xf0] ss:$8 sps:$4 sm:$0xff]  }
0x1018   :  { %5421 = vmatpush1.bf16.msra.mxu1 %v15901_v60  ;;  %v15994_v60 = vld [vmem:[%s19159_s14 + $0x204] ss:$8 sps:$4 sm:$0xff]  }
0x1019   :  { %5422 = vmatprep.subr.bf16.mxu1 %v15906_v13 }
0x101c   :  { %5423 = vmatpush1.bf16.msra.mxu1 %v15904_v20 }
0x101d   :  { %5424 = vmatprep.subr.bf16.mxu1 %v15909_v62 }
0x1020   :  { %5425 = vmatpush1.bf16.msra.mxu1 %v15907_v0 }
0x1021   :  { %5426 = vmatprep.subr.bf16.mxu1 %v15912_v2 }
0x1024   :  { %5427 = vmatpush1.bf16.msra.mxu1 %v15910_v4 }
0x1025   :  { %5428 = vmatprep.subr.bf16.mxu1 %v15915_v6 }
0x1028   :  { %5429 = vmatpush1.bf16.msra.mxu1 %v15913_v7 }
0x1029   :  { %5430 = vmatprep.subr.bf16.mxu1 %v15918_v8 }
0x102c   :  { %5431 = vmatpush1.bf16.msra.mxu1 %v15916_v10 }
0x102d   :  { %5432 = vmatprep.subr.bf16.mxu1 %v15921_v17 }
0x1030   :  { %5433 = vmatpush1.bf16.msra.mxu1 %v15919_v18  ;;  %v15992_v18 = vld [vmem:[%s19159_s14 + $0x200] ss:$8 sps:$4 sm:$0xff]  }
0x1031   :  { %5434 = vmatprep.subr.bf16.mxu1 %v15924_v21 }
0x1034   :  { %5435 = vmatpush1.bf16.msra.mxu1 %v15922_v22  ;;  %v15997_v22 = vld [vmem:[%s19159_s14 + $0x214] ss:$8 sps:$4 sm:$0xff]  }
0x1035   :  { %5436 = vmatprep.subr.bf16.mxu1 %v15927_v23  ;;  %v15995_v23 = vld [vmem:[%s19159_s14 + $0x210] ss:$8 sps:$4 sm:$0xff]  }
0x1038   :  { %5437 = vmatpush1.bf16.msra.mxu1 %v15925_v28  ;;  %v16000_v28 = vld [vmem:[%s19159_s14 + $0x224] ss:$8 sps:$4 sm:$0xff]  }
0x1039   :  { %5438 = vmatprep.subr.bf16.mxu1 %v15930_v30  ;;  %v15998_v30 = vld [vmem:[%s19159_s14 + $0x220] ss:$8 sps:$4 sm:$0xff]  }
0x103c   :  { %5439 = vmatpush1.bf16.msra.mxu1 %v15928_v35  ;;  %v16003_v35 = vld [vmem:[%s19159_s14 + $0x234] ss:$8 sps:$4 sm:$0xff]  }
0x103d   :  { %5440 = vmatprep.subr.bf16.mxu1 %v15933_v36  ;;  %v16001_v36 = vld [vmem:[%s19159_s14 + $0x230] ss:$8 sps:$4 sm:$0xff]  }
0x1040   :  { %5441 = vmatpush1.bf16.msra.mxu1 %v15931_v37  ;;  %v16006_v37 = vld [vmem:[%s19159_s14 + $0x244] ss:$8 sps:$4 sm:$0xff]  }
0x1041   :  { %5442 = vmatprep.subr.bf16.mxu1 %v15936_v38  ;;  %v16004_v38 = vld [vmem:[%s19159_s14 + $0x240] ss:$8 sps:$4 sm:$0xff]  }
0x1044   :  { %5443 = vmatpush1.bf16.msra.mxu1 %v15934_v39  ;;  %v16009_v39 = vld [vmem:[%s19159_s14 + $0x254] ss:$8 sps:$4 sm:$0xff]  }
0x1045   :  { %5444 = vmatprep.subr.bf16.mxu1 %v15939_v40  ;;  %v16007_v40 = vld [vmem:[%s19159_s14 + $0x250] ss:$8 sps:$4 sm:$0xff]  }
0x1048   :  { %5445 = vmatpush1.bf16.msra.mxu1 %v15937_v19  ;;  %v16012_v19 = vld [vmem:[%s19159_s14 + $0x264] ss:$8 sps:$4 sm:$0xff]  }
0x1049   :  { %5446 = vmatprep.subr.bf16.mxu1 %v15942_v26  ;;  %v16010_v26 = vld [vmem:[%s19159_s14 + $0x260] ss:$8 sps:$4 sm:$0xff]  }
0x104c   :  { %5447 = vmatpush1.bf16.msra.mxu1 %v15940_v61  ;;  %v16015_v61 = vld [vmem:[%s19159_s14 + $0x274] ss:$8 sps:$4 sm:$0xff]  }
0x104d   :  { %5619 = vmatprep.subr.bf16.mxu1 %v15946_v33  ;;  %v16013_v33 = vld [vmem:[%s19159_s14 + $0x270] ss:$8 sps:$4 sm:$0xff]  }
0x104f   :  { %5449 = vmatmul.mubr.bf16.vlgmr.msra.gmra.mrb[168].mxu1 %v18006_v3  ;;  %v15977_v3 = vld [vmem:[%s19159_s14 + $0xb0] ss:$8 sps:$4 sm:$0xff]  }
0x1050   :  { %5620 = vmatpush1.bf16.msra.mxu1 %v15944_v41  ;;  %v16018_v41 = vld [vmem:[%s19159_s14 + $0x284] ss:$8 sps:$4 sm:$0xff]  }
0x1051   :  { %5621 = vmatprep.subr.bf16.mxu1 %v15949_v42  ;;  %v16016_v42 = vld [vmem:[%s19159_s14 + $0x280] ss:$8 sps:$4 sm:$0xff]  }
0x1054   :  { %5622 = vmatpush1.bf16.msra.mxu1 %v15947_v43  ;;  %v16021_v43 = vld [vmem:[%s19159_s14 + $0x294] ss:$8 sps:$4 sm:$0xff]  }
0x1055   :  { %5623 = vmatprep.subr.bf16.mxu1 %v15952_v44  ;;  %v16019_v44 = vld [vmem:[%s19159_s14 + $0x290] ss:$8 sps:$4 sm:$0xff]  }
0x1058   :  { %5624 = vmatpush1.bf16.msra.mxu1 %v15950_v45  ;;  %v16024_v45 = vld [vmem:[%s19159_s14 + $0x2a4] ss:$8 sps:$4 sm:$0xff]  }
0x1059   :  { %5625 = vmatprep.subr.bf16.mxu1 %v15955_v46  ;;  %v16022_v46 = vld [vmem:[%s19159_s14 + $0x2a0] ss:$8 sps:$4 sm:$0xff]  }
0x105c   :  { %5626 = vmatpush1.bf16.msra.mxu1 %v15953_v47  ;;  %v16027_v47 = vld [vmem:[%s19159_s14 + $0x2b4] ss:$8 sps:$4 sm:$0xff]  }
0x105d   :  { %5627 = vmatprep.subr.bf16.mxu1 %v15958_v48  ;;  %v16025_v48 = vld [vmem:[%s19159_s14 + $0x2b0] ss:$8 sps:$4 sm:$0xff]  }
0x1060   :  { %5628 = vmatpush1.bf16.msra.mxu1 %v15956_v49  ;;  %v16030_v49 = vld [vmem:[%s19159_s14 + $0x2c4] ss:$8 sps:$4 sm:$0xff]  }
0x1061   :  { %5629 = vmatprep.subr.bf16.mxu1 %v15961_v50  ;;  %v16028_v50 = vld [vmem:[%s19159_s14 + $0x2c0] ss:$8 sps:$4 sm:$0xff]  }
0x1064   :  { %5630 = vmatpush1.bf16.msra.mxu1 %v15959_v51  ;;  %v16033_v51 = vld [vmem:[%s19159_s14 + $0x2d4] ss:$8 sps:$4 sm:$0xff]  }
0x1065   :  { %5631 = vmatprep.subr.bf16.mxu1 %v15964_v52  ;;  %v16031_v52 = vld [vmem:[%s19159_s14 + $0x2d0] ss:$8 sps:$4 sm:$0xff]  }
0x1068   :  { %5632 = vmatpush1.bf16.msra.mxu1 %v15962_v24  ;;  %v16036_v24 = vld [vmem:[%s19159_s14 + $0x2e4] ss:$8 sps:$4 sm:$0xff]  }
0x1069   :  { %5633 = vmatprep.subr.bf16.mxu1 %v15967_v25  ;;  %v16034_v25 = vld [vmem:[%s19159_s14 + $0x2e0] ss:$8 sps:$4 sm:$0xff]  }
0x106c   :  { %5634 = vmatpush1.bf16.msra.mxu1 %v15965_v27  ;;  %v16039_v27 = vld [vmem:[%s19159_s14 + $0x2f4] ss:$8 sps:$4 sm:$0xff]  }
0x106d   :  { %5635 = vmatprep.subr.bf16.mxu1 %v15970_v29  ;;  %v16037_v29 = vld [vmem:[%s19159_s14 + $0x2f0] ss:$8 sps:$4 sm:$0xff]  }
0x1070   :  { %5636 = vmatpush1.bf16.msra.mxu1 %v15968_v31  ;;  %v16043_v31 = vld [vmem:[%s19161_s24 + $0x200] ss:$16 sps:$4 sm:$0xff]  }
0x1071   :  { %5637 = vmatprep.subr.bf16.mxu1 %v15973_v32  ;;  %v16045_v32 = vld [vmem:[%s19161_s24 + $0x204] ss:$16 sps:$4 sm:$0xff]  }
0x1074   :  { %5638 = vmatpush1.bf16.msra.mxu1 %v15971_v63  ;;  %v16051_v63 = vld [vmem:[%s19161_s24 + $0x224] ss:$16 sps:$4 sm:$0xff]  }
0x1075   :  { %5639 = vmatprep.subr.bf16.mxu1 %v15976_v53  ;;  %v16049_v53 = vld [vmem:[%s19161_s24 + $0x220] ss:$16 sps:$4 sm:$0xff]  }
0x1078   :  { %5640 = vmatpush1.bf16.msra.mxu1 %v15974_v54  ;;  %v16057_v54 = vld [vmem:[%s19161_s24 + $0x244] ss:$16 sps:$4 sm:$0xff]  }
0x1079   :  { %5641 = vmatprep.subr.bf16.mxu1 %v15979_v1  ;;  %v16055_v1 = vld [vmem:[%s19161_s24 + $0x240] ss:$16 sps:$4 sm:$0xff]  }
0x107c   :  { %5642 = vmatpush1.bf16.msra.mxu1 %v15977_v3  ;;  %v16063_v3 = vld [vmem:[%s19161_s24 + $0x264] ss:$16 sps:$4 sm:$0xff]  }
0x107d   :  { %5643 = vmatprep.subr.bf16.mxu1 %v15982_v5  ;;  %v16061_v5 = vld [vmem:[%s19161_s24 + $0x260] ss:$16 sps:$4 sm:$0xff]  }
0x1080   :  { %5644 = vmatpush1.bf16.msra.mxu1 %v15980_v55  ;;  %v16069_v55 = vld [vmem:[%s19161_s24 + $0x284] ss:$16 sps:$4 sm:$0xff]  }
0x1081   :  { %5645 = vmatprep.subr.bf16.mxu1 %v15985_v56  ;;  %v16067_v56 = vld [vmem:[%s19161_s24 + $0x280] ss:$16 sps:$4 sm:$0xff]  }
0x1084   :  { %5646 = vmatpush1.bf16.msra.mxu1 %v15983_v57  ;;  %v16075_v57 = vld [vmem:[%s19161_s24 + $0x2a4] ss:$16 sps:$4 sm:$0xff]  }
0x1085   :  { %5647 = vmatprep.subr.bf16.mxu1 %v15988_v16  ;;  %v16073_v16 = vld [vmem:[%s19161_s24 + $0x2a0] ss:$16 sps:$4 sm:$0xff]  }
0x1088   :  { %5648 = vmatpush1.bf16.msra.mxu1 %v15986_v58  ;;  %v16081_v58 = vld [vmem:[%s19161_s24 + $0x2c4] ss:$16 sps:$4 sm:$0xff]  }
0x1089   :  { %5649 = vmatprep.subr.bf16.mxu1 %v15991_v59  ;;  %v16079_v59 = vld [vmem:[%s19161_s24 + $0x2c0] ss:$16 sps:$4 sm:$0xff]  }
0x108c   :  { %5650 = vmatpush1.bf16.msra.mxu1 %v15989_v11  ;;  %v16087_v11 = vld [vmem:[%s19161_s24 + $0x2e4] ss:$16 sps:$4 sm:$0xff]  }
0x108d   :  { %5911 = vmatprep.subr.bf16.mxu1 %v15994_v60  ;;  %v16085_v60 = vld [vmem:[%s19161_s24 + $0x2e0] ss:$16 sps:$4 sm:$0xff]  }
0x10e2   :  { %v5180_v13 = vpop.f32.mrb[172].mxu1  ;;  %v18081_v20 = vpop.f32.mrb[40].mxu0 }
0x10e3   :  { %v5182_v62 = vpop.f32.mrb[173].mxu1  ;;  %v5709_v0 = vpop.f32.mrb[41].mxu0 }
0x10e4   :  { %v5184_v2 = vpop.f32.mrb[174].mxu1  ;;  %v18083_v4 = vpop.f32.mrb[42].mxu0 }
0x10e5   :  { %v5221_v6 = vpack.c.bf16 %v5184_v2, %v5180_v13  ;;  %v5186_v7 = vpop.f32.mrb[175].mxu1  ;;  %v5749_v8 = vpack.c.bf16 %v18083_v4, %v18081_v20  ;;  %v5713_v10 = vpop.f32.mrb[43].mxu0  ;;  %v16093_v13 = vld [vmem:[%s19161_s24 + $0x304] ss:$16 sps:$4 sm:$0xff]   ;;  %v16091_v20 = vld [vmem:[%s19161_s24 + $0x300] ss:$16 sps:$4 sm:$0xff]  }
0x10e6   :  { %v5222_v17 = vpack.c.bf16 %v5186_v7, %v5182_v62  ;;  %v5750_v21 = vpack.c.bf16 %v5713_v10, %v5709_v0  ;;  %v16099_v62 = vld [vmem:[%s19161_s24 + $0x324] ss:$16 sps:$4 sm:$0xff]   ;;  %v16097_v0 = vld [vmem:[%s19161_s24 + $0x320] ss:$16 sps:$4 sm:$0xff]  }
0x10e7   :  { %v16105_v2 = vld [vmem:[%s19161_s24 + $0x344] ss:$16 sps:$4 sm:$0xff]   ;;  %v16103_v4 = vld [vmem:[%s19161_s24 + $0x340] ss:$16 sps:$4 sm:$0xff]  }
0x10e8   :  { %5651 = vmatprep.mubr.bf16.mxu1 %v5222_v17  ;;  %v16109_v7 = vld [vmem:[%s19161_s24 + $0x360] ss:$16 sps:$4 sm:$0xff]   ;;  %v16123_v17 = vld [vmem:[%s19161_s24 + $0x3a4] ss:$16 sps:$4 sm:$0xff]  }
0x10e9   :  { %5652 = vmatmul.mubr.bf16.vlgmr.msra.gmra.mrb[168].mxu1 %v5221_v6  ;;  %v16111_v6 = vld [vmem:[%s19161_s24 + $0x364] ss:$16 sps:$4 sm:$0xff]   ;;  %v16115_v10 = vld [vmem:[%s19161_s24 + $0x380] ss:$16 sps:$4 sm:$0xff]  }
0x10ea   :  { %5912 = vmatpush1.bf16.msra.mxu1 %v15992_v18  ;;  %5943 = vmatprep.mubr.bf16.mxu1 %v5750_v21  ;;  %v16121_v18 = vld [vmem:[%s19161_s24 + $0x3a0] ss:$16 sps:$4 sm:$0xff]  }
0x10eb   :  { %5913 = vmatprep.subr.bf16.mxu1 %v15997_v22  ;;  %v12924_v21 = vld [vmem:[%s19158_s8 + $0x2] ss:$4 sm:$0x3]  ;;  %v13187_v22 = vld [vmem:[%s19158_s8 + $0x1] ss:$4 sm:$0x3] }
0x10ee   :  { %5914 = vmatpush1.bf16.msra.mxu1 %v15995_v23  ;;  %v4558_v23 = vrot.slane %v12924_v21, %v17520_v14 }
0x10ef   :  { %5915 = vmatprep.subr.bf16.mxu1 %v16000_v28  ;;  %v4562_v28 = vrot.slane %v12924_v21, %v17523_v15  ;;  %v16132_v21 = vld [vmem:[%s19163_s6 + $0x1e4] ss:$16 sps:$4 sm:$0xff]  }
0x10f2   :  { %5916 = vmatpush1.bf16.msra.mxu1 %v15998_v30  ;;  %v5964_v30 = vrot.slane %v13187_v22, %v17520_v14 }
0x10f3   :  { %5917 = vmatprep.subr.bf16.mxu1 %v16003_v35 }
0x10f6   :  { %5918 = vmatpush1.bf16.msra.mxu1 %v16001_v36  ;;  %v5968_v36 = vrot.slane %v13187_v22, %v17523_v15  ;;  %v16135_v22 = vld [vmem:[%s19161_s24 + $0x3e4] ss:$16 sps:$4 sm:$0xff]  }
0x10f7   :  { %5919 = vmatprep.subr.bf16.mxu1 %v16006_v37 }
0x10fa   :  { %5920 = vmatpush1.bf16.msra.mxu1 %v16004_v38 }
0x10fb   :  { %5921 = vmatprep.subr.bf16.mxu1 %v16009_v39 }
0x10fe   :  { %5922 = vmatpush1.bf16.msra.mxu1 %v16007_v40 }
0x10ff   :  { %5923 = vmatprep.subr.bf16.mxu1 %v16012_v19 }
0x1102   :  { %5924 = vmatpush1.bf16.msra.mxu1 %v16010_v26 }
0x1103   :  { %5925 = vmatprep.subr.bf16.mxu1 %v16015_v61 }
0x1106   :  { %5926 = vmatpush1.bf16.msra.mxu1 %v16013_v33 }
0x1107   :  { %5927 = vmatprep.subr.bf16.mxu1 %v16018_v41 }
0x110a   :  { %5928 = vmatpush1.bf16.msra.mxu1 %v16016_v42 }
0x110b   :  { %5929 = vmatprep.subr.bf16.mxu1 %v16021_v43 }
0x110e   :  { %5930 = vmatpush1.bf16.msra.mxu1 %v16019_v44 }
0x110f   :  { %5931 = vmatprep.subr.bf16.mxu1 %v16024_v45 }
0x1112   :  { %5932 = vmatpush1.bf16.msra.mxu1 %v16022_v46 }
0x1113   :  { %5933 = vmatprep.subr.bf16.mxu1 %v16027_v47 }
0x1116   :  { %5934 = vmatpush1.bf16.msra.mxu1 %v16025_v48 }
0x1117   :  { %5935 = vmatprep.subr.bf16.mxu1 %v16030_v49 }
0x111a   :  { %5936 = vmatpush1.bf16.msra.mxu1 %v16028_v50  ;;  %v5983_v50 = vld [vmem:[%s19162_s30] sm:$0xf] }
0x111b   :  { %5937 = vmatprep.subr.bf16.mxu1 %v16033_v51  ;;  %v13189_v51 = vld [vmem:[%s19162_s30 + $0x4] sm:$0xf] }
0x111e   :  { %5938 = vmatpush1.bf16.msra.mxu1 %v16031_v52  ;;  %v16042_v52 = vld [vmem:[%s19163_s6 + $0x4] ss:$16 sps:$4 sm:$0xff]  }
0x111f   :  { %5939 = vmatprep.subr.bf16.mxu1 %v16036_v24  ;;  %v13191_v24 = vld [vmem:[%s19162_s30 + $0x8] sm:$0xf] }
0x1122   :  { %5940 = vmatpush1.bf16.msra.mxu1 %v16034_v25  ;;  %v16040_v25 = vld [vmem:[%s19163_s6] ss:$16 sps:$4 sm:$0xff]  }
0x1123   :  { %5941 = vmatprep.subr.bf16.mxu1 %v16039_v27  ;;  %v16048_v27 = vld [vmem:[%s19163_s6 + $0x24] ss:$16 sps:$4 sm:$0xff]  }
0x1126   :  { %5942 = vmatpush1.bf16.msra.mxu1 %v16037_v29  ;;  %v16046_v29 = vld [vmem:[%s19163_s6 + $0x20] ss:$16 sps:$4 sm:$0xff]  }
0x1127   :  { %7064 = vmatprep.subr.bf16.mxu1 %v16045_v32  ;;  %v16052_v32 = vld [vmem:[%s19163_s6 + $0x40] ss:$16 sps:$4 sm:$0xff]  }
0x1129   :  { %5944 = vmatmul.mubr.bf16.vlgmr.msra.gmra.mrb[168].mxu1 %v5749_v8  ;;  %v16117_v8 = vld [vmem:[%s19161_s24 + $0x384] ss:$16 sps:$4 sm:$0xff]  }
0x112a   :  { %7065 = vmatpush1.bf16.msra.mxu1 %v16043_v31  ;;  %v16054_v31 = vld [vmem:[%s19163_s6 + $0x44] ss:$16 sps:$4 sm:$0xff]  }
0x112b   :  { %7066 = vmatprep.subr.bf16.mxu1 %v16051_v63  ;;  %v16060_v63 = vld [vmem:[%s19163_s6 + $0x64] ss:$16 sps:$4 sm:$0xff]  }
0x112e   :  { %7067 = vmatpush1.bf16.msra.mxu1 %v16049_v53  ;;  %v16058_v53 = vld [vmem:[%s19163_s6 + $0x60] ss:$16 sps:$4 sm:$0xff]  }
0x112f   :  { %7068 = vmatprep.subr.bf16.mxu1 %v16057_v54  ;;  %v16066_v54 = vld [vmem:[%s19163_s6 + $0x84] ss:$16 sps:$4 sm:$0xff]  }
0x1132   :  { %7069 = vmatpush1.bf16.msra.mxu1 %v16055_v1  ;;  %v16064_v1 = vld [vmem:[%s19163_s6 + $0x80] ss:$16 sps:$4 sm:$0xff]  }
0x1133   :  { %7070 = vmatprep.subr.bf16.mxu1 %v16063_v3  ;;  %v16072_v3 = vld [vmem:[%s19163_s6 + $0xa4] ss:$16 sps:$4 sm:$0xff]  }
0x1136   :  { %7071 = vmatpush1.bf16.msra.mxu1 %v16061_v5  ;;  %v16070_v5 = vld [vmem:[%s19163_s6 + $0xa0] ss:$16 sps:$4 sm:$0xff]  }
0x1137   :  { %7072 = vmatprep.subr.bf16.mxu1 %v16069_v55  ;;  %v16078_v55 = vld [vmem:[%s19163_s6 + $0xc4] ss:$16 sps:$4 sm:$0xff]  }
0x113a   :  { %7073 = vmatpush1.bf16.msra.mxu1 %v16067_v56  ;;  %v16076_v56 = vld [vmem:[%s19163_s6 + $0xc0] ss:$16 sps:$4 sm:$0xff]  }
0x113b   :  { %7074 = vmatprep.subr.bf16.mxu1 %v16075_v57  ;;  %v16084_v57 = vld [vmem:[%s19163_s6 + $0xe4] ss:$16 sps:$4 sm:$0xff]  }
0x113e   :  { %7075 = vmatpush1.bf16.msra.mxu1 %v16073_v16  ;;  %v16082_v16 = vld [vmem:[%s19163_s6 + $0xe0] ss:$16 sps:$4 sm:$0xff]  }
0x113f   :  { %7076 = vmatprep.subr.bf16.mxu1 %v16081_v58  ;;  %v16090_v58 = vld [vmem:[%s19163_s6 + $0x104] ss:$16 sps:$4 sm:$0xff]  }
0x1142   :  { %7077 = vmatpush1.bf16.msra.mxu1 %v16079_v59  ;;  %v16088_v59 = vld [vmem:[%s19163_s6 + $0x100] ss:$16 sps:$4 sm:$0xff]  }
0x1143   :  { %7078 = vmatprep.subr.bf16.mxu1 %v16087_v11  ;;  %v16096_v11 = vld [vmem:[%s19163_s6 + $0x124] ss:$16 sps:$4 sm:$0xff]  }
0x1146   :  { %7079 = vmatpush1.bf16.msra.mxu1 %v16085_v60  ;;  %v16094_v60 = vld [vmem:[%s19163_s6 + $0x120] ss:$16 sps:$4 sm:$0xff]  }
0x1147   :  { %7080 = vmatprep.subr.bf16.mxu1 %v16093_v13  ;;  %v16102_v13 = vld [vmem:[%s19163_s6 + $0x144] ss:$16 sps:$4 sm:$0xff]  }
0x114a   :  { %7081 = vmatpush1.bf16.msra.mxu1 %v16091_v20  ;;  %v16100_v20 = vld [vmem:[%s19163_s6 + $0x140] ss:$16 sps:$4 sm:$0xff]  }
0x114b   :  { %7082 = vmatprep.subr.bf16.mxu1 %v16099_v62  ;;  %v16108_v62 = vld [vmem:[%s19163_s6 + $0x164] ss:$16 sps:$4 sm:$0xff]  }
0x114e   :  { %7083 = vmatpush1.bf16.msra.mxu1 %v16097_v0  ;;  %v16106_v0 = vld [vmem:[%s19163_s6 + $0x160] ss:$16 sps:$4 sm:$0xff]  }
0x114f   :  { %7084 = vmatprep.subr.bf16.mxu1 %v16105_v2  ;;  %v16114_v2 = vld [vmem:[%s19163_s6 + $0x184] ss:$16 sps:$4 sm:$0xff]  }
0x1152   :  { %7085 = vmatpush1.bf16.msra.mxu1 %v16103_v4  ;;  %v16112_v4 = vld [vmem:[%s19163_s6 + $0x180] ss:$16 sps:$4 sm:$0xff]  }
0x1153   :  { %7086 = vmatprep.subr.bf16.mxu1 %v16111_v6  ;;  %v16120_v6 = vld [vmem:[%s19163_s6 + $0x1a4] ss:$16 sps:$4 sm:$0xff]  }
0x1156   :  { %7087 = vmatpush1.bf16.msra.mxu1 %v16109_v7  ;;  %v16118_v7 = vld [vmem:[%s19163_s6 + $0x1a0] ss:$16 sps:$4 sm:$0xff]  }
0x1157   :  { %7088 = vmatprep.subr.bf16.mxu1 %v16117_v8  ;;  %v16124_v8 = vld [vmem:[%s19163_s6 + $0x1c0] ss:$16 sps:$4 sm:$0xff]  }
0x115a   :  { %7089 = vmatpush1.bf16.msra.mxu1 %v16115_v10  ;;  %v16126_v10 = vld [vmem:[%s19163_s6 + $0x1c4] ss:$16 sps:$4 sm:$0xff]  }
0x115b   :  { %7090 = vmatprep.subr.bf16.mxu1 %v16123_v17  ;;  %v16127_v17 = vld [vmem:[%s19161_s24 + $0x3c0] ss:$16 sps:$4 sm:$0xff]  }
0x115e   :  { %7091 = vmatpush1.bf16.msra.mxu1 %v16121_v18  ;;  %v16129_v18 = vld [vmem:[%s19161_s24 + $0x3c4] ss:$16 sps:$4 sm:$0xff]  }
0x115f   :  { %7092 = vmatprep.subr.bf16.mxu1 %v16129_v18  ;;  %v16193_v18 = vld [vmem:[%s19161_s24 + $0x120] ss:$16 sps:$4 sm:$0xff]  }
0x1162   :  { %7093 = vmatpush1.bf16.msra.mxu1 %v16127_v17  ;;  %v16190_v17 = vld [vmem:[%s19163_s6 + $0x128] ss:$16 sps:$4 sm:$0xff]  }
0x1163   :  { %7094 = vmatprep.subr.bf16.mxu1 %v16135_v22  ;;  %v16201_v22 = vld [vmem:[%s19161_s24 + $0x144] ss:$16 sps:$4 sm:$0xff]  }
0x11fc   :  { %v5945_v35 = vpop.f32.mrb[168].mxu1 }
0x11fd   :  { %v15260_v37 = vadd.f32 %v5945_v35, %v4558_v23  ;;  %v5947_v38 = vpop.f32.mrb[169].mxu1  ;;  %v16141_v35 = vld [vmem:[%s19161_s24 + $0x4] ss:$16 sps:$4 sm:$0xff]  }
0x11fe   :  { %v15262_v39 = vadd.f32 %v5947_v38, %v4562_v28  ;;  %v5949_v40 = vpop.f32.mrb[170].mxu1 }
0x11ff   :  { %v15261_v19 = vadd.f32 %v15260_v37, %v5964_v30  ;;  %v15264_v26 = vadd.f32 %v5949_v40, %v4558_v23  ;;  %v5951_v61 = vpop.f32.mrb[171].mxu1  ;;  %v16130_v23 = vld [vmem:[%s19163_s6 + $0x1e0] ss:$16 sps:$4 sm:$0xff]  }
0x1200   :  { %v15263_v33 = vadd.f32 %v15262_v39, %v5968_v36  ;;  %v15266_v41 = vadd.f32 %v5951_v61, %v4562_v28  ;;  %v16133_v28 = vld [vmem:[%s19161_s24 + $0x3e0] ss:$16 sps:$4 sm:$0xff]   ;;  %v16136_v61 = vld [vmem:[%s19163_s6 + $0x8] ss:$16 sps:$4 sm:$0xff]  }
0x1201   :  { %v15265_v42 = vadd.f32 %v15264_v26, %v5964_v30  ;;  %v5979_v44 = vmax.f32 %v15261_v19, 0.0  ;;  %7095 = vmatpush1.bf16.msra.mxu1 %v16133_v28  ;;  %v16138_v30 = vld [vmem:[%s19163_s6 + $0xc] ss:$16 sps:$4 sm:$0xff]   ;;  %v16199_v28 = vld [vmem:[%s19161_s24 + $0x140] ss:$16 sps:$4 sm:$0xff]  }
0x1202   :  { %v15267_v43 = vadd.f32 %v15266_v41, %v5968_v36  ;;  %v5980_v46 = vmax.f32 %v15263_v33, 0.0  ;;  %7466 = vmatprep.subr.bf16.mxu1 %v16141_v35  ;;  %v16139_v33 = vld [vmem:[%s19161_s24] ss:$16 sps:$4 sm:$0xff]   ;;  %v16207_v35 = vld [vmem:[%s19161_s24 + $0x164] ss:$16 sps:$4 sm:$0xff]  }
0x1203   :  { %v5981_v45 = vmax.f32 %v15265_v42, 0.0 }
0x1204   :  { %v5982_v47 = vmax.f32 %v15267_v43, 0.0 }
0x1205   :  { %v5984_v48 = vpack.c.bf16 %v5981_v45, %v5979_v44  ;;  %v16144_v44 = vld [vmem:[%s19163_s6 + $0x2c] ss:$16 sps:$4 sm:$0xff]   ;;  %v16147_v45 = vld [vmem:[%s19161_s24 + $0x24] ss:$16 sps:$4 sm:$0xff]  }
0x1206   :  { %v5985_v49 = vpack.c.bf16 %v5982_v47, %v5980_v46  ;;  %v16142_v47 = vld [vmem:[%s19163_s6 + $0x28] ss:$16 sps:$4 sm:$0xff]  }
0x1208   :  { %5989 = vmatprep.subr.bf16.mxu0 %v5985_v49 }
0x1209   :  { %5990 = vmatpush1.bf16.msra.mxu0 %v5984_v48 }
0x120a   :  { %6035 = vmatprep.subr.bf16.mxu0 %v5985_v49 }
0x120c   :  { %13188 = vmatmul.mubr.msk.bf16.vlgmr.msra.gmra.mrb[44].mxu0 %vm5142_vm7, %v5983_v50  ;;  %v16153_v50 = vld [vmem:[%s19161_s24 + $0x44] ss:$16 sps:$4 sm:$0xff]  }
0x120d   :  { %6036 = vmatpush1.bf16.msra.mxu0 %v5984_v48  ;;  %6067 = vmatprep.mubr.bf16.mxu0 %v17148_v34 }
0x120e   :  { %6081 = vmatprep.subr.bf16.mxu0 %v5985_v49  ;;  %v16150_v49 = vld [vmem:[%s19163_s6 + $0x4c] ss:$16 sps:$4 sm:$0xff]  }
0x1214   :  { %13190 = vmatmul.mubr.msk.bf16.vlgmr.msra.gmra.mrb[48].mxu0 %vm5142_vm7, %v13189_v51 }
0x1215   :  { %6082 = vmatpush1.bf16.msra.mxu0 %v5984_v48  ;;  %6113 = vmatprep.mubr.bf16.mxu0 %v17148_v34  ;;  %v16145_v48 = vld [vmem:[%s19161_s24 + $0x20] ss:$16 sps:$4 sm:$0xff]  }
0x1216   :  { %6531 = vmatprep.subr.bf16.mxu0 %v16042_v52 }
0x121c   :  { %13192 = vmatmul.mubr.msk.bf16.vlgmr.msra.gmra.mrb[52].mxu0 %vm5142_vm7, %v13191_v24  ;;  %v16148_v24 = vld [vmem:[%s19163_s6 + $0x48] ss:$16 sps:$4 sm:$0xff]  }
0x121d   :  { %6532 = vmatpush1.bf16.msra.mxu0 %v16040_v25  ;;  %v16151_v25 = vld [vmem:[%s19161_s24 + $0x40] ss:$16 sps:$4 sm:$0xff]  }
0x121e   :  { %6533 = vmatprep.subr.bf16.mxu0 %v16048_v27 }
0x1221   :  { %6534 = vmatpush1.bf16.msra.mxu0 %v16046_v29  ;;  %v16156_v29 = vld [vmem:[%s19163_s6 + $0x6c] ss:$16 sps:$4 sm:$0xff]  }
0x1222   :  { %6535 = vmatprep.subr.bf16.mxu0 %v16054_v31  ;;  %v16159_v31 = vld [vmem:[%s19161_s24 + $0x64] ss:$16 sps:$4 sm:$0xff]  }
0x1225   :  { %6536 = vmatpush1.bf16.msra.mxu0 %v16052_v32 }
0x1226   :  { %6537 = vmatprep.subr.bf16.mxu0 %v16060_v63  ;;  %v16154_v63 = vld [vmem:[%s19163_s6 + $0x68] ss:$16 sps:$4 sm:$0xff]  }
0x1229   :  { %6538 = vmatpush1.bf16.msra.mxu0 %v16058_v53  ;;  %v16157_v53 = vld [vmem:[%s19161_s24 + $0x60] ss:$16 sps:$4 sm:$0xff]  }
0x122a   :  { %6539 = vmatprep.subr.bf16.mxu0 %v16066_v54  ;;  %v16162_v54 = vld [vmem:[%s19163_s6 + $0x8c] ss:$16 sps:$4 sm:$0xff]  }
0x122d   :  { %6540 = vmatpush1.bf16.msra.mxu0 %v16064_v1  ;;  %v16165_v1 = vld [vmem:[%s19161_s24 + $0x84] ss:$16 sps:$4 sm:$0xff]  }
0x122e   :  { %6541 = vmatprep.subr.bf16.mxu0 %v16072_v3  ;;  %v16160_v3 = vld [vmem:[%s19163_s6 + $0x88] ss:$16 sps:$4 sm:$0xff]  }
0x1231   :  { %6542 = vmatpush1.bf16.msra.mxu0 %v16070_v5  ;;  %v16163_v5 = vld [vmem:[%s19161_s24 + $0x80] ss:$16 sps:$4 sm:$0xff]  }
0x1232   :  { %6543 = vmatprep.subr.bf16.mxu0 %v16078_v55  ;;  %v16168_v55 = vld [vmem:[%s19163_s6 + $0xac] ss:$16 sps:$4 sm:$0xff]  }
0x1235   :  { %6544 = vmatpush1.bf16.msra.mxu0 %v16076_v56  ;;  %v16171_v56 = vld [vmem:[%s19161_s24 + $0xa4] ss:$16 sps:$4 sm:$0xff]  }
0x1236   :  { %6545 = vmatprep.subr.bf16.mxu0 %v16084_v57  ;;  %v16166_v57 = vld [vmem:[%s19163_s6 + $0xa8] ss:$16 sps:$4 sm:$0xff]  }
0x1239   :  { %6546 = vmatpush1.bf16.msra.mxu0 %v16082_v16  ;;  %v16169_v16 = vld [vmem:[%s19161_s24 + $0xa0] ss:$16 sps:$4 sm:$0xff]  }
0x123a   :  { %6547 = vmatprep.subr.bf16.mxu0 %v16090_v58  ;;  %v16174_v58 = vld [vmem:[%s19163_s6 + $0xcc] ss:$16 sps:$4 sm:$0xff]  }
0x123d   :  { %6548 = vmatpush1.bf16.msra.mxu0 %v16088_v59  ;;  %v16177_v59 = vld [vmem:[%s19161_s24 + $0xc4] ss:$16 sps:$4 sm:$0xff]  }
0x123e   :  { %6549 = vmatprep.subr.bf16.mxu0 %v16096_v11  ;;  %v16172_v11 = vld [vmem:[%s19163_s6 + $0xc8] ss:$16 sps:$4 sm:$0xff]  }
0x1241   :  { %6550 = vmatpush1.bf16.msra.mxu0 %v16094_v60  ;;  %v16175_v60 = vld [vmem:[%s19161_s24 + $0xc0] ss:$16 sps:$4 sm:$0xff]  }
0x1242   :  { %6551 = vmatprep.subr.bf16.mxu0 %v16102_v13  ;;  %v16180_v13 = vld [vmem:[%s19163_s6 + $0xec] ss:$16 sps:$4 sm:$0xff]  }
0x1245   :  { %6552 = vmatpush1.bf16.msra.mxu0 %v16100_v20  ;;  %v16183_v20 = vld [vmem:[%s19161_s24 + $0xe4] ss:$16 sps:$4 sm:$0xff]  }
0x1246   :  { %6553 = vmatprep.subr.bf16.mxu0 %v16108_v62  ;;  %v16178_v62 = vld [vmem:[%s19163_s6 + $0xe8] ss:$16 sps:$4 sm:$0xff]  }
0x1249   :  { %6554 = vmatpush1.bf16.msra.mxu0 %v16106_v0  ;;  %v16181_v0 = vld [vmem:[%s19161_s24 + $0xe0] ss:$16 sps:$4 sm:$0xff]  }
0x124a   :  { %6555 = vmatprep.subr.bf16.mxu0 %v16114_v2  ;;  %v16186_v2 = vld [vmem:[%s19163_s6 + $0x10c] ss:$16 sps:$4 sm:$0xff]  }
0x124d   :  { %6556 = vmatpush1.bf16.msra.mxu0 %v16112_v4  ;;  %v16189_v4 = vld [vmem:[%s19161_s24 + $0x104] ss:$16 sps:$4 sm:$0xff]  }
0x124e   :  { %6557 = vmatprep.subr.bf16.mxu0 %v16120_v6  ;;  %v16184_v6 = vld [vmem:[%s19163_s6 + $0x108] ss:$16 sps:$4 sm:$0xff]  }
0x1251   :  { %6558 = vmatpush1.bf16.msra.mxu0 %v16118_v7  ;;  %v16187_v7 = vld [vmem:[%s19161_s24 + $0x100] ss:$16 sps:$4 sm:$0xff]  }
0x1252   :  { %6559 = vmatprep.subr.bf16.mxu0 %v16126_v10  ;;  %v16195_v10 = vld [vmem:[%s19161_s24 + $0x124] ss:$16 sps:$4 sm:$0xff]  }
0x1255   :  { %6560 = vmatpush1.bf16.msra.mxu0 %v16124_v8  ;;  %v16192_v8 = vld [vmem:[%s19163_s6 + $0x12c] ss:$16 sps:$4 sm:$0xff]  }
0x1256   :  { %6561 = vmatprep.subr.bf16.mxu0 %v16132_v21  ;;  %v16198_v21 = vld [vmem:[%s19163_s6 + $0x14c] ss:$16 sps:$4 sm:$0xff]  }
0x1259   :  { %6562 = vmatpush1.bf16.msra.mxu0 %v16130_v23  ;;  %v16196_v23 = vld [vmem:[%s19163_s6 + $0x148] ss:$16 sps:$4 sm:$0xff]  }
0x125a   :  { %6572 = vmatprep.subr.bf16.mxu0 %v16138_v30  ;;  %v16204_v30 = vld [vmem:[%s19163_s6 + $0x16c] ss:$16 sps:$4 sm:$0xff]  }
0x12df   :  { %v18201_v36 = vpop.f32.mrb[44].mxu0 }
0x12e0   :  { %v6025_v37 = vpop.f32.mrb[45].mxu0 }
0x12e1   :  { %v6027_v38 = vpop.f32.mrb[46].mxu0  ;;  %v18213_v46 = vpack.c.bf16 %v6025_v37, %v6025_v37  ;;  %v16202_v37 = vld [vmem:[%s19163_s6 + $0x168] ss:$16 sps:$4 sm:$0xff]  }
0x12e2   :  { %v6028_v39 = vpop.f32.mrb[47].mxu0  ;;  %v16205_v38 = vld [vmem:[%s19161_s24 + $0x160] ss:$16 sps:$4 sm:$0xff]  }
0x12e3   :  { %v16210_v39 = vld [vmem:[%s19163_s6 + $0x18c] ss:$16 sps:$4 sm:$0xff]  }
0x12e7   :  { %v6069_v40 = vpop.f32.mrb[48].mxu0 }
0x12e8   :  { %v6071_v19 = vpop.f32.mrb[49].mxu0  ;;  %v18207_v42 = vpack.c.bf16 %v6069_v40, %v6069_v40  ;;  %v16213_v40 = vld [vmem:[%s19161_s24 + $0x184] ss:$16 sps:$4 sm:$0xff]  }
0x12e9   :  { %v18203_v26 = vpack.c.bf16 %v6071_v19, %v6071_v19  ;;  %v6073_v41 = vpop.f32.mrb[50].mxu0  ;;  %v16208_v19 = vld [vmem:[%s19163_s6 + $0x188] ss:$16 sps:$4 sm:$0xff]  }
0x12ea   :  { %v6074_v43 = vpop.f32.mrb[51].mxu0  ;;  %v16219_v41 = vld [vmem:[%s19161_s24 + $0x1a4] ss:$16 sps:$4 sm:$0xff]  }
0x12eb   :  { %6563 = vmatprep.mubr.bf16.mxu0 %v18203_v26  ;;  %7096 = vmatprep.mubr.bf16.mxu1 %v18203_v26  ;;  %v16214_v43 = vld [vmem:[%s19163_s6 + $0x1a8] ss:$16 sps:$4 sm:$0xff]  }
0x12ec   :  { %6564 = vmatmul.mubr.bf16.vlgmr.msra.gmra.mrb[56].mxu0 %v18207_v42  ;;  %7097 = vmatmul.mubr.bf16.vlgmr.msra.gmra.mrb[176].mxu1 %v18207_v42 }
0x12ed   :  { %6573 = vmatpush1.bf16.msra.mxu0 %v16136_v61  ;;  %7467 = vmatpush1.bf16.msra.mxu1 %v16139_v33  ;;  %v16211_v61 = vld [vmem:[%s19161_s24 + $0x180] ss:$16 sps:$4 sm:$0xff]   ;;  %v16216_v33 = vld [vmem:[%s19163_s6 + $0x1ac] ss:$16 sps:$4 sm:$0xff]  }
0x12ee   :  { %7498 = vmatprep.mubr.bf16.mxu1 %v18213_v46  ;;  %6574 = vmatprep.subr.bf16.mxu0 %v16144_v44  ;;  %v16217_v44 = vld [vmem:[%s19161_s24 + $0x1a0] ss:$16 sps:$4 sm:$0xff]  }
0x12ef   :  { %7468 = vmatprep.subr.bf16.mxu1 %v16147_v45  ;;  %6604 = vmatprep.mubr.bf16.mxu0 %v18203_v26  ;;  %v18223_v51 = vpop.f32.mrb[52].mxu0  ;;  %v16222_v45 = vld [vmem:[%s19163_s6 + $0x1cc] ss:$16 sps:$4 sm:$0xff]  }
0x12f0   :  { %v18225_v52 = vpop.f32.mrb[53].mxu0 }
0x12f1   :  { %6575 = vmatpush1.bf16.msra.mxu0 %v16142_v47  ;;  %7469 = vmatpush1.bf16.msra.mxu1 %v16145_v48  ;;  %v6119_v27 = vpop.f32.mrb[54].mxu0  ;;  %v16225_v47 = vld [vmem:[%s19161_s24 + $0x1c4] ss:$16 sps:$4 sm:$0xff]   ;;  %v16220_v48 = vld [vmem:[%s19163_s6 + $0x1c8] ss:$16 sps:$4 sm:$0xff]  }
0x12f2   :  { %6576 = vmatprep.subr.bf16.mxu0 %v16150_v49  ;;  %7470 = vmatprep.subr.bf16.mxu1 %v16153_v50  ;;  %v6120_v32 = vpop.f32.mrb[55].mxu0  ;;  %v16223_v49 = vld [vmem:[%s19161_s24 + $0x1c0] ss:$16 sps:$4 sm:$0xff]   ;;  %v16228_v50 = vld [vmem:[%s19163_s6 + $0x1ec] ss:$16 sps:$4 sm:$0xff]  }
0x12f3   :  { %v16229_v27 = vld [vmem:[%s19161_s24 + $0x1e0] ss:$16 sps:$4 sm:$0xff]   ;;  %v16232_v32 = vld [vmem:[%s19161_s24 + $0x208] ss:$16 sps:$4 sm:$0xff]  }
0x12f5   :  { %6577 = vmatpush1.bf16.msra.mxu0 %v16148_v24  ;;  %7471 = vmatpush1.bf16.msra.mxu1 %v16151_v25  ;;  %v16231_v24 = vld [vmem:[%s19161_s24 + $0x1e4] ss:$16 sps:$4 sm:$0xff]   ;;  %v16226_v25 = vld [vmem:[%s19163_s6 + $0x1e8] ss:$16 sps:$4 sm:$0xff]  }
0x12f6   :  { %6578 = vmatprep.subr.bf16.mxu0 %v16156_v29  ;;  %7472 = vmatprep.subr.bf16.mxu1 %v16159_v31  ;;  %v16234_v29 = vld [vmem:[%s19161_s24 + $0x20c] ss:$16 sps:$4 sm:$0xff]   ;;  %v16237_v31 = vld [vmem:[%s19161_s24 + $0x404] ss:$16 sps:$4 sm:$0xff]  }
0x12f9   :  { %6579 = vmatpush1.bf16.msra.mxu0 %v16154_v63  ;;  %7473 = vmatpush1.bf16.msra.mxu1 %v16157_v53  ;;  %v18286_v63 = vpack.c.bf16 %v18201_v36, %v18201_v36  ;;  %v16235_v53 = vld [vmem:[%s19161_s24 + $0x400] ss:$16 sps:$4 sm:$0xff]   ;;  %v16238_v36 = vld [vmem:[%s19161_s24 + $0x228] ss:$16 sps:$4 sm:$0xff]  }
0x12fa   :  { %6580 = vmatprep.subr.bf16.mxu0 %v16162_v54  ;;  %7474 = vmatprep.subr.bf16.mxu1 %v16165_v1  ;;  %v16240_v54 = vld [vmem:[%s19161_s24 + $0x22c] ss:$16 sps:$4 sm:$0xff]   ;;  %v16243_v1 = vld [vmem:[%s19161_s24 + $0x424] ss:$16 sps:$4 sm:$0xff]  }
0x12fd   :  { %6581 = vmatpush1.bf16.msra.mxu0 %v16160_v3  ;;  %7475 = vmatpush1.bf16.msra.mxu1 %v16163_v5  ;;  %v18293_v3 = vpack.c.bf16 %v18225_v52, %v18225_v52  ;;  %v16241_v5 = vld [vmem:[%s19161_s24 + $0x420] ss:$16 sps:$4 sm:$0xff]   ;;  %v16249_v52 = vld [vmem:[%s19161_s24 + $0x444] ss:$16 sps:$4 sm:$0xff]  }
0x12fe   :  { %6582 = vmatprep.subr.bf16.mxu0 %v16168_v55  ;;  %7476 = vmatprep.subr.bf16.mxu1 %v16171_v56  ;;  %v16246_v55 = vld [vmem:[%s19161_s24 + $0x24c] ss:$16 sps:$4 sm:$0xff]   ;;  %v16244_v56 = vld [vmem:[%s19161_s24 + $0x248] ss:$16 sps:$4 sm:$0xff]  }
0x1301   :  { %6583 = vmatpush1.bf16.msra.mxu0 %v16166_v57  ;;  %7477 = vmatpush1.bf16.msra.mxu1 %v16169_v16  ;;  %v16252_v57 = vld [vmem:[%s19161_s24 + $0x26c] ss:$16 sps:$4 sm:$0xff]   ;;  %v16255_v16 = vld [vmem:[%s19161_s24 + $0x464] ss:$16 sps:$4 sm:$0xff]  }
0x1302   :  { %6584 = vmatprep.subr.bf16.mxu0 %v16174_v58  ;;  %7478 = vmatprep.subr.bf16.mxu1 %v16177_v59  ;;  %v16250_v58 = vld [vmem:[%s19161_s24 + $0x268] ss:$16 sps:$4 sm:$0xff]   ;;  %v16253_v59 = vld [vmem:[%s19161_s24 + $0x460] ss:$16 sps:$4 sm:$0xff]  }
0x1305   :  { %6585 = vmatpush1.bf16.msra.mxu0 %v16172_v11  ;;  %7479 = vmatpush1.bf16.msra.mxu1 %v16175_v60  ;;  %v16258_v11 = vld [vmem:[%s19161_s24 + $0x28c] ss:$16 sps:$4 sm:$0xff]   ;;  %v16261_v60 = vld [vmem:[%s19161_s24 + $0x484] ss:$16 sps:$4 sm:$0xff]  }
0x1306   :  { %6586 = vmatprep.subr.bf16.mxu0 %v16180_v13  ;;  %7480 = vmatprep.subr.bf16.mxu1 %v16183_v20  ;;  %v16256_v13 = vld [vmem:[%s19161_s24 + $0x288] ss:$16 sps:$4 sm:$0xff]   ;;  %v16259_v20 = vld [vmem:[%s19161_s24 + $0x480] ss:$16 sps:$4 sm:$0xff]  }
0x1309   :  { %6587 = vmatpush1.bf16.msra.mxu0 %v16178_v62  ;;  %7481 = vmatpush1.bf16.msra.mxu1 %v16181_v0  ;;  %v16264_v62 = vld [vmem:[%s19161_s24 + $0x2ac] ss:$16 sps:$4 sm:$0xff]   ;;  %v16267_v0 = vld [vmem:[%s19161_s24 + $0x4a4] ss:$16 sps:$4 sm:$0xff]  }
0x130a   :  { %6588 = vmatprep.subr.bf16.mxu0 %v16186_v2  ;;  %7482 = vmatprep.subr.bf16.mxu1 %v16189_v4  ;;  %v16262_v2 = vld [vmem:[%s19161_s24 + $0x2a8] ss:$16 sps:$4 sm:$0xff]   ;;  %v16265_v4 = vld [vmem:[%s19161_s24 + $0x4a0] ss:$16 sps:$4 sm:$0xff]  }
0x130d   :  { %6589 = vmatpush1.bf16.msra.mxu0 %v16184_v6  ;;  %7483 = vmatpush1.bf16.msra.mxu1 %v16187_v7  ;;  %v16270_v6 = vld [vmem:[%s19161_s24 + $0x2cc] ss:$16 sps:$4 sm:$0xff]   ;;  %v16273_v7 = vld [vmem:[%s19161_s24 + $0x4c4] ss:$16 sps:$4 sm:$0xff]  }
0x130e   :  { %6590 = vmatprep.subr.bf16.mxu0 %v16192_v8  ;;  %7484 = vmatprep.subr.bf16.mxu1 %v16195_v10  ;;  %v16268_v8 = vld [vmem:[%s19161_s24 + $0x2c8] ss:$16 sps:$4 sm:$0xff]   ;;  %v16271_v10 = vld [vmem:[%s19161_s24 + $0x4c0] ss:$16 sps:$4 sm:$0xff]  }
0x1311   :  { %6591 = vmatpush1.bf16.msra.mxu0 %v16190_v17  ;;  %7485 = vmatpush1.bf16.msra.mxu1 %v16193_v18  ;;  %v16276_v17 = vld [vmem:[%s19161_s24 + $0x2ec] ss:$16 sps:$4 sm:$0xff]   ;;  %v16279_v18 = vld [vmem:[%s19161_s24 + $0x4e4] ss:$16 sps:$4 sm:$0xff]  }
0x1312   :  { %6592 = vmatprep.subr.bf16.mxu0 %v16198_v21  ;;  %7486 = vmatprep.subr.bf16.mxu1 %v16201_v22  ;;  %v16274_v21 = vld [vmem:[%s19161_s24 + $0x2e8] ss:$16 sps:$4 sm:$0xff]   ;;  %v16277_v22 = vld [vmem:[%s19161_s24 + $0x4e0] ss:$16 sps:$4 sm:$0xff]  }
0x1315   :  { %6593 = vmatpush1.bf16.msra.mxu0 %v16196_v23  ;;  %7487 = vmatpush1.bf16.msra.mxu1 %v16199_v28  ;;  %v16282_v23 = vld [vmem:[%s19161_s24 + $0x30c] ss:$16 sps:$4 sm:$0xff]   ;;  %v16285_v28 = vld [vmem:[%s19161_s24 + $0x504] ss:$16 sps:$4 sm:$0xff]  }
0x1316   :  { %6594 = vmatprep.subr.bf16.mxu0 %v16204_v30  ;;  %7488 = vmatprep.subr.bf16.mxu1 %v16207_v35  ;;  %v16280_v30 = vld [vmem:[%s19161_s24 + $0x308] ss:$16 sps:$4 sm:$0xff]   ;;  %v16283_v35 = vld [vmem:[%s19161_s24 + $0x500] ss:$16 sps:$4 sm:$0xff]  }
0x1319   :  { %6595 = vmatpush1.bf16.msra.mxu0 %v16202_v37  ;;  %7489 = vmatpush1.bf16.msra.mxu1 %v16205_v38  ;;  %v16288_v37 = vld [vmem:[%s19161_s24 + $0x32c] ss:$16 sps:$4 sm:$0xff]   ;;  %v16291_v38 = vld [vmem:[%s19161_s24 + $0x524] ss:$16 sps:$4 sm:$0xff]  }
0x131a   :  { %6596 = vmatprep.subr.bf16.mxu0 %v16210_v39  ;;  %7490 = vmatprep.subr.bf16.mxu1 %v16213_v40  ;;  %v16286_v39 = vld [vmem:[%s19161_s24 + $0x328] ss:$16 sps:$4 sm:$0xff]   ;;  %v16289_v40 = vld [vmem:[%s19161_s24 + $0x520] ss:$16 sps:$4 sm:$0xff]  }
0x131d   :  { %6597 = vmatpush1.bf16.msra.mxu0 %v16208_v19  ;;  %7491 = vmatpush1.bf16.msra.mxu1 %v16211_v61  ;;  %v16294_v19 = vld [vmem:[%s19161_s24 + $0x34c] ss:$16 sps:$4 sm:$0xff]   ;;  %v16297_v61 = vld [vmem:[%s19161_s24 + $0x544] ss:$16 sps:$4 sm:$0xff]  }
0x131e   :  { %6598 = vmatprep.subr.bf16.mxu0 %v16216_v33  ;;  %7492 = vmatprep.subr.bf16.mxu1 %v16219_v41  ;;  %v16292_v33 = vld [vmem:[%s19161_s24 + $0x348] ss:$16 sps:$4 sm:$0xff]   ;;  %v16295_v41 = vld [vmem:[%s19161_s24 + $0x540] ss:$16 sps:$4 sm:$0xff]  }
0x1321   :  { %6599 = vmatpush1.bf16.msra.mxu0 %v16214_v43  ;;  %7493 = vmatpush1.bf16.msra.mxu1 %v16217_v44  ;;  %v16300_v43 = vld [vmem:[%s19161_s24 + $0x36c] ss:$16 sps:$4 sm:$0xff]   ;;  %v16303_v44 = vld [vmem:[%s19161_s24 + $0x564] ss:$16 sps:$4 sm:$0xff]  }
0x1322   :  { %6600 = vmatprep.subr.bf16.mxu0 %v16222_v45  ;;  %7494 = vmatprep.subr.bf16.mxu1 %v16225_v47  ;;  %v16298_v45 = vld [vmem:[%s19161_s24 + $0x368] ss:$16 sps:$4 sm:$0xff]   ;;  %v16301_v47 = vld [vmem:[%s19161_s24 + $0x560] ss:$16 sps:$4 sm:$0xff]  }
0x1325   :  { %6601 = vmatpush1.bf16.msra.mxu0 %v16220_v48  ;;  %7495 = vmatpush1.bf16.msra.mxu1 %v16223_v49  ;;  %v16306_v48 = vld [vmem:[%s19161_s24 + $0x38c] ss:$16 sps:$4 sm:$0xff]   ;;  %v16309_v49 = vld [vmem:[%s19161_s24 + $0x584] ss:$16 sps:$4 sm:$0xff]  }
0x1326   :  { %6602 = vmatprep.subr.bf16.mxu0 %v16228_v50  ;;  %7496 = vmatprep.subr.bf16.mxu1 %v16231_v24  ;;  %v16304_v50 = vld [vmem:[%s19161_s24 + $0x388] ss:$16 sps:$4 sm:$0xff]   ;;  %v16307_v24 = vld [vmem:[%s19161_s24 + $0x580] ss:$16 sps:$4 sm:$0xff]  }
0x1329   :  { %6603 = vmatpush1.bf16.msra.mxu0 %v16226_v25  ;;  %7497 = vmatpush1.bf16.msra.mxu1 %v16229_v27  ;;  %v16312_v25 = vld [vmem:[%s19161_s24 + $0x3ac] ss:$16 sps:$4 sm:$0xff]   ;;  %v16315_v27 = vld [vmem:[%s19161_s24 + $0x5a4] ss:$16 sps:$4 sm:$0xff]  }
0x132a   :  { %7105 = vmatprep.subr.bf16.mxu0 %v16234_v29  ;;  %7935 = vmatprep.subr.bf16.mxu1 %v16237_v31  ;;  %v16310_v29 = vld [vmem:[%s19161_s24 + $0x3a8] ss:$16 sps:$4 sm:$0xff]   ;;  %v16313_v31 = vld [vmem:[%s19161_s24 + $0x5a0] ss:$16 sps:$4 sm:$0xff]  }
0x132c   :  { %6605 = vmatmul.mubr.bf16.vlgmr.msra.gmra.mrb[60].mxu0 %v18207_v42  ;;  %7499 = vmatmul.mubr.bf16.vlgmr.msra.gmra.mrb[180].mxu1 %v18286_v63 }
0x132d   :  { %7106 = vmatpush1.bf16.msra.mxu0 %v16232_v32  ;;  %7137 = vmatprep.mubr.bf16.mxu0 %v18203_v26  ;;  %v16247_v26 = vld [vmem:[%s19161_s24 + $0x440] ss:$16 sps:$4 sm:$0xff]   ;;  %v16318_v32 = vld [vmem:[%s19161_s24 + $0x3cc] ss:$16 sps:$4 sm:$0xff]  }
0x132e   :  { %7936 = vmatpush1.bf16.msra.mxu1 %v16235_v53  ;;  %7107 = vmatprep.subr.bf16.mxu0 %v16240_v54  ;;  %v16321_v53 = vld [vmem:[%s19161_s24 + $0x5c4] ss:$16 sps:$4 sm:$0xff]   ;;  %v16316_v54 = vld [vmem:[%s19161_s24 + $0x3c8] ss:$16 sps:$4 sm:$0xff]  }
0x132f   :  { %7937 = vmatprep.subr.bf16.mxu1 %v16243_v1  ;;  %7967 = vmatprep.mubr.bf16.mxu1 %v18293_v3  ;;  %v16319_v1 = vld [vmem:[%s19161_s24 + $0x5c0] ss:$16 sps:$4 sm:$0xff]  }
0x1331   :  { %7108 = vmatpush1.bf16.msra.mxu0 %v16238_v36  ;;  %v16324_v36 = vld [vmem:[%s19161_s24 + $0x3ec] ss:$16 sps:$4 sm:$0xff]  }
0x1332   :  { %7938 = vmatpush1.bf16.msra.mxu1 %v16241_v5  ;;  %7109 = vmatprep.subr.bf16.mxu0 %v16246_v55  ;;  %v16327_v5 = vld [vmem:[%s19161_s24 + $0x5e4] ss:$16 sps:$4 sm:$0xff]   ;;  %v16322_v55 = vld [vmem:[%s19161_s24 + $0x3e8] ss:$16 sps:$4 sm:$0xff]  }
0x1333   :  { %7939 = vmatprep.subr.bf16.mxu1 %v16249_v52  ;;  %v16325_v52 = vld [vmem:[%s19161_s24 + $0x5e0] ss:$16 sps:$4 sm:$0xff]  }
0x1335   :  { %7110 = vmatpush1.bf16.msra.mxu0 %v16244_v56  ;;  %v16330_v56 = vld [vmem:[%s19161_s24 + $0xc] ss:$16 sps:$4 sm:$0xff]  }
0x1336   :  { %7940 = vmatpush1.bf16.msra.mxu1 %v16247_v26  ;;  %7111 = vmatprep.subr.bf16.mxu0 %v16252_v57  ;;  %v18360_v26 = vpack.c.bf16 %v18223_v51, %v18223_v51  ;;  %v16328_v57 = vld [vmem:[%s19161_s24 + $0x8] ss:$16 sps:$4 sm:$0xff]   ;;  %v16336_v51 = vld [vmem:[%s19161_s24 + $0x4c] ss:$16 sps:$4 sm:$0xff]  }
0x1337   :  { %7941 = vmatprep.subr.bf16.mxu1 %v16255_v16  ;;  %v16333_v16 = vld [vmem:[%s19161_s24 + $0x2c] ss:$16 sps:$4 sm:$0xff]  }
0x1339   :  { %7112 = vmatpush1.bf16.msra.mxu0 %v16250_v58  ;;  %v16331_v58 = vld [vmem:[%s19161_s24 + $0x28] ss:$16 sps:$4 sm:$0xff]  }
0x133a   :  { %7942 = vmatpush1.bf16.msra.mxu1 %v16253_v59  ;;  %7113 = vmatprep.subr.bf16.mxu0 %v16258_v11  ;;  %v16334_v59 = vld [vmem:[%s19161_s24 + $0x48] ss:$16 sps:$4 sm:$0xff]   ;;  %v16339_v11 = vld [vmem:[%s19161_s24 + $0x6c] ss:$16 sps:$4 sm:$0xff]  }
0x133b   :  { %7943 = vmatprep.subr.bf16.mxu1 %v16261_v60  ;;  %v16342_v60 = vld [vmem:[%s19161_s24 + $0x8c] ss:$16 sps:$4 sm:$0xff]  }
0x133d   :  { %7114 = vmatpush1.bf16.msra.mxu0 %v16256_v13  ;;  %v16345_v13 = vld [vmem:[%s19161_s24 + $0xac] ss:$16 sps:$4 sm:$0xff]  }
0x133e   :  { %7944 = vmatpush1.bf16.msra.mxu1 %v16259_v20  ;;  %7115 = vmatprep.subr.bf16.mxu0 %v16264_v62  ;;  %v16343_v20 = vld [vmem:[%s19161_s24 + $0xa8] ss:$16 sps:$4 sm:$0xff]   ;;  %v16348_v62 = vld [vmem:[%s19161_s24 + $0xcc] ss:$16 sps:$4 sm:$0xff]  }
0x133f   :  { %7945 = vmatprep.subr.bf16.mxu1 %v16267_v0  ;;  %v16346_v0 = vld [vmem:[%s19161_s24 + $0xc8] ss:$16 sps:$4 sm:$0xff]  }
0x1341   :  { %7116 = vmatpush1.bf16.msra.mxu0 %v16262_v2  ;;  %v16351_v2 = vld [vmem:[%s19161_s24 + $0xec] ss:$16 sps:$4 sm:$0xff]  }
0x1342   :  { %7946 = vmatpush1.bf16.msra.mxu1 %v16265_v4  ;;  %7117 = vmatprep.subr.bf16.mxu0 %v16270_v6  ;;  %v16349_v4 = vld [vmem:[%s19161_s24 + $0xe8] ss:$16 sps:$4 sm:$0xff]   ;;  %v16354_v6 = vld [vmem:[%s19161_s24 + $0x10c] ss:$16 sps:$4 sm:$0xff]  }
0x1343   :  { %7947 = vmatprep.subr.bf16.mxu1 %v16273_v7  ;;  %v16352_v7 = vld [vmem:[%s19161_s24 + $0x108] ss:$16 sps:$4 sm:$0xff]  }
0x1345   :  { %7118 = vmatpush1.bf16.msra.mxu0 %v16268_v8  ;;  %v16357_v8 = vld [vmem:[%s19161_s24 + $0x12c] ss:$16 sps:$4 sm:$0xff]  }
0x1346   :  { %7948 = vmatpush1.bf16.msra.mxu1 %v16271_v10  ;;  %7119 = vmatprep.subr.bf16.mxu0 %v16276_v17  ;;  %v16355_v10 = vld [vmem:[%s19161_s24 + $0x128] ss:$16 sps:$4 sm:$0xff]   ;;  %v16360_v17 = vld [vmem:[%s19161_s24 + $0x14c] ss:$16 sps:$4 sm:$0xff]  }
0x1347   :  { %7949 = vmatprep.subr.bf16.mxu1 %v16279_v18  ;;  %v16358_v18 = vld [vmem:[%s19161_s24 + $0x148] ss:$16 sps:$4 sm:$0xff]  }
0x1349   :  { %7120 = vmatpush1.bf16.msra.mxu0 %v16274_v21  ;;  %v16363_v21 = vld [vmem:[%s19161_s24 + $0x16c] ss:$16 sps:$4 sm:$0xff]  }
0x134a   :  { %7950 = vmatpush1.bf16.msra.mxu1 %v16277_v22  ;;  %7121 = vmatprep.subr.bf16.mxu0 %v16282_v23  ;;  %v16361_v22 = vld [vmem:[%s19161_s24 + $0x168] ss:$16 sps:$4 sm:$0xff]   ;;  %v16366_v23 = vld [vmem:[%s19161_s24 + $0x18c] ss:$16 sps:$4 sm:$0xff]  }
0x134b   :  { %7951 = vmatprep.subr.bf16.mxu1 %v16285_v28  ;;  %v16364_v28 = vld [vmem:[%s19161_s24 + $0x188] ss:$16 sps:$4 sm:$0xff]  }
0x134d   :  { %7122 = vmatpush1.bf16.msra.mxu0 %v16280_v30  ;;  %v16369_v30 = vld [vmem:[%s19161_s24 + $0x1ac] ss:$16 sps:$4 sm:$0xff]  }
0x134e   :  { %7952 = vmatpush1.bf16.msra.mxu1 %v16283_v35  ;;  %7123 = vmatprep.subr.bf16.mxu0 %v16288_v37  ;;  %v16367_v35 = vld [vmem:[%s19161_s24 + $0x1a8] ss:$16 sps:$4 sm:$0xff]   ;;  %v16372_v37 = vld [vmem:[%s19161_s24 + $0x1cc] ss:$16 sps:$4 sm:$0xff]  }
0x134f   :  { %7953 = vmatprep.subr.bf16.mxu1 %v16291_v38  ;;  %v16370_v38 = vld [vmem:[%s19161_s24 + $0x1c8] ss:$16 sps:$4 sm:$0xff]  }
0x1351   :  { %7124 = vmatpush1.bf16.msra.mxu0 %v16286_v39  ;;  %v16375_v39 = vld [vmem:[%s19161_s24 + $0x1ec] ss:$16 sps:$4 sm:$0xff]  }
0x1352   :  { %7954 = vmatpush1.bf16.msra.mxu1 %v16289_v40  ;;  %7125 = vmatprep.subr.bf16.mxu0 %v16294_v19  ;;  %v16373_v40 = vld [vmem:[%s19161_s24 + $0x1e8] ss:$16 sps:$4 sm:$0xff]   ;;  %v16378_v19 = vld [vmem:[%s19161_s24 + $0x40c] ss:$16 sps:$4 sm:$0xff]  }
0x1353   :  { %7955 = vmatprep.subr.bf16.mxu1 %v16297_v61  ;;  %v16376_v61 = vld [vmem:[%s19161_s24 + $0x408] ss:$16 sps:$4 sm:$0xff]  }
0x1355   :  { %7126 = vmatpush1.bf16.msra.mxu0 %v16292_v33  ;;  %v16381_v33 = vld [vmem:[%s19161_s24 + $0x42c] ss:$16 sps:$4 sm:$0xff]  }
0x1356   :  { %7956 = vmatpush1.bf16.msra.mxu1 %v16295_v41  ;;  %7127 = vmatprep.subr.bf16.mxu0 %v16300_v43  ;;  %v16379_v41 = vld [vmem:[%s19161_s24 + $0x428] ss:$16 sps:$4 sm:$0xff]   ;;  %v16384_v43 = vld [vmem:[%s19161_s24 + $0x44c] ss:$16 sps:$4 sm:$0xff]  }
0x1357   :  { %7957 = vmatprep.subr.bf16.mxu1 %v16303_v44  ;;  %v16382_v44 = vld [vmem:[%s19161_s24 + $0x448] ss:$16 sps:$4 sm:$0xff]  }
0x1359   :  { %7128 = vmatpush1.bf16.msra.mxu0 %v16298_v45  ;;  %v16387_v45 = vld [vmem:[%s19161_s24 + $0x46c] ss:$16 sps:$4 sm:$0xff]  }
0x135a   :  { %7958 = vmatpush1.bf16.msra.mxu1 %v16301_v47  ;;  %7129 = vmatprep.subr.bf16.mxu0 %v16306_v48  ;;  %v16385_v47 = vld [vmem:[%s19161_s24 + $0x468] ss:$16 sps:$4 sm:$0xff]   ;;  %v16390_v48 = vld [vmem:[%s19161_s24 + $0x48c] ss:$16 sps:$4 sm:$0xff]  }
0x135b   :  { %7959 = vmatprep.subr.bf16.mxu1 %v16309_v49  ;;  %v16391_v49 = vld [vmem:[%s19161_s24 + $0x4a8] ss:$16 sps:$4 sm:$0xff]  }
0x135d   :  { %7130 = vmatpush1.bf16.msra.mxu0 %v16304_v50  ;;  %v16396_v50 = vld [vmem:[%s19161_s24 + $0x4cc] ss:$16 sps:$4 sm:$0xff]  }
0x135e   :  { %7960 = vmatpush1.bf16.msra.mxu1 %v16307_v24  ;;  %7131 = vmatprep.subr.bf16.mxu0 %v16312_v25 }
0x135f   :  { %7961 = vmatprep.subr.bf16.mxu1 %v16315_v27  ;;  %v16394_v27 = vld [vmem:[%s19161_s24 + $0x4c8] ss:$16 sps:$4 sm:$0xff]  }
0x1361   :  { %7132 = vmatpush1.bf16.msra.mxu0 %v16310_v29 }
0x1362   :  { %7962 = vmatpush1.bf16.msra.mxu1 %v16313_v31  ;;  %7133 = vmatprep.subr.bf16.mxu0 %v16318_v32  ;;  %v16399_v32 = vld [vmem:[%s19161_s24 + $0x4ec] ss:$16 sps:$4 sm:$0xff]  }
0x1363   :  { %7963 = vmatprep.subr.bf16.mxu1 %v16321_v53  ;;  %v16397_v53 = vld [vmem:[%s19161_s24 + $0x4e8] ss:$16 sps:$4 sm:$0xff]  }
0x1365   :  { %7134 = vmatpush1.bf16.msra.mxu0 %v16316_v54  ;;  %v16402_v54 = vld [vmem:[%s19161_s24 + $0x50c] ss:$16 sps:$4 sm:$0xff]  }
0x1366   :  { %7964 = vmatpush1.bf16.msra.mxu1 %v16319_v1  ;;  %7135 = vmatprep.subr.bf16.mxu0 %v16324_v36  ;;  %v16400_v1 = vld [vmem:[%s19161_s24 + $0x508] ss:$16 sps:$4 sm:$0xff]   ;;  %v16405_v36 = vld [vmem:[%s19161_s24 + $0x52c] ss:$16 sps:$4 sm:$0xff]  }
0x1367   :  { %7965 = vmatprep.subr.bf16.mxu1 %v16327_v5  ;;  %v16403_v5 = vld [vmem:[%s19161_s24 + $0x528] ss:$16 sps:$4 sm:$0xff]  }
0x1369   :  { %7136 = vmatpush1.bf16.msra.mxu0 %v16322_v55  ;;  %v16408_v55 = vld [vmem:[%s19161_s24 + $0x54c] ss:$16 sps:$4 sm:$0xff]  }
0x136a   :  { %7966 = vmatpush1.bf16.msra.mxu1 %v16325_v52  ;;  %7507 = vmatprep.subr.bf16.mxu0 %v16330_v56  ;;  %v16406_v52 = vld [vmem:[%s19161_s24 + $0x548] ss:$16 sps:$4 sm:$0xff]   ;;  %v16411_v56 = vld [vmem:[%s19161_s24 + $0x56c] ss:$16 sps:$4 sm:$0xff]  }
0x136c   :  { %7138 = vmatmul.mubr.bf16.vlgmr.msra.gmra.mrb[64].mxu0 %v18207_v42  ;;  %v16337_v42 = vld [vmem:[%s19161_s24 + $0x68] ss:$16 sps:$4 sm:$0xff]  }
0x136d   :  { %7968 = vmatmul.mubr.bf16.vlgmr.msra.gmra.mrb[184].mxu1 %v18360_v26  ;;  %7508 = vmatpush1.bf16.msra.mxu0 %v16328_v57  ;;  %v16409_v57 = vld [vmem:[%s19161_s24 + $0x568] ss:$16 sps:$4 sm:$0xff]  }
0x136e   :  { %7539 = vmatprep.mubr.bf16.mxu0 %v18213_v46  ;;  %7509 = vmatprep.subr.bf16.mxu0 %v16333_v16  ;;  %v16340_v46 = vld [vmem:[%s19161_s24 + $0x88] ss:$16 sps:$4 sm:$0xff]   ;;  %v16414_v16 = vld [vmem:[%s19161_s24 + $0x58c] ss:$16 sps:$4 sm:$0xff]  }
0x136f   :  { %8105 = vmatprep.mubr.bf16.mxu1 %v17148_v34 }
0x1371   :  { %7510 = vmatpush1.bf16.msra.mxu0 %v16331_v58  ;;  %v16412_v58 = vld [vmem:[%s19161_s24 + $0x588] ss:$16 sps:$4 sm:$0xff]  }
0x1372   :  { %7511 = vmatprep.subr.bf16.mxu0 %v16336_v51  ;;  %v16417_v51 = vld [vmem:[%s19161_s24 + $0x5ac] ss:$16 sps:$4 sm:$0xff]  }
0x1375   :  { %7512 = vmatpush1.bf16.msra.mxu0 %v16334_v59  ;;  %v16415_v59 = vld [vmem:[%s19161_s24 + $0x5a8] ss:$16 sps:$4 sm:$0xff]  }
0x1376   :  { %7513 = vmatprep.subr.bf16.mxu0 %v16339_v11  ;;  %v16420_v11 = vld [vmem:[%s19161_s24 + $0x5cc] ss:$16 sps:$4 sm:$0xff]  }
0x1379   :  { %7514 = vmatpush1.bf16.msra.mxu0 %v16337_v42  ;;  %v16418_v42 = vld [vmem:[%s19161_s24 + $0x5c8] ss:$16 sps:$4 sm:$0xff]  }
0x137a   :  { %7515 = vmatprep.subr.bf16.mxu0 %v16342_v60  ;;  %v16423_v60 = vld [vmem:[%s19161_s24 + $0x5ec] ss:$16 sps:$4 sm:$0xff]  }
0x137d   :  { %7516 = vmatpush1.bf16.msra.mxu0 %v16340_v46  ;;  %v16421_v46 = vld [vmem:[%s19161_s24 + $0x5e8] ss:$16 sps:$4 sm:$0xff]  }
0x137e   :  { %7517 = vmatprep.subr.bf16.mxu0 %v16345_v13  ;;  %v16426_v13 = vld [vmem:[%s19164_s27 + $0x404] ss:$16 sps:$4 sm:$0xff]  }
0x1381   :  { %7518 = vmatpush1.bf16.msra.mxu0 %v16343_v20  ;;  %v16424_v20 = vld [vmem:[%s19164_s27 + $0x400] ss:$16 sps:$4 sm:$0xff]  }
0x1382   :  { %7519 = vmatprep.subr.bf16.mxu0 %v16348_v62  ;;  %v16429_v62 = vld [vmem:[%s19164_s27 + $0x424] ss:$16 sps:$4 sm:$0xff]  }
0x1385   :  { %7520 = vmatpush1.bf16.msra.mxu0 %v16346_v0  ;;  %v16427_v0 = vld [vmem:[%s19164_s27 + $0x420] ss:$16 sps:$4 sm:$0xff]  }
0x1386   :  { %7521 = vmatprep.subr.bf16.mxu0 %v16351_v2  ;;  %v16432_v2 = vld [vmem:[%s19164_s27 + $0x444] ss:$16 sps:$4 sm:$0xff]  }
0x1389   :  { %7522 = vmatpush1.bf16.msra.mxu0 %v16349_v4  ;;  %v16430_v4 = vld [vmem:[%s19164_s27 + $0x440] ss:$16 sps:$4 sm:$0xff]  }
0x138a   :  { %7523 = vmatprep.subr.bf16.mxu0 %v16354_v6  ;;  %v16435_v6 = vld [vmem:[%s19164_s27 + $0x464] ss:$16 sps:$4 sm:$0xff]  }
0x138d   :  { %7524 = vmatpush1.bf16.msra.mxu0 %v16352_v7  ;;  %v16433_v7 = vld [vmem:[%s19164_s27 + $0x460] ss:$16 sps:$4 sm:$0xff]  }
0x138e   :  { %7525 = vmatprep.subr.bf16.mxu0 %v16357_v8  ;;  %v16438_v8 = vld [vmem:[%s19164_s27 + $0x484] ss:$16 sps:$4 sm:$0xff]  }
0x1391   :  { %7526 = vmatpush1.bf16.msra.mxu0 %v16355_v10  ;;  %v16436_v10 = vld [vmem:[%s19164_s27 + $0x480] ss:$16 sps:$4 sm:$0xff]  }
0x1392   :  { %7527 = vmatprep.subr.bf16.mxu0 %v16360_v17  ;;  %v16439_v17 = vld [vmem:[%s19164_s27 + $0x4a0] ss:$16 sps:$4 sm:$0xff]  }
0x1395   :  { %7528 = vmatpush1.bf16.msra.mxu0 %v16358_v18  ;;  %v16444_v18 = vld [vmem:[%s19164_s27 + $0x4c4] ss:$16 sps:$4 sm:$0xff]  }
0x1396   :  { %7529 = vmatprep.subr.bf16.mxu0 %v16363_v21 }
0x1399   :  { %7530 = vmatpush1.bf16.msra.mxu0 %v16361_v22 }
0x139a   :  { %7531 = vmatprep.subr.bf16.mxu0 %v16366_v23 }
0x139d   :  { %7532 = vmatpush1.bf16.msra.mxu0 %v16364_v28 }
0x139e   :  { %7533 = vmatprep.subr.bf16.mxu0 %v16369_v30 }
0x13a1   :  { %7534 = vmatpush1.bf16.msra.mxu0 %v16367_v35  ;;  %v16442_v35 = vld [vmem:[%s19164_s27 + $0x4c0] ss:$16 sps:$4 sm:$0xff]  }
0x13a2   :  { %7535 = vmatprep.subr.bf16.mxu0 %v16372_v37 }
0x13a5   :  { %7536 = vmatpush1.bf16.msra.mxu0 %v16370_v38  ;;  %v16447_v38 = vld [vmem:[%s19164_s27 + $0x4e4] ss:$16 sps:$4 sm:$0xff]  }
0x13a6   :  { %7537 = vmatprep.subr.bf16.mxu0 %v16375_v39  ;;  %v16445_v39 = vld [vmem:[%s19164_s27 + $0x4e0] ss:$16 sps:$4 sm:$0xff]  }
0x13a9   :  { %7538 = vmatpush1.bf16.msra.mxu0 %v16373_v40  ;;  %v16450_v40 = vld [vmem:[%s19164_s27 + $0x504] ss:$16 sps:$4 sm:$0xff]  }
0x13aa   :  { %7976 = vmatprep.subr.bf16.mxu0 %v16378_v19  ;;  %v16448_v19 = vld [vmem:[%s19164_s27 + $0x500] ss:$16 sps:$4 sm:$0xff]  }
0x13ac   :  { %7540 = vmatmul.mubr.bf16.vlgmr.msra.gmra.mrb[68].mxu0 %v18286_v63  ;;  %v16388_v63 = vld [vmem:[%s19161_s24 + $0x488] ss:$16 sps:$4 sm:$0xff]  }
0x13ad   :  { %7977 = vmatpush1.bf16.msra.mxu0 %v16376_v61  ;;  %8008 = vmatprep.mubr.bf16.mxu0 %v18293_v3  ;;  %v16393_v3 = vld [vmem:[%s19161_s24 + $0x4ac] ss:$16 sps:$4 sm:$0xff]   ;;  %v16453_v61 = vld [vmem:[%s19164_s27 + $0x524] ss:$16 sps:$4 sm:$0xff]  }
0x13ae   :  { %7978 = vmatprep.subr.bf16.mxu0 %v16381_v33  ;;  %v16451_v33 = vld [vmem:[%s19164_s27 + $0x520] ss:$16 sps:$4 sm:$0xff]  }
0x13b1   :  { %7979 = vmatpush1.bf16.msra.mxu0 %v16379_v41  ;;  %v16456_v41 = vld [vmem:[%s19164_s27 + $0x544] ss:$16 sps:$4 sm:$0xff]  }
0x13b2   :  { %7980 = vmatprep.subr.bf16.mxu0 %v16384_v43  ;;  %v16454_v43 = vld [vmem:[%s19164_s27 + $0x540] ss:$16 sps:$4 sm:$0xff]  }
0x13b5   :  { %7981 = vmatpush1.bf16.msra.mxu0 %v16382_v44  ;;  %v16459_v44 = vld [vmem:[%s19164_s27 + $0x564] ss:$16 sps:$4 sm:$0xff]  }
0x13b6   :  { %7982 = vmatprep.subr.bf16.mxu0 %v16387_v45  ;;  %v16457_v45 = vld [vmem:[%s19164_s27 + $0x560] ss:$16 sps:$4 sm:$0xff]  }
0x13b9   :  { %7983 = vmatpush1.bf16.msra.mxu0 %v16385_v47  ;;  %v16462_v47 = vld [vmem:[%s19164_s27 + $0x584] ss:$16 sps:$4 sm:$0xff]  }
0x13ba   :  { %7984 = vmatprep.subr.bf16.mxu0 %v16390_v48  ;;  %v16460_v48 = vld [vmem:[%s19164_s27 + $0x580] ss:$16 sps:$4 sm:$0xff]  }
0x13bd   :  { %7985 = vmatpush1.bf16.msra.mxu0 %v16388_v63  ;;  %v16465_v63 = vld [vmem:[%s19164_s27 + $0x5a4] ss:$16 sps:$4 sm:$0xff]  }
0x13be   :  { %7986 = vmatprep.subr.bf16.mxu0 %v16393_v3  ;;  %v16463_v3 = vld [vmem:[%s19164_s27 + $0x5a0] ss:$16 sps:$4 sm:$0xff]  }
0x13bf   :  { %v18412_v24 = vpop.f32.mrb[176].mxu1 }
0x13c0   :  { %v18414_v25 = vpop.f32.mrb[177].mxu1 }
0x13c1   :  { %7987 = vmatpush1.bf16.msra.mxu0 %v16391_v49  ;;  %v7102_v29 = vpop.f32.mrb[178].mxu1  ;;  %v16468_v49 = vld [vmem:[%s19164_s27 + $0x5c4] ss:$16 sps:$4 sm:$0xff]  }
0x13c2   :  { %7988 = vmatprep.subr.bf16.mxu0 %v16396_v50  ;;  %v7103_v31 = vpop.f32.mrb[179].mxu1  ;;  %v16466_v50 = vld [vmem:[%s19164_s27 + $0x5c0] ss:$16 sps:$4 sm:$0xff]  }
0x13c3   :  { %v18472_v29 = vld [vmem:[%s19165_s15] ss:$4 sm:$0xf] }
0x13c5   :  { %7989 = vmatpush1.bf16.msra.mxu0 %v16394_v27  ;;  %v16474_v27 = vld [vmem:[%s19164_s27 + $0x604] ss:$16 sps:$4 sm:$0xff]  }
0x13c6   :  { %7990 = vmatprep.subr.bf16.mxu0 %v16399_v32  ;;  %v8026_v32 = vrot.slane %v18472_v29, %v17520_v14 }
0x13c9   :  { %7991 = vmatpush1.bf16.msra.mxu0 %v16397_v53 }
0x13ca   :  { %7992 = vmatprep.subr.bf16.mxu0 %v16402_v54 }
0x13cd   :  { %7993 = vmatpush1.bf16.msra.mxu0 %v16400_v1  ;;  %v8030_v1 = vrot.slane %v18472_v29, %v17523_v15 }
0x13ce   :  { %7994 = vmatprep.subr.bf16.mxu0 %v16405_v36 }
0x13d1   :  { %7995 = vmatpush1.bf16.msra.mxu0 %v16403_v5 }
0x13d2   :  { %7996 = vmatprep.subr.bf16.mxu0 %v16408_v55 }
0x13d5   :  { %7997 = vmatpush1.bf16.msra.mxu0 %v16406_v52 }
0x13d6   :  { %7998 = vmatprep.subr.bf16.mxu0 %v16411_v56 }
0x13d9   :  { %7999 = vmatpush1.bf16.msra.mxu0 %v16409_v57 }
0x13da   :  { %8000 = vmatprep.subr.bf16.mxu0 %v16414_v16 }
0x13dd   :  { %8001 = vmatpush1.bf16.msra.mxu0 %v16412_v58 }
0x13de   :  { %8002 = vmatprep.subr.bf16.mxu0 %v16417_v51 }
0x13e1   :  { %8003 = vmatpush1.bf16.msra.mxu0 %v16415_v59 }
0x13e2   :  { %8004 = vmatprep.subr.bf16.mxu0 %v16420_v11 }
0x13e5   :  { %8005 = vmatpush1.bf16.msra.mxu0 %v16418_v42 }
0x13e6   :  { %8006 = vmatprep.subr.bf16.mxu0 %v16423_v60 }
0x13e9   :  { %8007 = vmatpush1.bf16.msra.mxu0 %v16421_v46  ;;  %v16472_v46 = vld [vmem:[%s19164_s27 + $0x600] ss:$16 sps:$4 sm:$0xff]  }
0x13ea   :  { %9056 = vmatprep.subr.bf16.mxu0 %v16426_v13 }
0x13ec   :  { %8009 = vmatmul.mubr.bf16.vlgmr.msra.gmra.mrb[72].mxu0 %v18360_v26  ;;  %v16441_v26 = vld [vmem:[%s19164_s27 + $0x4a4] ss:$16 sps:$4 sm:$0xff]  }
0x13ed   :  { %9057 = vmatpush1.bf16.msra.mxu0 %v16424_v20  ;;  %v16477_v20 = vld [vmem:[%s19164_s27 + $0x624] ss:$16 sps:$4 sm:$0xff]  }
0x13ee   :  { %9058 = vmatprep.subr.bf16.mxu0 %v16429_v62  ;;  %v18498_v62 = vld [vmem:[%s19166_s16] sm:$0xf] }
0x13f1   :  { %9059 = vmatpush1.bf16.msra.mxu0 %v16427_v0  ;;  %v16475_v0 = vld [vmem:[%s19164_s27 + $0x620] ss:$16 sps:$4 sm:$0xff]  }
0x13f2   :  { %9060 = vmatprep.subr.bf16.mxu0 %v16432_v2  ;;  %v16480_v2 = vld [vmem:[%s19164_s27 + $0x644] ss:$16 sps:$4 sm:$0xff]  }
0x13f5   :  { %9061 = vmatpush1.bf16.msra.mxu0 %v16430_v4  ;;  %v16478_v4 = vld [vmem:[%s19164_s27 + $0x640] ss:$16 sps:$4 sm:$0xff]  }
0x13f6   :  { %9062 = vmatprep.subr.bf16.mxu0 %v16435_v6  ;;  %v16483_v6 = vld [vmem:[%s19164_s27 + $0x664] ss:$16 sps:$4 sm:$0xff]  }
0x13f9   :  { %9063 = vmatpush1.bf16.msra.mxu0 %v16433_v7  ;;  %v16481_v7 = vld [vmem:[%s19164_s27 + $0x660] ss:$16 sps:$4 sm:$0xff]  }
0x13fa   :  { %9064 = vmatprep.subr.bf16.mxu0 %v16438_v8  ;;  %v16486_v8 = vld [vmem:[%s19164_s27 + $0x684] ss:$16 sps:$4 sm:$0xff]  }
0x13fd   :  { %9065 = vmatpush1.bf16.msra.mxu0 %v16436_v10  ;;  %v16484_v10 = vld [vmem:[%s19164_s27 + $0x680] ss:$16 sps:$4 sm:$0xff]  }
0x13fe   :  { %9066 = vmatprep.subr.bf16.mxu0 %v16441_v26  ;;  %v16489_v26 = vld [vmem:[%s19164_s27 + $0x6a4] ss:$16 sps:$4 sm:$0xff]  }
0x13ff   :  { %v7500_v21 = vpop.f32.mrb[180].mxu1 }
0x1400   :  { %v7501_v22 = vadd.f32 %v7500_v21, %v18412_v24  ;;  %v7502_v23 = vpop.f32.mrb[181].mxu1  ;;  %v16471_v24 = vld [vmem:[%s19164_s27 + $0x5e4] ss:$16 sps:$4 sm:$0xff]   ;;  %v16490_v21 = vld [vmem:[%s19164_s27 + $0x6c0] ss:$16 sps:$4 sm:$0xff]  }
0x1401   :  { %v7503_v28 = vadd.f32 %v7502_v23, %v18414_v25  ;;  %v7504_v30 = vpop.f32.mrb[182].mxu1  ;;  %9067 = vmatpush1.bf16.msra.mxu0 %v16439_v17  ;;  %v16469_v25 = vld [vmem:[%s19164_s27 + $0x5e0] ss:$16 sps:$4 sm:$0xff]  }
0x1402   :  { %v7505_v37 = vpop.f32.mrb[183].mxu1  ;;  %9068 = vmatprep.subr.bf16.mxu0 %v16444_v18  ;;  %v16487_v17 = vld [vmem:[%s19164_s27 + $0x6a0] ss:$16 sps:$4 sm:$0xff]   ;;  %v16492_v18 = vld [vmem:[%s19164_s27 + $0x6c4] ss:$16 sps:$4 sm:$0xff]  }
0x1403   :  { %v16493_v23 = vld [vmem:[%s19164_s27 + $0x6e0] ss:$16 sps:$4 sm:$0xff]  }
0x1404   :  { %v16496_v30 = vld [vmem:[%s19164_s27 + $0x700] ss:$16 sps:$4 sm:$0xff]  }
0x1405   :  { %9069 = vmatpush1.bf16.msra.mxu0 %v16442_v35  ;;  %v16501_v35 = vld [vmem:[%s19164_s27 + $0x724] ss:$16 sps:$4 sm:$0xff]   ;;  %v16499_v37 = vld [vmem:[%s19164_s27 + $0x720] ss:$16 sps:$4 sm:$0xff]  }
0x1406   :  { %9070 = vmatprep.subr.bf16.mxu0 %v16447_v38  ;;  %v16504_v38 = vld [vmem:[%s19164_s27 + $0x744] ss:$16 sps:$4 sm:$0xff]  }
0x1409   :  { %9071 = vmatpush1.bf16.msra.mxu0 %v16445_v39  ;;  %v16502_v39 = vld [vmem:[%s19164_s27 + $0x740] ss:$16 sps:$4 sm:$0xff]  }
0x140a   :  { %9072 = vmatprep.subr.bf16.mxu0 %v16450_v40  ;;  %v16507_v40 = vld [vmem:[%s19164_s27 + $0x764] ss:$16 sps:$4 sm:$0xff]  }
0x140d   :  { %9073 = vmatpush1.bf16.msra.mxu0 %v16448_v19  ;;  %v16505_v19 = vld [vmem:[%s19164_s27 + $0x760] ss:$16 sps:$4 sm:$0xff]  }
0x140e   :  { %9074 = vmatprep.subr.bf16.mxu0 %v16453_v61  ;;  %v16510_v61 = vld [vmem:[%s19164_s27 + $0x784] ss:$16 sps:$4 sm:$0xff]  }
0x1411   :  { %9075 = vmatpush1.bf16.msra.mxu0 %v16451_v33  ;;  %v16508_v33 = vld [vmem:[%s19164_s27 + $0x780] ss:$16 sps:$4 sm:$0xff]  }
0x1412   :  { %9076 = vmatprep.subr.bf16.mxu0 %v16456_v41  ;;  %v16513_v41 = vld [vmem:[%s19164_s27 + $0x7a4] ss:$16 sps:$4 sm:$0xff]  }
0x1415   :  { %9077 = vmatpush1.bf16.msra.mxu0 %v16454_v43  ;;  %v16511_v43 = vld [vmem:[%s19164_s27 + $0x7a0] ss:$16 sps:$4 sm:$0xff]  }
0x1416   :  { %9078 = vmatprep.subr.bf16.mxu0 %v16459_v44  ;;  %v16516_v44 = vld [vmem:[%s19164_s27 + $0x7c4] ss:$16 sps:$4 sm:$0xff]  }
0x1419   :  { %9079 = vmatpush1.bf16.msra.mxu0 %v16457_v45 }
0x141a   :  { %9080 = vmatprep.subr.bf16.mxu0 %v16462_v47 }
0x141d   :  { %9081 = vmatpush1.bf16.msra.mxu0 %v16460_v48 }
0x141e   :  { %9082 = vmatprep.subr.bf16.mxu0 %v16465_v63  ;;  %v16514_v63 = vld [vmem:[%s19164_s27 + $0x7c0] ss:$16 sps:$4 sm:$0xff]  }
0x1421   :  { %9083 = vmatpush1.bf16.msra.mxu0 %v16463_v3 }
0x1422   :  { %9084 = vmatprep.subr.bf16.mxu0 %v16468_v49 }
0x1425   :  { %9085 = vmatpush1.bf16.msra.mxu0 %v16466_v50  ;;  %v16519_v50 = vld [vmem:[%s19164_s27 + $0x7e4] ss:$16 sps:$4 sm:$0xff]  }
0x1426   :  { %9086 = vmatprep.subr.bf16.mxu0 %v16471_v24 }
0x1429   :  { %9087 = vmatpush1.bf16.msra.mxu0 %v16469_v25  ;;  %v16517_v25 = vld [vmem:[%s19164_s27 + $0x7e0] ss:$16 sps:$4 sm:$0xff]  }
0x142a   :  { %9097 = vmatprep.subr.bf16.mxu0 %v16474_v27  ;;  %v16522_v27 = vld [vmem:[%s19164_s27 + $0x40c] ss:$16 sps:$4 sm:$0xff]  }
0x143f   :  { %v18474_v31 = vpop.f32.mrb[64].mxu0 }
0x1440   :  { %v7969_v53 = vpop.f32.mrb[184].mxu1  ;;  %v18478_v54 = vpop.f32.mrb[65].mxu0 }
0x1441   :  { %v8017_v36 = vadd.f32 %v7969_v53, %v7501_v22  ;;  %v7971_v5 = vpop.f32.mrb[185].mxu1  ;;  %v7143_v55 = vpop.f32.mrb[66].mxu0  ;;  %v16495_v22 = vld [vmem:[%s19164_s27 + $0x6e4] ss:$16 sps:$4 sm:$0xff]  }
0x1442   :  { %v8018_v52 = vadd.f32 %v7971_v5, %v7503_v28  ;;  %v7144_v56 = vpop.f32.mrb[67].mxu0  ;;  %v7973_v57 = vpop.f32.mrb[186].mxu1  ;;  %v16498_v28 = vld [vmem:[%s19164_s27 + $0x704] ss:$16 sps:$4 sm:$0xff]  }
0x1443   :  { %v8043_v16 = vadd.f32 %v8026_v32, %v8017_v36  ;;  %v7974_v58 = vpop.f32.mrb[187].mxu1  ;;  %v18536_v32 = vsub.s32 2, %v17516_v12 }
0x1444   :  { %v8044_v51 = vadd.f32 %v8030_v1, %v8018_v52 }
0x1445   :  { %v8047_v59 = vmax.f32 %v8043_v16, 0.0  ;;  %v8034_v53 = vrot.slane %v18472_v29, %v18536_v32 }
0x1446   :  { %v8048_v11 = vmax.f32 %v8044_v51, 0.0 }
0x1447   :  { %v18482_v42 = vpack.c.bf16 %v8047_v59, %v8047_v59 }
0x1448   :  { %v18484_v60 = vpack.c.bf16 %v8048_v11, %v8048_v11  ;;  %v16520_v11 = vld [vmem:[%s19164_s27 + $0x408] ss:$16 sps:$4 sm:$0xff]  }
0x1449   :  { %v18489_v13 = vsel %vm8060_vm8, %v18482_v42, 0 }
0x144a   :  { %13578 = vmatprep.subr.msk.bf16.mxu1 %vm8060_vm8, %v18484_v60  ;;  %9088 = vmatprep.mubr.bf16.mxu0 %v18484_v60 }
0x144b   :  { %8074 = vmatpush1.bf16.msra.mxu1 %v18489_v13  ;;  %9089 = vmatmul.mubr.bf16.vlgmr.msra.gmra.mrb[56].mxu0 %v18482_v42 }
0x144c   :  { %9098 = vmatpush1.bf16.msra.mxu0 %v16472_v46 }
0x144d   :  { %9099 = vmatprep.subr.bf16.mxu0 %v16477_v20  ;;  %v16523_v20 = vld [vmem:[%s19164_s27 + $0x428] ss:$16 sps:$4 sm:$0xff]  }
0x144e   :  { %13579 = vmatmul.mubr.msk.bf16.vlgmr.msra.gmra.mrb[188].mxu1 %vm8056_vm9, %v18498_v62 }
0x144f   :  { %8146 = vmatprep.mubr.bf16.mxu1 %v17148_v34 }
0x1450   :  { %9100 = vmatpush1.bf16.msra.mxu0 %v16475_v0  ;;  %v16528_v0 = vld [vmem:[%s19164_s27 + $0x44c] ss:$16 sps:$4 sm:$0xff]  }
0x1451   :  { %9101 = vmatprep.subr.bf16.mxu0 %v16480_v2  ;;  %v16526_v2 = vld [vmem:[%s19164_s27 + $0x448] ss:$16 sps:$4 sm:$0xff]  }
0x1454   :  { %9102 = vmatpush1.bf16.msra.mxu0 %v16478_v4  ;;  %v16531_v4 = vld [vmem:[%s19164_s27 + $0x46c] ss:$16 sps:$4 sm:$0xff]  }
0x1455   :  { %9103 = vmatprep.subr.bf16.mxu0 %v16483_v6  ;;  %v16529_v6 = vld [vmem:[%s19164_s27 + $0x468] ss:$16 sps:$4 sm:$0xff]  }
0x1458   :  { %9104 = vmatpush1.bf16.msra.mxu0 %v16481_v7  ;;  %v16537_v7 = vld [vmem:[%s19164_s27 + $0x4ac] ss:$16 sps:$4 sm:$0xff]  }
0x1459   :  { %9105 = vmatprep.subr.bf16.mxu0 %v16486_v8  ;;  %v16535_v8 = vld [vmem:[%s19164_s27 + $0x4a8] ss:$16 sps:$4 sm:$0xff]  }
0x145c   :  { %9106 = vmatpush1.bf16.msra.mxu0 %v16484_v10  ;;  %v16540_v10 = vld [vmem:[%s19164_s27 + $0x4cc] ss:$16 sps:$4 sm:$0xff]  }
0x145d   :  { %9107 = vmatprep.subr.bf16.mxu0 %v16489_v26  ;;  %v16538_v26 = vld [vmem:[%s19164_s27 + $0x4c8] ss:$16 sps:$4 sm:$0xff]  }
0x1460   :  { %9108 = vmatpush1.bf16.msra.mxu0 %v16487_v17  ;;  %v16543_v17 = vld [vmem:[%s19164_s27 + $0x4ec] ss:$16 sps:$4 sm:$0xff]  }
0x1461   :  { %9109 = vmatprep.subr.bf16.mxu0 %v16492_v18  ;;  %v16541_v18 = vld [vmem:[%s19164_s27 + $0x4e8] ss:$16 sps:$4 sm:$0xff]  }
0x1464   :  { %9110 = vmatpush1.bf16.msra.mxu0 %v16490_v21  ;;  %v16546_v21 = vld [vmem:[%s19164_s27 + $0x50c] ss:$16 sps:$4 sm:$0xff]  }
0x1465   :  { %9111 = vmatprep.subr.bf16.mxu0 %v16495_v22  ;;  %v16544_v22 = vld [vmem:[%s19164_s27 + $0x508] ss:$16 sps:$4 sm:$0xff]  }
0x1468   :  { %9112 = vmatpush1.bf16.msra.mxu0 %v16493_v23  ;;  %v16549_v23 = vld [vmem:[%s19164_s27 + $0x52c] ss:$16 sps:$4 sm:$0xff]  }
0x1469   :  { %9113 = vmatprep.subr.bf16.mxu0 %v16498_v28  ;;  %v16547_v28 = vld [vmem:[%s19164_s27 + $0x528] ss:$16 sps:$4 sm:$0xff]  }
0x146c   :  { %9114 = vmatpush1.bf16.msra.mxu0 %v16496_v30  ;;  %v16552_v30 = vld [vmem:[%s19164_s27 + $0x54c] ss:$16 sps:$4 sm:$0xff]  }
0x146d   :  { %9115 = vmatprep.subr.bf16.mxu0 %v16501_v35  ;;  %v16550_v35 = vld [vmem:[%s19164_s27 + $0x548] ss:$16 sps:$4 sm:$0xff]  }
0x1470   :  { %9116 = vmatpush1.bf16.msra.mxu0 %v16499_v37  ;;  %v16555_v37 = vld [vmem:[%s19164_s27 + $0x56c] ss:$16 sps:$4 sm:$0xff]  }
0x1471   :  { %9117 = vmatprep.subr.bf16.mxu0 %v16504_v38  ;;  %v16553_v38 = vld [vmem:[%s19164_s27 + $0x568] ss:$16 sps:$4 sm:$0xff]  }
0x1474   :  { %9118 = vmatpush1.bf16.msra.mxu0 %v16502_v39  ;;  %v16558_v39 = vld [vmem:[%s19164_s27 + $0x58c] ss:$16 sps:$4 sm:$0xff]  }
0x1475   :  { %9119 = vmatprep.subr.bf16.mxu0 %v16507_v40  ;;  %v16556_v40 = vld [vmem:[%s19164_s27 + $0x588] ss:$16 sps:$4 sm:$0xff]  }
0x1478   :  { %9120 = vmatpush1.bf16.msra.mxu0 %v16505_v19  ;;  %v16561_v19 = vld [vmem:[%s19164_s27 + $0x5ac] ss:$16 sps:$4 sm:$0xff]  }
0x1479   :  { %9121 = vmatprep.subr.bf16.mxu0 %v16510_v61  ;;  %v16559_v61 = vld [vmem:[%s19164_s27 + $0x5a8] ss:$16 sps:$4 sm:$0xff]  }
0x147c   :  { %9122 = vmatpush1.bf16.msra.mxu0 %v16508_v33  ;;  %v16564_v33 = vld [vmem:[%s19164_s27 + $0x5cc] ss:$16 sps:$4 sm:$0xff]  }
0x147d   :  { %9123 = vmatprep.subr.bf16.mxu0 %v16513_v41  ;;  %v16562_v41 = vld [vmem:[%s19164_s27 + $0x5c8] ss:$16 sps:$4 sm:$0xff]  }
0x147f   :  { %v7541_v45 = vpop.f32.mrb[68].mxu0 }
0x1480   :  { %v7542_v47 = vadd.f32 %v7541_v45, %v18474_v31  ;;  %v7543_v48 = vpop.f32.mrb[69].mxu0  ;;  %9124 = vmatpush1.bf16.msra.mxu0 %v16511_v43  ;;  %v18539_v31 = vsub.s32 3, %v17516_v12  ;;  %v16567_v43 = vld [vmem:[%s19164_s27 + $0x5ec] ss:$16 sps:$4 sm:$0xff]  }
0x1481   :  { %v7544_v3 = vadd.f32 %v7543_v48, %v18478_v54  ;;  %v7545_v49 = vpop.f32.mrb[70].mxu0  ;;  %9125 = vmatprep.subr.bf16.mxu0 %v16516_v44  ;;  %v16565_v44 = vld [vmem:[%s19164_s27 + $0x5e8] ss:$16 sps:$4 sm:$0xff]   ;;  %v16570_v45 = vld [vmem:[%s19164_s27 + $0x60c] ss:$16 sps:$4 sm:$0xff]  }
0x1482   :  { %v7546_v24 = vpop.f32.mrb[71].mxu0  ;;  %v8038_v1 = vrot.slane %v18472_v29, %v18539_v31  ;;  %v16525_v29 = vld [vmem:[%s19164_s27 + $0x42c] ss:$16 sps:$4 sm:$0xff]   ;;  %v16574_v49 = vld [vmem:[%s19164_s27 + $0x648] ss:$16 sps:$4 sm:$0xff]  }
0x1483   :  { %v16573_v48 = vld [vmem:[%s19164_s27 + $0x62c] ss:$16 sps:$4 sm:$0xff]   ;;  %v16577_v24 = vld [vmem:[%s19164_s27 + $0x668] ss:$16 sps:$4 sm:$0xff]  }
0x1484   :  { %9126 = vmatpush1.bf16.msra.mxu0 %v16514_v63  ;;  %v16571_v63 = vld [vmem:[%s19164_s27 + $0x628] ss:$16 sps:$4 sm:$0xff]  }
0x1485   :  { %9127 = vmatprep.subr.bf16.mxu0 %v16519_v50  ;;  %v16579_v50 = vld [vmem:[%s19164_s27 + $0x66c] ss:$16 sps:$4 sm:$0xff]  }
0x1488   :  { %9128 = vmatpush1.bf16.msra.mxu0 %v16517_v25  ;;  %v16582_v25 = vld [vmem:[%s19164_s27 + $0x68c] ss:$16 sps:$4 sm:$0xff]  }
0x1489   :  { %9138 = vmatprep.subr.bf16.mxu0 %v16522_v27  ;;  %v16585_v27 = vld [vmem:[%s19164_s27 + $0x6ac] ss:$16 sps:$4 sm:$0xff]  }
0x14bf   :  { %v8010_v54 = vpop.f32.mrb[72].mxu0 }
0x14c0   :  { %v8019_v36 = vadd.f32 %v8010_v54, %v7542_v47  ;;  %v8012_v5 = vpop.f32.mrb[73].mxu0  ;;  %v16568_v47 = vld [vmem:[%s19164_s27 + $0x608] ss:$16 sps:$4 sm:$0xff]   ;;  %v16588_v54 = vld [vmem:[%s19164_s27 + $0x6cc] ss:$16 sps:$4 sm:$0xff]  }
0x14c1   :  { %v8020_v55 = vadd.f32 %v8012_v5, %v7544_v3  ;;  %v8014_v52 = vpop.f32.mrb[74].mxu0  ;;  %v16576_v3 = vld [vmem:[%s19164_s27 + $0x64c] ss:$16 sps:$4 sm:$0xff]  }
0x14c2   :  { %v8045_v56 = vadd.f32 %v8034_v53, %v8019_v36  ;;  %v8015_v57 = vpop.f32.mrb[75].mxu0  ;;  %v16583_v53 = vld [vmem:[%s19164_s27 + $0x6a8] ss:$16 sps:$4 sm:$0xff]   ;;  %v16591_v36 = vld [vmem:[%s19164_s27 + $0x6ec] ss:$16 sps:$4 sm:$0xff]  }
0x14c3   :  { %v8046_v16 = vadd.f32 %v8038_v1, %v8020_v55  ;;  %v16586_v1 = vld [vmem:[%s19164_s27 + $0x6c8] ss:$16 sps:$4 sm:$0xff]   ;;  %v16594_v57 = vld [vmem:[%s19164_s27 + $0x70c] ss:$16 sps:$4 sm:$0xff]  }
0x14c4   :  { %v8049_v58 = vmax.f32 %v8045_v56, 0.0  ;;  %v16589_v52 = vld [vmem:[%s19164_s27 + $0x6e8] ss:$16 sps:$4 sm:$0xff]  }
0x14c5   :  { %v8050_v12 = vmax.f32 %v8046_v16, 0.0 }
0x14c6   :  { %v18545_v51 = vpack.c.bf16 %v8049_v58, %v8049_v58  ;;  %v16592_v58 = vld [vmem:[%s19164_s27 + $0x708] ss:$16 sps:$4 sm:$0xff]  }
0x14c7   :  { %v18547_v59 = vpack.c.bf16 %v8050_v12, %v8050_v12  ;;  %v16597_v12 = vld [vmem:[%s19164_s27 + $0x72c] ss:$16 sps:$4 sm:$0xff]  }
0x14c8   :  { %v8068_v46 = vsel %vm8060_vm8, %v18545_v51, 0 }
0x14c9   :  { %13580 = vmatprep.subr.msk.bf16.mxu1 %vm8060_vm8, %v18547_v59  ;;  %9129 = vmatprep.mubr.bf16.mxu0 %v18547_v59 }
0x14ca   :  { %8115 = vmatpush1.bf16.msra.mxu1 %v8068_v46  ;;  %9130 = vmatmul.mubr.bf16.vlgmr.msra.gmra.mrb[56].mxu0 %v18545_v51 }
0x14cb   :  { %9139 = vmatpush1.bf16.msra.mxu0 %v16520_v11  ;;  %9170 = vmatprep.mubr.bf16.mxu0 %v18484_v60  ;;  %v16600_v11 = vld [vmem:[%s19164_s27 + $0x74c] ss:$16 sps:$4 sm:$0xff]  }
0x14cc   :  { %13967 = vmatprep.subr.msk.bf16.mxu1 %vm8060_vm8, %v18484_v60  ;;  %9140 = vmatprep.subr.bf16.mxu0 %v16525_v29  ;;  %v13966_v60 = vld [vmem:[%s19166_s16 + $0x4] sm:$0xf]  ;;  %v16603_v29 = vld [vmem:[%s19164_s27 + $0x76c] ss:$16 sps:$4 sm:$0xff]  }
0x14cd   :  { %13581 = vmatmul.mubr.msk.bf16.vlgmr.msra.gmra.mrb[192].mxu1 %vm8056_vm9, %v18498_v62  ;;  %v16534_v62 = vld [vmem:[%s19164_s27 + $0x48c] ss:$16 sps:$4 sm:$0xff]  }
0x14ce   :  { %10030 = vmatpush1.bf16.msra.mxu1 %v18489_v13  ;;  %10061 = vmatprep.mubr.bf16.mxu1 %v17148_v34  ;;  %v16532_v13 = vld [vmem:[%s19164_s27 + $0x488] ss:$16 sps:$4 sm:$0xff]  }
0x14cf   :  { %9141 = vmatpush1.bf16.msra.mxu0 %v16523_v20  ;;  %13969 = vmatprep.subr.msk.bf16.mxu1 %vm8060_vm8, %v18547_v59  ;;  %v16601_v20 = vld [vmem:[%s19164_s27 + $0x768] ss:$16 sps:$4 sm:$0xff]  }
0x14d0   :  { %9142 = vmatprep.subr.bf16.mxu0 %v16528_v0  ;;  %v16606_v0 = vld [vmem:[%s19164_s27 + $0x78c] ss:$16 sps:$4 sm:$0xff]  }
0x14d3   :  { %9143 = vmatpush1.bf16.msra.mxu0 %v16526_v2  ;;  %v16604_v2 = vld [vmem:[%s19164_s27 + $0x788] ss:$16 sps:$4 sm:$0xff]  }
0x14d4   :  { %9144 = vmatprep.subr.bf16.mxu0 %v16531_v4  ;;  %v16609_v4 = vld [vmem:[%s19164_s27 + $0x7ac] ss:$16 sps:$4 sm:$0xff]  }
0x14d5   :  { %13968 = vmatmul.mubr.msk.bf16.vlgmr.msra.gmra.mrb[196].mxu1 %vm8056_vm9, %v13966_v60 }
0x14d6   :  { %10071 = vmatpush1.bf16.msra.mxu1 %v8068_v46  ;;  %10102 = vmatprep.mubr.bf16.mxu1 %v17148_v34  ;;  %v16598_v46 = vld [vmem:[%s19164_s27 + $0x748] ss:$16 sps:$4 sm:$0xff]  }
0x14d7   :  { %9145 = vmatpush1.bf16.msra.mxu0 %v16529_v6  ;;  %v16612_v6 = vld [vmem:[%s19164_s27 + $0x7cc] ss:$16 sps:$4 sm:$0xff]  }
0x14d8   :  { %9146 = vmatprep.subr.bf16.mxu0 %v16534_v62  ;;  %v16610_v62 = vld [vmem:[%s19164_s27 + $0x7c8] ss:$16 sps:$4 sm:$0xff]  }
0x14db   :  { %9147 = vmatpush1.bf16.msra.mxu0 %v16532_v13  ;;  %v16615_v13 = vld [vmem:[%s19164_s27 + $0x7ec] ss:$16 sps:$4 sm:$0xff]  }
0x14dc   :  { %9148 = vmatprep.subr.bf16.mxu0 %v16537_v7  ;;  %v16613_v7 = vld [vmem:[%s19164_s27 + $0x7e8] ss:$16 sps:$4 sm:$0xff]  }
0x14dd   :  { %13970 = vmatmul.mubr.msk.bf16.vlgmr.msra.gmra.mrb[200].mxu1 %vm8056_vm9, %v13966_v60  ;;  %v16607_v60 = vld [vmem:[%s19164_s27 + $0x7a8] ss:$16 sps:$4 sm:$0xff]  }
0x14de   :  { %11289 = vmatprep.mubr.bf16.mxu1 %v17148_v34 }
0x14df   :  { %9149 = vmatpush1.bf16.msra.mxu0 %v16535_v8  ;;  %v16618_v8 = vld [vmem:[%s19164_s27 + $0x4] ss:$16 sps:$4 sm:$0xff]  }
0x14e0   :  { %9150 = vmatprep.subr.bf16.mxu0 %v16540_v10  ;;  %v16616_v10 = vld [vmem:[%s19164_s27] ss:$16 sps:$4 sm:$0xff]  }
0x14e3   :  { %9151 = vmatpush1.bf16.msra.mxu0 %v16538_v26 }
0x14e4   :  { %9152 = vmatprep.subr.bf16.mxu0 %v16543_v17  ;;  %v16621_v17 = vld [vmem:[%s19164_s27 + $0x24] ss:$16 sps:$4 sm:$0xff]  }
0x14e7   :  { %9153 = vmatpush1.bf16.msra.mxu0 %v16541_v18  ;;  %v16619_v18 = vld [vmem:[%s19164_s27 + $0x20] ss:$16 sps:$4 sm:$0xff]  }
0x14e8   :  { %9154 = vmatprep.subr.bf16.mxu0 %v16546_v21  ;;  %v16624_v21 = vld [vmem:[%s19164_s27 + $0x44] ss:$16 sps:$4 sm:$0xff]  }
0x14eb   :  { %9155 = vmatpush1.bf16.msra.mxu0 %v16544_v22  ;;  %v16622_v22 = vld [vmem:[%s19164_s27 + $0x40] ss:$16 sps:$4 sm:$0xff]  }
0x14ec   :  { %9156 = vmatprep.subr.bf16.mxu0 %v16549_v23  ;;  %v16627_v23 = vld [vmem:[%s19164_s27 + $0x64] ss:$16 sps:$4 sm:$0xff]  }
0x14ef   :  { %9157 = vmatpush1.bf16.msra.mxu0 %v16547_v28  ;;  %v16625_v28 = vld [vmem:[%s19164_s27 + $0x60] ss:$16 sps:$4 sm:$0xff]  }
0x14f0   :  { %9158 = vmatprep.subr.bf16.mxu0 %v16552_v30  ;;  %v16628_v30 = vld [vmem:[%s19164_s27 + $0x80] ss:$16 sps:$4 sm:$0xff]  }
0x14f3   :  { %9159 = vmatpush1.bf16.msra.mxu0 %v16550_v35  ;;  %v16633_v35 = vld [vmem:[%s19164_s27 + $0xa4] ss:$16 sps:$4 sm:$0xff]  }
0x14f4   :  { %9160 = vmatprep.subr.bf16.mxu0 %v16555_v37  ;;  %v16631_v37 = vld [vmem:[%s19164_s27 + $0xa0] ss:$16 sps:$4 sm:$0xff]  }
0x14f7   :  { %9161 = vmatpush1.bf16.msra.mxu0 %v16553_v38  ;;  %v16636_v38 = vld [vmem:[%s19164_s27 + $0xc4] ss:$16 sps:$4 sm:$0xff]  }
0x14f8   :  { %9162 = vmatprep.subr.bf16.mxu0 %v16558_v39  ;;  %v16634_v39 = vld [vmem:[%s19164_s27 + $0xc0] ss:$16 sps:$4 sm:$0xff]  }
0x14fb   :  { %9163 = vmatpush1.bf16.msra.mxu0 %v16556_v40  ;;  %v16639_v40 = vld [vmem:[%s19164_s27 + $0xe4] ss:$16 sps:$4 sm:$0xff]  }
0x14fc   :  { %9164 = vmatprep.subr.bf16.mxu0 %v16561_v19  ;;  %v16637_v19 = vld [vmem:[%s19164_s27 + $0xe0] ss:$16 sps:$4 sm:$0xff]  }
0x14ff   :  { %9165 = vmatpush1.bf16.msra.mxu0 %v16559_v61  ;;  %v16642_v61 = vld [vmem:[%s19164_s27 + $0x104] ss:$16 sps:$4 sm:$0xff]  }
0x1500   :  { %9166 = vmatprep.subr.bf16.mxu0 %v16564_v33  ;;  %v16640_v33 = vld [vmem:[%s19164_s27 + $0x100] ss:$16 sps:$4 sm:$0xff]  }
0x1503   :  { %9167 = vmatpush1.bf16.msra.mxu0 %v16562_v41  ;;  %v16645_v41 = vld [vmem:[%s19164_s27 + $0x124] ss:$16 sps:$4 sm:$0xff]  }
0x1504   :  { %9168 = vmatprep.subr.bf16.mxu0 %v16567_v43  ;;  %v16643_v43 = vld [vmem:[%s19164_s27 + $0x120] ss:$16 sps:$4 sm:$0xff]  }
0x1507   :  { %9169 = vmatpush1.bf16.msra.mxu0 %v16565_v44  ;;  %v16648_v44 = vld [vmem:[%s19164_s27 + $0x144] ss:$16 sps:$4 sm:$0xff]  }
0x1508   :  { %9179 = vmatprep.subr.bf16.mxu0 %v16570_v45  ;;  %v16646_v45 = vld [vmem:[%s19164_s27 + $0x140] ss:$16 sps:$4 sm:$0xff]  }
0x150a   :  { %9171 = vmatmul.mubr.bf16.vlgmr.msra.gmra.mrb[60].mxu0 %v18482_v42  ;;  %v16580_v42 = vld [vmem:[%s19164_s27 + $0x688] ss:$16 sps:$4 sm:$0xff]  }
0x150b   :  { %9180 = vmatpush1.bf16.msra.mxu0 %v16568_v47  ;;  %9211 = vmatprep.mubr.bf16.mxu0 %v18547_v59  ;;  %v16595_v59 = vld [vmem:[%s19164_s27 + $0x728] ss:$16 sps:$4 sm:$0xff]   ;;  %v16651_v47 = vld [vmem:[%s19164_s27 + $0x164] ss:$16 sps:$4 sm:$0xff]  }
0x150c   :  { %9181 = vmatprep.subr.bf16.mxu0 %v16573_v48  ;;  %v16649_v48 = vld [vmem:[%s19164_s27 + $0x160] ss:$16 sps:$4 sm:$0xff]  }
0x150f   :  { %9182 = vmatpush1.bf16.msra.mxu0 %v16571_v63  ;;  %v16654_v63 = vld [vmem:[%s19164_s27 + $0x184] ss:$16 sps:$4 sm:$0xff]  }
0x1510   :  { %9183 = vmatprep.subr.bf16.mxu0 %v16576_v3  ;;  %v16652_v3 = vld [vmem:[%s19164_s27 + $0x180] ss:$16 sps:$4 sm:$0xff]  }
0x1513   :  { %9184 = vmatpush1.bf16.msra.mxu0 %v16574_v49  ;;  %v16657_v49 = vld [vmem:[%s19164_s27 + $0x1a4] ss:$16 sps:$4 sm:$0xff]  }
0x1514   :  { %9185 = vmatprep.subr.bf16.mxu0 %v16579_v50  ;;  %v16655_v50 = vld [vmem:[%s19164_s27 + $0x1a0] ss:$16 sps:$4 sm:$0xff]  }
0x1517   :  { %9186 = vmatpush1.bf16.msra.mxu0 %v16577_v24  ;;  %v16660_v24 = vld [vmem:[%s19164_s27 + $0x1c4] ss:$16 sps:$4 sm:$0xff]  }
0x1518   :  { %9187 = vmatprep.subr.bf16.mxu0 %v16582_v25  ;;  %v16658_v25 = vld [vmem:[%s19164_s27 + $0x1c0] ss:$16 sps:$4 sm:$0xff]  }
0x151b   :  { %9188 = vmatpush1.bf16.msra.mxu0 %v16580_v42  ;;  %v16663_v42 = vld [vmem:[%s19164_s27 + $0x1e4] ss:$16 sps:$4 sm:$0xff]  }
0x151c   :  { %9189 = vmatprep.subr.bf16.mxu0 %v16585_v27  ;;  %v16661_v27 = vld [vmem:[%s19164_s27 + $0x1e0] ss:$16 sps:$4 sm:$0xff]  }
0x151f   :  { %9190 = vmatpush1.bf16.msra.mxu0 %v16583_v53  ;;  %v16666_v53 = vld [vmem:[%s19164_s27 + $0x204] ss:$16 sps:$4 sm:$0xff]  }
0x1520   :  { %9191 = vmatprep.subr.bf16.mxu0 %v16588_v54 }
0x1521   :  { %v18617_v5 = vpop.f32.mrb[188].mxu1 }
0x1522   :  { %v8109_v55 = vpop.f32.mrb[189].mxu1  ;;  %v18675_v54 = vpack.c.bf16 %v18617_v5, %v18617_v5  ;;  %v16675_v5 = vld [vmem:[%s19164_s27 + $0x264] ss:$16 sps:$4 sm:$0xff]  }
0x1523   :  { %9192 = vmatpush1.bf16.msra.mxu0 %v16586_v1  ;;  %v8111_v56 = vpop.f32.mrb[190].mxu1  ;;  %v18638_v26 = vpack.c.bf16 %v8109_v55, %v8109_v55  ;;  %v16664_v1 = vld [vmem:[%s19164_s27 + $0x200] ss:$16 sps:$4 sm:$0xff]  }
0x1524   :  { %9193 = vmatprep.subr.bf16.mxu0 %v16591_v36  ;;  %v8112_v16 = vpop.f32.mrb[191].mxu1  ;;  %v16669_v36 = vld [vmem:[%s19164_s27 + $0x224] ss:$16 sps:$4 sm:$0xff]   ;;  %v16667_v55 = vld [vmem:[%s19164_s27 + $0x220] ss:$16 sps:$4 sm:$0xff]  }
0x1525   :  { %v16670_v56 = vld [vmem:[%s19164_s27 + $0x240] ss:$16 sps:$4 sm:$0xff]   ;;  %v16678_v16 = vld [vmem:[%s19164_s27 + $0x284] ss:$16 sps:$4 sm:$0xff]  }
0x1527   :  { %9194 = vmatpush1.bf16.msra.mxu0 %v16589_v52  ;;  %v16672_v52 = vld [vmem:[%s19164_s27 + $0x244] ss:$16 sps:$4 sm:$0xff]  }
0x1528   :  { %9195 = vmatprep.subr.bf16.mxu0 %v16594_v57  ;;  %v16673_v57 = vld [vmem:[%s19164_s27 + $0x260] ss:$16 sps:$4 sm:$0xff]  }
0x152b   :  { %9196 = vmatpush1.bf16.msra.mxu0 %v16592_v58  ;;  %v16676_v58 = vld [vmem:[%s19164_s27 + $0x280] ss:$16 sps:$4 sm:$0xff]  }
0x152c   :  { %9197 = vmatprep.subr.bf16.mxu0 %v16597_v12  ;;  %v16681_v12 = vld [vmem:[%s19164_s27 + $0x2a4] ss:$16 sps:$4 sm:$0xff]  }
0x152f   :  { %9198 = vmatpush1.bf16.msra.mxu0 %v16595_v59  ;;  %v16679_v59 = vld [vmem:[%s19164_s27 + $0x2a0] ss:$16 sps:$4 sm:$0xff]  }
0x1530   :  { %9199 = vmatprep.subr.bf16.mxu0 %v16600_v11  ;;  %v16684_v11 = vld [vmem:[%s19164_s27 + $0x2c4] ss:$16 sps:$4 sm:$0xff]  }
0x1533   :  { %9200 = vmatpush1.bf16.msra.mxu0 %v16598_v46  ;;  %v16682_v46 = vld [vmem:[%s19164_s27 + $0x2c0] ss:$16 sps:$4 sm:$0xff]  }
0x1534   :  { %9201 = vmatprep.subr.bf16.mxu0 %v16603_v29  ;;  %v16687_v29 = vld [vmem:[%s19164_s27 + $0x2e4] ss:$16 sps:$4 sm:$0xff]  }
0x1537   :  { %9202 = vmatpush1.bf16.msra.mxu0 %v16601_v20 }
0x1538   :  { %9203 = vmatprep.subr.bf16.mxu0 %v16606_v0 }
0x153b   :  { %9204 = vmatpush1.bf16.msra.mxu0 %v16604_v2 }
0x153c   :  { %9205 = vmatprep.subr.bf16.mxu0 %v16609_v4 }
0x153f   :  { %9206 = vmatpush1.bf16.msra.mxu0 %v16607_v60  ;;  %v16685_v60 = vld [vmem:[%s19164_s27 + $0x2e0] ss:$16 sps:$4 sm:$0xff]  }
0x1540   :  { %9207 = vmatprep.subr.bf16.mxu0 %v16612_v6 }
0x1543   :  { %9208 = vmatpush1.bf16.msra.mxu0 %v16610_v62  ;;  %v16690_v62 = vld [vmem:[%s19164_s27 + $0x304] ss:$16 sps:$4 sm:$0xff]  }
0x1544   :  { %9209 = vmatprep.subr.bf16.mxu0 %v16615_v13  ;;  %v16688_v13 = vld [vmem:[%s19164_s27 + $0x300] ss:$16 sps:$4 sm:$0xff]  }
0x1547   :  { %9210 = vmatpush1.bf16.msra.mxu0 %v16613_v7  ;;  %v16693_v7 = vld [vmem:[%s19164_s27 + $0x324] ss:$16 sps:$4 sm:$0xff]  }
0x1548   :  { %9860 = vmatprep.subr.bf16.mxu0 %v16618_v8  ;;  %v16691_v8 = vld [vmem:[%s19164_s27 + $0x320] ss:$16 sps:$4 sm:$0xff]  }
0x154a   :  { %9212 = vmatmul.mubr.bf16.vlgmr.msra.gmra.mrb[60].mxu0 %v18545_v51  ;;  %v16630_v51 = vld [vmem:[%s19164_s27 + $0x84] ss:$16 sps:$4 sm:$0xff]  }
0x154b   :  { %9861 = vmatpush1.bf16.msra.mxu0 %v16616_v10  ;;  %9892 = vmatprep.mubr.bf16.mxu0 %v18638_v26  ;;  %v16696_v10 = vld [vmem:[%s19164_s27 + $0x344] ss:$16 sps:$4 sm:$0xff]  }
0x154c   :  { %9862 = vmatprep.subr.bf16.mxu0 %v16621_v17  ;;  %v16694_v17 = vld [vmem:[%s19164_s27 + $0x340] ss:$16 sps:$4 sm:$0xff]  }
0x154f   :  { %9863 = vmatpush1.bf16.msra.mxu0 %v16619_v18  ;;  %v16699_v18 = vld [vmem:[%s19164_s27 + $0x364] ss:$16 sps:$4 sm:$0xff]  }
0x1550   :  { %9864 = vmatprep.subr.bf16.mxu0 %v16624_v21  ;;  %v16697_v21 = vld [vmem:[%s19164_s27 + $0x360] ss:$16 sps:$4 sm:$0xff]  }
0x1553   :  { %9865 = vmatpush1.bf16.msra.mxu0 %v16622_v22  ;;  %v16702_v22 = vld [vmem:[%s19164_s27 + $0x384] ss:$16 sps:$4 sm:$0xff]  }
0x1554   :  { %9866 = vmatprep.subr.bf16.mxu0 %v16627_v23  ;;  %v16700_v23 = vld [vmem:[%s19164_s27 + $0x380] ss:$16 sps:$4 sm:$0xff]  }
0x1557   :  { %9867 = vmatpush1.bf16.msra.mxu0 %v16625_v28  ;;  %v16705_v28 = vld [vmem:[%s19164_s27 + $0x3a4] ss:$16 sps:$4 sm:$0xff]  }
0x1558   :  { %9868 = vmatprep.subr.bf16.mxu0 %v16630_v51  ;;  %v16703_v51 = vld [vmem:[%s19164_s27 + $0x3a0] ss:$16 sps:$4 sm:$0xff]  }
0x155b   :  { %9869 = vmatpush1.bf16.msra.mxu0 %v16628_v30  ;;  %v16708_v30 = vld [vmem:[%s19164_s27 + $0x3c4] ss:$16 sps:$4 sm:$0xff]  }
0x155c   :  { %9870 = vmatprep.subr.bf16.mxu0 %v16633_v35  ;;  %v16706_v35 = vld [vmem:[%s19164_s27 + $0x3c0] ss:$16 sps:$4 sm:$0xff]  }
0x155f   :  { %9871 = vmatpush1.bf16.msra.mxu0 %v16631_v37  ;;  %v16711_v37 = vld [vmem:[%s19164_s27 + $0x3e4] ss:$16 sps:$4 sm:$0xff]  }
0x1560   :  { %9872 = vmatprep.subr.bf16.mxu0 %v16636_v38  ;;  %v16709_v38 = vld [vmem:[%s19164_s27 + $0x3e0] ss:$16 sps:$4 sm:$0xff]  }
0x1563   :  { %9873 = vmatpush1.bf16.msra.mxu0 %v16634_v39  ;;  %v16714_v39 = vld [vmem:[%s19164_s27 + $0xc] ss:$16 sps:$4 sm:$0xff]  }
0x1564   :  { %9874 = vmatprep.subr.bf16.mxu0 %v16639_v40 }
0x1567   :  { %9875 = vmatpush1.bf16.msra.mxu0 %v16637_v19  ;;  %v16712_v19 = vld [vmem:[%s19164_s27 + $0x8] ss:$16 sps:$4 sm:$0xff]  }
0x1568   :  { %9876 = vmatprep.subr.bf16.mxu0 %v16642_v61  ;;  %v16717_v61 = vld [vmem:[%s19164_s27 + $0x2c] ss:$16 sps:$4 sm:$0xff]  }
0x156b   :  { %9877 = vmatpush1.bf16.msra.mxu0 %v16640_v33  ;;  %v16715_v33 = vld [vmem:[%s19164_s27 + $0x28] ss:$16 sps:$4 sm:$0xff]  }
0x156c   :  { %9878 = vmatprep.subr.bf16.mxu0 %v16645_v41  ;;  %v16720_v41 = vld [vmem:[%s19164_s27 + $0x4c] ss:$16 sps:$4 sm:$0xff]  }
0x156f   :  { %9879 = vmatpush1.bf16.msra.mxu0 %v16643_v43  ;;  %v16718_v43 = vld [vmem:[%s19164_s27 + $0x48] ss:$16 sps:$4 sm:$0xff]  }
0x1570   :  { %9880 = vmatprep.subr.bf16.mxu0 %v16648_v44  ;;  %v16723_v44 = vld [vmem:[%s19164_s27 + $0x6c] ss:$16 sps:$4 sm:$0xff]  }
0x1573   :  { %9881 = vmatpush1.bf16.msra.mxu0 %v16646_v45  ;;  %v16721_v45 = vld [vmem:[%s19164_s27 + $0x68] ss:$16 sps:$4 sm:$0xff]  }
0x1574   :  { %9882 = vmatprep.subr.bf16.mxu0 %v16651_v47  ;;  %v16726_v47 = vld [vmem:[%s19164_s27 + $0x8c] ss:$16 sps:$4 sm:$0xff]  }
0x1577   :  { %9883 = vmatpush1.bf16.msra.mxu0 %v16649_v48  ;;  %v16724_v48 = vld [vmem:[%s19164_s27 + $0x88] ss:$16 sps:$4 sm:$0xff]  }
0x1578   :  { %9884 = vmatprep.subr.bf16.mxu0 %v16654_v63  ;;  %v16727_v63 = vld [vmem:[%s19164_s27 + $0xa8] ss:$16 sps:$4 sm:$0xff]  }
0x157b   :  { %9885 = vmatpush1.bf16.msra.mxu0 %v16652_v3  ;;  %v16732_v3 = vld [vmem:[%s19164_s27 + $0xcc] ss:$16 sps:$4 sm:$0xff]  }
0x157c   :  { %9886 = vmatprep.subr.bf16.mxu0 %v16657_v49  ;;  %v16730_v49 = vld [vmem:[%s19164_s27 + $0xc8] ss:$16 sps:$4 sm:$0xff]  }
0x157f   :  { %9887 = vmatpush1.bf16.msra.mxu0 %v16655_v50  ;;  %v16735_v50 = vld [vmem:[%s19164_s27 + $0xec] ss:$16 sps:$4 sm:$0xff]  }
0x1580   :  { %9888 = vmatprep.subr.bf16.mxu0 %v16660_v24  ;;  %v16733_v24 = vld [vmem:[%s19164_s27 + $0xe8] ss:$16 sps:$4 sm:$0xff]  }
0x1583   :  { %9889 = vmatpush1.bf16.msra.mxu0 %v16658_v25  ;;  %v16738_v25 = vld [vmem:[%s19164_s27 + $0x10c] ss:$16 sps:$4 sm:$0xff]  }
0x1584   :  { %9890 = vmatprep.subr.bf16.mxu0 %v16663_v42  ;;  %v16736_v42 = vld [vmem:[%s19164_s27 + $0x108] ss:$16 sps:$4 sm:$0xff]  }
0x1587   :  { %9891 = vmatpush1.bf16.msra.mxu0 %v16661_v27  ;;  %v16741_v27 = vld [vmem:[%s19164_s27 + $0x12c] ss:$16 sps:$4 sm:$0xff]  }
0x1588   :  { %9901 = vmatprep.subr.bf16.mxu0 %v16666_v53  ;;  %v16739_v53 = vld [vmem:[%s19164_s27 + $0x128] ss:$16 sps:$4 sm:$0xff]  }
0x158a   :  { %9893 = vmatmul.mubr.bf16.vlgmr.msra.gmra.mrb[56].mxu0 %v18675_v54 }
0x158b   :  { %9902 = vmatpush1.bf16.msra.mxu0 %v16664_v1  ;;  %v16744_v1 = vld [vmem:[%s19164_s27 + $0x14c] ss:$16 sps:$4 sm:$0xff]  }
0x158c   :  { %9903 = vmatprep.subr.bf16.mxu0 %v16669_v36  ;;  %v16742_v36 = vld [vmem:[%s19164_s27 + $0x148] ss:$16 sps:$4 sm:$0xff]  }
0x158f   :  { %9904 = vmatpush1.bf16.msra.mxu0 %v16667_v55  ;;  %v16747_v55 = vld [vmem:[%s19164_s27 + $0x16c] ss:$16 sps:$4 sm:$0xff]  }
0x1590   :  { %9905 = vmatprep.subr.bf16.mxu0 %v16672_v52  ;;  %v16745_v52 = vld [vmem:[%s19164_s27 + $0x168] ss:$16 sps:$4 sm:$0xff]  }
0x1593   :  { %9906 = vmatpush1.bf16.msra.mxu0 %v16670_v56  ;;  %v16750_v56 = vld [vmem:[%s19164_s27 + $0x18c] ss:$16 sps:$4 sm:$0xff]  }
0x1594   :  { %9907 = vmatprep.subr.bf16.mxu0 %v16675_v5  ;;  %v16748_v5 = vld [vmem:[%s19164_s27 + $0x188] ss:$16 sps:$4 sm:$0xff]  }
0x1597   :  { %9908 = vmatpush1.bf16.msra.mxu0 %v16673_v57  ;;  %v16753_v57 = vld [vmem:[%s19164_s27 + $0x1ac] ss:$16 sps:$4 sm:$0xff]  }
0x1598   :  { %9909 = vmatprep.subr.bf16.mxu0 %v16678_v16  ;;  %v16751_v16 = vld [vmem:[%s19164_s27 + $0x1a8] ss:$16 sps:$4 sm:$0xff]  }
0x159b   :  { %9910 = vmatpush1.bf16.msra.mxu0 %v16676_v58  ;;  %v16756_v58 = vld [vmem:[%s19164_s27 + $0x1cc] ss:$16 sps:$4 sm:$0xff]  }
0x159c   :  { %9911 = vmatprep.subr.bf16.mxu0 %v16681_v12  ;;  %v16754_v12 = vld [vmem:[%s19164_s27 + $0x1c8] ss:$16 sps:$4 sm:$0xff]  }
0x159f   :  { %9912 = vmatpush1.bf16.msra.mxu0 %v16679_v59  ;;  %v16759_v59 = vld [vmem:[%s19164_s27 + $0x1ec] ss:$16 sps:$4 sm:$0xff]  }
0x15a0   :  { %9913 = vmatprep.subr.bf16.mxu0 %v16684_v11  ;;  %v8148_v20 = vpop.f32.mrb[192].mxu1  ;;  %v16757_v11 = vld [vmem:[%s19164_s27 + $0x1e8] ss:$16 sps:$4 sm:$0xff]  }
0x15a1   :  { %v8150_v0 = vpop.f32.mrb[193].mxu1  ;;  %v18713_v40 = vpack.c.bf16 %v8148_v20, %v8148_v20 }
0x15a2   :  { %v18692_v2 = vpack.c.bf16 %v8150_v0, %v8150_v0  ;;  %v8152_v4 = vpop.f32.mrb[194].mxu1 }
0x15a3   :  { %9914 = vmatpush1.bf16.msra.mxu0 %v16682_v46  ;;  %v8153_v6 = vpop.f32.mrb[195].mxu1 }
0x15a4   :  { %9915 = vmatprep.subr.bf16.mxu0 %v16687_v29  ;;  %9933 = vmatprep.mubr.bf16.mxu0 %v18692_v2  ;;  %v16762_v29 = vld [vmem:[%s19164_s27 + $0x20c] ss:$16 sps:$4 sm:$0xff]  }
0x15a5   :  { %v16765_v6 = vld [vmem:[%s19164_s27 + $0x22c] ss:$16 sps:$4 sm:$0xff]  }
0x15a7   :  { %9916 = vmatpush1.bf16.msra.mxu0 %v16685_v60  ;;  %v16760_v60 = vld [vmem:[%s19164_s27 + $0x208] ss:$16 sps:$4 sm:$0xff]  }
0x15a8   :  { %9917 = vmatprep.subr.bf16.mxu0 %v16690_v62  ;;  %v18748_v46 = vpop.f32.mrb[196].mxu1  ;;  %v16763_v62 = vld [vmem:[%s19164_s27 + $0x228] ss:$16 sps:$4 sm:$0xff]  }
0x15a9   :  { %v18751_v20 = vpop.f32.mrb[197].mxu1 }
0x15aa   :  { %v10067_v0 = vpop.f32.mrb[198].mxu1 }
0x15ab   :  { %9918 = vmatpush1.bf16.msra.mxu0 %v16688_v13  ;;  %v10068_v4 = vpop.f32.mrb[199].mxu1  ;;  %v16768_v13 = vld [vmem:[%s19164_s27 + $0x24c] ss:$16 sps:$4 sm:$0xff]   ;;  %v16835_v0 = vld [vmem:[%s19164_s27 + $0x920] ss:$16 sps:$4 sm:$0xff]  }
0x15ac   :  { %9919 = vmatprep.subr.bf16.mxu0 %v16693_v7  ;;  %v16766_v7 = vld [vmem:[%s19164_s27 + $0x248] ss:$16 sps:$4 sm:$0xff]   ;;  %v16840_v4 = vld [vmem:[%s19164_s27 + $0x944] ss:$16 sps:$4 sm:$0xff]  }
0x15af   :  { %9920 = vmatpush1.bf16.msra.mxu0 %v16691_v8  ;;  %v16771_v8 = vld [vmem:[%s19164_s27 + $0x26c] ss:$16 sps:$4 sm:$0xff]  }
0x15b0   :  { %9921 = vmatprep.subr.bf16.mxu0 %v16696_v10  ;;  %v16769_v10 = vld [vmem:[%s19164_s27 + $0x268] ss:$16 sps:$4 sm:$0xff]  }
0x15b3   :  { %9922 = vmatpush1.bf16.msra.mxu0 %v16694_v17  ;;  %v16772_v17 = vld [vmem:[%s19164_s27 + $0x288] ss:$16 sps:$4 sm:$0xff]  }
0x15b4   :  { %9923 = vmatprep.subr.bf16.mxu0 %v16699_v18  ;;  %v16775_v18 = vld [vmem:[%s19164_s27 + $0x2a8] ss:$16 sps:$4 sm:$0xff]  }
0x15b7   :  { %9924 = vmatpush1.bf16.msra.mxu0 %v16697_v21  ;;  %v16780_v21 = vld [vmem:[%s19164_s27 + $0x2cc] ss:$16 sps:$4 sm:$0xff]  }
0x15b8   :  { %9925 = vmatprep.subr.bf16.mxu0 %v16702_v22  ;;  %v16778_v22 = vld [vmem:[%s19164_s27 + $0x2c8] ss:$16 sps:$4 sm:$0xff]  }
0x15bb   :  { %9926 = vmatpush1.bf16.msra.mxu0 %v16700_v23  ;;  %v16783_v23 = vld [vmem:[%s19164_s27 + $0x2ec] ss:$16 sps:$4 sm:$0xff]  }
0x15bc   :  { %9927 = vmatprep.subr.bf16.mxu0 %v16705_v28  ;;  %v16781_v28 = vld [vmem:[%s19164_s27 + $0x2e8] ss:$16 sps:$4 sm:$0xff]  }
0x15bf   :  { %9928 = vmatpush1.bf16.msra.mxu0 %v16703_v51  ;;  %v16786_v51 = vld [vmem:[%s19164_s27 + $0x30c] ss:$16 sps:$4 sm:$0xff]  }
0x15c0   :  { %9929 = vmatprep.subr.bf16.mxu0 %v16708_v30  ;;  %v16784_v30 = vld [vmem:[%s19164_s27 + $0x308] ss:$16 sps:$4 sm:$0xff]  }
0x15c3   :  { %9930 = vmatpush1.bf16.msra.mxu0 %v16706_v35  ;;  %v16789_v35 = vld [vmem:[%s19164_s27 + $0x32c] ss:$16 sps:$4 sm:$0xff]  }
0x15c4   :  { %9931 = vmatprep.subr.bf16.mxu0 %v16711_v37  ;;  %v16787_v37 = vld [vmem:[%s19164_s27 + $0x328] ss:$16 sps:$4 sm:$0xff]  }
0x15c7   :  { %9932 = vmatpush1.bf16.msra.mxu0 %v16709_v38  ;;  %v16792_v38 = vld [vmem:[%s19164_s27 + $0x34c] ss:$16 sps:$4 sm:$0xff]  }
0x15c8   :  { %9942 = vmatprep.subr.bf16.mxu0 %v16714_v39  ;;  %v16790_v39 = vld [vmem:[%s19164_s27 + $0x348] ss:$16 sps:$4 sm:$0xff]  }
0x15ca   :  { %9934 = vmatmul.mubr.bf16.vlgmr.msra.gmra.mrb[56].mxu0 %v18713_v40 }
0x15cb   :  { %9943 = vmatpush1.bf16.msra.mxu0 %v16712_v19  ;;  %9974 = vmatprep.mubr.bf16.mxu0 %v18638_v26  ;;  %v16729_v26 = vld [vmem:[%s19164_s27 + $0xac] ss:$16 sps:$4 sm:$0xff]  }
0x15cc   :  { %9944 = vmatprep.subr.bf16.mxu0 %v16717_v61  ;;  %v16795_v19 = vld [vmem:[%s19164_s27 + $0x36c] ss:$16 sps:$4 sm:$0xff]   ;;  %v16793_v61 = vld [vmem:[%s19164_s27 + $0x368] ss:$16 sps:$4 sm:$0xff]  }
0x15cf   :  { %9945 = vmatpush1.bf16.msra.mxu0 %v16715_v33  ;;  %v16798_v33 = vld [vmem:[%s19164_s27 + $0x38c] ss:$16 sps:$4 sm:$0xff]  }
0x15d0   :  { %9946 = vmatprep.subr.bf16.mxu0 %v16720_v41  ;;  %v16796_v41 = vld [vmem:[%s19164_s27 + $0x388] ss:$16 sps:$4 sm:$0xff]  }
0x15d3   :  { %9947 = vmatpush1.bf16.msra.mxu0 %v16718_v43  ;;  %v16801_v43 = vld [vmem:[%s19164_s27 + $0x3ac] ss:$16 sps:$4 sm:$0xff]  }
0x15d4   :  { %9948 = vmatprep.subr.bf16.mxu0 %v16723_v44  ;;  %v16799_v44 = vld [vmem:[%s19164_s27 + $0x3a8] ss:$16 sps:$4 sm:$0xff]  }
0x15d7   :  { %9949 = vmatpush1.bf16.msra.mxu0 %v16721_v45  ;;  %v16804_v45 = vld [vmem:[%s19164_s27 + $0x3cc] ss:$16 sps:$4 sm:$0xff]  }
0x15d8   :  { %9950 = vmatprep.subr.bf16.mxu0 %v16726_v47  ;;  %v16802_v47 = vld [vmem:[%s19164_s27 + $0x3c8] ss:$16 sps:$4 sm:$0xff]  }
0x15db   :  { %9951 = vmatpush1.bf16.msra.mxu0 %v16724_v48  ;;  %v16807_v48 = vld [vmem:[%s19164_s27 + $0x3ec] ss:$16 sps:$4 sm:$0xff]  }
0x15dc   :  { %9952 = vmatprep.subr.bf16.mxu0 %v16729_v26  ;;  %v16805_v26 = vld [vmem:[%s19164_s27 + $0x3e8] ss:$16 sps:$4 sm:$0xff]  }
0x15df   :  { %9953 = vmatpush1.bf16.msra.mxu0 %v16727_v63  ;;  %v18786_v63 = vpop.f32.mrb[200].mxu1 }
0x15e0   :  { %9954 = vmatprep.subr.bf16.mxu0 %v16732_v3  ;;  %v16810_v3 = vld [vmem:[%s19164_s27 + $0x804] ss:$16 sps:$4 sm:$0xff]  }
0x15e3   :  { %9955 = vmatpush1.bf16.msra.mxu0 %v16730_v49  ;;  %v18789_v49 = vpop.f32.mrb[201].mxu1 }
0x15e4   :  { %9956 = vmatprep.subr.bf16.mxu0 %v16735_v50  ;;  %v10108_v50 = vpop.f32.mrb[202].mxu1 }
0x15e5   :  { %v16886_v50 = vld [vmem:[%s19164_s27 + $0xb40] ss:$16 sps:$4 sm:$0xff]  }
0x15e7   :  { %9957 = vmatpush1.bf16.msra.mxu0 %v16733_v24  ;;  %v10109_v24 = vpop.f32.mrb[203].mxu1 }
0x15e8   :  { %9958 = vmatprep.subr.bf16.mxu0 %v16738_v25  ;;  %v16808_v25 = vld [vmem:[%s19164_s27 + $0x800] ss:$16 sps:$4 sm:$0xff]   ;;  %v16891_v24 = vld [vmem:[%s19164_s27 + $0xb64] ss:$16 sps:$4 sm:$0xff]  }
0x15eb   :  { %9959 = vmatpush1.bf16.msra.mxu0 %v16736_v42  ;;  %v18794_v42 = vpack.c.bf16 %v18751_v20, %v18751_v20  ;;  %v16837_v20 = vld [vmem:[%s19164_s27 + $0x924] ss:$16 sps:$4 sm:$0xff]  }
0x15ec   :  { %9960 = vmatprep.subr.bf16.mxu0 %v16741_v27  ;;  %v16813_v27 = vld [vmem:[%s19164_s27 + $0x824] ss:$16 sps:$4 sm:$0xff]  }
0x15ef   :  { %9961 = vmatpush1.bf16.msra.mxu0 %v16739_v53  ;;  %v16811_v53 = vld [vmem:[%s19164_s27 + $0x820] ss:$16 sps:$4 sm:$0xff]  }
0x15f0   :  { %9962 = vmatprep.subr.bf16.mxu0 %v16744_v1  ;;  %v16816_v1 = vld [vmem:[%s19164_s27 + $0x844] ss:$16 sps:$4 sm:$0xff]  }
0x15f3   :  { %9963 = vmatpush1.bf16.msra.mxu0 %v16742_v36  ;;  %v16814_v36 = vld [vmem:[%s19164_s27 + $0x840] ss:$16 sps:$4 sm:$0xff]  }
0x15f4   :  { %9964 = vmatprep.subr.bf16.mxu0 %v16747_v55  ;;  %v16819_v55 = vld [vmem:[%s19164_s27 + $0x864] ss:$16 sps:$4 sm:$0xff]  }
0x15f7   :  { %9965 = vmatpush1.bf16.msra.mxu0 %v16745_v52  ;;  %v16817_v52 = vld [vmem:[%s19164_s27 + $0x860] ss:$16 sps:$4 sm:$0xff]  }
0x15f8   :  { %9966 = vmatprep.subr.bf16.mxu0 %v16750_v56  ;;  %v16820_v56 = vld [vmem:[%s19164_s27 + $0x880] ss:$16 sps:$4 sm:$0xff]  }
0x15fb   :  { %9967 = vmatpush1.bf16.msra.mxu0 %v16748_v5  ;;  %v16825_v5 = vld [vmem:[%s19164_s27 + $0x8a4] ss:$16 sps:$4 sm:$0xff]  }
0x15fc   :  { %9968 = vmatprep.subr.bf16.mxu0 %v16753_v57  ;;  %v16823_v57 = vld [vmem:[%s19164_s27 + $0x8a0] ss:$16 sps:$4 sm:$0xff]  }
0x15ff   :  { %9969 = vmatpush1.bf16.msra.mxu0 %v16751_v16  ;;  %v16828_v16 = vld [vmem:[%s19164_s27 + $0x8c4] ss:$16 sps:$4 sm:$0xff]  }
0x1600   :  { %9970 = vmatprep.subr.bf16.mxu0 %v16756_v58  ;;  %v16826_v58 = vld [vmem:[%s19164_s27 + $0x8c0] ss:$16 sps:$4 sm:$0xff]  }
0x1603   :  { %9971 = vmatpush1.bf16.msra.mxu0 %v16754_v12  ;;  %v16831_v12 = vld [vmem:[%s19164_s27 + $0x8e4] ss:$16 sps:$4 sm:$0xff]  }
0x1604   :  { %9972 = vmatprep.subr.bf16.mxu0 %v16759_v59  ;;  %v16829_v59 = vld [vmem:[%s19164_s27 + $0x8e0] ss:$16 sps:$4 sm:$0xff]  }
0x1607   :  { %9973 = vmatpush1.bf16.msra.mxu0 %v16757_v11  ;;  %v16834_v11 = vld [vmem:[%s19164_s27 + $0x904] ss:$16 sps:$4 sm:$0xff]  }
0x1608   :  { %9983 = vmatprep.subr.bf16.mxu0 %v16762_v29  ;;  %v16832_v29 = vld [vmem:[%s19164_s27 + $0x900] ss:$16 sps:$4 sm:$0xff]  }
0x160a   :  { %9975 = vmatmul.mubr.bf16.vlgmr.msra.gmra.mrb[60].mxu0 %v18675_v54  ;;  %v16774_v54 = vld [vmem:[%s19164_s27 + $0x28c] ss:$16 sps:$4 sm:$0xff]  }
0x160b   :  { %9984 = vmatpush1.bf16.msra.mxu0 %v16760_v60  ;;  %10015 = vmatprep.mubr.bf16.mxu0 %v18692_v2  ;;  %v16777_v2 = vld [vmem:[%s19164_s27 + $0x2ac] ss:$16 sps:$4 sm:$0xff]   ;;  %v16838_v60 = vld [vmem:[%s19164_s27 + $0x940] ss:$16 sps:$4 sm:$0xff]  }
0x160c   :  { %9985 = vmatprep.subr.bf16.mxu0 %v16765_v6  ;;  %v16843_v6 = vld [vmem:[%s19164_s27 + $0x964] ss:$16 sps:$4 sm:$0xff]  }
0x160f   :  { %9986 = vmatpush1.bf16.msra.mxu0 %v16763_v62  ;;  %v16841_v62 = vld [vmem:[%s19164_s27 + $0x960] ss:$16 sps:$4 sm:$0xff]  }
0x1610   :  { %9987 = vmatprep.subr.bf16.mxu0 %v16768_v13  ;;  %v16846_v13 = vld [vmem:[%s19164_s27 + $0x984] ss:$16 sps:$4 sm:$0xff]  }
0x1613   :  { %9988 = vmatpush1.bf16.msra.mxu0 %v16766_v7  ;;  %v16844_v7 = vld [vmem:[%s19164_s27 + $0x980] ss:$16 sps:$4 sm:$0xff]  }
0x1614   :  { %9989 = vmatprep.subr.bf16.mxu0 %v16771_v8  ;;  %v16849_v8 = vld [vmem:[%s19164_s27 + $0x9a4] ss:$16 sps:$4 sm:$0xff]  }
0x1617   :  { %9990 = vmatpush1.bf16.msra.mxu0 %v16769_v10  ;;  %v16847_v10 = vld [vmem:[%s19164_s27 + $0x9a0] ss:$16 sps:$4 sm:$0xff]  }
0x1618   :  { %9991 = vmatprep.subr.bf16.mxu0 %v16774_v54  ;;  %v16852_v54 = vld [vmem:[%s19164_s27 + $0x9c4] ss:$16 sps:$4 sm:$0xff]  }
0x161b   :  { %9992 = vmatpush1.bf16.msra.mxu0 %v16772_v17  ;;  %v16850_v17 = vld [vmem:[%s19164_s27 + $0x9c0] ss:$16 sps:$4 sm:$0xff]  }
0x161c   :  { %9993 = vmatprep.subr.bf16.mxu0 %v16777_v2  ;;  %v16855_v2 = vld [vmem:[%s19164_s27 + $0x9e4] ss:$16 sps:$4 sm:$0xff]  }
0x161f   :  { %9994 = vmatpush1.bf16.msra.mxu0 %v16775_v18  ;;  %v16853_v18 = vld [vmem:[%s19164_s27 + $0x9e0] ss:$16 sps:$4 sm:$0xff]  }
0x1620   :  { %9995 = vmatprep.subr.bf16.mxu0 %v16780_v21  ;;  %v16858_v21 = vld [vmem:[%s19164_s27 + $0xa04] ss:$16 sps:$4 sm:$0xff]  }
0x1623   :  { %9996 = vmatpush1.bf16.msra.mxu0 %v16778_v22  ;;  %v18831_v22 = vpack.c.bf16 %v18748_v46, %v18748_v46  ;;  %v16864_v46 = vld [vmem:[%s19164_s27 + $0xa44] ss:$16 sps:$4 sm:$0xff]  }
0x1624   :  { %9997 = vmatprep.subr.bf16.mxu0 %v16783_v23  ;;  %v16856_v23 = vld [vmem:[%s19164_s27 + $0xa00] ss:$16 sps:$4 sm:$0xff]  }
0x1627   :  { %9998 = vmatpush1.bf16.msra.mxu0 %v16781_v28  ;;  %v18836_v28 = vpack.c.bf16 %v18789_v49, %v18789_v49  ;;  %v16888_v49 = vld [vmem:[%s19164_s27 + $0xb44] ss:$16 sps:$4 sm:$0xff]  }
0x1628   :  { %9999 = vmatprep.subr.bf16.mxu0 %v16786_v51  ;;  %v16861_v51 = vld [vmem:[%s19164_s27 + $0xa24] ss:$16 sps:$4 sm:$0xff]  }
0x162b   :  { %10000 = vmatpush1.bf16.msra.mxu0 %v16784_v30  ;;  %v16859_v30 = vld [vmem:[%s19164_s27 + $0xa20] ss:$16 sps:$4 sm:$0xff]  }
0x162c   :  { %10001 = vmatprep.subr.bf16.mxu0 %v16789_v35  ;;  %v16862_v35 = vld [vmem:[%s19164_s27 + $0xa40] ss:$16 sps:$4 sm:$0xff]  }
0x162f   :  { %10002 = vmatpush1.bf16.msra.mxu0 %v16787_v37  ;;  %v16867_v37 = vld [vmem:[%s19164_s27 + $0xa64] ss:$16 sps:$4 sm:$0xff]  }
0x1630   :  { %10003 = vmatprep.subr.bf16.mxu0 %v16792_v38  ;;  %v16865_v38 = vld [vmem:[%s19164_s27 + $0xa60] ss:$16 sps:$4 sm:$0xff]  }
0x1633   :  { %10004 = vmatpush1.bf16.msra.mxu0 %v16790_v39  ;;  %v16870_v39 = vld [vmem:[%s19164_s27 + $0xa84] ss:$16 sps:$4 sm:$0xff]  }
0x1634   :  { %10005 = vmatprep.subr.bf16.mxu0 %v16795_v19  ;;  %v16868_v19 = vld [vmem:[%s19164_s27 + $0xa80] ss:$16 sps:$4 sm:$0xff]  }
0x1637   :  { %10006 = vmatpush1.bf16.msra.mxu0 %v16793_v61  ;;  %v16873_v61 = vld [vmem:[%s19164_s27 + $0xaa4] ss:$16 sps:$4 sm:$0xff]  }
0x1638   :  { %10007 = vmatprep.subr.bf16.mxu0 %v16798_v33  ;;  %v16871_v33 = vld [vmem:[%s19164_s27 + $0xaa0] ss:$16 sps:$4 sm:$0xff]  }
0x163b   :  { %10008 = vmatpush1.bf16.msra.mxu0 %v16796_v41  ;;  %v16876_v41 = vld [vmem:[%s19164_s27 + $0xac4] ss:$16 sps:$4 sm:$0xff]  }
0x163c   :  { %10009 = vmatprep.subr.bf16.mxu0 %v16801_v43  ;;  %v16874_v43 = vld [vmem:[%s19164_s27 + $0xac0] ss:$16 sps:$4 sm:$0xff]  }
0x163f   :  { %10010 = vmatpush1.bf16.msra.mxu0 %v16799_v44  ;;  %v16879_v44 = vld [vmem:[%s19164_s27 + $0xae4] ss:$16 sps:$4 sm:$0xff]  }
0x1640   :  { %10011 = vmatprep.subr.bf16.mxu0 %v16804_v45  ;;  %v16877_v45 = vld [vmem:[%s19164_s27 + $0xae0] ss:$16 sps:$4 sm:$0xff]  }
0x1643   :  { %10012 = vmatpush1.bf16.msra.mxu0 %v16802_v47  ;;  %v16882_v47 = vld [vmem:[%s19164_s27 + $0xb04] ss:$16 sps:$4 sm:$0xff]  }
0x1644   :  { %10013 = vmatprep.subr.bf16.mxu0 %v16807_v48  ;;  %v16880_v48 = vld [vmem:[%s19164_s27 + $0xb00] ss:$16 sps:$4 sm:$0xff]  }
0x1647   :  { %10014 = vmatpush1.bf16.msra.mxu0 %v16805_v26  ;;  %v16885_v26 = vld [vmem:[%s19164_s27 + $0xb24] ss:$16 sps:$4 sm:$0xff]  }
0x1648   :  { %10884 = vmatprep.subr.bf16.mxu0 %v16810_v3  ;;  %v16883_v3 = vld [vmem:[%s19164_s27 + $0xb20] ss:$16 sps:$4 sm:$0xff]  }
0x164a   :  { %10016 = vmatmul.mubr.bf16.vlgmr.msra.gmra.mrb[60].mxu0 %v18713_v40  ;;  %v16822_v40 = vld [vmem:[%s19164_s27 + $0x884] ss:$16 sps:$4 sm:$0xff]  }
0x164b   :  { %10885 = vmatpush1.bf16.msra.mxu0 %v16808_v25  ;;  %10916 = vmatprep.mubr.bf16.mxu0 %v18794_v42  ;;  %v16889_v25 = vld [vmem:[%s19164_s27 + $0xb60] ss:$16 sps:$4 sm:$0xff]  }
0x164c   :  { %10886 = vmatprep.subr.bf16.mxu0 %v16813_v27  ;;  %v16894_v27 = vld [vmem:[%s19164_s27 + $0xb84] ss:$16 sps:$4 sm:$0xff]  }
0x164f   :  { %10887 = vmatpush1.bf16.msra.mxu0 %v16811_v53  ;;  %v16892_v53 = vld [vmem:[%s19164_s27 + $0xb80] ss:$16 sps:$4 sm:$0xff]  }
0x1650   :  { %10888 = vmatprep.subr.bf16.mxu0 %v16816_v1  ;;  %v16897_v1 = vld [vmem:[%s19164_s27 + $0xba4] ss:$16 sps:$4 sm:$0xff]  }
0x1653   :  { %10889 = vmatpush1.bf16.msra.mxu0 %v16814_v36  ;;  %v16895_v36 = vld [vmem:[%s19164_s27 + $0xba0] ss:$16 sps:$4 sm:$0xff]  }
0x1654   :  { %10890 = vmatprep.subr.bf16.mxu0 %v16819_v55  ;;  %v16900_v55 = vld [vmem:[%s19164_s27 + $0xbc4] ss:$16 sps:$4 sm:$0xff]  }
0x1657   :  { %10891 = vmatpush1.bf16.msra.mxu0 %v16817_v52  ;;  %v16898_v52 = vld [vmem:[%s19164_s27 + $0xbc0] ss:$16 sps:$4 sm:$0xff]  }
0x1658   :  { %10892 = vmatprep.subr.bf16.mxu0 %v16822_v40  ;;  %v16903_v40 = vld [vmem:[%s19164_s27 + $0xbe4] ss:$16 sps:$4 sm:$0xff]  }
0x165b   :  { %10893 = vmatpush1.bf16.msra.mxu0 %v16820_v56  ;;  %v16901_v56 = vld [vmem:[%s19164_s27 + $0xbe0] ss:$16 sps:$4 sm:$0xff]  }
0x165c   :  { %10894 = vmatprep.subr.bf16.mxu0 %v16825_v5  ;;  %v16906_v5 = vld [vmem:[%s19164_s27 + $0x80c] ss:$16 sps:$4 sm:$0xff]  }
0x165f   :  { %10895 = vmatpush1.bf16.msra.mxu0 %v16823_v57  ;;  %v18873_v57 = vpack.c.bf16 %v18786_v63, %v18786_v63  ;;  %v16910_v63 = vld [vmem:[%s19164_s27 + $0x848] ss:$16 sps:$4 sm:$0xff]  }
0x1660   :  { %10896 = vmatprep.subr.bf16.mxu0 %v16828_v16  ;;  %v16904_v16 = vld [vmem:[%s19164_s27 + $0x808] ss:$16 sps:$4 sm:$0xff]  }
0x1663   :  { %10897 = vmatpush1.bf16.msra.mxu0 %v16826_v58  ;;  %v16909_v58 = vld [vmem:[%s19164_s27 + $0x82c] ss:$16 sps:$4 sm:$0xff]  }
0x1664   :  { %10898 = vmatprep.subr.bf16.mxu0 %v16831_v12  ;;  %v16907_v12 = vld [vmem:[%s19164_s27 + $0x828] ss:$16 sps:$4 sm:$0xff]  }
0x1667   :  { %10899 = vmatpush1.bf16.msra.mxu0 %v16829_v59  ;;  %v16912_v59 = vld [vmem:[%s19164_s27 + $0x84c] ss:$16 sps:$4 sm:$0xff]  }
0x1668   :  { %10900 = vmatprep.subr.bf16.mxu0 %v16834_v11  ;;  %v16915_v11 = vld [vmem:[%s19164_s27 + $0x86c] ss:$16 sps:$4 sm:$0xff]  }
0x166b   :  { %10901 = vmatpush1.bf16.msra.mxu0 %v16832_v29  ;;  %v16913_v29 = vld [vmem:[%s19164_s27 + $0x868] ss:$16 sps:$4 sm:$0xff]  }
0x166c   :  { %10902 = vmatprep.subr.bf16.mxu0 %v16837_v20  ;;  %v16918_v20 = vld [vmem:[%s19164_s27 + $0x88c] ss:$16 sps:$4 sm:$0xff]  }
0x166f   :  { %10903 = vmatpush1.bf16.msra.mxu0 %v16835_v0  ;;  %v16916_v0 = vld [vmem:[%s19164_s27 + $0x888] ss:$16 sps:$4 sm:$0xff]  }
0x1670   :  { %10904 = vmatprep.subr.bf16.mxu0 %v16840_v4  ;;  %v16919_v4 = vld [vmem:[%s19164_s27 + $0x8a8] ss:$16 sps:$4 sm:$0xff]  }
0x1673   :  { %10905 = vmatpush1.bf16.msra.mxu0 %v16838_v60  ;;  %v16924_v60 = vld [vmem:[%s19164_s27 + $0x8cc] ss:$16 sps:$4 sm:$0xff]  }
0x1674   :  { %10906 = vmatprep.subr.bf16.mxu0 %v16843_v6  ;;  %v16922_v6 = vld [vmem:[%s19164_s27 + $0x8c8] ss:$16 sps:$4 sm:$0xff]  }
0x1677   :  { %10907 = vmatpush1.bf16.msra.mxu0 %v16841_v62  ;;  %v16927_v62 = vld [vmem:[%s19164_s27 + $0x8ec] ss:$16 sps:$4 sm:$0xff]  }
0x1678   :  { %10908 = vmatprep.subr.bf16.mxu0 %v16846_v13  ;;  %v16925_v13 = vld [vmem:[%s19164_s27 + $0x8e8] ss:$16 sps:$4 sm:$0xff]  }
0x167b   :  { %10909 = vmatpush1.bf16.msra.mxu0 %v16844_v7  ;;  %v16930_v7 = vld [vmem:[%s19164_s27 + $0x90c] ss:$16 sps:$4 sm:$0xff]  }
0x167c   :  { %10910 = vmatprep.subr.bf16.mxu0 %v16849_v8  ;;  %v16928_v8 = vld [vmem:[%s19164_s27 + $0x908] ss:$16 sps:$4 sm:$0xff]  }
0x167f   :  { %10911 = vmatpush1.bf16.msra.mxu0 %v16847_v10  ;;  %v16933_v10 = vld [vmem:[%s19164_s27 + $0x92c] ss:$16 sps:$4 sm:$0xff]  }
0x1680   :  { %10912 = vmatprep.subr.bf16.mxu0 %v16852_v54  ;;  %v16931_v54 = vld [vmem:[%s19164_s27 + $0x928] ss:$16 sps:$4 sm:$0xff]  }
0x1683   :  { %10913 = vmatpush1.bf16.msra.mxu0 %v16850_v17  ;;  %v16936_v17 = vld [vmem:[%s19164_s27 + $0x94c] ss:$16 sps:$4 sm:$0xff]  }
0x1684   :  { %10914 = vmatprep.subr.bf16.mxu0 %v16855_v2  ;;  %v16934_v2 = vld [vmem:[%s19164_s27 + $0x948] ss:$16 sps:$4 sm:$0xff]  }
0x1687   :  { %10915 = vmatpush1.bf16.msra.mxu0 %v16853_v18  ;;  %v16939_v18 = vld [vmem:[%s19164_s27 + $0x96c] ss:$16 sps:$4 sm:$0xff]  }
0x1688   :  { %10925 = vmatprep.subr.bf16.mxu0 %v16858_v21  ;;  %v16937_v21 = vld [vmem:[%s19164_s27 + $0x968] ss:$16 sps:$4 sm:$0xff]  }
0x168a   :  { %10917 = vmatmul.mubr.bf16.vlgmr.msra.gmra.mrb[56].mxu0 %v18831_v22 }
0x168b   :  { %10926 = vmatpush1.bf16.msra.mxu0 %v16856_v23  ;;  %10957 = vmatprep.mubr.bf16.mxu0 %v18836_v28  ;;  %v16942_v23 = vld [vmem:[%s19164_s27 + $0x98c] ss:$16 sps:$4 sm:$0xff]  }
0x168c   :  { %10927 = vmatprep.subr.bf16.mxu0 %v16861_v51  ;;  %v16940_v51 = vld [vmem:[%s19164_s27 + $0x988] ss:$16 sps:$4 sm:$0xff]  }
0x168f   :  { %10928 = vmatpush1.bf16.msra.mxu0 %v16859_v30  ;;  %v16945_v30 = vld [vmem:[%s19164_s27 + $0x9ac] ss:$16 sps:$4 sm:$0xff]  }
0x1690   :  { %10929 = vmatprep.subr.bf16.mxu0 %v16864_v46  ;;  %v16943_v46 = vld [vmem:[%s19164_s27 + $0x9a8] ss:$16 sps:$4 sm:$0xff]  }
0x1693   :  { %10930 = vmatpush1.bf16.msra.mxu0 %v16862_v35  ;;  %v16948_v35 = vld [vmem:[%s19164_s27 + $0x9cc] ss:$16 sps:$4 sm:$0xff]  }
0x1694   :  { %10931 = vmatprep.subr.bf16.mxu0 %v16867_v37  ;;  %v16946_v37 = vld [vmem:[%s19164_s27 + $0x9c8] ss:$16 sps:$4 sm:$0xff]  }
0x1697   :  { %10932 = vmatpush1.bf16.msra.mxu0 %v16865_v38  ;;  %v16951_v38 = vld [vmem:[%s19164_s27 + $0x9ec] ss:$16 sps:$4 sm:$0xff]  }
0x1698   :  { %10933 = vmatprep.subr.bf16.mxu0 %v16870_v39  ;;  %v16949_v39 = vld [vmem:[%s19164_s27 + $0x9e8] ss:$16 sps:$4 sm:$0xff]  }
0x169b   :  { %10934 = vmatpush1.bf16.msra.mxu0 %v16868_v19  ;;  %v16954_v19 = vld [vmem:[%s19164_s27 + $0xa0c] ss:$16 sps:$4 sm:$0xff]  }
0x169c   :  { %10935 = vmatprep.subr.bf16.mxu0 %v16873_v61  ;;  %v16952_v61 = vld [vmem:[%s19164_s27 + $0xa08] ss:$16 sps:$4 sm:$0xff]  }
0x169f   :  { %10936 = vmatpush1.bf16.msra.mxu0 %v16871_v33  ;;  %v16957_v33 = vld [vmem:[%s19164_s27 + $0xa2c] ss:$16 sps:$4 sm:$0xff]  }
0x16a0   :  { %10937 = vmatprep.subr.bf16.mxu0 %v16876_v41  ;;  %v16955_v41 = vld [vmem:[%s19164_s27 + $0xa28] ss:$16 sps:$4 sm:$0xff]  }
0x16a3   :  { %10938 = vmatpush1.bf16.msra.mxu0 %v16874_v43  ;;  %v16960_v43 = vld [vmem:[%s19164_s27 + $0xa4c] ss:$16 sps:$4 sm:$0xff]  }
0x16a4   :  { %10939 = vmatprep.subr.bf16.mxu0 %v16879_v44  ;;  %v16958_v44 = vld [vmem:[%s19164_s27 + $0xa48] ss:$16 sps:$4 sm:$0xff]  }
0x16a7   :  { %10940 = vmatpush1.bf16.msra.mxu0 %v16877_v45  ;;  %v16963_v45 = vld [vmem:[%s19164_s27 + $0xa6c] ss:$16 sps:$4 sm:$0xff]  }
0x16a8   :  { %10941 = vmatprep.subr.bf16.mxu0 %v16882_v47  ;;  %v16961_v47 = vld [vmem:[%s19164_s27 + $0xa68] ss:$16 sps:$4 sm:$0xff]  }
0x16ab   :  { %10942 = vmatpush1.bf16.msra.mxu0 %v16880_v48  ;;  %v16964_v48 = vld [vmem:[%s19164_s27 + $0xa88] ss:$16 sps:$4 sm:$0xff]  }
0x16ac   :  { %10943 = vmatprep.subr.bf16.mxu0 %v16885_v26  ;;  %v16967_v26 = vld [vmem:[%s19164_s27 + $0xaa8] ss:$16 sps:$4 sm:$0xff]  }
0x16af   :  { %10944 = vmatpush1.bf16.msra.mxu0 %v16883_v3  ;;  %v16972_v3 = vld [vmem:[%s19164_s27 + $0xacc] ss:$16 sps:$4 sm:$0xff]  }
0x16b0   :  { %10945 = vmatprep.subr.bf16.mxu0 %v16888_v49  ;;  %v16970_v49 = vld [vmem:[%s19164_s27 + $0xac8] ss:$16 sps:$4 sm:$0xff]  }
0x16b3   :  { %10946 = vmatpush1.bf16.msra.mxu0 %v16886_v50  ;;  %v16975_v50 = vld [vmem:[%s19164_s27 + $0xaec] ss:$16 sps:$4 sm:$0xff]  }
0x16b4   :  { %10947 = vmatprep.subr.bf16.mxu0 %v16891_v24  ;;  %v16973_v24 = vld [vmem:[%s19164_s27 + $0xae8] ss:$16 sps:$4 sm:$0xff]  }
0x16b7   :  { %10948 = vmatpush1.bf16.msra.mxu0 %v16889_v25  ;;  %v16978_v25 = vld [vmem:[%s19164_s27 + $0xb0c] ss:$16 sps:$4 sm:$0xff]  }
0x16b8   :  { %10949 = vmatprep.subr.bf16.mxu0 %v16894_v27  ;;  %v16976_v27 = vld [vmem:[%s19164_s27 + $0xb08] ss:$16 sps:$4 sm:$0xff]  }
0x16bb   :  { %10950 = vmatpush1.bf16.msra.mxu0 %v16892_v53  ;;  %v16981_v53 = vld [vmem:[%s19164_s27 + $0xb2c] ss:$16 sps:$4 sm:$0xff]  }
0x16bc   :  { %10951 = vmatprep.subr.bf16.mxu0 %v16897_v1  ;;  %v16979_v1 = vld [vmem:[%s19164_s27 + $0xb28] ss:$16 sps:$4 sm:$0xff]  }
0x16bf   :  { %10952 = vmatpush1.bf16.msra.mxu0 %v16895_v36  ;;  %v16984_v36 = vld [vmem:[%s19164_s27 + $0xb4c] ss:$16 sps:$4 sm:$0xff]  }
0x16c0   :  { %10953 = vmatprep.subr.bf16.mxu0 %v16900_v55  ;;  %v16982_v55 = vld [vmem:[%s19164_s27 + $0xb48] ss:$16 sps:$4 sm:$0xff]  }
0x16c3   :  { %10954 = vmatpush1.bf16.msra.mxu0 %v16898_v52  ;;  %v16987_v52 = vld [vmem:[%s19164_s27 + $0xb6c] ss:$16 sps:$4 sm:$0xff]  }
0x16c4   :  { %10955 = vmatprep.subr.bf16.mxu0 %v16903_v40  ;;  %v16985_v40 = vld [vmem:[%s19164_s27 + $0xb68] ss:$16 sps:$4 sm:$0xff]  }
0x16c7   :  { %10956 = vmatpush1.bf16.msra.mxu0 %v16901_v56  ;;  %v16990_v56 = vld [vmem:[%s19164_s27 + $0xb8c] ss:$16 sps:$4 sm:$0xff]  }
0x16c8   :  { %10966 = vmatprep.subr.bf16.mxu0 %v16906_v5  ;;  %v16988_v5 = vld [vmem:[%s19164_s27 + $0xb88] ss:$16 sps:$4 sm:$0xff]  }
0x16ca   :  { %10958 = vmatmul.mubr.bf16.vlgmr.msra.gmra.mrb[56].mxu0 %v18873_v57 }
0x16cb   :  { %10967 = vmatpush1.bf16.msra.mxu0 %v16904_v16  ;;  %10998 = vmatprep.mubr.bf16.mxu0 %v18794_v42  ;;  %v16921_v42 = vld [vmem:[%s19164_s27 + $0x8ac] ss:$16 sps:$4 sm:$0xff]  }
0x16cc   :  { %10968 = vmatprep.subr.bf16.mxu0 %v16909_v58  ;;  %v16993_v16 = vld [vmem:[%s19164_s27 + $0xbac] ss:$16 sps:$4 sm:$0xff]   ;;  %v16991_v58 = vld [vmem:[%s19164_s27 + $0xba8] ss:$16 sps:$4 sm:$0xff]  }
0x16cf   :  { %10969 = vmatpush1.bf16.msra.mxu0 %v16907_v12  ;;  %v16996_v12 = vld [vmem:[%s19164_s27 + $0xbcc] ss:$16 sps:$4 sm:$0xff]  }
0x16d0   :  { %10970 = vmatprep.subr.bf16.mxu0 %v16912_v59  ;;  %v16994_v59 = vld [vmem:[%s19164_s27 + $0xbc8] ss:$16 sps:$4 sm:$0xff]  }
0x16d3   :  { %10971 = vmatpush1.bf16.msra.mxu0 %v16910_v63  ;;  %v16999_v63 = vld [vmem:[%s19164_s27 + $0xbec] ss:$16 sps:$4 sm:$0xff]  }
0x16d4   :  { %10972 = vmatprep.subr.bf16.mxu0 %v16915_v11  ;;  %v16997_v11 = vld [vmem:[%s19164_s27 + $0xbe8] ss:$16 sps:$4 sm:$0xff]  }
0x16d7   :  { %10973 = vmatpush1.bf16.msra.mxu0 %v16913_v29  ;;  %v13193_v29 = vld [vmem:[%s19165_s15 + $0x2] ss:$4 sm:$0xf] }
0x16d8   :  { %10974 = vmatprep.subr.bf16.mxu0 %v16918_v20  ;;  %v14227_v20 = vld [vmem:[%s19165_s15 + $0x1] ss:$4 sm:$0xf] }
0x16db   :  { %10975 = vmatpush1.bf16.msra.mxu0 %v16916_v0  ;;  %v6194_v0 = vrot.slane %v13193_v29, %v17520_v14 }
0x16dc   :  { %10976 = vmatprep.subr.bf16.mxu0 %v16921_v42  ;;  %v6198_v42 = vrot.slane %v13193_v29, %v17523_v15 }
0x16df   :  { %10977 = vmatpush1.bf16.msra.mxu0 %v16919_v4  ;;  %v11058_v4 = vrot.slane %v14227_v20, %v17520_v14  ;;  %v11087_v14 = vld [vmem:[%s19167_s18] sm:$0x1] }
0x16e0   :  { %10978 = vmatprep.subr.bf16.mxu0 %v16924_v60 }
0x16e3   :  { %10979 = vmatpush1.bf16.msra.mxu0 %v16922_v6  ;;  %v11062_v6 = vrot.slane %v14227_v20, %v17523_v15  ;;  %v6202_v15 = vrot.slane %v13193_v29, %v18536_v32 }
0x16e4   :  { %10980 = vmatprep.subr.bf16.mxu0 %v16927_v62 }
0x16e7   :  { %10981 = vmatpush1.bf16.msra.mxu0 %v16925_v13 }
0x16e8   :  { %10982 = vmatprep.subr.bf16.mxu0 %v16930_v7 }
0x16eb   :  { %10983 = vmatpush1.bf16.msra.mxu0 %v16928_v8 }
0x16ec   :  { %10984 = vmatprep.subr.bf16.mxu0 %v16933_v10 }
0x16ef   :  { %10985 = vmatpush1.bf16.msra.mxu0 %v16931_v54 }
0x16f0   :  { %10986 = vmatprep.subr.bf16.mxu0 %v16936_v17 }
0x16f3   :  { %10987 = vmatpush1.bf16.msra.mxu0 %v16934_v2 }
0x16f4   :  { %10988 = vmatprep.subr.bf16.mxu0 %v16939_v18 }
0x16f7   :  { %10989 = vmatpush1.bf16.msra.mxu0 %v16937_v21 }
0x16f8   :  { %10990 = vmatprep.subr.bf16.mxu0 %v16942_v23 }
0x16fb   :  { %10991 = vmatpush1.bf16.msra.mxu0 %v16940_v51  ;;  %v6206_v51 = vrot.slane %v13193_v29, %v18539_v31 }
0x16fc   :  { %10992 = vmatprep.subr.bf16.mxu0 %v16945_v30  ;;  %v11066_v30 = vrot.slane %v14227_v20, %v18536_v32  ;;  %v11339_v32 = vld [vmem:[%s19168_s22] sm:$0x1] }
0x16ff   :  { %10993 = vmatpush1.bf16.msra.mxu0 %v16943_v46 }
0x1700   :  { %10994 = vmatprep.subr.bf16.mxu0 %v16948_v35  ;;  %v11070_v35 = vrot.slane %v14227_v20, %v18539_v31  ;;  %v14236_v31 = vld [vmem:[%s19168_s22 + $0x1] sm:$0x1] }
0x1703   :  { %10995 = vmatpush1.bf16.msra.mxu0 %v16946_v37 }
0x1704   :  { %10996 = vmatprep.subr.bf16.mxu0 %v16951_v38 }
0x1707   :  { %10997 = vmatpush1.bf16.msra.mxu0 %v16949_v39 }
0x1708   :  { %11007 = vmatprep.subr.bf16.mxu0 %v16954_v19 }
0x170a   :  { %10999 = vmatmul.mubr.bf16.vlgmr.msra.gmra.mrb[60].mxu0 %v18831_v22  ;;  %v16966_v22 = vld [vmem:[%s19164_s27 + $0xa8c] ss:$16 sps:$4 sm:$0xff]  }
0x170b   :  { %11008 = vmatpush1.bf16.msra.mxu0 %v16952_v61  ;;  %11039 = vmatprep.mubr.bf16.mxu0 %v18836_v28  ;;  %v16969_v28 = vld [vmem:[%s19164_s27 + $0xaac] ss:$16 sps:$4 sm:$0xff]  }
0x170c   :  { %11009 = vmatprep.subr.bf16.mxu0 %v16957_v33 }
0x170f   :  { %11010 = vmatpush1.bf16.msra.mxu0 %v16955_v41 }
0x1710   :  { %11011 = vmatprep.subr.bf16.mxu0 %v16960_v43 }
0x1713   :  { %11012 = vmatpush1.bf16.msra.mxu0 %v16958_v44 }
0x1714   :  { %11013 = vmatprep.subr.bf16.mxu0 %v16963_v45 }
0x1717   :  { %11014 = vmatpush1.bf16.msra.mxu0 %v16961_v47 }
0x1718   :  { %11015 = vmatprep.subr.bf16.mxu0 %v16966_v22 }
0x171b   :  { %11016 = vmatpush1.bf16.msra.mxu0 %v16964_v48  ;;  %v14241_v48 = vld [vmem:[%s19168_s22 + $0x2] sm:$0x1] }
0x171c   :  { %11017 = vmatprep.subr.bf16.mxu0 %v16969_v28  ;;  %v14246_v28 = vld [vmem:[%s19168_s22 + $0x3] sm:$0x1] }
0x171f   :  { %11018 = vmatpush1.bf16.msra.mxu0 %v16967_v26 }
0x1720   :  { %11019 = vmatprep.subr.bf16.mxu0 %v16972_v3 }
0x1723   :  { %11020 = vmatpush1.bf16.msra.mxu0 %v16970_v49 }
0x1724   :  { %11021 = vmatprep.subr.bf16.mxu0 %v16975_v50 }
0x1727   :  { %11022 = vmatpush1.bf16.msra.mxu0 %v16973_v24  ;;  %v17000_v24 = vld [vmem:[%s19169_s23 + $0x40] sm:$0xff]  }
0x1728   :  { %11023 = vmatprep.subr.bf16.mxu0 %v16978_v25  ;;  %v17001_v25 = vld [vmem:[%s19169_s23] sm:$0xff]  }
0x172b   :  { %11024 = vmatpush1.bf16.msra.mxu0 %v16976_v27  ;;  %v17002_v27 = vld [vmem:[%s19169_s23 + $0x48] sm:$0xff]  }
0x172c   :  { %11025 = vmatprep.subr.bf16.mxu0 %v16981_v53  ;;  %v17003_v53 = vld [vmem:[%s19169_s23 + $0x8] sm:$0xff]  }
0x172f   :  { %11026 = vmatpush1.bf16.msra.mxu0 %v16979_v1  ;;  %v17005_v1 = vld [vmem:[%s19169_s23 + $0x10] sm:$0xff]  }
0x1730   :  { %11027 = vmatprep.subr.bf16.mxu0 %v16984_v36  ;;  %v17006_v36 = vld [vmem:[%s19169_s23 + $0x58] sm:$0xff]  }
0x1733   :  { %11028 = vmatpush1.bf16.msra.mxu0 %v16982_v55  ;;  %v17007_v55 = vld [vmem:[%s19169_s23 + $0x18] sm:$0xff]  }
0x1734   :  { %11029 = vmatprep.subr.bf16.mxu0 %v16987_v52  ;;  %v17008_v52 = vld [vmem:[%s19169_s23 + $0x60] sm:$0xff]  }
0x1737   :  { %11030 = vmatpush1.bf16.msra.mxu0 %v16985_v40  ;;  %v17009_v40 = vld [vmem:[%s19169_s23 + $0x20] sm:$0xff]  }
0x1738   :  { %11031 = vmatprep.subr.bf16.mxu0 %v16990_v56  ;;  %v17010_v56 = vld [vmem:[%s19169_s23 + $0x68] sm:$0xff]  }
0x173b   :  { %11032 = vmatpush1.bf16.msra.mxu0 %v16988_v5  ;;  %v17011_v5 = vld [vmem:[%s19169_s23 + $0x28] sm:$0xff]  }
0x173c   :  { %11033 = vmatprep.subr.bf16.mxu0 %v16993_v16  ;;  %v17012_v16 = vld [vmem:[%s19169_s23 + $0x70] sm:$0xff]  }
0x173f   :  { %11034 = vmatpush1.bf16.msra.mxu0 %v16991_v58  ;;  %v17013_v58 = vld [vmem:[%s19169_s23 + $0x30] sm:$0xff]  }
0x1740   :  { %11035 = vmatprep.subr.bf16.mxu0 %v16996_v12  ;;  %v17014_v12 = vld [vmem:[%s19169_s23 + $0x78] sm:$0xff]  }
0x1743   :  { %11036 = vmatpush1.bf16.msra.mxu0 %v16994_v59  ;;  %v17015_v59 = vld [vmem:[%s19169_s23 + $0x38] sm:$0xff]  }
0x1744   :  { %11037 = vmatprep.subr.bf16.mxu0 %v16999_v63  ;;  %v17016_v63 = vld [vmem:[%s19169_s23 + $0xc0] sm:$0xff]  }
0x1747   :  { %11038 = vmatpush1.bf16.msra.mxu0 %v16997_v11 }
0x174a   :  { %11040 = vmatmul.mubr.bf16.vlgmr.msra.gmra.mrb[60].mxu0 %v18873_v57 }
0x179d   :  { %v10959_v60 = vpop.f32.mrb[56].mxu0 }
0x179e   :  { %v15268_v62 = vadd.f32 %v10959_v60, %v6194_v0  ;;  %v10961_v13 = vpop.f32.mrb[57].mxu0 }
0x179f   :  { %v15270_v7 = vadd.f32 %v10961_v13, %v6198_v42  ;;  %v10963_v8 = vpop.f32.mrb[58].mxu0 }
0x17a0   :  { %v15269_v10 = vadd.f32 %v15268_v62, %v11058_v4  ;;  %v10964_v54 = vpop.f32.mrb[59].mxu0 }
0x17a1   :  { %v15271_v17 = vadd.f32 %v15270_v7, %v11062_v6 }
0x17a2   :  { %v11083_v57 = vmax.f32 %v15269_v10, 0.0 }
0x17a3   :  { %v11084_v2 = vmax.f32 %v15271_v17, 0.0 }
0x17a4   :  { %v11238_v18 = vpack.c.bf16 %v11083_v57, %v11083_v57 }
0x17a5   :  { %v11239_v21 = vpack.c.bf16 %v11084_v2, %v11084_v2 }
0x17a6   :  { %v11246_v23 = vsel %vm8060_vm8, %v11238_v18, 0 }
0x17a7   :  { %14228 = vmatprep.subr.msk.bf16.mxu1 %vm8060_vm8, %v11239_v21 }
0x17a8   :  { %11258 = vmatpush1.bf16.msra.mxu1 %v11246_v23 }
0x17ab   :  { %14229 = vmatmul.mubr.msk.bf16.vlgmr.msra.gmra.mrb[204].mxu1 %vm8056_vm9, %v11087_v14 }
0x17ac   :  { %11330 = vmatprep.mubr.bf16.mxu1 %v17148_v34 }
0x181d   :  { %v11041_v46 = vpop.f32.mrb[60].mxu0 }
0x181e   :  { %v15272_v37 = vadd.f32 %v11041_v46, %v6202_v15  ;;  %v11043_v38 = vpop.f32.mrb[61].mxu0 }
0x181f   :  { %v15274_v39 = vadd.f32 %v11043_v38, %v6206_v51  ;;  %v11045_v19 = vpop.f32.mrb[62].mxu0 }
0x1820   :  { %v15273_v61 = vadd.f32 %v15272_v37, %v11066_v30  ;;  %v11046_v33 = vpop.f32.mrb[63].mxu0 }
0x1821   :  { %v15275_v41 = vadd.f32 %v15274_v39, %v11070_v35 }
0x1822   :  { %v11085_v43 = vmax.f32 %v15273_v61, 0.0 }
0x1823   :  { %v11086_v44 = vmax.f32 %v15275_v41, 0.0 }
0x1824   :  { %v11240_v45 = vpack.c.bf16 %v11085_v43, %v11085_v43 }
0x1825   :  { %v11241_v47 = vpack.c.bf16 %v11086_v44, %v11086_v44 }
0x1826   :  { %v11252_v22 = vsel %vm8060_vm8, %v11240_v45, 0 }
0x1827   :  { %14230 = vmatprep.subr.msk.bf16.mxu1 %vm8060_vm8, %v11241_v47 }
0x1828   :  { %11299 = vmatpush1.bf16.msra.mxu1 %v11252_v22 }
0x1829   :  { %14232 = vmatprep.subr.msk.bf16.mxu1 %vm8060_vm8, %v11239_v21 }
0x182b   :  { %14231 = vmatmul.mubr.msk.bf16.vlgmr.msra.gmra.mrb[208].mxu1 %vm8056_vm9, %v11087_v14 }
0x182c   :  { %11344 = vmatpush1.bf16.msra.mxu1 %v11246_v23  ;;  %11375 = vmatprep.mubr.bf16.mxu1 %v17148_v34 }
0x182d   :  { %14234 = vmatprep.subr.msk.bf16.mxu1 %vm8060_vm8, %v11241_v47 }
0x1833   :  { %14233 = vmatmul.mubr.msk.bf16.vlgmr.msra.gmra.mrb[212].mxu1 %vm8056_vm9, %v11339_v32 }
0x1834   :  { %11385 = vmatpush1.bf16.msra.mxu1 %v11252_v22  ;;  %11416 = vmatprep.mubr.bf16.mxu1 %v17148_v34 }
0x1835   :  { %14237 = vmatprep.subr.msk.bf16.mxu1 %vm8060_vm8, %v11239_v21 }
0x183b   :  { %14235 = vmatmul.mubr.msk.bf16.vlgmr.msra.gmra.mrb[216].mxu1 %vm8056_vm9, %v11339_v32 }
0x183c   :  { %11431 = vmatpush1.bf16.msra.mxu1 %v11246_v23  ;;  %11462 = vmatprep.mubr.bf16.mxu1 %v17148_v34 }
0x183d   :  { %14239 = vmatprep.subr.msk.bf16.mxu1 %vm8060_vm8, %v11241_v47 }
0x1843   :  { %14238 = vmatmul.mubr.msk.bf16.vlgmr.msra.gmra.mrb[220].mxu1 %vm8056_vm9, %v14236_v31 }
0x1844   :  { %11472 = vmatpush1.bf16.msra.mxu1 %v11252_v22  ;;  %11503 = vmatprep.mubr.bf16.mxu1 %v17148_v34 }
0x1845   :  { %14242 = vmatprep.subr.msk.bf16.mxu1 %vm8060_vm8, %v11239_v21 }
0x184b   :  { %14240 = vmatmul.mubr.msk.bf16.vlgmr.msra.gmra.mrb[224].mxu1 %vm8056_vm9, %v14236_v31 }
0x184c   :  { %11522 = vmatpush1.bf16.msra.mxu1 %v11246_v23  ;;  %11553 = vmatprep.mubr.bf16.mxu1 %v17148_v34 }
0x184d   :  { %14244 = vmatprep.subr.msk.bf16.mxu1 %vm8060_vm8, %v11241_v47 }
0x1853   :  { %14243 = vmatmul.mubr.msk.bf16.vlgmr.msra.gmra.mrb[228].mxu1 %vm8056_vm9, %v14241_v48 }
0x1854   :  { %11563 = vmatpush1.bf16.msra.mxu1 %v11252_v22  ;;  %11594 = vmatprep.mubr.bf16.mxu1 %v17148_v34 }
0x1855   :  { %14247 = vmatprep.subr.msk.bf16.mxu1 %vm8060_vm8, %v11239_v21 }
0x185b   :  { %14245 = vmatmul.mubr.msk.bf16.vlgmr.msra.gmra.mrb[232].mxu1 %vm8056_vm9, %v14241_v48 }
0x185c   :  { %11613 = vmatpush1.bf16.msra.mxu1 %v11246_v23  ;;  %11644 = vmatprep.mubr.bf16.mxu1 %v17148_v34 }
0x185d   :  { %14249 = vmatprep.subr.msk.bf16.mxu1 %vm8060_vm8, %v11241_v47 }
0x1863   :  { %14248 = vmatmul.mubr.msk.bf16.vlgmr.msra.gmra.mrb[236].mxu1 %vm8056_vm9, %v14246_v28 }
0x1864   :  { %11654 = vmatpush1.bf16.msra.mxu1 %v11252_v22  ;;  %11685 = vmatprep.mubr.bf16.mxu1 %v17148_v34  ;;  %v17004_v34 = vld [vmem:[%s19169_s23 + $0x50] sm:$0xff]  }
0x1865   :  { %14620 = vmatprep.subr.bf16.mxu1 %v17000_v24 }
0x186b   :  { %14250 = vmatmul.mubr.msk.bf16.vlgmr.msra.gmra.mrb[240].mxu1 %vm8056_vm9, %v14246_v28 }
0x186c   :  { %14621 = vmatpush3.bf16.msra.mxu1 %v17001_v25  ;;  %v17018_v25 = vld [vmem:[%s19169_s23 + $0xc8] sm:$0xff]  }
0x186d   :  { %14622 = vmatprep.subr.bf16.mxu1 %v17002_v27 }
0x1870   :  { %14623 = vmatpush3.bf16.msra.mxu1 %v17003_v53  ;;  %v17019_v53 = vld [vmem:[%s19169_s23 + $0x88] sm:$0xff]  }
0x1871   :  { %14624 = vmatprep.subr.bf16.mxu1 %v17004_v34 }
0x1874   :  { %14625 = vmatpush3.bf16.msra.mxu1 %v17005_v1 }
0x1875   :  { %14626 = vmatprep.subr.bf16.mxu1 %v17006_v36  ;;  %v17020_v36 = vld [vmem:[%s19169_s23 + $0xd0] sm:$0xff]  }
0x1878   :  { %14627 = vmatpush3.bf16.msra.mxu1 %v17007_v55 }
0x1879   :  { %14628 = vmatprep.subr.bf16.mxu1 %v17008_v52 }
0x187c   :  { %14629 = vmatpush3.bf16.msra.mxu1 %v17009_v40 }
0x187d   :  { %14630 = vmatprep.subr.bf16.mxu1 %v17010_v56 }
0x187e   :  { %v18989_v26 = vpop.f32.mrb[204].mxu1 }
0x187f   :  { %v18991_v3 = vpop.f32.mrb[205].mxu1 }
0x1880   :  { %v11295_v49 = vpop.f32.mrb[206].mxu1  ;;  %14631 = vmatpush3.bf16.msra.mxu1 %v17011_v5  ;;  %v17021_v5 = vld [vmem:[%s19169_s23 + $0x90] sm:$0xff]  }
0x1881   :  { %v11296_v50 = vpop.f32.mrb[207].mxu1  ;;  %14632 = vmatprep.subr.bf16.mxu1 %v17012_v16  ;;  %v17022_v16 = vld [vmem:[%s19169_s23 + $0xd8] sm:$0xff]  }
0x1882   :  { %v17017_v50 = vld [vmem:[%s19169_s23 + $0x80] sm:$0xff]  }
0x1884   :  { %14633 = vmatpush3.bf16.msra.mxu1 %v17013_v58  ;;  %v17023_v58 = vld [vmem:[%s19169_s23 + $0x98] sm:$0xff]  }
0x1885   :  { %14634 = vmatprep.subr.bf16.mxu1 %v17014_v12  ;;  %v17024_v12 = vld [vmem:[%s19169_s23 + $0xe0] sm:$0xff]  }
0x1888   :  { %14635 = vmatpush3.bf16.msra.mxu1 %v17015_v59  ;;  %v17025_v59 = vld [vmem:[%s19169_s23 + $0xa0] sm:$0xff]  }
0x1889   :  { %14642 = vmatprep.subr.bf16.mxu1 %v17016_v63  ;;  %v17026_v63 = vld [vmem:[%s19169_s23 + $0xe8] sm:$0xff]  }
0x18fe   :  { %v19010_v11 = vpop.f32.mrb[208].mxu1 }
0x18ff   :  { %v19012_v29 = vpop.f32.mrb[209].mxu1 }
0x1900   :  { %v11336_v20 = vpop.f32.mrb[210].mxu1 }
0x1901   :  { %v11337_v0 = vpop.f32.mrb[211].mxu1  ;;  %v17027_v20 = vld [vmem:[%s19169_s23 + $0xa8] sm:$0xff]  }
0x1902   :  { %v17028_v0 = vld [vmem:[%s19169_s23 + $0xf0] sm:$0xff]  }
0x1906   :  { %v11377_v42 = vpop.f32.mrb[212].mxu1 }
0x1907   :  { %v11379_v4 = vpop.f32.mrb[213].mxu1 }
0x1908   :  { %v11381_v60 = vpop.f32.mrb[214].mxu1 }
0x1909   :  { %v11382_v6 = vpop.f32.mrb[215].mxu1  ;;  %v17031_v60 = vld [vmem:[%s19169_s23 + $0xb8] sm:$0xff]  }
0x190a   :  { %v17032_v6 = vld [vmem:[%s19170_s26 + $0x40] sm:$0xff]  }
0x190e   :  { %v11418_v62 = vpop.f32.mrb[216].mxu1 }
0x190f   :  { %v11420_v13 = vpop.f32.mrb[217].mxu1 }
0x1910   :  { %v11422_v7 = vpop.f32.mrb[218].mxu1 }
0x1911   :  { %v11423_v8 = vpop.f32.mrb[219].mxu1  ;;  %v17034_v7 = vld [vmem:[%s19170_s26 + $0x48] sm:$0xff]  }
0x1912   :  { %v11699_v8 = vpack.c.bf16 %v18991_v3, %v18991_v3  ;;  %v17040_v3 = vld [vmem:[%s19170_s26 + $0x60] sm:$0xff]  }
0x1916   :  { %v11464_v10 = vpop.f32.mrb[220].mxu1 }
0x1917   :  { %v11512_v54 = vmax.f32 %v11377_v42, %v11464_v10  ;;  %v11466_v17 = vpop.f32.mrb[221].mxu1  ;;  %v17029_v42 = vld [vmem:[%s19169_s23 + $0xb0] sm:$0xff]   ;;  %v17035_v10 = vld [vmem:[%s19170_s26 + $0x8] sm:$0xff]  }
0x1918   :  { %v11513_v57 = vmax.f32 %v11379_v4, %v11466_v17  ;;  %v11468_v2 = vpop.f32.mrb[222].mxu1  ;;  %v17030_v4 = vld [vmem:[%s19169_s23 + $0xf8] sm:$0xff]   ;;  %v17037_v17 = vld [vmem:[%s19170_s26 + $0x10] sm:$0xff]  }
0x1919   :  { %v11469_v18 = vpop.f32.mrb[223].mxu1  ;;  %v17039_v2 = vld [vmem:[%s19170_s26 + $0x18] sm:$0xff]  }
0x191a   :  { %v17041_v18 = vld [vmem:[%s19170_s26 + $0x20] sm:$0xff]  }
0x191e   :  { %v11505_v21 = vpop.f32.mrb[224].mxu1 }
0x191f   :  { %v11514_v23 = vmax.f32 %v11418_v62, %v11505_v21  ;;  %v11507_v14 = vpop.f32.mrb[225].mxu1  ;;  %v17033_v62 = vld [vmem:[%s19170_s26] sm:$0xff]   ;;  %v17042_v21 = vld [vmem:[%s19170_s26 + $0x68] sm:$0xff]  }
0x1920   :  { %v11515_v15 = vmax.f32 %v11420_v13, %v11507_v14  ;;  %v11509_v51 = vpop.f32.mrb[226].mxu1  ;;  %v17044_v14 = vld [vmem:[%s19170_s26 + $0x70] sm:$0xff]  }
0x1921   :  { %v11510_v30 = vpop.f32.mrb[227].mxu1  ;;  %v17046_v51 = vld [vmem:[%s19170_s26 + $0x78] sm:$0xff]  }
0x1922   :  { %v17047_v30 = vld [vmem:[%s19170_s26 + $0x38] sm:$0xff]  }
0x1926   :  { %v11555_v46 = vpop.f32.mrb[228].mxu1 }
0x1927   :  { %v11603_v35 = vmax.f32 %v11512_v54, %v11555_v46  ;;  %v11557_v37 = vpop.f32.mrb[229].mxu1  ;;  %v17036_v54 = vld [vmem:[%s19170_s26 + $0x50] sm:$0xff]   ;;  %v17048_v46 = vld [vmem:[%s19170_s26 + $0xc0] sm:$0xff]  }
0x1928   :  { %v11604_v38 = vmax.f32 %v11513_v57, %v11557_v37  ;;  %v11559_v39 = vpop.f32.mrb[230].mxu1  ;;  %v17038_v57 = vld [vmem:[%s19170_s26 + $0x58] sm:$0xff]   ;;  %v11698_v37 = vpack.c.bf16 %v18989_v26, %v18989_v26 }
0x1929   :  { %v11560_v19 = vpop.f32.mrb[231].mxu1  ;;  %v11701_v39 = vpack.c.bf16 %v19012_v29, %v19012_v29  ;;  %v17054_v26 = vld [vmem:[%s19170_s26 + $0xd8] sm:$0xff]   ;;  %v17056_v29 = vld [vmem:[%s19170_s26 + $0xe0] sm:$0xff]  }
0x192a   :  { %v17051_v19 = vld [vmem:[%s19170_s26 + $0x88] sm:$0xff]  }
0x192e   :  { %v11596_v61 = vpop.f32.mrb[232].mxu1 }
0x192f   :  { %v11605_v33 = vmax.f32 %v11514_v23, %v11596_v61  ;;  %v11598_v41 = vpop.f32.mrb[233].mxu1  ;;  %v17043_v23 = vld [vmem:[%s19170_s26 + $0x28] sm:$0xff]   ;;  %v17052_v61 = vld [vmem:[%s19170_s26 + $0xd0] sm:$0xff]  }
0x1930   :  { %v11606_v43 = vmax.f32 %v11515_v15, %v11598_v41  ;;  %v11600_v44 = vpop.f32.mrb[234].mxu1  ;;  %v17045_v15 = vld [vmem:[%s19170_s26 + $0x30] sm:$0xff]   ;;  %v17055_v41 = vld [vmem:[%s19170_s26 + $0x98] sm:$0xff]  }
0x1931   :  { %v11601_v45 = vpop.f32.mrb[235].mxu1  ;;  %v17058_v44 = vld [vmem:[%s19170_s26 + $0xe8] sm:$0xff]  }
0x1932   :  { %v17059_v45 = vld [vmem:[%s19170_s26 + $0xa8] sm:$0xff]  }
0x1936   :  { %v11646_v47 = vpop.f32.mrb[236].mxu1 }
0x1937   :  { %v11694_v22 = vmax.f32 %v11603_v35, %v11646_v47  ;;  %v11648_v32 = vpop.f32.mrb[237].mxu1  ;;  %v17049_v35 = vld [vmem:[%s19170_s26 + $0x80] sm:$0xff]   ;;  %v17060_v47 = vld [vmem:[%s19170_s26 + $0xf0] sm:$0xff]  }
0x1938   :  { %v11695_v31 = vmax.f32 %v11604_v38, %v11648_v32  ;;  %v11650_v48 = vpop.f32.mrb[238].mxu1  ;;  %v17050_v38 = vld [vmem:[%s19170_s26 + $0xc8] sm:$0xff]   ;;  %v17062_v32 = vld [vmem:[%s19170_s26 + $0xf8] sm:$0xff]  }
0x1939   :  { %v11651_v28 = vpop.f32.mrb[239].mxu1  ;;  %v11702_v24 = vpack.c.bf16 %v11694_v22, %v11694_v22  ;;  %v17061_v22 = vld [vmem:[%s19170_s26 + $0xb0] sm:$0xff]   ;;  %v11700_v48 = vpack.c.bf16 %v19010_v11, %v19010_v11  ;;  %v17067_v11 = vld [vmem:[%s19171_s1 + $0x18] sm:$0xff]  }
0x193a   :  { %v11703_v49 = vpack.c.bf16 %v11695_v31, %v11695_v31  ;;  %v17063_v31 = vld [vmem:[%s19170_s26 + $0xb8] sm:$0xff]   ;;  %v17064_v28 = vld [vmem:[%s19171_s1] sm:$0xff]  }
0x193c   :  { %11930 = vmatprep.mubr.bf16.mxu1 %v11703_v49  ;;  %v17065_v49 = vld [vmem:[%s19171_s1 + $0x8] sm:$0xff]  }
0x193d   :  { %11931 = vmatmul.mubr.bf16.vlgmr.msra.gmra.mrb[244].mxu1 %v11702_v24  ;;  %v17068_v24 = vld [vmem:[%s19171_s1 + $0x20] sm:$0xff]  }
0x193e   :  { %14643 = vmatpush3.bf16.msra.mxu1 %v17017_v50  ;;  %v11687_v27 = vpop.f32.mrb[240].mxu1  ;;  %v17066_v50 = vld [vmem:[%s19171_s1 + $0x10] sm:$0xff]  }
0x193f   :  { %v11696_v34 = vmax.f32 %v11605_v33, %v11687_v27  ;;  %v11689_v1 = vpop.f32.mrb[241].mxu1  ;;  %14644 = vmatprep.subr.bf16.mxu1 %v17018_v25  ;;  %v17053_v33 = vld [vmem:[%s19170_s26 + $0x90] sm:$0xff]   ;;  %v17069_v25 = vld [vmem:[%s19171_s1 + $0x28] sm:$0xff]  }
0x1940   :  { %v11697_v55 = vmax.f32 %v11606_v43, %v11689_v1  ;;  %v11691_v52 = vpop.f32.mrb[242].mxu1  ;;  %v17057_v43 = vld [vmem:[%s19170_s26 + $0xa0] sm:$0xff]   ;;  %v17070_v27 = vld [vmem:[%s19171_s1 + $0x30] sm:$0xff]  }
0x1941   :  { %v11692_v40 = vpop.f32.mrb[243].mxu1  ;;  %v11704_v13 = vpack.c.bf16 %v11696_v34, %v11696_v34 }
0x1942   :  { %v11705_v56 = vpack.c.bf16 %v11697_v55, %v11697_v55  ;;  %14645 = vmatpush3.bf16.msra.mxu1 %v17019_v53  ;;  %v17071_v53 = vld [vmem:[%s19171_s1 + $0x38] sm:$0xff]  }
0x1943   :  { %14646 = vmatprep.subr.bf16.mxu1 %v17020_v36 }
0x1944   :  { %11970 = vmatprep.mubr.bf16.mxu1 %v11705_v56 }
0x1946   :  { %14647 = vmatpush3.bf16.msra.mxu1 %v17021_v5 }
0x1947   :  { %14648 = vmatprep.subr.bf16.mxu1 %v17022_v16 }
0x194a   :  { %14649 = vmatpush3.bf16.msra.mxu1 %v17023_v58 }
0x194b   :  { %14650 = vmatprep.subr.bf16.mxu1 %v17024_v12 }
0x194e   :  { %14651 = vmatpush3.bf16.msra.mxu1 %v17025_v59 }
0x194f   :  { %14652 = vmatprep.subr.bf16.mxu1 %v17026_v63 }
0x1952   :  { %14653 = vmatpush3.bf16.msra.mxu1 %v17027_v20 }
0x1953   :  { %14654 = vmatprep.subr.bf16.mxu1 %v17028_v0 }
0x1956   :  { %14655 = vmatpush3.bf16.msra.mxu1 %v17029_v42 }
0x1957   :  { %14656 = vmatprep.subr.bf16.mxu1 %v17030_v4 }
0x195a   :  { %14657 = vmatpush3.bf16.msra.mxu1 %v17031_v60 }
0x195b   :  { %14664 = vmatprep.subr.bf16.mxu1 %v17032_v6 }
0x195d   :  { %11971 = vmatmul.mubr.bf16.vlgmr.msra.gmra.mrb[248].mxu1 %v11704_v13 }
0x195e   :  { %14665 = vmatpush3.bf16.msra.mxu1 %v17033_v62  ;;  %12202 = vmatprep.mubr.bf16.mxu1 %v11699_v8 }
0x195f   :  { %14666 = vmatprep.subr.bf16.mxu1 %v17034_v7  ;;  %v14315_v7 = vld [vmem:[%s19172_s28] ss:$0 sm:$0xff] }
0x1962   :  { %14667 = vmatpush3.bf16.msra.mxu1 %v17035_v10 }
0x1963   :  { %14668 = vmatprep.subr.bf16.mxu1 %v17036_v54 }
0x1966   :  { %14669 = vmatpush3.bf16.msra.mxu1 %v17037_v17 }
0x1967   :  { %14670 = vmatprep.subr.bf16.mxu1 %v17038_v57 }
0x196a   :  { %14671 = vmatpush3.bf16.msra.mxu1 %v17039_v2 }
0x196b   :  { %14672 = vmatprep.subr.bf16.mxu1 %v17040_v3 }
0x196e   :  { %14673 = vmatpush3.bf16.msra.mxu1 %v17041_v18 }
0x196f   :  { %14674 = vmatprep.subr.bf16.mxu1 %v17042_v21  ;;  %v17072_v21 = vld [vmem:[%s17355_s20] sm:$0xff]  }
0x1972   :  { %14675 = vmatpush3.bf16.msra.mxu1 %v17043_v23 }
0x1973   :  { %14676 = vmatprep.subr.bf16.mxu1 %v17044_v14  ;;  %v17073_v14 = vld [vmem:[%s17355_s20 + $0x8] ss:$0 sps:$4 sm:$0x11]  }
0x1976   :  { %14677 = vmatpush3.bf16.msra.mxu1 %v17045_v15  ;;  %v12378_v15 = vsel %vm2119_vm5, %v17073_v14, 0 }
0x1977   :  { %14678 = vmatprep.subr.bf16.mxu1 %v17046_v51  ;;  %v14316_v51 = vld [vmem:[%s19173_s2] ss:$0 sm:$0xff] }
0x197a   :  { %14679 = vmatpush3.bf16.msra.mxu1 %v17047_v30 }
0x197b   :  { %14686 = vmatprep.subr.bf16.mxu1 %v17048_v46 }
0x197d   :  { %12203 = vmatmul.mubr.bf16.vlgmr.msra.gmra.mrb[252].mxu1 %v11698_v37 }
0x197e   :  { %14687 = vmatpush3.bf16.msra.mxu1 %v17049_v35  ;;  %12242 = vmatprep.mubr.bf16.mxu1 %v11701_v39 }
0x197f   :  { %14688 = vmatprep.subr.bf16.mxu1 %v17050_v38 }
0x1982   :  { %14689 = vmatpush3.bf16.msra.mxu1 %v17051_v19 }
0x1983   :  { %14690 = vmatprep.subr.bf16.mxu1 %v17052_v61 }
0x1986   :  { %14691 = vmatpush3.bf16.msra.mxu1 %v17053_v33 }
0x1987   :  { %14692 = vmatprep.subr.bf16.mxu1 %v17054_v26 }
0x198a   :  { %14693 = vmatpush3.bf16.msra.mxu1 %v17055_v41 }
0x198b   :  { %14694 = vmatprep.subr.bf16.mxu1 %v17056_v29 }
0x198e   :  { %14695 = vmatpush3.bf16.msra.mxu1 %v17057_v43 }
0x198f   :  { %14696 = vmatprep.subr.bf16.mxu1 %v17058_v44 }
0x1992   :  { %14697 = vmatpush3.bf16.msra.mxu1 %v17059_v45 }
0x1993   :  { %14698 = vmatprep.subr.bf16.mxu1 %v17060_v47 }
0x1996   :  { %14699 = vmatpush3.bf16.msra.mxu1 %v17061_v22 }
0x1997   :  { %14700 = vmatprep.subr.bf16.mxu1 %v17062_v32 }
0x199a   :  { %14701 = vmatpush3.bf16.msra.mxu1 %v17063_v31 }
0x199b   :  { %15184 = vmatprep.subr.bf16.mxu1 %v17149_v9 }
0x199d   :  { %12243 = vmatmul.mubr.bf16.vlgmr.msra.gmra.mrb[0].mxu1 %v11700_v48 }
0x199e   :  { %15200 = vmatprep.mubr.msk.bf16.mxu1 %vm17150_vm0, %v17149_v9  ;;  %15185 = vmatpush3.bf16.msra.mxu1 %v17064_v28 }
0x199f   :  { %15186 = vmatprep.subr.bf16.mxu1 %v17149_v9 }
0x19a2   :  { %15187 = vmatpush3.bf16.msra.mxu1 %v17065_v49 }
0x19a3   :  { %15188 = vmatprep.subr.bf16.mxu1 %v17149_v9 }
0x19a6   :  { %15189 = vmatpush3.bf16.msra.mxu1 %v17066_v50 }
0x19a7   :  { %15190 = vmatprep.subr.bf16.mxu1 %v17149_v9 }
0x19aa   :  { %15191 = vmatpush3.bf16.msra.mxu1 %v17067_v11 }
0x19ab   :  { %15192 = vmatprep.subr.bf16.mxu1 %v17149_v9 }
0x19ae   :  { %15193 = vmatpush3.bf16.msra.mxu1 %v17068_v24 }
0x19af   :  { %15194 = vmatprep.subr.bf16.mxu1 %v17149_v9 }
0x19b2   :  { %15195 = vmatpush3.bf16.msra.mxu1 %v17069_v25 }
0x19b3   :  { %15196 = vmatprep.subr.bf16.mxu1 %v17149_v9 }
0x19b6   :  { %15197 = vmatpush3.bf16.msra.mxu1 %v17070_v27 }
0x19b7   :  { %15198 = vmatprep.subr.bf16.mxu1 %v17149_v9 }
0x19ba   :  { %15199 = vmatpush3.bf16.msra.mxu1 %v17071_v53 }
0x19bb   :  { %15204 = vmatprep.subr.bf16.mxu1 %v17149_v9 }
0x1a10   :  { %v14636_v34 = vpop.f32.mrb[244].mxu1 }
0x1a11   :  { %v14637_v1 = vpop.f32.mrb[245].mxu1 }
0x1a12   :  { %v14638_v36 = vadd.f32 %v14637_v1, %v14636_v34  ;;  %v14639_v55 = vpop.f32.mrb[246].mxu1 }
0x1a13   :  { %v14640_v52 = vpop.f32.mrb[247].mxu1 }
0x1a30   :  { %v14658_v40 = vpop.f32.mrb[248].mxu1 }
0x1a31   :  { %v14659_v56 = vpop.f32.mrb[249].mxu1 }
0x1a32   :  { %v14660_v5 = vadd.f32 %v14659_v56, %v14658_v40  ;;  %v14661_v16 = vpop.f32.mrb[250].mxu1 }
0x1a33   :  { %v14662_v58 = vpop.f32.mrb[251].mxu1 }
0x1a34   :  { %v11973_v12 = vadd.f32 %v14660_v5, %v14638_v36 }
0x1a50   :  { %v14680_v59 = vpop.f32.mrb[252].mxu1 }
0x1a51   :  { %v14681_v63 = vpop.f32.mrb[253].mxu1 }
0x1a52   :  { %v14682_v20 = vadd.f32 %v14681_v63, %v14680_v59  ;;  %v14683_v0 = vpop.f32.mrb[254].mxu1 }
0x1a53   :  { %v14684_v42 = vpop.f32.mrb[255].mxu1 }
0x1a54   :  { %v12205_v4 = vadd.f32 %v14682_v20, %v11973_v12 }
0x1a70   :  { %v14702_v60 = vpop.f32.mrb[0].mxu1 }
0x1a71   :  { %v14703_v6 = vpop.f32.mrb[1].mxu1 }
0x1a72   :  { %v14704_v62 = vadd.f32 %v14703_v6, %v14702_v60  ;;  %v14705_v13 = vpop.f32.mrb[2].mxu1 }
0x1a73   :  { %v14706_v8 = vpop.f32.mrb[3].mxu1 }
0x1a74   :  { %v12245_v10 = vadd.f32 %v14704_v62, %v12205_v4 }
0x1a76   :  { %v12256_v54 = vadd.f32 %v14315_v7, %v12245_v10 }
0x1a78   :  { %v12257_v17 = vadd.f32 3.0, %v12256_v54 }
0x1a7a   :  { %v12258_v57 = vmax.f32 %v12257_v17, 0.0 }
0x1a7c   :  { %v12259_v2 = vmin.f32 %v12258_v57, 6.0 }
0x1a7e   :  { %v12260_v3 = vmul.f32 %v12259_v2, %v12256_v54 }
0x1a80   :  { %v12261_v18 = vmul.f32 0.16666667, %v12260_v3 }
0x1a82   :  { %v12262_v23 = vpack.c.bf16 %v12261_v18, %v12261_v18 }
0x1a84   :  { %15201 = vmatmul.mubr.bf16.vlgmr.msra.gmra.mrb[4].mxu1 %v12262_v23 }
0x1a85   :  { %15205 = vmatpush3.bf16.msra.mxu1 %v17072_v21  ;;  %15208 = vmatprep.mubr.msk.bf16.mxu1 %vm17150_vm0, %v17149_v9 }
0x1a86   :  { %15206 = vmatprep.subr.bf16.mxu1 %v17149_v9 }
0x1a89   :  { %15207 = vmatpush3.bf16.msra.mxu1 %v12378_v15 }
0x1b57   :  { %v12351_v30 = vpop.f32.mrb[4].mxu1 }
0x1b58   :  { %v12352_v46 = vadd.f32 %v14316_v51, %v12351_v30  ;;  %v15202_v35 = vpop.f32.mrb[5].mxu1 }
0x1b59   :  { %v12354_v37 = vpop.f32.mrb[6].mxu1 }
0x1b5a   :  { %v12357_v38 = vpack.c.bf16 %v12352_v46, %v12352_v46  ;;  %v15203_v39 = vpop.f32.mrb[7].mxu1  ;;  %12427 = vst.msk [vmem:[#allocation3] sm:$0x3] %vm12426_vm10, %v12352_v46 }
0x1b5c   :  { %15209 = vmatmul.mubr.msk.bf16.vlgmr.msra.gmra.mrb[8].mxu1 %vm12373_vm11, %v12357_v38 }
0x1b5d   :  { %17093 = shalt.err (!%p17090_p4)
}
0x1b5e   :  { %s17094_s20 = scalar_lea.hbm %s17363_s4, 32 }
0x1b5f   :  { %p17095_p5 = scmp.ne.s32.totalorder %s17363_s4, %s17094_s20  ;;  %p17098_p6 = scmp.lt.u32.totalorder %s17094_s20, %s17363_s4 }
0x1b61   :  { %p17100_p7 = pnand %p17098_p6, %p17095_p5 }
0x1b63   :  { %17103 = shalt.err (!%p17100_p7)
}
0x1b64   :  { %12439 = dma.vmem_to_hbm [thread:$0]  %s12437_s7, 32, %s17363_s4, [#allocation4]   ;;  %v14325_v9 = vld [vmem:[#allocation2] ss:$0 sm:$0xff]  ;;  %vm12428_vm12 = vcmask 1024  }
0x1c2f   :  { %v12414_v19 = vpop.f32.mrb[8].mxu1 }
0x1c30   :  { %v12415_v61 = vadd.f32 %v14325_v9, %v12414_v19  ;;  %v15210_v33 = vpop.f32.mrb[9].mxu1 }
0x1c31   :  { %v12417_v26 = vpop.f32.mrb[10].mxu1 }
0x1c32   :  { %v14329_v41 = vmul.f32 -1.442695, %v12415_v61  ;;  %v15211_v29 = vpop.f32.mrb[11].mxu1 }
0x1c34   :  { %17078 = vpow2.f32 %v14329_v41 }
0x1c3e   :  { %v17079_v43 = vpop.eup %17078 }
0x1c3f   :  { %v12423_v44 = vadd.f32 1.0, %v17079_v43 }
0x1c41   :  { %17080 = vrcp.f32 %v12423_v44 }
0x1c4b   :  { %v17081_v45 = vpop.eup %17080 }
0x1c4c   :  { %12429 = vst.msk [vmem:[%s17368_s12] sm:$0x3] %vm12428_vm12, %v17081_v45 }
0x1c4d   :  { %17104 = dma.done.wait [#allocation4], 32  }
0x1c4e   :  { %17105 = vsyncadd [#allocation4], 4294967264 }
0x1c4f   :  { %12447 = vsyncpa [#allocation4], 1 }

</bundles_post_ra>
